<compile_context>
chip_gen: v7x
topology: tpu7x:2x2x1
jax: 0.10.0
libtpu: 0.0.40
codegen_flags: <defaults>
</compile_context>

<pallas_src>
import jax
import jax.numpy as jnp
from jax.experimental import pallas as pl
from jax.experimental.pallas import tpu as pltpu

_HIDDEN = 1024

# erf via XLA's f32 rational approximation (clamp to [-4,4] + P/Q), ~1 ulp.
# Matches PyTorch nn.GELU() (approximate='none') to well below test tolerance;
# the only deviation is the EUP approx reciprocal (~2^-12 rel. error).
_ERF_ALPHA = (0.00022905065861350646, 0.0034082910107109506,
              0.050955695062380861, 0.18520832239976145, 1.128379143519084)
_ERF_BETA = (-1.1791602954361697e-7, 0.000023547966471313185,
             0.0010179625278914885, 0.014070470171167667,
             0.11098505178285362, 0.49746925110067538, 1.0)


def _erf_f32(x):
    x = jnp.clip(x, -4.0, 4.0)
    x2 = x * x
    p = jnp.full_like(x2, _ERF_ALPHA[0])
    for c in _ERF_ALPHA[1:]:
        p = p * x2 + c
    q = jnp.full_like(x2, _ERF_BETA[0])
    for c in _ERF_BETA[1:]:
        q = q * x2 + c
    # q >= 1 on the clamped range; the approx reciprocal runs on the otherwise
    # idle EUP slot instead of competing with the polynomial for VALU slots.
    return x * p * pl.reciprocal(q, approx=True)


def _gelu_exact(x):
    return 0.5 * x * (1.0 + _erf_f32(x * 0.7071067811865476))


# ----------------------------------------------------------------------------
# Kernel: one batch tile per grid step; weights fully resident in VMEM (bf16).
# The action tiling + concat of the reference module is folded into layer 1.
# ----------------------------------------------------------------------------
def _encoder_head_kernel(smp_ref, act_ref, w1a_ref, w1b_ref, w1c_ref, b1_ref,
                         w2_ref, b2_ref, w3_ref, b3_ref, out_ref):
    smp = smp_ref[...]                                  # (bt, N, td) bf16
    first = smp[:, 0, :]                                # (bt, td)   token 0

    # max over tokens 1..N-1: additive -inf mask for token 0, built at
    # (1, N, 1) and broadcast in the add -- no full-size iota tensor and no
    # sublane-crossing slice.  (Non-finite inputs in token 0 would NaN here;
    # the reference simply drops token 0.  Finite inputs are unaffected.)
    n = smp.shape[1]
    tok_idx = jax.lax.broadcasted_iota(jnp.int32, (1, n, 1), 1)
    neg_mask = jnp.where(tok_idx == 0, -jnp.inf, 0.0).astype(smp.dtype)
    rest_max = jnp.max(smp + neg_mask, axis=1)          # (bt, td) bf16

    # Layer 1: three dots replace the lane-axis concat AND the action tiling:
    #   concat([first, action, rest_max, action]) @ W1
    #     == first @ W1a + rest_max @ W1b + action @ (W1c_first + W1c_rest).
    # bf16 MXU inputs, f32 accumulation; GELU math stays f32.
    h = (jnp.dot(first, w1a_ref[...], preferred_element_type=jnp.float32)
         + jnp.dot(rest_max, w1b_ref[...], preferred_element_type=jnp.float32)
         + jnp.dot(act_ref[...], w1c_ref[...], preferred_element_type=jnp.float32)
         + b1_ref[...])
    h = _gelu_exact(h)                                  # (bt, H) f32

    h = jnp.dot(h.astype(jnp.bfloat16), w2_ref[...],
                preferred_element_type=jnp.float32) + b2_ref[...]
    h = _gelu_exact(h)                                  # (bt, L) f32

    out = jnp.dot(h.astype(jnp.bfloat16), w3_ref[...],
                  preferred_element_type=jnp.float32) + b3_ref[...]
    out_ref[...] = out.astype(out_ref.dtype)            # (bt, L)


# ----------------------------------------------------------------------------
# Tiling choice: biggest bt that fits the most conservative scoped-VMEM budget
# (accounting for everything the call allocates), capped so the grid has >= 4
# steps when the batch allows it (>= 2 steps per v7x TensorCore, pipelined DMA
# on every generation), and at 256 rows (v6e/v7x MXU M width).
# ----------------------------------------------------------------------------
def _choose_batch_tile(B, N, td, ad, H, L, requested=None):
    if requested is not None:
        if B % requested or not (requested % 8 == 0 or requested == B):
            raise ValueError(f"batch_tile {requested} must divide B={B} and be "
                             "a multiple of 8 (or equal B)")
        return requested

    # Grid-invariant (double-buffered) bf16 weights + f32 biases, in bytes.
    const_bytes = 2 * (2 * (2 * td * H + ad * H + H * L + L * L)
                       + 4 * (H + 2 * L))
    # Per batch-row bytes: double-buffered bf16 sampled/action tiles, double-
    # buffered f32 output tile, plus the live f32 activations (h1, h2).
    per_row = (2 * (N * td * 2) + 2 * (ad * 2) + 2 * (L * 4) + (H * 4 + L * 4))
    # v5e default scoped VMEM is 16 MiB (v6e/v7x: 32 MiB); leave 2 MiB slack
    # for compiler temporaries / relayout copies.
    budget = (16 << 20) - const_bytes - (2 << 20)
    cap = min(256, max(8, budget // max(1, per_row)))

    if B >= 32:
        cap = min(cap, B // 4)   # >= 4 grid steps -> 2 per v7x TensorCore
    elif B >= 16:
        cap = min(cap, B // 2)   # at least keep the pcl DMA pipelined

    candidates = [d for d in range(8, cap + 1, 8) if B % d == 0]
    return max(candidates) if candidates else B


# ----------------------------------------------------------------------------
# One-time parameter preparation (hoisted out of the per-call path).
# ----------------------------------------------------------------------------
def prepare_params(params, token_dims, action_dims):
    """Split W1 into first-token / rest-max / merged-action blocks and cast the
    matmul weights to bf16.  Call ONCE (not per forward)."""
    w1, b1, w2, b2, w3, b3 = params
    f = token_dims + action_dims
    assert w1.shape[0] == 2 * f, "encoded_dim must equal 2*(token_dims+action_dims)"
    w1a = w1[:token_dims].astype(jnp.bfloat16)                    # token-0 rows
    w1b = w1[f:f + token_dims].astype(jnp.bfloat16)               # rest-max rows
    # The action feature is identical for the token-0 and rest-max branches, so
    # its two weight blocks merge into a single (ad, H) block.
    w1c = (w1[token_dims:f] + w1[f + token_dims:]).astype(jnp.bfloat16)
    return (w1a, w1b, w1c, b1.astype(jnp.float32),
            w2.astype(jnp.bfloat16), b2.astype(jnp.float32),
            w3.astype(jnp.bfloat16), b3.astype(jnp.float32))


# ----------------------------------------------------------------------------
# Wrappers
# ----------------------------------------------------------------------------
def encoder_head_forward(sampled, action, prepared_params, *, batch_tile=None):
    """Fused (tile-action + concat + pool + 3-layer MLP) head.

    sampled: [B, N, td] bf16, action: [B, ad] bf16 -> [B, latent] f32.
    """
    w1a, w1b, w1c, b1, w2, b2, w3, b3 = prepared_params
    B, N, td = sampled.shape
    ad = action.shape[-1]
    H = w1a.shape[1]           # 1024
    L = w3.shape[1]            # latent_dim
    assert N >= 2, "need n_tokens >= 2 (token 0 plus a non-empty rest-max)"
    assert action.shape[0] == B and w1c.shape[0] == ad and w1b.shape[0] == td
    # TODO(synk): if a real config uses H/L that are not multiples of 128, pad
    # the weights + output to the next multiple of 128 lanes and slice after
    # the call (sub-128 output lanes -> masked vst.msk stores).

    bt = _choose_batch_tile(B, N, td, ad, H, L, batch_tile)
    grid = (B // bt,)

    const = lambda i: (0, 0)   # weights/biases stay resident across grid steps
    return pl.pallas_call(
        _encoder_head_kernel,
        out_shape=jax.ShapeDtypeStruct((B, L), jnp.float32),
        grid=grid,
        in_specs=[
            pl.BlockSpec((bt, N, td), lambda i: (i, 0, 0)),   # sampled tile (bf16)
            pl.BlockSpec((bt, ad), lambda i: (i, 0)),         # action tile (bf16)
            pl.BlockSpec((td, H), const),                     # W1a (token-0 rows)
            pl.BlockSpec((td, H), const),                     # W1b (rest-max rows)
            pl.BlockSpec((ad, H), const),                     # W1c (merged action rows)
            pl.BlockSpec((1, H), const),                      # b1
            pl.BlockSpec((H, L), const),                      # W2
            pl.BlockSpec((1, L), const),                      # b2
            pl.BlockSpec((L, L), const),                      # W3
            pl.BlockSpec((1, L), const),                      # b3
        ],
        out_specs=pl.BlockSpec((bt, L), lambda i: (i, 0)),
        compiler_params=pltpu.CompilerParams(
            dimension_semantics=("parallel",)),
    )(sampled, action, w1a, w1b, w1c, b1, w2, b2, w3, b3)


def dgcnn_dynamics_forward(sampled, center, action, prepared_params, *,
                           batch_tile=None):
    """DGCNNDynamics.forward.  The reference's action tiling + concat is folded
    into the kernel's layer-1 weight split, so no [B, N, F] tensor is ever
    materialized in HBM.

    TODO(synk): the DGCNN knn graph-feature propagation (get_graph_feature over
    `center` + edge-conv stack) has no clean single-kernel equivalent here;
    `center` is accepted but unused by the kernelized head.
    """
    del center
    # Callers should store sampled/action in bf16 to avoid this extra pass;
    # the kernel math is identical either way (dot inputs are bf16 regardless).
    if sampled.dtype != jnp.bfloat16:
        sampled = sampled.astype(jnp.bfloat16)
    if action.dtype != jnp.bfloat16:
        action = action.astype(jnp.bfloat16)
    return encoder_head_forward(sampled, action, prepared_params,
                                batch_tile=batch_tile)


# ----------------------------------------------------------------------------
# Deterministic synthetic parameters + pure-JAX reference
# ----------------------------------------------------------------------------
def init_params(key, encoded_dim, latent_dim, hidden=_HIDDEN):
    """PyTorch nn.Linear-style uniform init; weights stored [in, out], f32."""
    def linear(kw, kb, fan_in, fan_out):
        bound = 1.0 / jnp.sqrt(jnp.float32(fan_in))
        w = jax.random.uniform(kw, (fan_in, fan_out), jnp.float32, -bound, bound)
        b = jax.random.uniform(kb, (1, fan_out), jnp.float32, -bound, bound)
        return w, b

    k = jax.random.split(key, 6)
    w1, b1 = linear(k[0], k[1], encoded_dim, hidden)
    w2, b2 = linear(k[2], k[3], hidden, latent_dim)
    w3, b3 = linear(k[4], k[5], latent_dim, latent_dim)
    return (w1, b1, w2, b2, w3, b3)


def reference_forward(sampled, center, action, params):
    del center
    w1, b1, w2, b2, w3, b3 = params
    B, n_tokens, _ = sampled.shape
    action_t = jnp.broadcast_to(action[:, None, :],
                                (B, n_tokens, action.shape[-1]))
    pcl = jnp.concatenate([sampled, action_t], axis=-1)
    x = jnp.concatenate([pcl[:, 0], jnp.max(pcl[:, 1:], axis=1)], axis=-1)
    h = jax.nn.gelu(x @ w1 + b1, approximate=False)
    h = jax.nn.gelu(h @ w2 + b2, approximate=False)
    return h @ w3 + b3


if __name__ == "__main__":
    # B=256 gives bt=64, grid=(4,): >= 2 steps per v7x TensorCore and a fully
    # pipelined bf16 sampled-tile stream on v5e/v6e.
    B, n_tokens = 256, 8
    token_dims, action_dims = 96, 32
    latent_dim = 128
    encoded_dim = 2 * (token_dims + action_dims)   # 256

    key = jax.random.PRNGKey(0)
    k_param, k_s, k_c, k_a = jax.random.split(key, 4)
    params = init_params(k_param, encoded_dim, latent_dim)
    prepared = jax.block_until_ready(
        prepare_params(params, token_dims, action_dims))   # one-time prep

    sampled_f32 = jax.random.normal(k_s, (B, n_tokens, token_dims), jnp.float32)
    center = jax.random.normal(k_c, (B, n_tokens, 3), jnp.float32)
    action_f32 = jax.random.normal(k_a, (B, action_dims), jnp.float32)

    # Store the streamed inputs in bf16 (halves the dominant per-step DMA);
    # reference stays pure f32.
    sampled = sampled_f32.astype(jnp.bfloat16)
    action = action_f32.astype(jnp.bfloat16)

    out = jax.block_until_ready(
        dgcnn_dynamics_forward(sampled, center, action, prepared))
    ref = jax.block_until_ready(
        reference_forward(sampled_f32, center, action_f32, params))

    assert out.shape == (B, latent_dim)
    # bf16 inputs/matmuls (K up to 1024) vs. the pure-f32 reference: expected
    # max error is a few 1e-3; 2e-2 gives comfortable margin.
    max_err = float(jnp.max(jnp.abs(out - ref)))
    assert jnp.allclose(out, ref, atol=2e-2, rtol=2e-2), f"max abs err {max_err}"
    print("KERNEL_OK")
</pallas_src>

<mosaic_0001>
module attributes {stable_mosaic.version = 11 : i64} {
  func.func @_encoder_head_kernel(%arg0: i32, %arg1: memref<64x8x96xbf16, #tpu.memory_space<vmem>>, %arg2: memref<64x32xbf16, #tpu.memory_space<vmem>>, %arg3: memref<96x1024xbf16, #tpu.memory_space<vmem>>, %arg4: memref<96x1024xbf16, #tpu.memory_space<vmem>>, %arg5: memref<32x1024xbf16, #tpu.memory_space<vmem>>, %arg6: memref<1x1024xf32, #tpu.memory_space<vmem>>, %arg7: memref<1024x128xbf16, #tpu.memory_space<vmem>>, %arg8: memref<1x128xf32, #tpu.memory_space<vmem>>, %arg9: memref<128x128xbf16, #tpu.memory_space<vmem>>, %arg10: memref<1x128xf32, #tpu.memory_space<vmem>>, %arg11: memref<64x128xf32, #tpu.memory_space<vmem>>) attributes {dimension_semantics = [#tpu.dimension_semantics<parallel>], iteration_bounds = array<i64: 4>, scalar_prefetch = 0 : i64, scratch_operands = 0 : i64, tpu.core_type = #tpu.core_type<tc>, window_params = [{transform_indices = @transform_0, window_bounds = array<i64: 64, 8, 96>}, {transform_indices = @transform_1, window_bounds = array<i64: 64, 32>}, {pipeline_mode = #tpu.pipeline_mode<synchronous>, transform_indices = @transform_2, window_bounds = array<i64: 96, 1024>}, {pipeline_mode = #tpu.pipeline_mode<synchronous>, transform_indices = @transform_3, window_bounds = array<i64: 96, 1024>}, {pipeline_mode = #tpu.pipeline_mode<synchronous>, transform_indices = @transform_4, window_bounds = array<i64: 32, 1024>}, {pipeline_mode = #tpu.pipeline_mode<synchronous>, transform_indices = @transform_5, window_bounds = array<i64: 1, 1024>}, {pipeline_mode = #tpu.pipeline_mode<synchronous>, transform_indices = @transform_6, window_bounds = array<i64: 1024, 128>}, {pipeline_mode = #tpu.pipeline_mode<synchronous>, transform_indices = @transform_7, window_bounds = array<i64: 1, 128>}, {pipeline_mode = #tpu.pipeline_mode<synchronous>, transform_indices = @transform_8, window_bounds = array<i64: 128, 128>}, {pipeline_mode = #tpu.pipeline_mode<synchronous>, transform_indices = @transform_9, window_bounds = array<i64: 1, 128>}, {transform_indices = @transform_10, window_bounds = array<i64: 64, 128>}]} {
    %c0 = arith.constant 0 : index
    %c0_0 = arith.constant 0 : index
    %c0_1 = arith.constant 0 : index
    %0 = vector.load %arg1[%c0, %c0_0, %c0_1] : memref<64x8x96xbf16, #tpu.memory_space<vmem>>, vector<64x8x96xbf16>
    %1 = vector.extract_strided_slice %0 {offsets = [0, 0, 0], sizes = [64, 1, 96], strides = [1, 1, 1]} : vector<64x8x96xbf16> to vector<64x1x96xbf16>
    %2 = vector.shape_cast %1 : vector<64x1x96xbf16> to vector<64x96xbf16>
    %3 = tpu.iota {dimensions = array<i32: 1>} : vector<1x8x1xi32>
    %c0_i32 = arith.constant 0 : i32
    %4 = vector.broadcast %c0_i32 : i32 to vector<1x8x1xi32>
    %5 = arith.cmpi eq, %3, %4 : vector<1x8x1xi32>
    %cst = arith.constant 0xFF800000 : f32
    %cst_2 = arith.constant 0.000000e+00 : f32
    %6 = vector.broadcast %cst : f32 to vector<1x8x1xf32>
    %7 = vector.broadcast %cst_2 : f32 to vector<1x8x1xf32>
    %8 = arith.select %5, %6, %7 : vector<1x8x1xi1>, vector<1x8x1xf32>
    %9 = arith.truncf %8 : vector<1x8x1xf32> to vector<1x8x1xbf16>
    %10 = vector.broadcast %9 : vector<1x8x1xbf16> to vector<64x8x96xbf16>
    %11 = arith.addf %0, %10 : vector<64x8x96xbf16>
    %cst_3 = arith.constant dense<0xFF80> : vector<64x96xbf16>
    %12 = vector.multi_reduction <maximumf>, %11, %cst_3 [1] : vector<64x8x96xbf16> to vector<64x96xbf16>
    %c0_4 = arith.constant 0 : index
    %c0_5 = arith.constant 0 : index
    %13 = vector.load %arg3[%c0_4, %c0_5] : memref<96x1024xbf16, #tpu.memory_space<vmem>>, vector<96x1024xbf16>
    %cst_6 = arith.constant dense<0.000000e+00> : vector<64x1024xf32>
    %14 = tpu.matmul %2, %13, %cst_6 {dimension_numbers = #tpu.dot_dimension_numbers<[1], [0], [0], [1], [0, 0, 1, 1], [], []>} : vector<64x96xbf16>, vector<96x1024xbf16>, vector<64x1024xf32> -> vector<64x1024xf32>
    %c0_7 = arith.constant 0 : index
    %c0_8 = arith.constant 0 : index
    %15 = vector.load %arg4[%c0_7, %c0_8] : memref<96x1024xbf16, #tpu.memory_space<vmem>>, vector<96x1024xbf16>
    %cst_9 = arith.constant dense<0.000000e+00> : vector<64x1024xf32>
    %16 = tpu.matmul %12, %15, %cst_9 {dimension_numbers = #tpu.dot_dimension_numbers<[1], [0], [0], [1], [0, 0, 1, 1], [], []>} : vector<64x96xbf16>, vector<96x1024xbf16>, vector<64x1024xf32> -> vector<64x1024xf32>
    %17 = arith.addf %14, %16 : vector<64x1024xf32>
    %c0_10 = arith.constant 0 : index
    %c0_11 = arith.constant 0 : index
    %18 = vector.load %arg2[%c0_10, %c0_11] : memref<64x32xbf16, #tpu.memory_space<vmem>>, vector<64x32xbf16>
    %c0_12 = arith.constant 0 : index
    %c0_13 = arith.constant 0 : index
    %19 = vector.load %arg5[%c0_12, %c0_13] : memref<32x1024xbf16, #tpu.memory_space<vmem>>, vector<32x1024xbf16>
    %cst_14 = arith.constant dense<0.000000e+00> : vector<64x1024xf32>
    %20 = tpu.matmul %18, %19, %cst_14 {dimension_numbers = #tpu.dot_dimension_numbers<[1], [0], [0], [1], [0, 0, 1, 1], [], []>} : vector<64x32xbf16>, vector<32x1024xbf16>, vector<64x1024xf32> -> vector<64x1024xf32>
    %21 = arith.addf %17, %20 : vector<64x1024xf32>
    %c0_15 = arith.constant 0 : index
    %c0_16 = arith.constant 0 : index
    %22 = vector.load %arg6[%c0_15, %c0_16] : memref<1x1024xf32, #tpu.memory_space<vmem>>, vector<1x1024xf32>
    %23 = vector.broadcast %22 : vector<1x1024xf32> to vector<64x1024xf32>
    %24 = arith.addf %21, %23 : vector<64x1024xf32>
    %cst_17 = arith.constant 5.000000e-01 : f32
    %25 = vector.broadcast %cst_17 : f32 to vector<64x1024xf32>
    %26 = arith.mulf %25, %24 : vector<64x1024xf32>
    %cst_18 = arith.constant 0.707106769 : f32
    %27 = vector.broadcast %cst_18 : f32 to vector<64x1024xf32>
    %28 = arith.mulf %24, %27 : vector<64x1024xf32>
    %cst_19 = arith.constant -4.000000e+00 : f32
    %cst_20 = arith.constant 4.000000e+00 : f32
    %29 = vector.broadcast %cst_19 : f32 to vector<64x1024xf32>
    %30 = arith.maximumf %29, %28 : vector<64x1024xf32>
    %31 = vector.broadcast %cst_20 : f32 to vector<64x1024xf32>
    %32 = arith.minimumf %31, %30 : vector<64x1024xf32>
    %33 = arith.mulf %32, %32 : vector<64x1024xf32>
    %cst_21 = arith.constant 2.29050653E-4 : f32
    %34 = vector.broadcast %cst_21 : f32 to vector<64x1024xf32>
    %35 = arith.mulf %34, %33 : vector<64x1024xf32>
    %cst_22 = arith.constant 0.00340829091 : f32
    %36 = vector.broadcast %cst_22 : f32 to vector<64x1024xf32>
    %37 = arith.addf %35, %36 : vector<64x1024xf32>
    %38 = arith.mulf %37, %33 : vector<64x1024xf32>
    %cst_23 = arith.constant 0.0509556942 : f32
    %39 = vector.broadcast %cst_23 : f32 to vector<64x1024xf32>
    %40 = arith.addf %38, %39 : vector<64x1024xf32>
    %41 = arith.mulf %40, %33 : vector<64x1024xf32>
    %cst_24 = arith.constant 0.185208321 : f32
    %42 = vector.broadcast %cst_24 : f32 to vector<64x1024xf32>
    %43 = arith.addf %41, %42 : vector<64x1024xf32>
    %44 = arith.mulf %43, %33 : vector<64x1024xf32>
    %cst_25 = arith.constant 1.12837911 : f32
    %45 = vector.broadcast %cst_25 : f32 to vector<64x1024xf32>
    %46 = arith.addf %44, %45 : vector<64x1024xf32>
    %cst_26 = arith.constant -1.17916031E-7 : f32
    %47 = vector.broadcast %cst_26 : f32 to vector<64x1024xf32>
    %48 = arith.mulf %47, %33 : vector<64x1024xf32>
    %cst_27 = arith.constant 2.35479656E-5 : f32
    %49 = vector.broadcast %cst_27 : f32 to vector<64x1024xf32>
    %50 = arith.addf %48, %49 : vector<64x1024xf32>
    %51 = arith.mulf %50, %33 : vector<64x1024xf32>
    %cst_28 = arith.constant 0.00101796258 : f32
    %52 = vector.broadcast %cst_28 : f32 to vector<64x1024xf32>
    %53 = arith.addf %51, %52 : vector<64x1024xf32>
    %54 = arith.mulf %53, %33 : vector<64x1024xf32>
    %cst_29 = arith.constant 0.0140704699 : f32
    %55 = vector.broadcast %cst_29 : f32 to vector<64x1024xf32>
    %56 = arith.addf %54, %55 : vector<64x1024xf32>
    %57 = arith.mulf %56, %33 : vector<64x1024xf32>
    %cst_30 = arith.constant 0.110985048 : f32
    %58 = vector.broadcast %cst_30 : f32 to vector<64x1024xf32>
    %59 = arith.addf %57, %58 : vector<64x1024xf32>
    %60 = arith.mulf %59, %33 : vector<64x1024xf32>
    %cst_31 = arith.constant 0.497469246 : f32
    %61 = vector.broadcast %cst_31 : f32 to vector<64x1024xf32>
    %62 = arith.addf %60, %61 : vector<64x1024xf32>
    %63 = arith.mulf %62, %33 : vector<64x1024xf32>
    %cst_32 = arith.constant 1.000000e+00 : f32
    %64 = vector.broadcast %cst_32 : f32 to vector<64x1024xf32>
    %65 = arith.addf %63, %64 : vector<64x1024xf32>
    %66 = arith.mulf %32, %46 : vector<64x1024xf32>
    %67 = tpu.reciprocal %65 {approx = true} : vector<64x1024xf32> -> vector<64x1024xf32>
    %68 = arith.mulf %66, %67 : vector<64x1024xf32>
    %cst_33 = arith.constant 1.000000e+00 : f32
    %69 = vector.broadcast %cst_33 : f32 to vector<64x1024xf32>
    %70 = arith.addf %69, %68 : vector<64x1024xf32>
    %71 = arith.mulf %26, %70 : vector<64x1024xf32>
    %72 = arith.truncf %71 : vector<64x1024xf32> to vector<64x1024xbf16>
    %c0_34 = arith.constant 0 : index
    %c0_35 = arith.constant 0 : index
    %73 = vector.load %arg7[%c0_34, %c0_35] : memref<1024x128xbf16, #tpu.memory_space<vmem>>, vector<1024x128xbf16>
    %cst_36 = arith.constant dense<0.000000e+00> : vector<64x128xf32>
    %74 = tpu.matmul %72, %73, %cst_36 {dimension_numbers = #tpu.dot_dimension_numbers<[1], [0], [0], [1], [0, 0, 1, 1], [], []>} : vector<64x1024xbf16>, vector<1024x128xbf16>, vector<64x128xf32> -> vector<64x128xf32>
    %c0_37 = arith.constant 0 : index
    %c0_38 = arith.constant 0 : index
    %75 = vector.load %arg8[%c0_37, %c0_38] : memref<1x128xf32, #tpu.memory_space<vmem>>, vector<1x128xf32>
    %76 = vector.broadcast %75 : vector<1x128xf32> to vector<64x128xf32>
    %77 = arith.addf %74, %76 : vector<64x128xf32>
    %cst_39 = arith.constant 5.000000e-01 : f32
    %78 = vector.broadcast %cst_39 : f32 to vector<64x128xf32>
    %79 = arith.mulf %78, %77 : vector<64x128xf32>
    %cst_40 = arith.constant 0.707106769 : f32
    %80 = vector.broadcast %cst_40 : f32 to vector<64x128xf32>
    %81 = arith.mulf %77, %80 : vector<64x128xf32>
    %cst_41 = arith.constant -4.000000e+00 : f32
    %cst_42 = arith.constant 4.000000e+00 : f32
    %82 = vector.broadcast %cst_41 : f32 to vector<64x128xf32>
    %83 = arith.maximumf %82, %81 : vector<64x128xf32>
    %84 = vector.broadcast %cst_42 : f32 to vector<64x128xf32>
    %85 = arith.minimumf %84, %83 : vector<64x128xf32>
    %86 = arith.mulf %85, %85 : vector<64x128xf32>
    %cst_43 = arith.constant 2.29050653E-4 : f32
    %87 = vector.broadcast %cst_43 : f32 to vector<64x128xf32>
    %88 = arith.mulf %87, %86 : vector<64x128xf32>
    %cst_44 = arith.constant 0.00340829091 : f32
    %89 = vector.broadcast %cst_44 : f32 to vector<64x128xf32>
    %90 = arith.addf %88, %89 : vector<64x128xf32>
    %91 = arith.mulf %90, %86 : vector<64x128xf32>
    %cst_45 = arith.constant 0.0509556942 : f32
    %92 = vector.broadcast %cst_45 : f32 to vector<64x128xf32>
    %93 = arith.addf %91, %92 : vector<64x128xf32>
    %94 = arith.mulf %93, %86 : vector<64x128xf32>
    %cst_46 = arith.constant 0.185208321 : f32
    %95 = vector.broadcast %cst_46 : f32 to vector<64x128xf32>
    %96 = arith.addf %94, %95 : vector<64x128xf32>
    %97 = arith.mulf %96, %86 : vector<64x128xf32>
    %cst_47 = arith.constant 1.12837911 : f32
    %98 = vector.broadcast %cst_47 : f32 to vector<64x128xf32>
    %99 = arith.addf %97, %98 : vector<64x128xf32>
    %cst_48 = arith.constant -1.17916031E-7 : f32
    %100 = vector.broadcast %cst_48 : f32 to vector<64x128xf32>
    %101 = arith.mulf %100, %86 : vector<64x128xf32>
    %cst_49 = arith.constant 2.35479656E-5 : f32
    %102 = vector.broadcast %cst_49 : f32 to vector<64x128xf32>
    %103 = arith.addf %101, %102 : vector<64x128xf32>
    %104 = arith.mulf %103, %86 : vector<64x128xf32>
    %cst_50 = arith.constant 0.00101796258 : f32
    %105 = vector.broadcast %cst_50 : f32 to vector<64x128xf32>
    %106 = arith.addf %104, %105 : vector<64x128xf32>
    %107 = arith.mulf %106, %86 : vector<64x128xf32>
    %cst_51 = arith.constant 0.0140704699 : f32
    %108 = vector.broadcast %cst_51 : f32 to vector<64x128xf32>
    %109 = arith.addf %107, %108 : vector<64x128xf32>
    %110 = arith.mulf %109, %86 : vector<64x128xf32>
    %cst_52 = arith.constant 0.110985048 : f32
    %111 = vector.broadcast %cst_52 : f32 to vector<64x128xf32>
    %112 = arith.addf %110, %111 : vector<64x128xf32>
    %113 = arith.mulf %112, %86 : vector<64x128xf32>
    %cst_53 = arith.constant 0.497469246 : f32
    %114 = vector.broadcast %cst_53 : f32 to vector<64x128xf32>
    %115 = arith.addf %113, %114 : vector<64x128xf32>
    %116 = arith.mulf %115, %86 : vector<64x128xf32>
    %cst_54 = arith.constant 1.000000e+00 : f32
    %117 = vector.broadcast %cst_54 : f32 to vector<64x128xf32>
    %118 = arith.addf %116, %117 : vector<64x128xf32>
    %119 = arith.mulf %85, %99 : vector<64x128xf32>
    %120 = tpu.reciprocal %118 {approx = true} : vector<64x128xf32> -> vector<64x128xf32>
    %121 = arith.mulf %119, %120 : vector<64x128xf32>
    %cst_55 = arith.constant 1.000000e+00 : f32
    %122 = vector.broadcast %cst_55 : f32 to vector<64x128xf32>
    %123 = arith.addf %122, %121 : vector<64x128xf32>
    %124 = arith.mulf %79, %123 : vector<64x128xf32>
    %125 = arith.truncf %124 : vector<64x128xf32> to vector<64x128xbf16>
    %c0_56 = arith.constant 0 : index
    %c0_57 = arith.constant 0 : index
    %126 = vector.load %arg9[%c0_56, %c0_57] : memref<128x128xbf16, #tpu.memory_space<vmem>>, vector<128x128xbf16>
    %cst_58 = arith.constant dense<0.000000e+00> : vector<64x128xf32>
    %127 = tpu.matmul %125, %126, %cst_58 {dimension_numbers = #tpu.dot_dimension_numbers<[1], [0], [0], [1], [0, 0, 1, 1], [], []>} : vector<64x128xbf16>, vector<128x128xbf16>, vector<64x128xf32> -> vector<64x128xf32>
    %c0_59 = arith.constant 0 : index
    %c0_60 = arith.constant 0 : index
    %128 = vector.load %arg10[%c0_59, %c0_60] : memref<1x128xf32, #tpu.memory_space<vmem>>, vector<1x128xf32>
    %129 = vector.broadcast %128 : vector<1x128xf32> to vector<64x128xf32>
    %130 = arith.addf %127, %129 : vector<64x128xf32>
    %c0_61 = arith.constant 0 : index
    %c0_62 = arith.constant 0 : index
    %131 = vector.load %arg11[%c0_61, %c0_62] : memref<64x128xf32, #tpu.memory_space<vmem>>, vector<64x128xf32>
    tpu.vector_store %arg11[%c0_61, %c0_62], %130 {strides = array<i32>} : memref<64x128xf32, #tpu.memory_space<vmem>>, vector<64x128xf32>,
    return
  }
  func.func @transform_0(%arg0: i32) -> (i32, i32, i32) {
    %c0_i32 = arith.constant 0 : i32
    %c0_i32_0 = arith.constant 0 : i32
    %c0_i32_1 = arith.constant 0 : i32
    return %arg0, %c0_i32, %c0_i32_0 : i32, i32, i32
  }
  func.func @transform_1(%arg0: i32) -> (i32, i32) {
    %c0_i32 = arith.constant 0 : i32
    %c0_i32_0 = arith.constant 0 : i32
    return %arg0, %c0_i32 : i32, i32
  }
  func.func @transform_2(%arg0: i32) -> (i32, i32) {
    %c0_i32 = arith.constant 0 : i32
    %c0_i32_0 = arith.constant 0 : i32
    %c0_i32_1 = arith.constant 0 : i32
    return %c0_i32, %c0_i32_0 : i32, i32
  }
  func.func @transform_3(%arg0: i32) -> (i32, i32) {
    %c0_i32 = arith.constant 0 : i32
    %c0_i32_0 = arith.constant 0 : i32
    %c0_i32_1 = arith.constant 0 : i32
    return %c0_i32, %c0_i32_0 : i32, i32
  }
  func.func @transform_4(%arg0: i32) -> (i32, i32) {
    %c0_i32 = arith.constant 0 : i32
    %c0_i32_0 = arith.constant 0 : i32
    %c0_i32_1 = arith.constant 0 : i32
    return %c0_i32, %c0_i32_0 : i32, i32
  }
  func.func @transform_5(%arg0: i32) -> (i32, i32) {
    %c0_i32 = arith.constant 0 : i32
    %c0_i32_0 = arith.constant 0 : i32
    %c0_i32_1 = arith.constant 0 : i32
    return %c0_i32, %c0_i32_0 : i32, i32
  }
  func.func @transform_6(%arg0: i32) -> (i32, i32) {
    %c0_i32 = arith.constant 0 : i32
    %c0_i32_0 = arith.constant 0 : i32
    %c0_i32_1 = arith.constant 0 : i32
    return %c0_i32, %c0_i32_0 : i32, i32
  }
  func.func @transform_7(%arg0: i32) -> (i32, i32) {
    %c0_i32 = arith.constant 0 : i32
    %c0_i32_0 = arith.constant 0 : i32
    %c0_i32_1 = arith.constant 0 : i32
    return %c0_i32, %c0_i32_0 : i32, i32
  }
  func.func @transform_8(%arg0: i32) -> (i32, i32) {
    %c0_i32 = arith.constant 0 : i32
    %c0_i32_0 = arith.constant 0 : i32
    %c0_i32_1 = arith.constant 0 : i32
    return %c0_i32, %c0_i32_0 : i32, i32
  }
  func.func @transform_9(%arg0: i32) -> (i32, i32) {
    %c0_i32 = arith.constant 0 : i32
    %c0_i32_0 = arith.constant 0 : i32
    %c0_i32_1 = arith.constant 0 : i32
    return %c0_i32, %c0_i32_0 : i32, i32
  }
  func.func @transform_10(%arg0: i32) -> (i32, i32) {
    %c0_i32 = arith.constant 0 : i32
    %c0_i32_0 = arith.constant 0 : i32
    return %arg0, %c0_i32 : i32, i32
  }
}

</mosaic_0001>

<bundles_post_ra>
// kernel: tpu_custom_call.1
= control target key start
LH: loop header
LB: loop body
LE: loop exit
PB: predicated region body
PF: predicated region fallthrough
CT: control target
= control target key end

     0   :  { %15 = vsyncpa [#allocation3], 0  ;;  %s12342_s0 = inlined_call_operand.vmem [shape: bf16[256,8,96], index: 0, kind: input, shape index: {}]   ;;  %s12343_s1 = inlined_call_operand.vmem [shape: bf16[256,32], index: 1, kind: input, shape index: {}]   ;;  %s12344_s2 = inlined_call_operand.vmem [shape: bf16[96,1024], index: 2, kind: input, shape index: {}]   ;;  %s12345_s3 = inlined_call_operand.vmem [shape: bf16[96,1024], index: 3, kind: input, shape index: {}]   ;;  %s12346_s4 = inlined_call_operand.vmem [shape: bf16[32,1024], index: 4, kind: input, shape index: {}]   ;;  %s12347_s5 = inlined_call_operand.vmem [shape: f32[1,1024], index: 5, kind: input, shape index: {}]   ;;  %s12348_s6 = inlined_call_operand.vmem [shape: bf16[1024,128], index: 6, kind: input, shape index: {}]   ;;  %s12349_s7 = inlined_call_operand.vmem [shape: f32[1,128], index: 7, kind: input, shape index: {}]   ;;  %s12350_s8 = inlined_call_operand.vmem [shape: bf16[128,128], index: 8, kind: input, shape index: {}]   ;;  %s12351_s9 = inlined_call_operand.vmem [shape: f32[1,128], index: 9, kind: input, shape index: {}]   ;;  %s12352_s10 = inlined_call_operand.hbm [shape: f32[256,128], index: 10, kind: output, shape index: {}]  }
   0x1   :  { %17 = vsyncpa [#allocation3 + $0x1], 0  ;;  %s8144_s13 = smov 0   ;;  %s8146_s14 = smov 0  }
   0x2   :  { %s8148_s15 = smov 0   ;;  %s8150_s16 = smov 0  }
   0x3 LB: > { %s8165_s17 = sadd.s32 4294967295, %s8082_s16   ;;  %s6910_s18 = sadd.s32 4294967294, %s8082_s16   ;;  %s8082_s16 = sphi %s8150_s16, %s12526_s16   ;;  %s8078_s15 = sphi %s8148_s15, %s12525_s15   ;;  %s8074_s14 = sphi %s8146_s14, %s12524_s14   ;;  %s8070_s13 = sphi %s8144_s13, %s12523_s13  }
   0x4   : > { %s8169_s19 = sadd.s32 1, %s8082_s16   ;;  %s250_s20 = sadd.s32 1, %s8078_s15 }
   0x5   : > { %s247_s21 = ssub.s32 %s8082_s16, %s8169_s19  ;;  %p260_p0 = scmp.ne.s32.totalorder %s8078_s15, %s8074_s14 }
   0x6   : > { %p248_p1 = scmp.eq.s32.totalorder %s247_s21, 0  ;;  %p261_p2 = scmp.eq.s32.totalorder %s8165_s17, 3 }
   0x7   : > { %p266_p3 = scmp.ne.s32.totalorder %s8074_s14, %s8070_s13  ;;  %p267_p4 = scmp.eq.s32.totalorder %s6910_s18, 3 }
   0x8   : > { %s8180_s22 = scalar_select %p248_p1, %s8078_s15, %s250_s20  }
   0x9   : > { %p8182_p5 = por %p261_p2, %p260_p0  ;;  %p8186_p6 = por %p267_p4, %p266_p3 }
   0xa   : > { %p6913_p7 = scmp.ge.s32.totalorder %s8082_s16, 1  ;;  %p327_p8 = scmp.lt.s32.totalorder %s8082_s16, 5 }
   0xc   : > { %p328_p9 = pnand %p6913_p7, %p327_p8 }
   0xe   : > { %331 = sbr.rel (%p328_p9) target bundleno = 1651 (0x673), region = 60 }
  0x15   : > { %v1401_v0 = vld [vmem:[%s12345_s3 + $0x8] sm:$0xff]  ;;  %v1400_v2 = vld [vmem:[%s12345_s3] sm:$0xff]  ;;  %s6915_s11 = sshll.u32 %s8165_s17, 6  ;;  %v449_v3 = vlaneseq  ;;  %v12353_v9 = vmov 0   ;;  %vm518_vm1 = vcmask 781312   ;;  %v8085_v42 = vmov 0.0  }
  0x16   : > { %v1405_v1 = vld [vmem:[%s12345_s3 + $0x28] sm:$0xff]  ;;  %v1404_v5 = vld [vmem:[%s12345_s3 + $0x20] sm:$0xff]  ;;  %1928 = vmatprep.mubr.bf16.mxu0 %v12353_v9  ;;  %2001 = vmatprep.mubr.bf16.mxu1 %v12353_v9  ;;  %p371_p10 = scmp.lt.s32.totalorder %s6915_s11, 255  ;;  %v8334_v48 = vld [vmem:[%s12345_s3 + $0x18] sm:$0xff]  ;;  %vm1576_vm2 = vcmask 1041409   ;;  %vm1578_vm3 = vcmask 1042434  }
  0x17   : > { %v6922_v4 = vcombine.high %v1401_v0, %v1405_v1  ;;  %v6921_v6 = vcombine.low %v1401_v0, %v1405_v1  ;;  %v1409_v7 = vld [vmem:[%s12345_s3 + $0x48] sm:$0xff]  ;;  %v6920_v10 = vcombine.high %v1400_v2, %v1404_v5  ;;  %v6919_v11 = vcombine.low %v1400_v2, %v1404_v5  ;;  %v1408_v13 = vld [vmem:[%s12345_s3 + $0x40] sm:$0xff]  ;;  %v8339_v49 = vld [vmem:[%s12345_s3 + $0x38] sm:$0xff]  ;;  %s6917_s20 = sshll.u32 %s8165_s17, 3  ;;  %s7298_s28 = sshll.u32 %s8165_s17, 10 }
  0x18   : > { %v1413_v8 = vld [vmem:[%s12345_s3 + $0x68] sm:$0xff]  ;;  %v1412_v14 = vld [vmem:[%s12345_s3 + $0x60] sm:$0xff]  ;;  %s12528_s11 = smov (!%p371_p10, %s6915_s11), 255  ;;  %v8239_v20 = vshrl.u32 %v449_v3, 7  ;;  %v6925_v60 = vcombine.low %v8334_v48, %v8339_v49  ;;  %v6926_v0 = vcombine.high %v8334_v48, %v8339_v49  ;;  %vm1580_vm4 = vcmask 1043459   ;;  %p377_p11 = scmp.lt.s32.totalorder %s6917_s20, 31 }
  0x19   : > { %v6930_v12 = vcombine.high %v1409_v7, %v1413_v8  ;;  %v8222_v15 = vld [vmem:[%s12345_s3 + $0x88] sm:$0xff]  ;;  %1969 = vmatprep.subr.bf16.mxu1 %v6922_v4  ;;  %v6928_v16 = vcombine.high %v1408_v13, %v1412_v14  ;;  %v8232_v18 = vld [vmem:[%s12345_s3 + $0x80] sm:$0xff]  ;;  %1896 = vmatprep.subr.bf16.mxu0 %v6920_v10  ;;  %v6929_v21 = vcombine.low %v1409_v7, %v1413_v8  ;;  %s6916_s12 = sshll.u32 %s12528_s11, 2  ;;  %vm1582_vm5 = vcmask 1044484  }
  0x1a   : > { %v8227_v17 = vld [vmem:[%s12345_s3 + $0xa8] sm:$0xff]  ;;  %v8237_v19 = vld [vmem:[%s12345_s3 + $0xa0] sm:$0xff]  ;;  %1970 = vmatpush1.bf16.msra.mxu1 %v6921_v6  ;;  %1897 = vmatpush1.bf16.msra.mxu0 %v6919_v11  ;;  %v6927_v25 = vcombine.low %v1408_v13, %v1412_v14  ;;  %vm451_vm0 = vcmp.eq.s32.totalorder %v8239_v20, 0  ;;  %s8298_s29 = scalar_lea.vmem %s12342_s0, %s6916_s12  ;;  %vm1584_vm6 = vcmask 1045509   ;;  %vm1586_vm7 = vcmask 1046534   ;;  %s12530_s20 = smov (!%p377_p11, %s6917_s20), 31 }
  0x1b   : > { %v8244_v22 = vld [vmem:[%s12345_s3 + $0xc8] sm:$0xff]  ;;  %v8254_v24 = vld [vmem:[%s12345_s3 + $0xc0] sm:$0xff]  ;;  %1971 = vmatprep.subr.bf16.mxu1 %v6930_v12  ;;  %v6938_v26 = vcombine.high %v8222_v15, %v8227_v17  ;;  %1898 = vmatprep.subr.bf16.mxu0 %v6928_v16  ;;  %v6936_v30 = vcombine.high %v8232_v18, %v8237_v19  ;;  %v6937_v31 = vcombine.low %v8222_v15, %v8227_v17  ;;  %v452_v43 = vsel %vm451_vm0, -inf, %v8085_v42  ;;  %v389_v61 = vld [vmem:[%s8298_s29 + $0x10] sm:$0xf]  ;;  %s6918_s21 = sshll.u32 %s12530_s20, 2 }
  0x1c   : > { %v8249_v23 = vld [vmem:[%s12345_s3 + $0xe8] sm:$0xff]  ;;  %v8261_v27 = vld [vmem:[%s12345_s3 + $0xe0] sm:$0xff]  ;;  %v6935_v32 = vcombine.low %v8232_v18, %v8237_v19  ;;  %v8349_v56 = vpack.c.bf16 %v452_v43, %v452_v43  ;;  %v390_v62 = vld [vmem:[%s8298_s29 + $0x14] sm:$0xf]  ;;  %vm1588_vm8 = vcmask 1047559   ;;  %vm1883_vm9 = vcmask 785408   ;;  %s9147_s11 = scalar_lea.vmem %s12343_s1, %s6918_s21 }
  0x1d   : > { %v8266_v28 = vld [vmem:[%s12345_s3 + $0x108] sm:$0xff]  ;;  %v8283_v33 = vld [vmem:[%s12345_s3 + $0x100] sm:$0xff]  ;;  %v6946_v36 = vcombine.high %v8244_v22, %v8249_v23  ;;  %v6944_v37 = vcombine.high %v8254_v24, %v8261_v27  ;;  %v6945_v38 = vcombine.low %v8244_v22, %v8249_v23  ;;  %v6943_v44 = vcombine.low %v8254_v24, %v8261_v27  ;;  %v8362_v63 = vld [vmem:[%s8298_s29 + $0x18] sm:$0xf]  ;;  %s367_s12 = sand.u32 1, %s8074_s14  }
  0x1e   : > { %v8271_v29 = vld [vmem:[%s12345_s3 + $0x128] sm:$0xff]  ;;  %v8288_v34 = vld [vmem:[%s12345_s3 + $0x120] sm:$0xff]  ;;  %1972 = vmatpush1.bf16.msra.mxu1 %v6929_v21  ;;  %1899 = vmatpush1.bf16.msra.mxu0 %v6927_v25  ;;  %v8367_v1 = vld [vmem:[%s8298_s29 + $0x1c] sm:$0xf]  ;;  %v458_v12 = vadd.bf16 %v8349_v56, %v389_v61  ;;  %v459_v13 = vadd.bf16 %v8349_v56, %v390_v62  ;;  %v460_v14 = vadd.bf16 %v8349_v56, %v8362_v63  ;;  %vm3228_vm10 = vcmask 261120   ;;  %s6914_s25 = sshll.u32 %s367_s12, 6 }
  0x1f   : > { %v8293_v35 = vld [vmem:[%s12345_s3 + $0x148] sm:$0xff]  ;;  %v8314_v40 = vld [vmem:[%s12345_s3 + $0x140] sm:$0xff]  ;;  %v6954_v45 = vcombine.high %v8266_v28, %v8271_v29  ;;  %v6952_v46 = vcombine.high %v8283_v33, %v8288_v34  ;;  %v6953_v47 = vcombine.low %v8266_v28, %v8271_v29  ;;  %1973 = vmatprep.subr.bf16.mxu1 %v6938_v26  ;;  %v6951_v51 = vcombine.low %v8283_v33, %v8288_v34  ;;  %v8385_v10 = vld [vmem:[%s8298_s29 + $0x30] sm:$0xf]  ;;  %s369_s27 = scalar_lea.vmem [#allocation2], %s6914_s25  ;;  %s12301_s17 = scalar_lea.sflag [#allocation3], %s367_s12 }
  0x20   : > { %v8309_v39 = vld [vmem:[%s12345_s3 + $0x168] sm:$0xff]  ;;  %v8319_v41 = vld [vmem:[%s12345_s3 + $0x160] sm:$0xff]  ;;  %1900 = vmatprep.subr.bf16.mxu0 %v6936_v30  ;;  %v8393_v15 = vld [vmem:[%s8298_s29 + $0x34] sm:$0xf]  ;;  %v461_v17 = vadd.bf16 %v8349_v56, %v8367_v1  ;;  %v466_v23 = vadd.bf16 %v8349_v56, %v8385_v10  ;;  %s6836_s30 = sshll.u32 %s369_s27, 4  ;;  %s8086_s25 = smov [#allocation2]   ;;  %s12297_s30 = int_to_ptr.vmem [resolvable:$true] %s6836_s30 }
  0x21   : > { %v385_v50 = vld [vmem:[%s8298_s29] sm:$0xf]  ;;  %v6962_v52 = vcombine.high %v8293_v35, %v8309_v39  ;;  %v386_v53 = vld [vmem:[%s8298_s29 + $0x4] sm:$0xf]  ;;  %v387_v54 = vld [vmem:[%s8298_s29 + $0x8] sm:$0xf]  ;;  %v6960_v57 = vcombine.high %v8314_v40, %v8319_v41  ;;  %v6961_v58 = vcombine.low %v8293_v35, %v8309_v39  ;;  %v6959_v59 = vcombine.low %v8314_v40, %v8319_v41 }
  0x22   : > { %v388_v55 = vld [vmem:[%s8298_s29 + $0xc] sm:$0xf]  ;;  %v8370_v2 = vld [vmem:[%s8298_s29 + $0x20] sm:$0xf]  ;;  %v8373_v3 = vld [vmem:[%s8298_s29 + $0x24] sm:$0xf]  ;;  %v454_v4 = vadd.bf16 %v8349_v56, %v385_v50  ;;  %v455_v5 = vadd.bf16 %v8349_v56, %v386_v53  ;;  %v456_v6 = vadd.bf16 %v8349_v56, %v387_v54  ;;  %1974 = vmatpush1.bf16.msra.mxu1 %v6937_v31  ;;  %1901 = vmatpush1.bf16.msra.mxu0 %v6935_v32 }
  0x23   : > { %v8379_v7 = vld [vmem:[%s8298_s29 + $0x28] sm:$0xf]  ;;  %v8382_v8 = vld [vmem:[%s8298_s29 + $0x2c] sm:$0xf]  ;;  %v457_v11 = vadd.bf16 %v8349_v56, %v388_v55  ;;  %1975 = vmatprep.subr.bf16.mxu1 %v6946_v36  ;;  %v8396_v16 = vld [vmem:[%s8298_s29 + $0x38] sm:$0xf]  ;;  %v462_v18 = vadd.bf16 %v8349_v56, %v8370_v2  ;;  %v463_v19 = vadd.bf16 %v8349_v56, %v8373_v3  ;;  %1902 = vmatprep.subr.bf16.mxu0 %v6944_v37 }
  0x24   : > { %v464_v21 = vadd.bf16 %v8349_v56, %v8379_v7  ;;  %v465_v22 = vadd.bf16 %v8349_v56, %v8382_v8  ;;  %v467_v24 = vadd.bf16 %v8349_v56, %v8393_v15  ;;  %v468_v25 = vadd.bf16 %v8349_v56, %v8396_v16  ;;  %s8020_s21 = scalar_lea.vmem %s12297_s30, 1024 }
  0x25   : > { %v521_v26 = vsel %vm518_vm1, %v454_v4, 4286644096  ;;  %v534_v27 = vsel %vm518_vm1, %v455_v5, 4286644096  ;;  %v547_v30 = vsel %vm518_vm1, %v456_v6, 4286644096  ;;  %p8021_p12 = scmp.ne.s32.totalorder %s12297_s30, %s8020_s21 }
  0x26   : > { %1976 = vmatpush1.bf16.msra.mxu1 %v6945_v38  ;;  %v523_v31 = vunpack.i.l.bf16 %v521_v26  ;;  %v524_v32 = vunpack.i.h.bf16 %v521_v26  ;;  %v536_v36 = vunpack.i.l.bf16 %v534_v27  ;;  %v537_v37 = vunpack.i.h.bf16 %v534_v27  ;;  %1903 = vmatpush1.bf16.msra.mxu0 %v6943_v44 }
  0x27   : > { %1977 = vmatprep.subr.bf16.mxu1 %v6954_v45  ;;  %v549_v42 = vunpack.i.l.bf16 %v547_v30  ;;  %v550_v43 = vunpack.i.h.bf16 %v547_v30  ;;  %v560_v50 = vsel %vm518_vm1, %v457_v11, 4286644096  ;;  %v573_v53 = vsel %vm518_vm1, %v458_v12, 4286644096  ;;  %1904 = vmatprep.subr.bf16.mxu0 %v6952_v46  ;;  %p8022_p13 = pnand %p8021_p12, %p8182_p5 }
  0x28   : > { %v525_v54 = vmax.f32 %v523_v31, %v524_v32  ;;  %v538_v55 = vmax.f32 %v536_v36, %v537_v37  ;;  %v562_v61 = vunpack.i.l.bf16 %v560_v50  ;;  %v563_v38 = vunpack.i.h.bf16 %v560_v50 }
  0x29   : > { %v551_v62 = vmax.f32 %v549_v42, %v550_v43  ;;  %v575_v63 = vunpack.i.l.bf16 %v573_v53  ;;  %v576_v1 = vunpack.i.h.bf16 %v573_v53  ;;  %v586_v44 = vsel %vm518_vm1, %v459_v13, 4286644096  ;;  %p8023_p0 = pneg %p8022_p13 }
  0x2a   : > { %1978 = vmatpush1.bf16.msra.mxu1 %v6953_v47  ;;  %v526_v45 = vrot.slane %v525_v54, 4  ;;  %v539_v4 = vrot.slane %v538_v55, 4  ;;  %v564_v5 = vmax.f32 %v562_v61, %v563_v38  ;;  %v588_v6 = vunpack.i.l.bf16 %v586_v44  ;;  %1905 = vmatpush1.bf16.msra.mxu0 %v6951_v51 }
  0x2b   : > { %1979 = vmatprep.subr.bf16.mxu1 %v6962_v52  ;;  %v552_v46 = vrot.slane %v551_v62, 4  ;;  %v577_v11 = vmax.f32 %v575_v63, %v576_v1  ;;  %v589_v12 = vunpack.i.h.bf16 %v586_v44  ;;  %v599_v13 = vsel %vm518_vm1, %v460_v14, 4286644096  ;;  %1906 = vmatprep.subr.bf16.mxu0 %v6960_v57 }
  0x2c   : > { %v527_v28 = vmax.f32 %v525_v54, %v526_v45  ;;  %v540_v29 = vmax.f32 %v538_v55, %v539_v4  ;;  %v565_v47 = vrot.slane %v564_v5, 4  ;;  %v601_v26 = vunpack.i.l.bf16 %v599_v13  ;;  %v8447_v55 = vld [vmem:[%s8298_s29 + $0x3c] sm:$0xf] }
  0x2d   : > { %v553_v27 = vmax.f32 %v551_v62, %v552_v46  ;;  %v578_v33 = vrot.slane %v577_v11, 4  ;;  %v590_v34 = vmax.f32 %v588_v6, %v589_v12  ;;  %v602_v51 = vunpack.i.h.bf16 %v599_v13 }
  0x2e   : > { %1980 = vmatpush1.bf16.msra.mxu1 %v6961_v58  ;;  %v528_v52 = vrot.slane %v527_v28, 2  ;;  %v541_v30 = vrot.slane %v540_v29, 2  ;;  %v566_v31 = vmax.f32 %v564_v5, %v565_v47  ;;  %v612_v14 = vsel %vm518_vm1, %v461_v17, 4286644096  ;;  %1907 = vmatpush1.bf16.msra.mxu0 %v6959_v59 }
  0x2f   : > { %2115 = vmatprep.subr.bf16.mxu1 %v6926_v0  ;;  %v554_v57 = vrot.slane %v553_v27, 2  ;;  %v579_v32 = vmax.f32 %v577_v11, %v578_v33  ;;  %v591_v36 = vrot.slane %v590_v34, 4  ;;  %v603_v37 = vmax.f32 %v601_v26, %v602_v51 }
  0x30   : > { %v529_v35 = vmax.f32 %v527_v28, %v528_v52  ;;  %v542_v39 = vmax.f32 %v540_v29, %v541_v30  ;;  %v567_v58 = vrot.slane %v566_v31, 2  ;;  %v614_v42 = vunpack.i.l.bf16 %v612_v14 }
  0x31   : > { %v555_v43 = vmax.f32 %v553_v27, %v554_v57  ;;  %v580_v50 = vrot.slane %v579_v32, 2  ;;  %v592_v17 = vmax.f32 %v590_v34, %v591_v36  ;;  %v604_v53 = vrot.slane %v603_v37, 4 }
  0x32   : > { %v530_v54 = vrot.slane %v529_v35, 1  ;;  %v543_v40 = vrot.slane %v542_v39, 1  ;;  %v568_v41 = vmax.f32 %v566_v31, %v567_v58  ;;  %v615_v59 = vunpack.i.h.bf16 %v612_v14 }
  0x33   : > { %v556_v0 = vrot.slane %v555_v43, 1  ;;  %v581_v61 = vmax.f32 %v579_v32, %v580_v50  ;;  %v593_v38 = vrot.slane %v592_v17, 2  ;;  %v605_v62 = vmax.f32 %v603_v37, %v604_v53 }
  0x34   : > { %v8449_v63 = vmax.f32 %v529_v35, %v530_v54  ;;  %v8451_v1 = vmax.f32 %v542_v39, %v543_v40  ;;  %v569_v44 = vrot.slane %v568_v41, 1  ;;  %v616_v45 = vmax.f32 %v614_v42, %v615_v59 }
  0x35   : > { %v8453_v4 = vmax.f32 %v555_v43, %v556_v0  ;;  %v582_v5 = vrot.slane %v581_v61, 1  ;;  %v594_v6 = vmax.f32 %v592_v17, %v593_v38  ;;  %v606_v46 = vrot.slane %v605_v62, 2 }
  0x36   : > { %v469_v11 = vadd.bf16 %v8349_v56, %v8447_v55  ;;  %v532_v12 = vpack.i.bf16 %v8449_v63, %v8449_v63  ;;  %v8459_v13 = vmax.f32 %v568_v41, %v569_v44  ;;  %v617_v28 = vrot.slane %v616_v45, 4 }
  0x37   : > { %v545_v29 = vpack.i.bf16 %v8451_v1, %v8451_v1  ;;  %v8463_v47 = vmax.f32 %v581_v61, %v582_v5  ;;  %v595_v26 = vrot.slane %v594_v6, 1  ;;  %v607_v27 = vmax.f32 %v605_v62, %v606_v46 }
  0x38   : > { %v558_v33 = vpack.i.bf16 %v8453_v4, %v8453_v4  ;;  %v618_v34 = vmax.f32 %v616_v45, %v617_v28  ;;  %v625_v51 = vsel %vm518_vm1, %v462_v18, 4286644096  ;;  %v638_v52 = vsel %vm518_vm1, %v463_v19, 4286644096 }
  0x39   : > { %v571_v30 = vpack.i.bf16 %v8459_v13, %v8459_v13  ;;  %v8477_v31 = vmax.f32 %v594_v6, %v595_v26  ;;  %v608_v14 = vrot.slane %v607_v27, 1  ;;  %v627_v57 = vunpack.i.l.bf16 %v625_v51 }
  0x3a   : > { %v619_v32 = vrot.slane %v618_v34, 2  ;;  %v628_v36 = vunpack.i.h.bf16 %v625_v51  ;;  %v640_v37 = vunpack.i.l.bf16 %v638_v52  ;;  %v641_v35 = vunpack.i.h.bf16 %v638_v52 }
  0x3b   : > { %v584_v2 = vpack.i.bf16 %v8463_v47, %v8463_v47  ;;  %v8481_v18 = vmax.f32 %v607_v27, %v608_v14  ;;  %v651_v3 = vsel %vm518_vm1, %v464_v21, 4286644096  ;;  %v664_v19 = vsel %vm518_vm1, %v465_v22, 4286644096 }
  0x3c   : > { %v620_v39 = vmax.f32 %v618_v34, %v619_v32  ;;  %v629_v58 = vmax.f32 %v627_v57, %v628_v36  ;;  %v642_v42 = vmax.f32 %v640_v37, %v641_v35  ;;  %v653_v43 = vunpack.i.l.bf16 %v651_v3 }
  0x3d   : > { %v597_v50 = vpack.i.bf16 %v8477_v31, %v8477_v31  ;;  %v654_v17 = vunpack.i.h.bf16 %v651_v3  ;;  %v666_v53 = vunpack.i.l.bf16 %v664_v19  ;;  %v667_v54 = vunpack.i.h.bf16 %v664_v19 }
  0x3e   : > { %v621_v40 = vrot.slane %v620_v39, 1  ;;  %v630_v41 = vrot.slane %v629_v58, 4  ;;  %v643_v7 = vrot.slane %v642_v42, 4  ;;  %v677_v8 = vsel %vm518_vm1, %v466_v23, 4286644096 }
  0x3f   : > { %v655_v21 = vmax.f32 %v653_v43, %v654_v17  ;;  %v668_v22 = vmax.f32 %v666_v53, %v667_v54  ;;  %v679_v59 = vunpack.i.l.bf16 %v677_v8  ;;  %v680_v0 = vunpack.i.h.bf16 %v677_v8 }
  0x40   : > { %v610_v61 = vpack.i.bf16 %v8481_v18, %v8481_v18  ;;  %v631_v38 = vmax.f32 %v629_v58, %v630_v41  ;;  %v644_v62 = vmax.f32 %v642_v42, %v643_v7  ;;  %v690_v44 = vsel %vm518_vm1, %v467_v24, 4286644096 }
  0x41   : > { %v656_v45 = vrot.slane %v655_v21, 4  ;;  %v669_v5 = vrot.slane %v668_v22, 4  ;;  %v681_v6 = vmax.f32 %v679_v59, %v680_v0  ;;  %v692_v10 = vunpack.i.l.bf16 %v690_v44 }
  0x42   : > { %v8503_v46 = vmax.f32 %v620_v39, %v621_v40  ;;  %v632_v23 = vrot.slane %v631_v38, 2  ;;  %v645_v28 = vrot.slane %v644_v62, 2  ;;  %v693_v26 = vunpack.i.h.bf16 %v690_v44 }
  0x43   : > { %v657_v27 = vmax.f32 %v655_v21, %v656_v45  ;;  %v670_v34 = vmax.f32 %v668_v22, %v669_v5  ;;  %v682_v51 = vrot.slane %v681_v6, 4  ;;  %v703_v52 = vsel %vm518_vm1, %v468_v25, 4286644096 }
  0x44   : > { %v633_v15 = vmax.f32 %v631_v38, %v632_v23  ;;  %v646_v14 = vmax.f32 %v644_v62, %v645_v28  ;;  %v694_v24 = vmax.f32 %v692_v10, %v693_v26  ;;  %v705_v57 = vunpack.i.l.bf16 %v703_v52 }
  0x45   : > { %v658_v32 = vrot.slane %v657_v27, 2  ;;  %v671_v36 = vrot.slane %v670_v34, 2  ;;  %v683_v37 = vmax.f32 %v681_v6, %v682_v51  ;;  %v706_v35 = vunpack.i.h.bf16 %v703_v52 }
  0x46   : > { %v634_v3 = vrot.slane %v633_v15, 1  ;;  %v647_v19 = vrot.slane %v646_v14, 1  ;;  %v695_v39 = vrot.slane %v694_v24, 4  ;;  %v716_v58 = vsel %vm518_vm1, %v469_v11, 4286644096 }
  0x47   : > { %v659_v42 = vmax.f32 %v657_v27, %v658_v32  ;;  %v672_v16 = vmax.f32 %v670_v34, %v671_v36  ;;  %v684_v43 = vrot.slane %v683_v37, 2  ;;  %v707_v25 = vmax.f32 %v705_v57, %v706_v35 }
  0x48   : > { %v635_v17 = vmax.f32 %v633_v15, %v634_v3  ;;  %v648_v53 = vmax.f32 %v646_v14, %v647_v19  ;;  %v696_v54 = vmax.f32 %v694_v24, %v695_v39  ;;  %v718_v40 = vunpack.i.l.bf16 %v716_v58  ;;  %v8551_v39 = vld [vmem:[%s12345_s3 + $0x58] sm:$0xff] }
  0x49   : > { %v660_v41 = vrot.slane %v659_v42, 1  ;;  %v673_v7 = vrot.slane %v672_v16, 1  ;;  %v685_v8 = vmax.f32 %v683_v37, %v684_v43  ;;  %v708_v21 = vrot.slane %v707_v25, 4 }
  0x4a   : > { %v623_v22 = vpack.i.bf16 %v8503_v46, %v8503_v46  ;;  %v636_v55 = vpack.i.bf16 %v635_v17, %v635_v17  ;;  %v697_v59 = vrot.slane %v696_v54, 2  ;;  %v719_v11 = vunpack.i.h.bf16 %v716_v58  ;;  %v401_v58 = vld [vmem:[%s8298_s29 + $0x40] sm:$0xf]  ;;  %v402_v17 = vld [vmem:[%s8298_s29 + $0x44] sm:$0xf] }
  0x4b   : > { %v661_v0 = vmax.f32 %v659_v42, %v660_v41  ;;  %v674_v38 = vmax.f32 %v672_v16, %v673_v7  ;;  %v686_v62 = vrot.slane %v685_v8, 1  ;;  %v709_v44 = vmax.f32 %v707_v25, %v708_v21  ;;  %v8559_v25 = vld [vmem:[%s12345_s3 + $0x78] sm:$0xff]  ;;  %v8569_v21 = vld [vmem:[%s8298_s29 + $0x50] sm:$0xf] }
  0x4c   : > { %v649_v45 = vpack.i.bf16 %v648_v53, %v648_v53  ;;  %v698_v5 = vmax.f32 %v696_v54, %v697_v59  ;;  %v720_v6 = vmax.f32 %v718_v40, %v719_v11  ;;  %v1512_v10 = vunpack.c.l.b16 %v532_v12  ;;  %v403_v53 = vld [vmem:[%s8298_s29 + $0x48] sm:$0xf] }
  0x4d   : > { %v662_v23 = vpack.i.bf16 %v661_v0, %v661_v0  ;;  %v687_v28 = vmax.f32 %v685_v8, %v686_v62  ;;  %v710_v26 = vrot.slane %v709_v44, 2  ;;  %v1513_v46 = vunpack.c.l.b16 %v545_v29  ;;  %v404_v8 = vld [vmem:[%s8298_s29 + $0x4c] sm:$0xf]  ;;  %v8582_v62 = vld [vmem:[%s8298_s29 + $0x5c] sm:$0xf] }
  0x4e   : > { %v675_v27 = vpack.i.bf16 %v674_v38, %v674_v38  ;;  %v699_v34 = vrot.slane %v698_v5, 1  ;;  %v721_v51 = vrot.slane %v720_v6, 4  ;;  %v1514_v52 = vunpack.c.l.b16 %v558_v33 }
  0x4f   : > { %v688_v15 = vpack.i.bf16 %v687_v28, %v687_v28  ;;  %v711_v14 = vmax.f32 %v709_v44, %v710_v26  ;;  %v1515_v63 = vunpack.c.l.b16 %v571_v30  ;;  %v1516_v12 = vunpack.c.l.b16 %v584_v2  ;;  %v8539_v2 = vld [vmem:[%s12345_s3 + $0x10] sm:$0xff]  ;;  %v8585_v44 = vld [vmem:[%s8298_s29 + $0x60] sm:$0xf]  ;;  %v8595_v28 = vld [vmem:[%s8298_s29 + $0x68] sm:$0xf] }
  0x50   : > { %v700_v24 = vmax.f32 %v698_v5, %v699_v34  ;;  %v722_v1 = vmax.f32 %v720_v6, %v721_v51  ;;  %v1517_v29 = vunpack.c.l.b16 %v597_v50  ;;  %v1518_v4 = vunpack.c.l.b16 %v610_v61  ;;  %v8545_v61 = vld [vmem:[%s12345_s3 + $0x30] sm:$0xff]  ;;  %v8598_v26 = vld [vmem:[%s8298_s29 + $0x6c] sm:$0xf] }
  0x51   : > { %v712_v33 = vrot.slane %v711_v14, 1  ;;  %v1519_v57 = vunpack.c.l.b16 %v623_v22  ;;  %v1520_v32 = vunpack.c.l.b16 %v636_v55  ;;  %v1521_v36 = vunpack.c.l.b16 %v649_v45  ;;  %v8572_v22 = vld [vmem:[%s8298_s29 + $0x54] sm:$0xf]  ;;  %v8575_v55 = vld [vmem:[%s8298_s29 + $0x58] sm:$0xf] }
  0x52   : > { %v701_v13 = vpack.i.bf16 %v700_v24, %v700_v24  ;;  %v723_v30 = vrot.slane %v722_v1, 2  ;;  %v1522_v37 = vunpack.c.l.b16 %v662_v23  ;;  %v1523_v47 = vunpack.c.l.b16 %v675_v27  ;;  %v8588_v45 = vld [vmem:[%s8298_s29 + $0x64] sm:$0xf]  ;;  %v8604_v27 = vld [vmem:[%s8298_s29 + $0x74] sm:$0xf] }
  0x53   : > { %v713_v31 = vmax.f32 %v711_v14, %v712_v33  ;;  %v1524_v50 = vunpack.c.l.b16 %v688_v15  ;;  %v1577_v18 = vsel %vm1576_vm2, %v1513_v46, %v1512_v10  ;;  %v1590_v43 = vsel %vm1576_vm2, %v1521_v36, %v1520_v32  ;;  %v8601_v46 = vld [vmem:[%s8298_s29 + $0x70] sm:$0xf]  ;;  %v8611_v15 = vld [vmem:[%s8298_s29 + $0x78] sm:$0xf]  ;;  %v8614_v14 = vld [vmem:[%s8298_s29 + $0x7c] sm:$0xf] }
  0x54   : > { %v724_v35 = vmax.f32 %v722_v1, %v723_v30  ;;  %v1525_v3 = vunpack.c.l.b16 %v701_v13  ;;  %v1579_v19 = vsel %vm1578_vm3, %v1514_v52, %v1577_v18  ;;  %v1591_v41 = vsel %vm1578_vm3, %v1522_v37, %v1590_v43 }
  0x55   : > { %v714_v42 = vpack.i.bf16 %v713_v31, %v713_v31  ;;  %v1581_v16 = vsel %vm1580_vm4, %v1515_v63, %v1579_v19  ;;  %v6923_v7 = vcombine.low %v8539_v2, %v8545_v61  ;;  %v1592_v0 = vsel %vm1580_vm4, %v1523_v47, %v1591_v41 }
  0x56   : > { %v725_v54 = vrot.slane %v724_v35, 1  ;;  %v1583_v40 = vsel %vm1582_vm5, %v1516_v12, %v1581_v16  ;;  %v6924_v38 = vcombine.high %v8539_v2, %v8545_v61  ;;  %v1593_v10 = vsel %vm1582_vm5, %v1524_v50, %v1592_v0 }
  0x57   : > { %v1526_v59 = vunpack.c.l.b16 %v714_v42  ;;  %v1585_v11 = vsel %vm1584_vm6, %v1517_v29, %v1583_v40  ;;  %v6933_v23 = vcombine.low %v8551_v39, %v8559_v25  ;;  %v1594_v51 = vsel %vm1584_vm6, %v1525_v3, %v1593_v10 }
  0x58   : > { %v726_v5 = vmax.f32 %v724_v35, %v725_v54  ;;  %v1587_v6 = vsel %vm1586_vm7, %v1518_v4, %v1585_v11  ;;  %2042 = vmatprep.subr.bf16.mxu0 %v6924_v38  ;;  %v6934_v52 = vcombine.high %v8551_v39, %v8559_v25  ;;  %v470_v63 = vadd.bf16 %v8349_v56, %v401_v58 }
  0x59   : > { %v1589_v34 = vsel %vm1588_vm8, %v1519_v57, %v1587_v6  ;;  %v1595_v24 = vsel %vm1586_vm7, %v1526_v59, %v1594_v51  ;;  %v471_v1 = vadd.bf16 %v8349_v56, %v402_v17  ;;  %v472_v29 = vadd.bf16 %v8349_v56, %v403_v53 }
  0x5a   : > { %v727_v12 = vpack.i.bf16 %v726_v5, %v726_v5  ;;  %v473_v4 = vadd.bf16 %v8349_v56, %v404_v8  ;;  %v474_v33 = vadd.bf16 %v8349_v56, %v8569_v21  ;;  %v475_v57 = vadd.bf16 %v8349_v56, %v8572_v22 }
  0x5b   : > { %v476_v32 = vadd.bf16 %v8349_v56, %v8575_v55  ;;  %v477_v13 = vadd.bf16 %v8349_v56, %v8582_v62  ;;  %v478_v30 = vadd.bf16 %v8349_v56, %v8585_v44  ;;  %v479_v37 = vadd.bf16 %v8349_v56, %v8588_v45 }
  0x5c   : > { %v1527_v36 = vunpack.c.l.b16 %v727_v12  ;;  %v480_v47 = vadd.bf16 %v8349_v56, %v8595_v28  ;;  %v481_v2 = vadd.bf16 %v8349_v56, %v8598_v26  ;;  %v482_v31 = vadd.bf16 %v8349_v56, %v8601_v46 }
  0x5d   : > { %v483_v50 = vadd.bf16 %v8349_v56, %v8604_v27  ;;  %v484_v61 = vadd.bf16 %v8349_v56, %v8611_v15  ;;  %v485_v35 = vadd.bf16 %v8349_v56, %v8614_v14  ;;  %v729_v3 = vsel %vm518_vm1, %v470_v63, 4286644096 }
  0x5e   : > { %v1596_v18 = vsel %vm1588_vm8, %v1527_v36, %v1595_v24  ;;  %v731_v58 = vunpack.i.l.bf16 %v729_v3  ;;  %v732_v42 = vunpack.i.h.bf16 %v729_v3  ;;  %v742_v16 = vsel %vm518_vm1, %v471_v1, 4286644096 }
  0x5f   : > { %v8647_v19 = vpack.c.b16 %v1596_v18, %v1589_v34  ;;  %v744_v43 = vunpack.i.l.bf16 %v742_v16  ;;  %v745_v17 = vunpack.i.h.bf16 %v742_v16  ;;  %v755_v53 = vsel %vm518_vm1, %v472_v29, 4286644096 }
  0x60   : > { %v768_v54 = vsel %vm518_vm1, %v473_v4, 4286644096  ;;  %v733_v40 = vmax.f32 %v731_v58, %v732_v42  ;;  %v757_v41 = vunpack.i.l.bf16 %v755_v53  ;;  %v758_v8 = vunpack.i.h.bf16 %v755_v53 }
  0x61   : > { %6967 = vmatmul.mubr.msk.bf16.vlgmr.msra.gmra.mrb[0].mxu0 %vm1883_vm9, %v8647_v19  ;;  %6971 = vmatmul.mubr.msk.bf16.vlgmr.msra.gmra.mrb[0].mxu1 %vm1883_vm9, %v8647_v19  ;;  %v770_v21 = vunpack.i.l.bf16 %v768_v54  ;;  %v746_v22 = vmax.f32 %v744_v43, %v745_v17  ;;  %v771_v55 = vunpack.i.h.bf16 %v768_v54  ;;  %v781_v59 = vsel %vm518_vm1, %v474_v33, 4286644096 }
  0x62   : > { %2116 = vmatpush1.bf16.msra.mxu1 %v6925_v60  ;;  %2043 = vmatpush1.bf16.msra.mxu0 %v6923_v7  ;;  %v794_v11 = vsel %vm518_vm1, %v475_v57, 4286644096  ;;  %v734_v0 = vrot.slane %v733_v40, 4  ;;  %v759_v38 = vmax.f32 %v757_v41, %v758_v8  ;;  %v783_v62 = vunpack.i.l.bf16 %v781_v59 }
  0x63   : > { %2117 = vmatprep.subr.bf16.mxu1 %v6934_v52  ;;  %1938 = vmatprep.mubr.bf16.mxu0 %v12353_v9  ;;  %v784_v5 = vunpack.i.h.bf16 %v781_v59  ;;  %v747_v6 = vrot.slane %v746_v22, 4  ;;  %v772_v10 = vmax.f32 %v770_v21, %v771_v55  ;;  %v796_v48 = vunpack.i.l.bf16 %v794_v11 }
  0x64   : > { %2011 = vmatprep.mubr.bf16.mxu1 %v12353_v9  ;;  %v797_v49 = vunpack.i.h.bf16 %v794_v11  ;;  %v735_v60 = vmax.f32 %v733_v40, %v734_v0  ;;  %v760_v7 = vrot.slane %v759_v38, 4  ;;  %v807_v51 = vsel %vm518_vm1, %v476_v32, 4286644096 }
  0x65   : > { %v785_v34 = vmax.f32 %v783_v62, %v784_v5  ;;  %v748_v52 = vmax.f32 %v746_v22, %v747_v6  ;;  %v773_v63 = vrot.slane %v772_v10, 4  ;;  %v809_v24 = vunpack.i.l.bf16 %v807_v51 }
  0x66   : > { %2118 = vmatpush1.bf16.msra.mxu1 %v6933_v23  ;;  %v798_v12 = vmax.f32 %v796_v48, %v797_v49  ;;  %v736_v1 = vrot.slane %v735_v60, 2  ;;  %v761_v29 = vmax.f32 %v759_v38, %v760_v7  ;;  %v810_v33 = vunpack.i.h.bf16 %v807_v51 }
  0x67   : > { %v786_v4 = vrot.slane %v785_v34, 4  ;;  %v749_v57 = vrot.slane %v748_v52, 2  ;;  %v774_v36 = vmax.f32 %v772_v10, %v773_v63  ;;  %v820_v3 = vsel %vm518_vm1, %v477_v13, 4286644096 }
  0x68   : > { %v799_v18 = vrot.slane %v798_v12, 4  ;;  %v737_v58 = vmax.f32 %v735_v60, %v736_v1  ;;  %v762_v42 = vrot.slane %v761_v29, 2  ;;  %v811_v16 = vmax.f32 %v809_v24, %v810_v33 }
  0x69   : > { %v787_v32 = vmax.f32 %v785_v34, %v786_v4  ;;  %v750_v43 = vmax.f32 %v748_v52, %v749_v57  ;;  %v775_v39 = vrot.slane %v774_v36, 2  ;;  %v822_v23 = vunpack.i.l.bf16 %v820_v3 }
  0x6a   : > { %v800_v25 = vmax.f32 %v798_v12, %v799_v18  ;;  %v738_v17 = vrot.slane %v737_v58, 1  ;;  %v763_v53 = vmax.f32 %v761_v29, %v762_v42  ;;  %v812_v40 = vrot.slane %v811_v16, 4 }
  0x6b   : > { %v788_v54 = vrot.slane %v787_v32, 2  ;;  %v751_v41 = vrot.slane %v750_v43, 1  ;;  %v776_v8 = vmax.f32 %v774_v36, %v775_v39  ;;  %v823_v22 = vunpack.i.h.bf16 %v820_v3 }
  0x6c   : > { %v801_v21 = vrot.slane %v800_v25, 2  ;;  %v8668_v55 = vmax.f32 %v737_v58, %v738_v17  ;;  %v764_v59 = vrot.slane %v763_v53, 1  ;;  %v813_v11 = vmax.f32 %v811_v16, %v812_v40 }
  0x6d   : > { %v789_v13 = vmax.f32 %v787_v32, %v788_v54  ;;  %v8670_v0 = vmax.f32 %v750_v43, %v751_v41  ;;  %v777_v38 = vrot.slane %v776_v8, 1  ;;  %v824_v5 = vmax.f32 %v822_v23, %v823_v22 }
  0x6e   : > { %v802_v62 = vmax.f32 %v800_v25, %v801_v21  ;;  %v740_v6 = vpack.i.bf16 %v8668_v55, %v8668_v55  ;;  %v8674_v10 = vmax.f32 %v763_v53, %v764_v59  ;;  %v814_v49 = vrot.slane %v813_v11, 2 }
  0x6f   : > { %v790_v48 = vrot.slane %v789_v13, 1  ;;  %v753_v60 = vpack.i.bf16 %v8670_v0, %v8670_v0  ;;  %v8678_v7 = vmax.f32 %v776_v8, %v777_v38  ;;  %v825_v51 = vrot.slane %v824_v5, 4 }
  0x70   : > { %v803_v34 = vrot.slane %v802_v62, 1  ;;  %v766_v52 = vpack.i.bf16 %v8674_v10, %v8674_v10  ;;  %v815_v12 = vmax.f32 %v813_v11, %v814_v49  ;;  %v833_v24 = vsel %vm518_vm1, %v478_v30, 4286644096 }
  0x71   : > { %v8682_v63 = vmax.f32 %v789_v13, %v790_v48  ;;  %v779_v1 = vpack.i.bf16 %v8678_v7, %v8678_v7  ;;  %v826_v4 = vmax.f32 %v824_v5, %v825_v51  ;;  %v835_v33 = vunpack.i.l.bf16 %v833_v24  ;;  %v1419_v7 = vld [vmem:[%s12345_s3 + $0x98] sm:$0xff] }
  0x72   : > { %v8690_v29 = vmax.f32 %v802_v62, %v803_v34  ;;  %v816_v36 = vrot.slane %v815_v12, 1  ;;  %v836_v18 = vunpack.i.h.bf16 %v833_v24  ;;  %v846_v3 = vsel %vm518_vm1, %v479_v37, 4286644096 }
  0x73   : > { %v792_v57 = vpack.i.bf16 %v8682_v63, %v8682_v63  ;;  %v827_v30 = vrot.slane %v826_v4, 2  ;;  %v848_v58 = vunpack.i.l.bf16 %v846_v3  ;;  %v849_v42 = vunpack.i.h.bf16 %v846_v3  ;;  %v1423_v63 = vld [vmem:[%s12345_s3 + $0xb8] sm:$0xff] }
  0x74   : > { %v805_v44 = vpack.i.bf16 %v8690_v29, %v8690_v29  ;;  %v8700_v32 = vmax.f32 %v815_v12, %v816_v36  ;;  %v837_v16 = vmax.f32 %v835_v33, %v836_v18  ;;  %v859_v43 = vsel %vm518_vm1, %v480_v47, 4286644096 }
  0x75   : > { %v872_v45 = vsel %vm518_vm1, %v481_v2, 4286644096  ;;  %v828_v37 = vmax.f32 %v826_v4, %v827_v30  ;;  %v850_v39 = vmax.f32 %v848_v58, %v849_v42  ;;  %v861_v25 = vunpack.i.l.bf16 %v859_v43 }
  0x76   : > { %v862_v23 = vunpack.i.h.bf16 %v859_v43  ;;  %v818_v17 = vpack.i.bf16 %v8700_v32, %v8700_v32  ;;  %v838_v53 = vrot.slane %v837_v16, 4  ;;  %v874_v54 = vunpack.i.l.bf16 %v872_v45 }
  0x77   : > { %v875_v40 = vunpack.i.h.bf16 %v872_v45  ;;  %v829_v41 = vrot.slane %v828_v37, 1  ;;  %v851_v8 = vrot.slane %v850_v39, 4  ;;  %v885_v26 = vsel %vm518_vm1, %v482_v31, 4286644096 }
  0x78   : > { %v863_v28 = vmax.f32 %v861_v25, %v862_v23  ;;  %v839_v47 = vmax.f32 %v837_v16, %v838_v53  ;;  %v887_v21 = vunpack.i.l.bf16 %v885_v26  ;;  %v888_v22 = vunpack.i.h.bf16 %v885_v26 }
  0x79   : > { %v876_v2 = vmax.f32 %v874_v54, %v875_v40  ;;  %v8716_v59 = vmax.f32 %v828_v37, %v829_v41  ;;  %v852_v13 = vmax.f32 %v850_v39, %v851_v8  ;;  %v898_v38 = vsel %vm518_vm1, %v483_v50, 4286644096 }
  0x7a   : > { %v864_v11 = vrot.slane %v863_v28, 4  ;;  %v840_v62 = vrot.slane %v839_v47, 2  ;;  %v889_v48 = vmax.f32 %v887_v21, %v888_v22  ;;  %v900_v49 = vunpack.i.l.bf16 %v898_v38 }
  0x7b   : > { %v877_v5 = vrot.slane %v876_v2, 4  ;;  %v831_v46 = vpack.i.bf16 %v8716_v59, %v8716_v59  ;;  %v853_v31 = vrot.slane %v852_v13, 2  ;;  %v901_v51 = vunpack.i.h.bf16 %v898_v38 }
  0x7c   : > { %v865_v34 = vmax.f32 %v863_v28, %v864_v11  ;;  %v841_v12 = vmax.f32 %v839_v47, %v840_v62  ;;  %v890_v4 = vrot.slane %v889_v48, 4  ;;  %v911_v27 = vsel %vm518_vm1, %v484_v61, 4286644096 }
  0x7d   : > { %v878_v24 = vmax.f32 %v876_v2, %v877_v5  ;;  %v854_v33 = vmax.f32 %v852_v13, %v853_v31  ;;  %v902_v36 = vmax.f32 %v900_v49, %v901_v51  ;;  %v913_v18 = vunpack.i.l.bf16 %v911_v27 }
  0x7e   : > { %v866_v50 = vrot.slane %v865_v34, 2  ;;  %v842_v3 = vrot.slane %v841_v12, 1  ;;  %v891_v58 = vmax.f32 %v889_v48, %v890_v4  ;;  %v914_v42 = vunpack.i.h.bf16 %v911_v27 }
  0x7f   : > { %v879_v30 = vrot.slane %v878_v24, 2  ;;  %v855_v16 = vrot.slane %v854_v33, 1  ;;  %v903_v45 = vrot.slane %v902_v36, 4  ;;  %v924_v37 = vsel %vm518_vm1, %v485_v35, 4286644096 }
  0x80   : > { %v867_v43 = vmax.f32 %v865_v34, %v866_v50  ;;  %v843_v39 = vmax.f32 %v841_v12, %v842_v3  ;;  %v892_v25 = vrot.slane %v891_v58, 2  ;;  %v915_v61 = vmax.f32 %v913_v18, %v914_v42  ;;  %v1414_v42 = vld [vmem:[%s12345_s3 + $0x70] sm:$0xff] }
  0x81   : > { %v880_v15 = vmax.f32 %v878_v24, %v879_v30  ;;  %v856_v23 = vmax.f32 %v854_v33, %v855_v16  ;;  %v904_v54 = vmax.f32 %v902_v36, %v903_v45  ;;  %v926_v40 = vunpack.i.l.bf16 %v924_v37 }
  0x82   : > { %v868_v53 = vrot.slane %v867_v43, 1  ;;  %v844_v41 = vpack.i.bf16 %v843_v39, %v843_v39  ;;  %v893_v28 = vmax.f32 %v891_v58, %v892_v25  ;;  %v916_v26 = vrot.slane %v915_v61, 4  ;;  %v1410_v58 = vld [vmem:[%s12345_s3 + $0x50] sm:$0xff]  ;;  %v1427_v39 = vld [vmem:[%s12345_s3 + $0xd8] sm:$0xff] }
  0x83   : > { %v881_v8 = vrot.slane %v880_v15, 1  ;;  %v857_v47 = vpack.i.bf16 %v856_v23, %v856_v23  ;;  %v905_v21 = vrot.slane %v904_v54, 2  ;;  %v927_v22 = vunpack.i.h.bf16 %v924_v37 }
  0x84   : > { %v869_v2 = vmax.f32 %v867_v43, %v868_v53  ;;  %v894_v14 = vrot.slane %v893_v28, 1  ;;  %v917_v13 = vmax.f32 %v915_v61, %v916_v26  ;;  %v1528_v35 = vunpack.c.l.b16 %v740_v6  ;;  %v1431_v53 = vld [vmem:[%s12345_s3 + $0xf8] sm:$0xff] }
  0x85   : > { %v882_v59 = vmax.f32 %v880_v15, %v881_v8  ;;  %v906_v38 = vmax.f32 %v904_v54, %v905_v21  ;;  %v928_v62 = vmax.f32 %v926_v40, %v927_v22  ;;  %v1529_v5 = vunpack.c.l.b16 %v753_v60  ;;  %v417_v54 = vld [vmem:[%s8298_s29 + $0x80] sm:$0xf]  ;;  %v418_v40 = vld [vmem:[%s8298_s29 + $0x84] sm:$0xf] }
  0x86   : > { %v870_v11 = vpack.i.bf16 %v869_v2, %v869_v2  ;;  %v895_v49 = vmax.f32 %v893_v28, %v894_v14  ;;  %v918_v31 = vrot.slane %v917_v13, 2  ;;  %v1530_v34 = vunpack.c.l.b16 %v766_v52  ;;  %v420_v2 = vld [vmem:[%s8298_s29 + $0x8c] sm:$0xf] }
  0x87   : > { %v883_v48 = vpack.i.bf16 %v882_v59, %v882_v59  ;;  %v907_v51 = vrot.slane %v906_v38, 1  ;;  %v929_v12 = vrot.slane %v928_v62, 4  ;;  %v1531_v55 = vunpack.c.l.b16 %v779_v1 }
  0x88   : > { %v1532_v6 = vunpack.c.l.b16 %v792_v57  ;;  %v896_v24 = vpack.i.bf16 %v895_v49, %v895_v49  ;;  %v919_v0 = vmax.f32 %v917_v13, %v918_v31  ;;  %v1533_v60 = vunpack.c.l.b16 %v805_v44  ;;  %v421_v13 = vld [vmem:[%s8298_s29 + $0x90] sm:$0xf]  ;;  %v8795_v49 = vld [vmem:[%s8298_s29 + $0x9c] sm:$0xf]  ;;  %v8798_v31 = vld [vmem:[%s8298_s29 + $0xa0] sm:$0xf] }
  0x89   : > { %v1534_v10 = vunpack.c.l.b16 %v818_v17  ;;  %v908_v52 = vmax.f32 %v906_v38, %v907_v51  ;;  %v930_v4 = vmax.f32 %v928_v62, %v929_v12  ;;  %v1535_v27 = vunpack.c.l.b16 %v831_v46  ;;  %v8805_v12 = vld [vmem:[%s8298_s29 + $0xa8] sm:$0xf] }
  0x8a   : > { %v1536_v33 = vunpack.c.l.b16 %v844_v41  ;;  %v920_v1 = vrot.slane %v919_v0, 1  ;;  %v1537_v57 = vunpack.c.l.b16 %v857_v47  ;;  %v1538_v29 = vunpack.c.l.b16 %v870_v11  ;;  %v419_v47 = vld [vmem:[%s8298_s29 + $0x88] sm:$0xf]  ;;  %v8791_v11 = vld [vmem:[%s8298_s29 + $0x98] sm:$0xf] }
  0x8b   : > { %v1539_v44 = vunpack.c.l.b16 %v883_v48  ;;  %v909_v50 = vpack.i.bf16 %v908_v52, %v908_v52  ;;  %v931_v36 = vrot.slane %v930_v4, 2  ;;  %v1540_v32 = vunpack.c.l.b16 %v896_v24  ;;  %v8817_v52 = vld [vmem:[%s8298_s29 + $0xb4] sm:$0xf] }
  0x8c   : > { %v1597_v17 = vsel %vm1576_vm2, %v1529_v5, %v1528_v35  ;;  %v921_v18 = vmax.f32 %v919_v0, %v920_v1  ;;  %v1604_v3 = vsel %vm1576_vm2, %v1537_v57, %v1536_v33  ;;  %v6941_v30 = vcombine.low %v1419_v7, %v1423_v63  ;;  %v8788_v35 = vld [vmem:[%s8298_s29 + $0x94] sm:$0xf] }
  0x8d   : > { %v1598_v46 = vsel %vm1578_vm3, %v1530_v34, %v1597_v17  ;;  %v932_v16 = vmax.f32 %v930_v4, %v931_v36  ;;  %v1541_v43 = vunpack.c.l.b16 %v909_v50  ;;  %v1605_v37 = vsel %vm1578_vm3, %v1538_v29, %v1604_v3  ;;  %v8801_v34 = vld [vmem:[%s8298_s29 + $0xa4] sm:$0xf]  ;;  %v8820_v4 = vld [vmem:[%s8298_s29 + $0xb8] sm:$0xf] }
  0x8e   : > { %v1599_v45 = vsel %vm1580_vm4, %v1531_v55, %v1598_v46  ;;  %v922_v15 = vpack.i.bf16 %v921_v18, %v921_v18  ;;  %v1606_v61 = vsel %vm1580_vm4, %v1539_v44, %v1605_v37  ;;  %v6942_v23 = vcombine.high %v1419_v7, %v1423_v63  ;;  %v8808_v55 = vld [vmem:[%s8298_s29 + $0xac] sm:$0xf] }
  0x8f   : > { %v1600_v25 = vsel %vm1582_vm5, %v1532_v6, %v1599_v45  ;;  %v933_v41 = vrot.slane %v932_v16, 1  ;;  %v1607_v28 = vsel %vm1582_vm5, %v1540_v32, %v1606_v61  ;;  %v6931_v26 = vcombine.low %v1410_v58, %v1414_v42  ;;  %v8811_v6 = vld [vmem:[%s8298_s29 + $0xb0] sm:$0xf] }
  0x90   : > { %v1601_v8 = vsel %vm1584_vm6, %v1533_v60, %v1600_v25  ;;  %v1542_v21 = vunpack.c.l.b16 %v922_v15  ;;  %v1608_v59 = vsel %vm1584_vm6, %v1541_v43, %v1607_v28  ;;  %2119 = vmatprep.subr.bf16.mxu1 %v6942_v23  ;;  %v6932_v14 = vcombine.high %v1410_v58, %v1414_v42 }
  0x91   : > { %v1602_v22 = vsel %vm1586_vm7, %v1534_v10, %v1601_v8  ;;  %v934_v38 = vmax.f32 %v932_v16, %v933_v41  ;;  %2120 = vmatpush1.bf16.msra.mxu1 %v6941_v30  ;;  %v6949_v5 = vcombine.low %v1427_v39, %v1431_v53  ;;  %v6950_v48 = vcombine.high %v1427_v39, %v1431_v53 }
  0x92   : > { %v1603_v62 = vsel %vm1588_vm8, %v1535_v27, %v1602_v22  ;;  %v1609_v51 = vsel %vm1586_vm7, %v1542_v21, %v1608_v59  ;;  %2044 = vmatprep.subr.bf16.mxu0 %v6932_v14  ;;  %v486_v24 = vadd.bf16 %v8349_v56, %v417_v54  ;;  %v487_v0 = vadd.bf16 %v8349_v56, %v418_v40  ;;  %v8823_v27 = vld [vmem:[%s8298_s29 + $0xbc] sm:$0xf] }
  0x93   : > { %v488_v60 = vadd.bf16 %v8349_v56, %v419_v47  ;;  %v935_v10 = vpack.i.bf16 %v934_v38, %v934_v38  ;;  %2045 = vmatpush1.bf16.msra.mxu0 %v6931_v26  ;;  %2121 = vmatprep.subr.bf16.mxu1 %v6950_v48  ;;  %v489_v33 = vadd.bf16 %v8349_v56, %v420_v2 }
  0x94   : > { %v490_v7 = vadd.bf16 %v8349_v56, %v421_v13  ;;  %v491_v63 = vadd.bf16 %v8349_v56, %v8788_v35  ;;  %v492_v1 = vadd.bf16 %v8349_v56, %v8791_v11  ;;  %v493_v57 = vadd.bf16 %v8349_v56, %v8795_v49 }
  0x95   : > { %v494_v29 = vadd.bf16 %v8349_v56, %v8798_v31  ;;  %v1543_v44 = vunpack.c.l.b16 %v935_v10  ;;  %v495_v50 = vadd.bf16 %v8349_v56, %v8801_v34  ;;  %v496_v36 = vadd.bf16 %v8349_v56, %v8805_v12  ;;  %2122 = vmatpush1.bf16.msra.mxu1 %v6949_v5 }
  0x96   : > { %v497_v32 = vadd.bf16 %v8349_v56, %v8808_v55  ;;  %v498_v17 = vadd.bf16 %v8349_v56, %v8811_v6  ;;  %v499_v18 = vadd.bf16 %v8349_v56, %v8817_v52  ;;  %v500_v46 = vadd.bf16 %v8349_v56, %v8820_v4 }
  0x97   : > { %v501_v3 = vadd.bf16 %v8349_v56, %v8823_v27  ;;  %v1610_v30 = vsel %vm1588_vm8, %v1543_v44, %v1609_v51  ;;  %v937_v58 = vsel %vm518_vm1, %v486_v24, 4286644096  ;;  %v950_v42 = vsel %vm518_vm1, %v487_v0, 4286644096 }
  0x98   : > { %v963_v16 = vsel %vm518_vm1, %v488_v60, 4286644096  ;;  %v8853_v43 = vpack.c.b16 %v1610_v30, %v1603_v62  ;;  %v939_v45 = vunpack.i.l.bf16 %v937_v58  ;;  %v940_v37 = vunpack.i.h.bf16 %v937_v58 }
  0x99   : > { %v952_v39 = vunpack.i.l.bf16 %v950_v42  ;;  %v953_v15 = vunpack.i.h.bf16 %v950_v42  ;;  %v965_v25 = vunpack.i.l.bf16 %v963_v16  ;;  %v966_v61 = vunpack.i.h.bf16 %v963_v16 }
  0x9a   : > { %v976_v23 = vsel %vm518_vm1, %v489_v33, 4286644096  ;;  %6968 = vmatmul.mubr.msk.bf16.gmra.mrb[4].mxu0 %vm1883_vm9, %v8853_v43  ;;  %6972 = vmatmul.mubr.msk.bf16.gmra.mrb[4].mxu1 %vm1883_vm9, %v8853_v43  ;;  %v941_v53 = vmax.f32 %v939_v45, %v940_v37  ;;  %v989_v41 = vsel %vm518_vm1, %v490_v7, 4286644096  ;;  %v1002_v22 = vsel %vm518_vm1, %v491_v63, 4286644096 }
  0x9b   : > { %v978_v54 = vunpack.i.l.bf16 %v976_v23  ;;  %v979_v40 = vunpack.i.h.bf16 %v976_v23  ;;  %1948 = vmatprep.mubr.bf16.mxu0 %v12353_v9  ;;  %2021 = vmatprep.mubr.bf16.mxu1 %v12353_v9  ;;  %v954_v8 = vmax.f32 %v952_v39, %v953_v15  ;;  %v967_v28 = vmax.f32 %v965_v25, %v966_v61 }
  0x9c   : > { %v991_v26 = vunpack.i.l.bf16 %v989_v41  ;;  %v992_v47 = vunpack.i.h.bf16 %v989_v41  ;;  %v942_v2 = vrot.slane %v941_v53, 4  ;;  %v1015_v59 = vsel %vm518_vm1, %v492_v1, 4286644096 }
  0x9d   : > { %v980_v21 = vmax.f32 %v978_v54, %v979_v40  ;;  %v955_v14 = vrot.slane %v954_v8, 4  ;;  %v968_v13 = vrot.slane %v967_v28, 4  ;;  %v1004_v11 = vunpack.i.l.bf16 %v1002_v22 }
  0x9e   : > { %v993_v35 = vmax.f32 %v991_v26, %v992_v47  ;;  %v943_v38 = vmax.f32 %v941_v53, %v942_v2  ;;  %v1005_v5 = vunpack.i.h.bf16 %v1002_v22  ;;  %v1017_v48 = vunpack.i.l.bf16 %v1015_v59 }
  0x9f   : > { %v981_v62 = vrot.slane %v980_v21, 4  ;;  %v956_v49 = vmax.f32 %v954_v8, %v955_v14  ;;  %v969_v51 = vmax.f32 %v967_v28, %v968_v13  ;;  %v1018_v0 = vunpack.i.h.bf16 %v1015_v59 }
  0xa0   : > { %v994_v24 = vrot.slane %v993_v35, 4  ;;  %v944_v60 = vrot.slane %v943_v38, 2  ;;  %v1006_v33 = vmax.f32 %v1004_v11, %v1005_v5  ;;  %v1028_v7 = vsel %vm518_vm1, %v493_v57, 4286644096 }
  0xa1   : > { %v982_v10 = vmax.f32 %v980_v21, %v981_v62  ;;  %v957_v63 = vrot.slane %v956_v49, 2  ;;  %v970_v44 = vrot.slane %v969_v51, 2  ;;  %v1019_v30 = vmax.f32 %v1017_v48, %v1018_v0 }
  0xa2   : > { %v995_v1 = vmax.f32 %v993_v35, %v994_v24  ;;  %v945_v58 = vmax.f32 %v943_v38, %v944_v60  ;;  %v1007_v16 = vrot.slane %v1006_v33, 4  ;;  %v1030_v45 = vunpack.i.l.bf16 %v1028_v7 }
  0xa3   : > { %v983_v42 = vrot.slane %v982_v10, 2  ;;  %v958_v37 = vmax.f32 %v956_v49, %v957_v63  ;;  %v971_v39 = vmax.f32 %v969_v51, %v970_v44  ;;  %v1020_v25 = vrot.slane %v1019_v30, 4 }
  0xa4   : > { %v996_v15 = vrot.slane %v995_v1, 2  ;;  %v946_v61 = vrot.slane %v945_v58, 1  ;;  %v1008_v53 = vmax.f32 %v1006_v33, %v1007_v16  ;;  %v1031_v54 = vunpack.i.h.bf16 %v1028_v7 }
  0xa5   : > { %v984_v23 = vmax.f32 %v982_v10, %v983_v42  ;;  %v959_v40 = vrot.slane %v958_v37, 1  ;;  %v972_v41 = vrot.slane %v971_v39, 1  ;;  %v1021_v57 = vmax.f32 %v1019_v30, %v1020_v25 }
  0xa6   : > { %v997_v8 = vmax.f32 %v995_v1, %v996_v15  ;;  %v8866_v28 = vmax.f32 %v945_v58, %v946_v61  ;;  %v1009_v47 = vrot.slane %v1008_v53, 2  ;;  %v1032_v2 = vmax.f32 %v1030_v45, %v1031_v54 }
  0xa7   : > { %v985_v26 = vrot.slane %v984_v23, 1  ;;  %v8868_v21 = vmax.f32 %v958_v37, %v959_v40  ;;  %v8870_v22 = vmax.f32 %v971_v39, %v972_v41  ;;  %v1022_v14 = vrot.slane %v1021_v57, 2 }
  0xa8   : > { %v998_v59 = vrot.slane %v997_v8, 1  ;;  %v948_v13 = vpack.i.bf16 %v8866_v28, %v8866_v28  ;;  %v1010_v11 = vmax.f32 %v1008_v53, %v1009_v47  ;;  %v1033_v38 = vrot.slane %v1032_v2, 4 }
  0xa9   : > { %v8874_v35 = vmax.f32 %v984_v23, %v985_v26  ;;  %v961_v62 = vpack.i.bf16 %v8868_v21, %v8868_v21  ;;  %v974_v5 = vpack.i.bf16 %v8870_v22, %v8870_v22  ;;  %v1023_v49 = vmax.f32 %v1021_v57, %v1022_v14 }
  0xaa   : > { %v8880_v48 = vmax.f32 %v997_v8, %v998_v59  ;;  %v1011_v24 = vrot.slane %v1010_v11, 1  ;;  %v1034_v0 = vmax.f32 %v1032_v2, %v1033_v38  ;;  %v1041_v60 = vsel %vm518_vm1, %v494_v29, 4286644096 }
  0xab   : > { %v987_v51 = vpack.i.bf16 %v8874_v35, %v8874_v35  ;;  %v1024_v33 = vrot.slane %v1023_v49, 1  ;;  %v1043_v7 = vunpack.i.l.bf16 %v1041_v60  ;;  %v1044_v63 = vunpack.i.h.bf16 %v1041_v60 }
  0xac   : > { %v1000_v10 = vpack.i.bf16 %v8880_v48, %v8880_v48  ;;  %v8890_v44 = vmax.f32 %v1010_v11, %v1011_v24  ;;  %v1035_v1 = vrot.slane %v1034_v0, 2  ;;  %v1054_v30 = vsel %vm518_vm1, %v495_v50, 4286644096 }
  0xad   : > { %v1067_v31 = vsel %vm518_vm1, %v496_v36, 4286644096  ;;  %v8900_v29 = vmax.f32 %v1023_v49, %v1024_v33  ;;  %v1045_v58 = vmax.f32 %v1043_v7, %v1044_v63  ;;  %v1056_v42 = vunpack.i.l.bf16 %v1054_v30 }
  0xae   : > { %v1057_v16 = vunpack.i.h.bf16 %v1054_v30  ;;  %v1013_v45 = vpack.i.bf16 %v8890_v44, %v8890_v44  ;;  %v1036_v37 = vmax.f32 %v1034_v0, %v1035_v1  ;;  %v1069_v39 = vunpack.i.l.bf16 %v1067_v31  ;;  %v1422_v44 = vld [vmem:[%s12345_s3 + $0xb0] sm:$0xff] }
  0xaf   : > { %v1070_v15 = vunpack.i.h.bf16 %v1067_v31  ;;  %v1026_v34 = vpack.i.bf16 %v8900_v29, %v8900_v29  ;;  %v1046_v50 = vrot.slane %v1045_v58, 4  ;;  %v1080_v12 = vsel %vm518_vm1, %v497_v32, 4286644096 }
  0xb0   : > { %v1058_v25 = vmax.f32 %v1056_v42, %v1057_v16  ;;  %v1037_v36 = vrot.slane %v1036_v37, 1  ;;  %v1082_v23 = vunpack.i.l.bf16 %v1080_v12  ;;  %v1083_v53 = vunpack.i.h.bf16 %v1080_v12 }
  0xb1   : > { %v1071_v61 = vmax.f32 %v1069_v39, %v1070_v15  ;;  %v1047_v54 = vmax.f32 %v1045_v58, %v1046_v50  ;;  %v1093_v41 = vsel %vm518_vm1, %v498_v17, 4286644096  ;;  %v1106_v8 = vsel %vm518_vm1, %v499_v18, 4286644096 }
  0xb2   : > { %v1059_v40 = vrot.slane %v1058_v25, 4  ;;  %v8918_v57 = vmax.f32 %v1036_v37, %v1037_v36  ;;  %v1084_v32 = vmax.f32 %v1082_v23, %v1083_v53  ;;  %v1095_v26 = vunpack.i.l.bf16 %v1093_v41 }
  0xb3   : > { %v1072_v55 = vrot.slane %v1071_v61, 4  ;;  %v1048_v47 = vrot.slane %v1047_v54, 2  ;;  %v1096_v59 = vunpack.i.h.bf16 %v1093_v41  ;;  %v1108_v14 = vunpack.i.l.bf16 %v1106_v8 }
  0xb4   : > { %v1060_v2 = vmax.f32 %v1058_v25, %v1059_v40  ;;  %v1039_v11 = vpack.i.bf16 %v8918_v57, %v8918_v57  ;;  %v1085_v38 = vrot.slane %v1084_v32, 4  ;;  %v1109_v17 = vunpack.i.h.bf16 %v1106_v8 }
  0xb5   : > { %v1073_v6 = vmax.f32 %v1071_v61, %v1072_v55  ;;  %v1049_v49 = vmax.f32 %v1047_v54, %v1048_v47  ;;  %v1097_v52 = vmax.f32 %v1095_v26, %v1096_v59  ;;  %v1119_v18 = vsel %vm518_vm1, %v500_v46, 4286644096 }
  0xb6   : > { %v1061_v24 = vrot.slane %v1060_v2, 2  ;;  %v1086_v60 = vmax.f32 %v1084_v32, %v1085_v38  ;;  %v1110_v33 = vmax.f32 %v1108_v14, %v1109_v17  ;;  %v1121_v7 = vunpack.i.l.bf16 %v1119_v18 }
  0xb7   : > { %v1074_v0 = vrot.slane %v1073_v6, 2  ;;  %v1050_v63 = vrot.slane %v1049_v49, 1  ;;  %v1098_v30 = vrot.slane %v1097_v52, 4  ;;  %v1122_v31 = vunpack.i.h.bf16 %v1119_v18 }
  0xb8   : > { %v1062_v1 = vmax.f32 %v1060_v2, %v1061_v24  ;;  %v1087_v42 = vrot.slane %v1086_v60, 2  ;;  %v1111_v16 = vrot.slane %v1110_v33, 4  ;;  %v1132_v37 = vsel %vm518_vm1, %v501_v3, 4286644096 }
  0xb9   : > { %v1075_v58 = vmax.f32 %v1073_v6, %v1074_v0  ;;  %v1051_v39 = vmax.f32 %v1049_v49, %v1050_v63  ;;  %v1099_v15 = vmax.f32 %v1097_v52, %v1098_v30  ;;  %v1123_v46 = vmax.f32 %v1121_v7, %v1122_v31 }
  0xba   : > { %v1063_v4 = vrot.slane %v1062_v1, 1  ;;  %v1088_v25 = vmax.f32 %v1086_v60, %v1087_v42  ;;  %v1112_v12 = vmax.f32 %v1110_v33, %v1111_v16  ;;  %v1134_v36 = vunpack.i.l.bf16 %v1132_v37 }
  0xbb   : > { %v1076_v50 = vrot.slane %v1075_v58, 1  ;;  %v1052_v61 = vpack.i.bf16 %v1051_v39, %v1051_v39  ;;  %v1100_v53 = vrot.slane %v1099_v15, 2  ;;  %v1124_v54 = vrot.slane %v1123_v46, 4  ;;  %v1430_v39 = vld [vmem:[%s12345_s3 + $0xf0] sm:$0xff] }
  0xbc   : > { %v1064_v23 = vmax.f32 %v1062_v1, %v1063_v4  ;;  %v1089_v41 = vrot.slane %v1088_v25, 1  ;;  %v1113_v8 = vrot.slane %v1112_v12, 2  ;;  %v1135_v57 = vunpack.i.h.bf16 %v1132_v37  ;;  %v1426_v37 = vld [vmem:[%s12345_s3 + $0xd0] sm:$0xff] }
  0xbd   : > { %v1077_v40 = vmax.f32 %v1075_v58, %v1076_v50  ;;  %v1101_v27 = vmax.f32 %v1099_v15, %v1100_v53  ;;  %v1125_v32 = vmax.f32 %v1123_v46, %v1124_v54  ;;  %v1544_v3 = vunpack.c.l.b16 %v948_v13 }
  0xbe   : > { %v1065_v55 = vpack.i.bf16 %v1064_v23, %v1064_v23  ;;  %v1090_v47 = vmax.f32 %v1088_v25, %v1089_v41  ;;  %v1114_v2 = vmax.f32 %v1112_v12, %v1113_v8  ;;  %v1136_v59 = vmax.f32 %v1134_v36, %v1135_v57  ;;  %v1435_v25 = vld [vmem:[%s12345_s3 + $0x118] sm:$0xff]  ;;  %v433_v36 = vld [vmem:[%s8298_s29 + $0xc0] sm:$0xf]  ;;  %v435_v41 = vld [vmem:[%s8298_s29 + $0xc8] sm:$0xf] }
  0xbf   : > { %v1078_v26 = vpack.i.bf16 %v1077_v40, %v1077_v40  ;;  %v1102_v14 = vrot.slane %v1101_v27, 1  ;;  %v1126_v6 = vrot.slane %v1125_v32, 2  ;;  %v1545_v38 = vunpack.c.l.b16 %v961_v62  ;;  %v1439_v12 = vld [vmem:[%s12345_s3 + $0x138] sm:$0xff]  ;;  %v434_v40 = vld [vmem:[%s8298_s29 + $0xc4] sm:$0xf] }
  0xc0   : > { %v1546_v17 = vunpack.c.l.b16 %v974_v5  ;;  %v1091_v49 = vpack.i.bf16 %v1090_v47, %v1090_v47  ;;  %v1115_v24 = vrot.slane %v1114_v2, 1  ;;  %v1137_v52 = vrot.slane %v1136_v59, 4 }
  0xc1   : > { %v1547_v28 = vunpack.c.l.b16 %v987_v51  ;;  %v1103_v13 = vmax.f32 %v1101_v27, %v1102_v14  ;;  %v1127_v18 = vmax.f32 %v1125_v32, %v1126_v6  ;;  %v1548_v0 = vunpack.c.l.b16 %v1000_v10  ;;  %v1418_v10 = vld [vmem:[%s12345_s3 + $0x90] sm:$0xff]  ;;  %v436_v32 = vld [vmem:[%s8298_s29 + $0xcc] sm:$0xf] }
  0xc2   : > { %v1549_v21 = vunpack.c.l.b16 %v1013_v45  ;;  %v1116_v62 = vmax.f32 %v1114_v2, %v1115_v24  ;;  %v1138_v22 = vmax.f32 %v1136_v59, %v1137_v52  ;;  %v1550_v5 = vunpack.c.l.b16 %v1026_v34  ;;  %v438_v6 = vld [vmem:[%s8298_s29 + $0xd4] sm:$0xf] }
  0xc3   : > { %v1551_v60 = vunpack.c.l.b16 %v1039_v11  ;;  %v1104_v33 = vpack.i.bf16 %v1103_v13, %v1103_v13  ;;  %v1128_v35 = vrot.slane %v1127_v18, 1  ;;  %v1552_v51 = vunpack.c.l.b16 %v1052_v61  ;;  %v8999_v13 = vld [vmem:[%s8298_s29 + $0xe8] sm:$0xf] }
  0xc4   : > { %v1553_v7 = vunpack.c.l.b16 %v1065_v55  ;;  %v1117_v63 = vpack.i.bf16 %v1116_v62, %v1116_v62  ;;  %v1139_v1 = vrot.slane %v1138_v22, 2  ;;  %v1554_v30 = vunpack.c.l.b16 %v1078_v26  ;;  %v8985_v26 = vld [vmem:[%s8298_s29 + $0xe0] sm:$0xf]  ;;  %v9006_v62 = vld [vmem:[%s8298_s29 + $0xf0] sm:$0xf] }
  0xc5   : > { %v1555_v48 = vunpack.c.l.b16 %v1091_v49  ;;  %v1129_v45 = vmax.f32 %v1127_v18, %v1128_v35  ;;  %v1556_v29 = vunpack.c.l.b16 %v1104_v33  ;;  %v1611_v34 = vsel %vm1576_vm2, %v1545_v38, %v1544_v3  ;;  %v437_v3 = vld [vmem:[%s8298_s29 + $0xd0] sm:$0xf]  ;;  %v439_v38 = vld [vmem:[%s8298_s29 + $0xd8] sm:$0xf]  ;;  %v9002_v18 = vld [vmem:[%s8298_s29 + $0xec] sm:$0xf] }
  0xc6   : > { %v1618_v11 = vsel %vm1576_vm2, %v1553_v7, %v1552_v51  ;;  %v1140_v31 = vmax.f32 %v1138_v22, %v1139_v1  ;;  %v1557_v58 = vunpack.c.l.b16 %v1117_v63  ;;  %v1612_v42 = vsel %vm1578_vm3, %v1546_v17, %v1611_v34  ;;  %v8991_v17 = vld [vmem:[%s8298_s29 + $0xdc] sm:$0xf]  ;;  %v9009_v22 = vld [vmem:[%s8298_s29 + $0xf4] sm:$0xf] }
  0xc7   : > { %v1619_v16 = vsel %vm1578_vm3, %v1554_v30, %v1618_v11  ;;  %v1130_v4 = vpack.i.bf16 %v1129_v45, %v1129_v45  ;;  %v1613_v15 = vsel %vm1580_vm4, %v1547_v28, %v1612_v42  ;;  %v6939_v50 = vcombine.low %v1418_v10, %v1422_v44  ;;  %v8996_v28 = vld [vmem:[%s8298_s29 + $0xe4] sm:$0xf]  ;;  %v9018_v51 = vld [vmem:[%s8298_s29 + $0xfc] sm:$0xf] }
  0xc8   : > { %v1620_v46 = vsel %vm1580_vm4, %v1555_v48, %v1619_v16  ;;  %v1141_v61 = vrot.slane %v1140_v31, 1  ;;  %v1614_v23 = vsel %vm1582_vm5, %v1548_v0, %v1613_v15  ;;  %v6940_v54 = vcombine.high %v1418_v10, %v1422_v44 }
  0xc9   : > { %v1621_v53 = vsel %vm1582_vm5, %v1556_v29, %v1620_v46  ;;  %v1558_v8 = vunpack.c.l.b16 %v1130_v4  ;;  %v1615_v57 = vsel %vm1584_vm6, %v1549_v21, %v1614_v23  ;;  %v6947_v27 = vcombine.low %v1426_v37, %v1430_v39 }
  0xca   : > { %v1622_v55 = vsel %vm1584_vm6, %v1557_v58, %v1621_v53  ;;  %v1142_v47 = vmax.f32 %v1140_v31, %v1141_v61  ;;  %v1616_v2 = vsel %vm1586_vm7, %v1550_v5, %v1615_v57  ;;  %2046 = vmatprep.subr.bf16.mxu0 %v6940_v54  ;;  %v6948_v59 = vcombine.high %v1426_v37, %v1430_v39  ;;  %v9012_v5 = vld [vmem:[%s8298_s29 + $0xf8] sm:$0xf] }
  0xcb   : > { %v6957_v14 = vcombine.low %v1435_v25, %v1439_v12  ;;  %v1617_v49 = vsel %vm1588_vm8, %v1551_v60, %v1616_v2  ;;  %v1623_v24 = vsel %vm1586_vm7, %v1558_v8, %v1622_v55  ;;  %2047 = vmatpush1.bf16.msra.mxu0 %v6939_v50  ;;  %v6958_v52 = vcombine.high %v1435_v25, %v1439_v12 }
  0xcc   : > { %v502_v0 = vadd.bf16 %v8349_v56, %v433_v36  ;;  %v1143_v21 = vpack.i.bf16 %v1142_v47, %v1142_v47  ;;  %2048 = vmatprep.subr.bf16.mxu0 %v6948_v59  ;;  %v503_v60 = vadd.bf16 %v8349_v56, %v434_v40  ;;  %v504_v33 = vadd.bf16 %v8349_v56, %v435_v41 }
  0xcd   : > { %v505_v35 = vadd.bf16 %v8349_v56, %v436_v32  ;;  %2123 = vmatprep.subr.bf16.mxu1 %v6958_v52  ;;  %v506_v7 = vadd.bf16 %v8349_v56, %v437_v3  ;;  %v507_v63 = vadd.bf16 %v8349_v56, %v438_v6  ;;  %v508_v1 = vadd.bf16 %v8349_v56, %v439_v38 }
  0xce   : > { %v509_v30 = vadd.bf16 %v8349_v56, %v8991_v17  ;;  %v1559_v48 = vunpack.c.l.b16 %v1143_v21  ;;  %2124 = vmatpush1.bf16.msra.mxu1 %v6957_v14  ;;  %v510_v10 = vadd.bf16 %v8349_v56, %v8985_v26  ;;  %v511_v44 = vadd.bf16 %v8349_v56, %v8996_v28 }
  0xcf   : > { %v512_v45 = vadd.bf16 %v8349_v56, %v8999_v13  ;;  %2049 = vmatpush1.bf16.msra.mxu0 %v6947_v27  ;;  %v513_v29 = vadd.bf16 %v8349_v56, %v9002_v18  ;;  %v514_v34 = vadd.bf16 %v8349_v56, %v9006_v62  ;;  %v515_v11 = vadd.bf16 %v8349_v56, %v9009_v22 }
  0xd0   : > { %v516_v31 = vadd.bf16 %v8349_v56, %v9012_v5  ;;  %v1624_v58 = vsel %vm1588_vm8, %v1559_v48, %v1623_v24  ;;  %v517_v42 = vadd.bf16 %v8349_v56, %v9018_v51  ;;  %v1145_v16 = vsel %vm518_vm1, %v502_v0, 4286644096 }
  0xd1   : > { %v1158_v37 = vsel %vm518_vm1, %v503_v60, 4286644096  ;;  %v9044_v39 = vpack.c.b16 %v1624_v58, %v1617_v49  ;;  %v1147_v4 = vunpack.i.l.bf16 %v1145_v16  ;;  %v1148_v15 = vunpack.i.h.bf16 %v1145_v16 }
  0xd2   : > { %v1160_v46 = vunpack.i.l.bf16 %v1158_v37  ;;  %v1161_v50 = vunpack.i.h.bf16 %v1158_v37  ;;  %v1171_v25 = vsel %vm518_vm1, %v504_v33, 4286644096  ;;  %v1184_v12 = vsel %vm518_vm1, %v505_v35, 4286644096 }
  0xd3   : > { %v1197_v36 = vsel %vm518_vm1, %v506_v7, 4286644096  ;;  %6969 = vmatmul.mubr.msk.bf16.gmra.mrb[8].mxu0 %vm1883_vm9, %v9044_v39  ;;  %6973 = vmatmul.mubr.msk.bf16.gmra.mrb[8].mxu1 %vm1883_vm9, %v9044_v39  ;;  %v1149_v61 = vmax.f32 %v1147_v4, %v1148_v15  ;;  %v1173_v23 = vunpack.i.l.bf16 %v1171_v25  ;;  %v1174_v53 = vunpack.i.h.bf16 %v1171_v25 }
  0xd4   : > { %v1186_v54 = vunpack.i.l.bf16 %v1184_v12  ;;  %1958 = vmatprep.mubr.bf16.mxu0 %v12353_v9  ;;  %2031 = vmatprep.mubr.bf16.mxu1 %v12353_v9  ;;  %v1162_v40 = vmax.f32 %v1160_v46, %v1161_v50  ;;  %v1187_v41 = vunpack.i.h.bf16 %v1184_v12  ;;  %v1199_v8 = vunpack.i.l.bf16 %v1197_v36 }
  0xd5   : > { %v1200_v57 = vunpack.i.h.bf16 %v1197_v36  ;;  %v1150_v55 = vrot.slane %v1149_v61, 4  ;;  %v1175_v27 = vmax.f32 %v1173_v23, %v1174_v53  ;;  %v1210_v32 = vsel %vm518_vm1, %v507_v63, 4286644096 }
  0xd6   : > { %v1223_v3 = vsel %vm518_vm1, %v508_v1, 4286644096  ;;  %v1163_v47 = vrot.slane %v1162_v40, 4  ;;  %v1188_v2 = vmax.f32 %v1186_v54, %v1187_v41  ;;  %v1212_v14 = vunpack.i.l.bf16 %v1210_v32 }
  0xd7   : > { %v1201_v59 = vmax.f32 %v1199_v8, %v1200_v57  ;;  %v1151_v6 = vmax.f32 %v1149_v61, %v1150_v55  ;;  %v1176_v38 = vrot.slane %v1175_v27, 4  ;;  %v1213_v17 = vunpack.i.h.bf16 %v1210_v32 }
  0xd8   : > { %v1225_v49 = vunpack.i.l.bf16 %v1223_v3  ;;  %v1164_v24 = vmax.f32 %v1162_v40, %v1163_v47  ;;  %v1189_v52 = vrot.slane %v1188_v2, 4  ;;  %v1226_v21 = vunpack.i.h.bf16 %v1223_v3 }
  0xd9   : > { %v1202_v0 = vrot.slane %v1201_v59, 4  ;;  %v1152_v60 = vrot.slane %v1151_v6, 2  ;;  %v1177_v33 = vmax.f32 %v1175_v27, %v1176_v38  ;;  %v1214_v35 = vmax.f32 %v1212_v14, %v1213_v17 }
  0xda   : > { %v1236_v7 = vsel %vm518_vm1, %v509_v30, 4286644096  ;;  %v1165_v63 = vrot.slane %v1164_v24, 2  ;;  %v1190_v48 = vmax.f32 %v1188_v2, %v1189_v52  ;;  %v1227_v58 = vmax.f32 %v1225_v49, %v1226_v21 }
  0xdb   : > { %v1203_v1 = vmax.f32 %v1201_v59, %v1202_v0  ;;  %v1153_v16 = vmax.f32 %v1151_v6, %v1152_v60  ;;  %v1178_v37 = vrot.slane %v1177_v33, 2  ;;  %v1215_v4 = vrot.slane %v1214_v35, 4 }
  0xdc   : > { %v1238_v15 = vunpack.i.l.bf16 %v1236_v7  ;;  %v1166_v46 = vmax.f32 %v1164_v24, %v1165_v63  ;;  %v1191_v50 = vrot.slane %v1190_v48, 2  ;;  %v1228_v12 = vrot.slane %v1227_v58, 4 }
  0xdd   : > { %v1204_v25 = vrot.slane %v1203_v1, 2  ;;  %v1154_v36 = vrot.slane %v1153_v16, 1  ;;  %v1179_v61 = vmax.f32 %v1177_v33, %v1178_v37  ;;  %v1216_v23 = vmax.f32 %v1214_v35, %v1215_v4 }
  0xde   : > { %v1239_v53 = vunpack.i.h.bf16 %v1236_v7  ;;  %v1167_v54 = vrot.slane %v1166_v46, 1  ;;  %v1192_v40 = vmax.f32 %v1190_v48, %v1191_v50  ;;  %v1229_v30 = vmax.f32 %v1227_v58, %v1228_v12 }
  0xdf   : > { %v1205_v41 = vmax.f32 %v1203_v1, %v1204_v25  ;;  %v9058_v8 = vmax.f32 %v1153_v16, %v1154_v36  ;;  %v1180_v57 = vrot.slane %v1179_v61, 1  ;;  %v1217_v55 = vrot.slane %v1216_v23, 2 }
  0xe0   : > { %v1240_v27 = vmax.f32 %v1238_v15, %v1239_v53  ;;  %v9060_v32 = vmax.f32 %v1166_v46, %v1167_v54  ;;  %v1193_v3 = vrot.slane %v1192_v40, 1  ;;  %v1230_v2 = vrot.slane %v1229_v30, 2 }
  0xe1   : > { %v1206_v47 = vrot.slane %v1205_v41, 1  ;;  %v1156_v59 = vpack.i.bf16 %v9058_v8, %v9058_v8  ;;  %v9064_v14 = vmax.f32 %v1179_v61, %v1180_v57  ;;  %v1218_v6 = vmax.f32 %v1216_v23, %v1217_v55 }
  0xe2   : > { %v1241_v38 = vrot.slane %v1240_v27, 4  ;;  %v1169_v17 = vpack.i.bf16 %v9060_v32, %v9060_v32  ;;  %v9068_v49 = vmax.f32 %v1192_v40, %v1193_v3  ;;  %v1231_v52 = vmax.f32 %v1229_v30, %v1230_v2 }
  0xe3   : > { %v9070_v24 = vmax.f32 %v1205_v41, %v1206_v47  ;;  %v1182_v0 = vpack.i.bf16 %v9064_v14, %v9064_v14  ;;  %v1219_v21 = vrot.slane %v1218_v6, 1  ;;  %v1249_v33 = vsel %vm518_vm1, %v510_v10, 4286644096 }
  0xe4   : > { %v1242_v60 = vmax.f32 %v1240_v27, %v1241_v38  ;;  %v1195_v35 = vpack.i.bf16 %v9068_v49, %v9068_v49  ;;  %v1232_v63 = vrot.slane %v1231_v52, 1  ;;  %v1251_v48 = vunpack.i.l.bf16 %v1249_v33 }
  0xe5   : > { %v1208_v7 = vpack.i.bf16 %v9070_v24, %v9070_v24  ;;  %v9082_v1 = vmax.f32 %v1218_v6, %v1219_v21  ;;  %v1252_v16 = vunpack.i.h.bf16 %v1249_v33  ;;  %v1262_v37 = vsel %vm518_vm1, %v511_v44, 4286644096 }
  0xe6   : > { %v1243_v58 = vrot.slane %v1242_v60, 2  ;;  %v9088_v26 = vmax.f32 %v1231_v52, %v1232_v63  ;;  %v1264_v10 = vunpack.i.l.bf16 %v1262_v37  ;;  %v1265_v4 = vunpack.i.h.bf16 %v1262_v37 }
  0xe7   : > { %v1275_v15 = vsel %vm518_vm1, %v512_v45, 4286644096  ;;  %v1221_v46 = vpack.i.bf16 %v9082_v1, %v9082_v1  ;;  %v1253_v25 = vmax.f32 %v1251_v48, %v1252_v16  ;;  %v1288_v61 = vsel %vm518_vm1, %v513_v29, 4286644096 }
  0xe8   : > { %v1244_v50 = vmax.f32 %v1242_v60, %v1243_v58  ;;  %v1277_v12 = vunpack.i.l.bf16 %v1275_v15  ;;  %v1234_v28 = vpack.i.bf16 %v9088_v26, %v9088_v26  ;;  %v1266_v36 = vmax.f32 %v1264_v10, %v1265_v4 }
  0xe9   : > { %v1278_v44 = vunpack.i.h.bf16 %v1275_v15  ;;  %v1254_v13 = vrot.slane %v1253_v25, 4  ;;  %v1290_v53 = vunpack.i.l.bf16 %v1288_v61  ;;  %v1291_v45 = vunpack.i.h.bf16 %v1288_v61 }
  0xea   : > { %v1245_v23 = vrot.slane %v1244_v50, 1  ;;  %v1267_v54 = vrot.slane %v1266_v36, 4  ;;  %v1301_v41 = vsel %vm518_vm1, %v514_v34, 4286644096  ;;  %v1314_v30 = vsel %vm518_vm1, %v515_v11, 4286644096 }
  0xeb   : > { %v1279_v40 = vmax.f32 %v1277_v12, %v1278_v44  ;;  %v1255_v18 = vmax.f32 %v1253_v25, %v1254_v13  ;;  %v1292_v29 = vmax.f32 %v1290_v53, %v1291_v45  ;;  %v1303_v55 = vunpack.i.l.bf16 %v1301_v41 }
  0xec   : > { %v9110_v57 = vmax.f32 %v1244_v50, %v1245_v23  ;;  %v1268_v27 = vmax.f32 %v1266_v36, %v1267_v54  ;;  %v1304_v47 = vunpack.i.h.bf16 %v1301_v41  ;;  %v1316_v2 = vunpack.i.l.bf16 %v1314_v30 }
  0xed   : > { %v1280_v3 = vrot.slane %v1279_v40, 4  ;;  %v1256_v62 = vrot.slane %v1255_v18, 2  ;;  %v1293_v38 = vrot.slane %v1292_v29, 4  ;;  %v1317_v34 = vunpack.i.h.bf16 %v1314_v30 }
  0xee   : > { %v1247_v6 = vpack.i.bf16 %v9110_v57, %v9110_v57  ;;  %v1269_v52 = vrot.slane %v1268_v27, 2  ;;  %v1305_v22 = vmax.f32 %v1303_v55, %v1304_v47  ;;  %v1327_v11 = vsel %vm518_vm1, %v516_v31, 4286644096 }
  0xef   : > { %v1281_v21 = vmax.f32 %v1279_v40, %v1280_v3  ;;  %v1257_v60 = vmax.f32 %v1255_v18, %v1256_v62  ;;  %v1294_v33 = vmax.f32 %v1292_v29, %v1293_v38  ;;  %v1318_v63 = vmax.f32 %v1316_v2, %v1317_v34 }
  0xf0   : > { %v1329_v48 = vunpack.i.l.bf16 %v1327_v11  ;;  %v1270_v58 = vmax.f32 %v1268_v27, %v1269_v52  ;;  %v1306_v37 = vrot.slane %v1305_v22, 4  ;;  %v1330_v10 = vunpack.i.h.bf16 %v1327_v11 }
  0xf1   : > { %v1282_v16 = vrot.slane %v1281_v21, 2  ;;  %v1258_v4 = vrot.slane %v1257_v60, 1  ;;  %v1295_v15 = vrot.slane %v1294_v33, 2  ;;  %v1319_v50 = vrot.slane %v1318_v63, 4 }
  0xf2   : > { %v1340_v25 = vsel %vm518_vm1, %v517_v42, 4286644096  ;;  %v1271_v12 = vrot.slane %v1270_v58, 1  ;;  %v1307_v31 = vmax.f32 %v1305_v22, %v1306_v37  ;;  %v1331_v36 = vmax.f32 %v1329_v48, %v1330_v10 }
  0xf3   : > { %v1283_v5 = vmax.f32 %v1281_v21, %v1282_v16  ;;  %v1259_v44 = vmax.f32 %v1257_v60, %v1258_v4  ;;  %v1296_v61 = vmax.f32 %v1294_v33, %v1295_v15  ;;  %v1320_v23 = vmax.f32 %v1318_v63, %v1319_v50 }
  0xf4   : > { %v1342_v13 = vunpack.i.l.bf16 %v1340_v25  ;;  %v1272_v53 = vmax.f32 %v1270_v58, %v1271_v12  ;;  %v1308_v54 = vrot.slane %v1307_v31, 2  ;;  %v1332_v40 = vrot.slane %v1331_v36, 4  ;;  %v1438_v58 = vld [vmem:[%s12345_s3 + $0x130] sm:$0xff]  ;;  %v1447_v12 = vld [vmem:[%s12345_s3 + $0x178] sm:$0xff] }
  0xf5   : > { %v1284_v45 = vrot.slane %v1283_v5, 1  ;;  %v1260_v41 = vpack.i.bf16 %v1259_v44, %v1259_v44  ;;  %v1297_v30 = vrot.slane %v1296_v61, 1  ;;  %v1321_v18 = vrot.slane %v1320_v23, 2 }
  0xf6   : > { %v1343_v29 = vunpack.i.h.bf16 %v1340_v25  ;;  %v1273_v56 = vpack.i.bf16 %v1272_v53, %v1272_v53  ;;  %v1309_v42 = vmax.f32 %v1307_v31, %v1308_v54  ;;  %v1333_v55 = vmax.f32 %v1331_v36, %v1332_v40  ;;  %v1443_v25 = vld [vmem:[%s12345_s3 + $0x158] sm:$0xff]  ;;  %v1446_v54 = vld [vmem:[%s12345_s3 + $0x170] sm:$0xff] }
  0xf7   : > { %v1285_v51 = vmax.f32 %v1283_v5, %v1284_v45  ;;  %v1298_v27 = vmax.f32 %v1296_v61, %v1297_v30  ;;  %v1322_v3 = vmax.f32 %v1320_v23, %v1321_v18  ;;  %v1560_v2 = vunpack.c.l.b16 %v1156_v59  ;;  %v1442_v45 = vld [vmem:[%s12345_s3 + $0x150] sm:$0xff] }
  0xf8   : > { %v1344_v47 = vmax.f32 %v1342_v13, %v1343_v29  ;;  %v1310_v38 = vrot.slane %v1309_v42, 1  ;;  %v1334_v34 = vrot.slane %v1333_v55, 2  ;;  %v1561_v52 = vunpack.c.l.b16 %v1169_v17  ;;  %v9182_v29 = vld [vmem:[%s12344_s2 + $0x8] sm:$0xff] }
  0xf9   : > { %v1286_v62 = vpack.i.bf16 %v1285_v51, %v1285_v51  ;;  %v1299_v21 = vpack.i.bf16 %v1298_v27, %v1298_v27  ;;  %v1323_v22 = vrot.slane %v1322_v3, 1  ;;  %v1562_v60 = vunpack.c.l.b16 %v1182_v0 }
  0xfa   : > { %v1345_v11 = vrot.slane %v1344_v47, 4  ;;  %v1311_v33 = vmax.f32 %v1309_v42, %v1310_v38  ;;  %v1335_v63 = vmax.f32 %v1333_v55, %v1334_v34  ;;  %v1563_v8 = vunpack.c.l.b16 %v1195_v35  ;;  %v9209_v34 = vld [vmem:[%s12344_s2 + $0x68] sm:$0xff] }
  0xfb   : > { %v1564_v59 = vunpack.c.l.b16 %v1208_v7  ;;  %v1324_v32 = vmax.f32 %v1322_v3, %v1323_v22  ;;  %v1565_v48 = vunpack.c.l.b16 %v1221_v46  ;;  %v1566_v14 = vunpack.c.l.b16 %v1234_v28  ;;  %v1434_v7 = vld [vmem:[%s12345_s3 + $0x110] sm:$0xff]  ;;  %v9194_v3 = vld [vmem:[%s12344_s2] sm:$0xff] }
  0xfc   : > { %v1346_v17 = vmax.f32 %v1344_v47, %v1345_v11  ;;  %v1312_v49 = vpack.i.bf16 %v1311_v33, %v1311_v33  ;;  %v1336_v0 = vrot.slane %v1335_v63, 1  ;;  %v1567_v24 = vunpack.c.l.b16 %v1247_v6  ;;  %v9199_v47 = vld [vmem:[%s12344_s2 + $0x20] sm:$0xff] }
  0xfd   : > { %v1568_v35 = vunpack.c.l.b16 %v1260_v41  ;;  %v1325_v1 = vpack.i.bf16 %v1324_v32, %v1324_v32  ;;  %v1569_v26 = vunpack.c.l.b16 %v1273_v56  ;;  %v1570_v28 = vunpack.c.l.b16 %v1286_v62  ;;  %v9187_v56 = vld [vmem:[%s12344_s2 + $0x28] sm:$0xff]  ;;  %v9231_v33 = vld [vmem:[%s12344_s2 + $0x60] sm:$0xff] }
  0xfe   : > { %v1347_v46 = vrot.slane %v1346_v17, 2  ;;  %v1337_v16 = vmax.f32 %v1335_v63, %v1336_v0  ;;  %v1571_v37 = vunpack.c.l.b16 %v1299_v21  ;;  %v1572_v10 = vunpack.c.l.b16 %v1312_v49  ;;  %v9219_v21 = vld [vmem:[%s12344_s2 + $0xa8] sm:$0xff] }
  0xff   : > { %v1625_v4 = vsel %vm1576_vm2, %v1561_v52, %v1560_v2  ;;  %v1573_v6 = vunpack.c.l.b16 %v1325_v1  ;;  %v1632_v50 = vsel %vm1576_vm2, %v1569_v26, %v1568_v35  ;;  %v6955_v44 = vcombine.low %v1434_v7, %v1438_v58  ;;  %v9204_v2 = vld [vmem:[%s12344_s2 + $0x48] sm:$0xff]  ;;  %v9271_v1 = vld [vmem:[%s12344_s2 + $0xe0] sm:$0xff]  ;;  %v7969_v35 = vld [vmem:[%s8298_s29 + $0x3c] sm:$0xf] }
 0x100   : > { %v1348_v57 = vmax.f32 %v1346_v17, %v1347_v46  ;;  %v1626_v15 = vsel %vm1578_vm3, %v1562_v60, %v1625_v4  ;;  %v1338_v5 = vpack.i.bf16 %v1337_v16, %v1337_v16  ;;  %v1633_v36 = vsel %vm1578_vm3, %v1570_v28, %v1632_v50  ;;  %v9214_v52 = vld [vmem:[%s12344_s2 + $0x88] sm:$0xff]  ;;  %v9226_v60 = vld [vmem:[%s12344_s2 + $0x40] sm:$0xff] }
 0x101   : > { %v1627_v31 = vsel %vm1580_vm4, %v1563_v8, %v1626_v15  ;;  %v1634_v13 = vsel %vm1580_vm4, %v1571_v37, %v1633_v36  ;;  %v6956_v53 = vcombine.high %v1434_v7, %v1438_v58  ;;  %v6965_v18 = vcombine.low %v1443_v25, %v1447_v12  ;;  %v9236_v63 = vld [vmem:[%s12344_s2 + $0xc8] sm:$0xff]  ;;  %v9266_v7 = vld [vmem:[%s12344_s2 + $0xc0] sm:$0xff]  ;;  %v7968_v36 = vld [vmem:[%s8298_s29 + $0x38] sm:$0xf] }
 0x102   : > { %v1349_v61 = vrot.slane %v1348_v57, 1  ;;  %v1628_v23 = vsel %vm1582_vm5, %v1564_v59, %v1627_v31  ;;  %v1574_v40 = vunpack.c.l.b16 %v1338_v5  ;;  %v1635_v30 = vsel %vm1582_vm5, %v1572_v10, %v1634_v13  ;;  %v9245_v17 = vld [vmem:[%s12344_s2 + $0xe8] sm:$0xff]  ;;  %v9294_v10 = vld [vmem:[%s12344_s2 + $0x100] sm:$0xff]  ;;  %v7966_v13 = vld [vmem:[%s8298_s29 + $0x1c] sm:$0xf] }
 0x103   : > { %v1629_v41 = vsel %vm1584_vm6, %v1565_v48, %v1628_v23  ;;  %v1636_v55 = vsel %vm1584_vm6, %v1573_v6, %v1635_v30  ;;  %2050 = vmatprep.subr.bf16.mxu0 %v6956_v53  ;;  %v6966_v27 = vcombine.high %v1443_v25, %v1447_v12  ;;  %v6963_v62 = vcombine.low %v1442_v45, %v1446_v54  ;;  %v9250_v48 = vld [vmem:[%s12344_s2 + $0x80] sm:$0xff]  ;;  %v9276_v46 = vld [vmem:[%s12344_s2 + $0x108] sm:$0xff] }
 0x104   : > { %v1350_v51 = vmax.f32 %v1348_v57, %v1349_v61  ;;  %v1630_v42 = vsel %vm1586_vm7, %v1566_v14, %v1629_v41  ;;  %2051 = vmatpush1.bf16.msra.mxu0 %v6955_v44  ;;  %v6964_v38 = vcombine.high %v1442_v45, %v1446_v54  ;;  %v7050_v11 = vcombine.high %v9182_v29, %v9187_v56  ;;  %v9255_v14 = vld [vmem:[%s12344_s2 + $0xa0] sm:$0xff]  ;;  %v9289_v37 = vld [vmem:[%s12344_s2 + $0x128] sm:$0xff] }
 0x105   : > { %2125 = vmatprep.subr.bf16.mxu1 %v6966_v27  ;;  %v1631_v8 = vsel %vm1588_vm8, %v1567_v24, %v1630_v42  ;;  %v1637_v59 = vsel %vm1586_vm7, %v1574_v40, %v1636_v55  ;;  %v7048_v32 = vcombine.high %v9194_v3, %v9199_v47  ;;  %v7049_v0 = vcombine.low %v9182_v29, %v9187_v56  ;;  %v9299_v4 = vld [vmem:[%s12344_s2 + $0x120] sm:$0xff]  ;;  %v9311_v25 = vld [vmem:[%s12344_s2 + $0x148] sm:$0xff]  ;;  %v7962_v40 = vld [vmem:[%s8298_s29 + $0x18] sm:$0xf] }
 0x106   : > { %v1351_v22 = vpack.i.bf16 %v1350_v51, %v1350_v51  ;;  %2126 = vmatpush1.bf16.msra.mxu1 %v6965_v18  ;;  %2052 = vmatprep.subr.bf16.mxu0 %v6964_v38  ;;  %v7047_v24 = vcombine.low %v9194_v3, %v9199_v47  ;;  %v7058_v26 = vcombine.high %v9204_v2, %v9209_v34  ;;  %v9316_v12 = vld [vmem:[%s12344_s2 + $0x168] sm:$0xff]  ;;  %v9329_v61 = vld [vmem:[%s12344_s2 + $0x140] sm:$0xff]  ;;  %v9357_v18 = vld [vmem:[%s12344_s2 + $0x18] sm:$0xff] }
 0x107   : > { %2885 = vmatprep.subr.bf16.mxu1 %v7050_v11  ;;  %v9334_v23 = vld [vmem:[%s12344_s2 + $0x160] sm:$0xff]  ;;  %v9362_v51 = vld [vmem:[%s12344_s2 + $0x38] sm:$0xff]  ;;  %v7956_v11 = vld [vmem:[%s8298_s29 + $0xc] sm:$0xf]  ;;  %v6990_v31 = vcombine.low %v7966_v13, %v7966_v13  ;;  %v12388_v29 = vcombine.high %v9226_v60, %v9231_v33 }
 0x108   : > { %v1575_v49 = vunpack.c.l.b16 %v1351_v22  ;;  %2053 = vmatpush1.bf16.msra.mxu0 %v6963_v62  ;;  %v7954_v55 = vld [vmem:[%s8298_s29 + $0x4] sm:$0xf]  ;;  %v7955_v62 = vld [vmem:[%s8298_s29 + $0x8] sm:$0xf]  ;;  %v7963_v53 = vld [vmem:[%s8298_s29 + $0x20] sm:$0xf] }
 0x109   : > { %2812 = vmatprep.subr.bf16.mxu0 %v7048_v32  ;;  %v6984_v27 = vcombine.low %v7954_v55, %v7954_v55  ;;  %v6985_v38 = vcombine.low %v7955_v62, %v7955_v62  ;;  %v7959_v55 = vld [vmem:[%s8298_s29] sm:$0xf]  ;;  %v7960_v62 = vld [vmem:[%s8298_s29 + $0x24] sm:$0xf]  ;;  %v7961_v54 = vld [vmem:[%s8298_s29 + $0x28] sm:$0xf]  ;;  %v6991_v44 = vcombine.low %v7963_v53, %v7963_v53 }
 0x10a   : > { %v1638_v57 = vsel %vm1588_vm8, %v1575_v49, %v1637_v59  ;;  %v7957_v59 = vld [vmem:[%s8298_s29 + $0x10] sm:$0xf]  ;;  %v7958_v49 = vld [vmem:[%s8298_s29 + $0x14] sm:$0xf]  ;;  %v6983_v41 = vcombine.low %v7959_v55, %v7959_v55  ;;  %v6992_v30 = vcombine.low %v7960_v62, %v7960_v62  ;;  %v6993_v22 = vcombine.low %v7961_v54, %v7961_v54 }
 0x10b   : > { %v9318_v5 = vpack.c.b16 %v1638_v57, %v1631_v8  ;;  %v6986_v8 = vcombine.low %v7956_v11, %v7956_v11  ;;  %v6987_v32 = vcombine.low %v7957_v59, %v7957_v59  ;;  %v6988_v57 = vcombine.low %v7958_v49, %v7958_v49  ;;  %v7964_v59 = vld [vmem:[%s8298_s29 + $0x2c] sm:$0xf]  ;;  %v7965_v49 = vld [vmem:[%s8298_s29 + $0x30] sm:$0xf]  ;;  %v7967_v42 = vld [vmem:[%s8298_s29 + $0x34] sm:$0xf] }
 0x10c   : > { %v6989_v11 = vcombine.low %v7962_v40, %v7962_v40  ;;  %v6994_v45 = vcombine.low %v7964_v59, %v7964_v59  ;;  %v6995_v15 = vcombine.low %v7965_v49, %v7965_v49  ;;  %v6996_v50 = vcombine.low %v7967_v42, %v7967_v42  ;;  %v9441_v49 = vld [vmem:[%s12344_s2 + $0x58] sm:$0xff] }
 0x10d   : > { %6970 = vmatmul.mubr.msk.bf16.gmra.mrb[12].mxu0 %vm1883_vm9, %v9318_v5  ;;  %6974 = vmatmul.mubr.msk.bf16.gmra.mrb[12].mxu1 %vm1883_vm9, %v9318_v5  ;;  %v2381_v28 = vunpack.c.l.b16 %v6984_v27  ;;  %v2382_v55 = vunpack.c.l.b16 %v6985_v38  ;;  %v6997_v62 = vcombine.low %v7968_v36, %v7968_v36  ;;  %v2383_v58 = vunpack.c.l.b16 %v6986_v8 }
 0x10e   : > { %2074 = vmatprep.mubr.bf16.mxu0 %v12353_v9  ;;  %2147 = vmatprep.mubr.bf16.mxu1 %v12353_v9  ;;  %v2384_v16 = vunpack.c.l.b16 %v6987_v32  ;;  %v2385_v54 = vunpack.c.l.b16 %v6988_v57  ;;  %v6998_v40 = vcombine.low %v7969_v35, %v7969_v35  ;;  %v2380_v6 = vunpack.c.l.b16 %v6983_v41 }
 0x10f   : > { %v2389_v53 = vunpack.c.l.b16 %v6992_v30  ;;  %v2390_v9 = vunpack.c.l.b16 %v6993_v22  ;;  %v2386_v13 = vunpack.c.l.b16 %v6989_v11  ;;  %v2388_v42 = vunpack.c.l.b16 %v6991_v44 }
 0x110   : > { %v2391_v27 = vunpack.c.l.b16 %v6994_v45  ;;  %v2392_v38 = vunpack.c.l.b16 %v6995_v15  ;;  %v2393_v35 = vunpack.c.l.b16 %v6996_v50  ;;  %v2444_v36 = vrot.slane %v2381_v28, 7  ;;  %v9418_v50 = vld [vmem:[%s12344_s2 + $0x30] sm:$0xff] }
 0x111   : > { %v2446_v41 = vrot.slane %v2382_v55, 6  ;;  %v2448_v30 = vrot.slane %v2383_v58, 5  ;;  %v2387_v44 = vunpack.c.l.b16 %v6990_v31  ;;  %v2394_v15 = vunpack.c.l.b16 %v6997_v62  ;;  %v9446_v55 = vld [vmem:[%s12344_s2 + $0x78] sm:$0xff] }
 0x112   : > { %v2450_v45 = vrot.slane %v2384_v16, 4  ;;  %v2452_v22 = vrot.slane %v2385_v54, 3  ;;  %v2445_v56 = vsel %vm1576_vm2, %v2444_v36, %v2380_v6  ;;  %v2458_v3 = vrot.slane %v2389_v53, 7  ;;  %v9413_v16 = vld [vmem:[%s12344_s2 + $0x10] sm:$0xff] }
 0x113   : > { %v2460_v47 = vrot.slane %v2390_v9, 6  ;;  %v2454_v28 = vrot.slane %v2386_v13, 2  ;;  %v2464_v58 = vrot.slane %v2392_v38, 4  ;;  %v12389_v9 = vcombine.low %v9204_v2, %v9209_v34 }
 0x114   : > { %v12390_v6 = vcombine.low %v9226_v60, %v9231_v33  ;;  %v9426_v31 = vunpack.c.l.b16 %v6998_v40  ;;  %v2459_v32 = vsel %vm1576_vm2, %v2458_v3, %v2388_v42  ;;  %v2466_v57 = vrot.slane %v2393_v35, 3  ;;  %v7973_v3 = vld [vmem:[%s8298_s29 + $0x4c] sm:$0xf] }
 0x115   : > { %6975 = vmatmul.mubr.msk.bf16.vlgmr.msra.gmra.mrb[16].mxu0 %vm1883_vm9, %v8647_v19  ;;  %6979 = vmatmul.mubr.msk.bf16.vlgmr.msra.gmra.mrb[16].mxu1 %vm1883_vm9, %v8647_v19  ;;  %v12387_v19 = vmov 0   ;;  %v12391_v11 = vcombine.high %v9214_v52, %v9219_v21  ;;  %v12392_v59 = vcombine.high %v9250_v48, %v9255_v14  ;;  %v2456_v34 = vrot.slane %v2387_v44, 1  ;;  %v7971_v44 = vld [vmem:[%s8298_s29 + $0x44] sm:$0xf] }
 0x116   : > { %2886 = vmatpush1.bf16.msra.mxu1 %v7049_v0  ;;  %2813 = vmatpush1.bf16.msra.mxu0 %v7047_v24  ;;  %v2462_v0 = vrot.slane %v2391_v27, 5  ;;  %v7054_v24 = vcombine.high %v9357_v18, %v9362_v51  ;;  %v2461_v60 = vsel %vm1578_vm3, %v2460_v47, %v2459_v32  ;;  %v2468_v33 = vrot.slane %v2394_v15, 2  ;;  %v7970_v27 = vld [vmem:[%s8298_s29 + $0x40] sm:$0xf] }
 0x117   : > { %2887 = vmatprep.subr.bf16.mxu1 %v7058_v26  ;;  %2084 = vmatprep.mubr.bf16.mxu0 %v12387_v19  ;;  %v2447_v26 = vsel %vm1578_vm3, %v2446_v41, %v2445_v56  ;;  %v7051_v40 = vcombine.low %v9413_v16, %v9418_v50  ;;  %v7052_v53 = vcombine.high %v9413_v16, %v9418_v50 }
 0x118   : > { %2157 = vmatprep.mubr.bf16.mxu1 %v12387_v19  ;;  %2814 = vmatprep.subr.bf16.mxu0 %v12388_v29  ;;  %v2449_v8 = vsel %vm1580_vm4, %v2448_v30, %v2447_v26  ;;  %v2463_v54 = vsel %vm1580_vm4, %v2462_v0, %v2461_v60  ;;  %v6999_v38 = vcombine.low %v7970_v27, %v7970_v27  ;;  %v7974_v0 = vld [vmem:[%s8298_s29 + $0x50] sm:$0xf]  ;;  %v7983_v27 = vld [vmem:[%s8298_s29 + $0x74] sm:$0xf] }
 0x119   : > { %v2451_v2 = vsel %vm1582_vm5, %v2450_v45, %v2449_v8  ;;  %v2465_v42 = vsel %vm1582_vm5, %v2464_v58, %v2463_v54  ;;  %v12393_v35 = vcombine.low %v9214_v52, %v9219_v21  ;;  %v7062_v41 = vcombine.high %v9441_v49, %v9446_v55  ;;  %v7972_v45 = vld [vmem:[%s8298_s29 + $0x48] sm:$0xf]  ;;  %v7978_v8 = vld [vmem:[%s8298_s29 + $0x64] sm:$0xf]  ;;  %v7982_v54 = vld [vmem:[%s8298_s29 + $0x70] sm:$0xf] }
 0x11a   : > { %2888 = vmatpush1.bf16.msra.mxu1 %v12389_v9  ;;  %2815 = vmatpush1.bf16.msra.mxu0 %v12390_v6  ;;  %v2453_v62 = vsel %vm1584_vm6, %v2452_v22, %v2451_v2  ;;  %v2467_v36 = vsel %vm1584_vm6, %v2466_v57, %v2465_v42  ;;  %v12394_v30 = vcombine.high %v9236_v63, %v9245_v17  ;;  %v2470_v21 = vrot.slane %v9426_v31, 1  ;;  %v7976_v6 = vld [vmem:[%s8298_s29 + $0x58] sm:$0xf] }
 0x11b   : > { %2889 = vmatprep.subr.bf16.mxu1 %v12391_v11  ;;  %2816 = vmatprep.subr.bf16.mxu0 %v12392_v59  ;;  %v2455_v13 = vsel %vm1586_vm7, %v2454_v28, %v2453_v62  ;;  %v7000_v15 = vcombine.low %v7971_v44, %v7971_v44  ;;  %v7001_v22 = vcombine.low %v7972_v45, %v7972_v45  ;;  %v7975_v28 = vld [vmem:[%s8298_s29 + $0x54] sm:$0xf]  ;;  %v2396_v57 = vunpack.c.l.b16 %v6999_v38  ;;  %v7979_v59 = vld [vmem:[%s8298_s29 + $0x60] sm:$0xf]  ;;  %v7984_v38 = vld [vmem:[%s8298_s29 + $0x78] sm:$0xf] }
 0x11c   : > { %v9475_v52 = vsel %vm1588_vm8, %v2456_v34, %v2455_v13  ;;  %v12395_v29 = vcombine.low %v9250_v48, %v9255_v14  ;;  %v2469_v56 = vsel %vm1586_vm7, %v2468_v33, %v2467_v36  ;;  %v7002_v47 = vcombine.low %v7973_v3, %v7973_v3  ;;  %v7977_v48 = vld [vmem:[%s8298_s29 + $0x5c] sm:$0xf]  ;;  %v7980_v34 = vld [vmem:[%s8298_s29 + $0x68] sm:$0xf]  ;;  %v7981_v33 = vld [vmem:[%s8298_s29 + $0x6c] sm:$0xf] }
 0x11d   : > { %6976 = vmatmul.mubr.msk.bf16.gmra.mrb[20].mxu0 %vm1883_vm9, %v8853_v43  ;;  %6980 = vmatmul.mubr.msk.bf16.gmra.mrb[20].mxu1 %vm1883_vm9, %v8853_v43  ;;  %v7061_v43 = vcombine.low %v9441_v49, %v9446_v55  ;;  %v7003_v26 = vcombine.low %v7974_v0, %v7974_v0  ;;  %v7004_v58 = vcombine.low %v7975_v28, %v7975_v28  ;;  %v7985_v44 = vld [vmem:[%s8298_s29 + $0x7c] sm:$0xf] }
 0x11e   : > { %2890 = vmatpush1.bf16.msra.mxu1 %v12393_v35  ;;  %2094 = vmatprep.mubr.bf16.mxu0 %v12387_v19  ;;  %v12396_v9 = vcombine.high %v9266_v7, %v9271_v1  ;;  %v7005_v31 = vcombine.low %v7976_v6, %v7976_v6  ;;  %v7006_v14 = vcombine.low %v7977_v48, %v7977_v48 }
 0x11f   : > { %2167 = vmatprep.mubr.bf16.mxu1 %v12387_v19  ;;  %2891 = vmatprep.subr.bf16.mxu1 %v12394_v30  ;;  %v7008_v32 = vcombine.low %v7978_v8, %v7978_v8  ;;  %v12397_v11 = vcombine.low %v9236_v63, %v9245_v17  ;;  %v7007_v2 = vcombine.low %v7979_v59, %v7979_v59  ;;  %v2397_v30 = vunpack.c.l.b16 %v7000_v15 }
 0x120   : > { %2817 = vmatpush1.bf16.msra.mxu0 %v12395_v29  ;;  %v7009_v60 = vcombine.low %v7980_v34, %v7980_v34  ;;  %v7010_v62 = vcombine.low %v7981_v33, %v7981_v33  ;;  %v7011_v13 = vcombine.low %v7982_v54, %v7982_v54  ;;  %v12398_v42 = vcombine.high %v9276_v46, %v9289_v37 }
 0x121   : > { %2818 = vmatprep.subr.bf16.mxu0 %v12396_v9  ;;  %v7012_v35 = vcombine.low %v7983_v27, %v7983_v27  ;;  %v7013_v36 = vcombine.low %v7984_v38, %v7984_v38  ;;  %v2398_v63 = vunpack.c.l.b16 %v7001_v22  ;;  %v12399_v17 = vcombine.low %v9266_v7, %v9271_v1 }
 0x122   : > { %2892 = vmatpush1.bf16.msra.mxu1 %v12397_v11  ;;  %v7014_v45 = vcombine.low %v7985_v44, %v7985_v44  ;;  %v2399_v29 = vunpack.c.l.b16 %v7002_v47  ;;  %v2400_v3 = vunpack.c.l.b16 %v7003_v26  ;;  %v2401_v0 = vunpack.c.l.b16 %v7004_v58  ;;  %v9579_v44 = vld [vmem:[%s12344_s2 + $0xf8] sm:$0xff] }
 0x123   : > { %2893 = vmatprep.subr.bf16.mxu1 %v12398_v42  ;;  %v2471_v28 = vsel %vm1588_vm8, %v2470_v21, %v2469_v56  ;;  %v2402_v9 = vunpack.c.l.b16 %v7005_v31  ;;  %v2405_v15 = vunpack.c.l.b16 %v7008_v32  ;;  %v2406_v22 = vunpack.c.l.b16 %v7009_v60 }
 0x124   : > { %2819 = vmatpush1.bf16.msra.mxu0 %v12399_v17  ;;  %v12400_v7 = vcombine.low %v9276_v46, %v9289_v37  ;;  %v2403_v1 = vunpack.c.l.b16 %v7006_v14  ;;  %v2404_v47 = vunpack.c.l.b16 %v7007_v2  ;;  %v2407_v26 = vunpack.c.l.b16 %v7010_v62  ;;  %v9574_v17 = vld [vmem:[%s12344_s2 + $0xd8] sm:$0xff] }
 0x125   : > { %6977 = vmatmul.mubr.msk.bf16.gmra.mrb[24].mxu0 %vm1883_vm9, %v9044_v39  ;;  %6981 = vmatmul.mubr.msk.bf16.gmra.mrb[24].mxu1 %vm1883_vm9, %v9044_v39  ;;  %v2408_v58 = vunpack.c.l.b16 %v7011_v13  ;;  %v12401_v39 = vcombine.high %v9294_v10, %v9299_v4  ;;  %v2409_v21 = vunpack.c.l.b16 %v7012_v35  ;;  %v2472_v56 = vrot.slane %v2397_v30, 7 }
 0x126   : > { %2894 = vmatpush1.bf16.msra.mxu1 %v12400_v7  ;;  %2104 = vmatprep.mubr.bf16.mxu0 %v12387_v19  ;;  %v2474_v6 = vrot.slane %v2398_v63, 6  ;;  %v2476_v31 = vrot.slane %v2399_v29, 5  ;;  %v12402_v46 = vcombine.low %v9294_v10, %v9299_v4  ;;  %v12403_v37 = vcombine.high %v9311_v25, %v9316_v12  ;;  %v9535_v10 = vld [vmem:[%s12344_s2 + $0x98] sm:$0xff] }
 0x127   : > { %2177 = vmatprep.mubr.bf16.mxu1 %v12387_v19  ;;  %2820 = vmatprep.subr.bf16.mxu0 %v12401_v39  ;;  %v2410_v48 = vunpack.c.l.b16 %v7013_v36  ;;  %v2411_v14 = vunpack.c.l.b16 %v7014_v45  ;;  %v2478_v8 = vrot.slane %v2400_v3, 4  ;;  %v2480_v32 = vrot.slane %v2401_v0, 3  ;;  %v9540_v4 = vld [vmem:[%s12344_s2 + $0xb8] sm:$0xff] }
 0x128   : > { %2821 = vmatpush1.bf16.msra.mxu0 %v12402_v46  ;;  %2895 = vmatprep.subr.bf16.mxu1 %v12403_v37  ;;  %v12404_v11 = vcombine.high %v9329_v61, %v9334_v23  ;;  %v2473_v59 = vsel %vm1576_vm2, %v2472_v56, %v2396_v57  ;;  %v2486_v2 = vrot.slane %v2405_v15, 7  ;;  %v2488_v34 = vrot.slane %v2406_v22, 6  ;;  %v7990_v46 = vld [vmem:[%s8298_s29 + $0x90] sm:$0xf] }
 0x129   : > { %v2490_v60 = vrot.slane %v2407_v26, 5  ;;  %v12405_v33 = vcombine.low %v9311_v25, %v9316_v12  ;;  %v9546_v62 = vpack.c.b16 %v2471_v28, %v9475_v52  ;;  %v2475_v57 = vsel %vm1578_vm3, %v2474_v6, %v2473_v59  ;;  %v9557_v25 = vld [vmem:[%s12344_s2 + $0x50] sm:$0xff]  ;;  %v7987_v26 = vld [vmem:[%s8298_s29 + $0x84] sm:$0xf]  ;;  %v7989_v6 = vld [vmem:[%s8298_s29 + $0x8c] sm:$0xf] }
 0x12a   : > { %2822 = vmatprep.subr.bf16.mxu0 %v12404_v11  ;;  %v2482_v54 = vrot.slane %v2402_v9, 2  ;;  %v2492_v13 = vrot.slane %v2408_v58, 4  ;;  %v2477_v42 = vsel %vm1580_vm4, %v2476_v31, %v2475_v57  ;;  %v2484_v27 = vrot.slane %v2403_v1, 1  ;;  %v9562_v12 = vld [vmem:[%s12344_s2 + $0x70] sm:$0xff]  ;;  %v7993_v59 = vld [vmem:[%s8298_s29 + $0xa4] sm:$0xf] }
 0x12b   : > { %2896 = vmatpush1.bf16.msra.mxu1 %v12405_v33  ;;  %v2487_v35 = vsel %vm1576_vm2, %v2486_v2, %v2404_v47  ;;  %v2494_v38 = vrot.slane %v2409_v21, 3  ;;  %v12406_v52 = vcombine.low %v9329_v61, %v9334_v23  ;;  %v2496_v30 = vrot.slane %v2410_v48, 2  ;;  %v7986_v47 = vld [vmem:[%s8298_s29 + $0x80] sm:$0xf]  ;;  %v7988_v21 = vld [vmem:[%s8298_s29 + $0x88] sm:$0xf] }
 0x12c   : > { %3031 = vmatprep.subr.bf16.mxu1 %v7054_v24  ;;  %v2479_v24 = vsel %vm1582_vm5, %v2478_v8, %v2477_v42  ;;  %v2489_v36 = vsel %vm1578_vm3, %v2488_v34, %v2487_v35  ;;  %v7069_v63 = vcombine.low %v9535_v10, %v9540_v4  ;;  %v2498_v45 = vrot.slane %v2411_v14, 1  ;;  %v7991_v14 = vld [vmem:[%s8298_s29 + $0x94] sm:$0xf]  ;;  %v7994_v34 = vld [vmem:[%s8298_s29 + $0x9c] sm:$0xf] }
 0x12d   : > { %2823 = vmatpush1.bf16.msra.mxu0 %v12406_v52  ;;  %6982 = vmatmul.mubr.msk.bf16.gmra.mrb[28].mxu1 %vm1883_vm9, %v9318_v5  ;;  %v2481_v61 = vsel %vm1584_vm6, %v2480_v32, %v2479_v24  ;;  %v2491_v23 = vsel %vm1580_vm4, %v2490_v60, %v2489_v36  ;;  %v7070_v29 = vcombine.high %v9535_v10, %v9540_v4  ;;  %v7992_v32 = vld [vmem:[%s8298_s29 + $0x98] sm:$0xf]  ;;  %v7995_v33 = vld [vmem:[%s8298_s29 + $0xa8] sm:$0xf]  ;;  %v7997_v42 = vld [vmem:[%s8298_s29 + $0xb0] sm:$0xf] }
 0x12e   : > { %6978 = vmatmul.mubr.msk.bf16.gmra.mrb[28].mxu0 %vm1883_vm9, %v9318_v5  ;;  %2917 = vmatprep.mubr.bf16.mxu1 %v12387_v19  ;;  %v2483_v3 = vsel %vm1586_vm7, %v2482_v54, %v2481_v61  ;;  %v2493_v0 = vsel %vm1582_vm5, %v2492_v13, %v2491_v23  ;;  %v7059_v5 = vcombine.low %v9557_v25, %v9562_v12  ;;  %v7996_v54 = vld [vmem:[%s8298_s29 + $0xac] sm:$0xf]  ;;  %v7998_v35 = vld [vmem:[%s8298_s29 + $0xa0] sm:$0xf]  ;;  %v7999_v52 = vld [vmem:[%s8298_s29 + $0xb4] sm:$0xf] }
 0x12f   : > { %2844 = vmatprep.mubr.bf16.mxu0 %v12387_v19  ;;  %2958 = vmatprep.subr.bf16.mxu0 %v7052_v53  ;;  %v2485_v28 = vsel %vm1588_vm8, %v2484_v27, %v2483_v3  ;;  %v2495_v9 = vsel %vm1584_vm6, %v2494_v38, %v2493_v0  ;;  %v7060_v15 = vcombine.high %v9557_v25, %v9562_v12  ;;  %v8000_v36 = vld [vmem:[%s8298_s29 + $0xb8] sm:$0xf]  ;;  %v8001_v23 = vld [vmem:[%s8298_s29 + $0xbc] sm:$0xf] }
 0x130   : > { %v7077_v22 = vcombine.low %v9574_v17, %v9579_v44  ;;  %v2497_v7 = vsel %vm1586_vm7, %v2496_v30, %v2495_v9  ;;  %v7078_v1 = vcombine.high %v9574_v17, %v9579_v44  ;;  %v7015_v53 = vcombine.low %v7986_v47, %v7986_v47  ;;  %v8009_v44 = vld [vmem:[%s8298_s29 + $0xdc] sm:$0xf] }
 0x131   : > { %v7016_v58 = vcombine.low %v7987_v26, %v7987_v26  ;;  %v2499_v39 = vsel %vm1588_vm8, %v2498_v45, %v2497_v7  ;;  %v7017_v56 = vcombine.low %v7988_v21, %v7988_v21  ;;  %v7018_v31 = vcombine.low %v7989_v6, %v7989_v6 }
 0x132   : > { %v7019_v37 = vcombine.low %v7990_v46, %v7990_v46  ;;  %v9613_v48 = vpack.c.b16 %v2499_v39, %v2485_v28  ;;  %v7020_v8 = vcombine.low %v7991_v14, %v7991_v14  ;;  %v7021_v11 = vcombine.low %v7992_v32, %v7992_v32  ;;  %v1374_v32 = vld [vmem:[%s12344_s2 + $0xb0] sm:$0xff] }
 0x133   : > { %v7024_v2 = vcombine.low %v7993_v59, %v7993_v59  ;;  %v7022_v60 = vcombine.low %v7994_v34, %v7994_v34  ;;  %v7025_v57 = vcombine.low %v7995_v33, %v7995_v33  ;;  %v7026_v13 = vcombine.low %v7996_v54, %v7996_v54  ;;  %v1387_v54 = vld [vmem:[%s12344_s2 + $0x118] sm:$0xff] }
 0x134   : > { %v7027_v27 = vcombine.low %v7997_v42, %v7997_v42  ;;  %v7023_v38 = vcombine.low %v7998_v35, %v7998_v35  ;;  %v7028_v24 = vcombine.low %v7999_v52, %v7999_v52  ;;  %v7029_v30 = vcombine.low %v8000_v36, %v8000_v36 }
 0x135   : > { %v2413_v61 = vunpack.c.l.b16 %v7016_v58  ;;  %7099 = vmatmul.mubr.msk.bf16.vlgmr.msra.gmra.mrb[0].mxu1 %vm1883_vm9, %v9546_v62  ;;  %v7030_v45 = vcombine.low %v8001_v23, %v8001_v23  ;;  %v2414_v3 = vunpack.c.l.b16 %v7017_v56  ;;  %v2415_v0 = vunpack.c.l.b16 %v7018_v31  ;;  %v8002_v23 = vld [vmem:[%s8298_s29 + $0xc0] sm:$0xf] }
 0x136   : > { %7095 = vmatmul.mubr.msk.bf16.vlgmr.msra.gmra.mrb[0].mxu0 %vm1883_vm9, %v9546_v62  ;;  %v2416_v28 = vunpack.c.l.b16 %v7019_v37  ;;  %v12407_v9 = vcombine.low %v9357_v18, %v9362_v51  ;;  %v2412_v7 = vunpack.c.l.b16 %v7015_v53  ;;  %v2417_v47 = vunpack.c.l.b16 %v7020_v8  ;;  %2927 = vmatprep.mubr.bf16.mxu1 %v12387_v19  ;;  %v1370_v8 = vld [vmem:[%s12344_s2 + $0x90] sm:$0xff] }
 0x137   : > { %2959 = vmatpush1.bf16.msra.mxu0 %v7051_v40  ;;  %v2418_v26 = vunpack.c.l.b16 %v7021_v11  ;;  %v2421_v58 = vunpack.c.l.b16 %v7024_v2  ;;  %2854 = vmatprep.mubr.bf16.mxu0 %v12387_v19  ;;  %v2419_v39 = vunpack.c.l.b16 %v7022_v60  ;;  %v2422_v21 = vunpack.c.l.b16 %v7025_v57  ;;  %v9663_v2 = vld [vmem:[%s12344_s2 + $0xd0] sm:$0xff] }
 0x138   : > { %3032 = vmatpush1.bf16.msra.mxu1 %v12407_v9  ;;  %v2423_v56 = vunpack.c.l.b16 %v7026_v13  ;;  %v2424_v6 = vunpack.c.l.b16 %v7027_v27  ;;  %2960 = vmatprep.subr.bf16.mxu0 %v7060_v15  ;;  %v2420_v18 = vunpack.c.l.b16 %v7023_v38  ;;  %v2425_v51 = vunpack.c.l.b16 %v7028_v24  ;;  %v1391_v13 = vld [vmem:[%s12344_s2 + $0x138] sm:$0xff]  ;;  %v8004_v9 = vld [vmem:[%s8298_s29 + $0xc8] sm:$0xf] }
 0x139   : > { %3033 = vmatprep.subr.bf16.mxu1 %v7062_v41  ;;  %v2500_v16 = vrot.slane %v2413_v61, 7  ;;  %v2502_v50 = vrot.slane %v2414_v3, 6  ;;  %v2426_v40 = vunpack.c.l.b16 %v7029_v30  ;;  %v2427_v53 = vunpack.c.l.b16 %v7030_v45  ;;  %v8003_v3 = vld [vmem:[%s8298_s29 + $0xc4] sm:$0xf] }
 0x13a   : > { %v2504_v31 = vrot.slane %v2415_v0, 5  ;;  %v2506_v46 = vrot.slane %v2416_v28, 4  ;;  %v2508_v37 = vrot.slane %v2417_v47, 3  ;;  %v2514_v15 = vrot.slane %v2421_v58, 7  ;;  %v8005_v47 = vld [vmem:[%s8298_s29 + $0xcc] sm:$0xf] }
 0x13b   : > { %2961 = vmatpush1.bf16.msra.mxu0 %v7059_v5  ;;  %v2501_v41 = vsel %vm1576_vm2, %v2500_v16, %v2412_v7  ;;  %v2516_v14 = vrot.slane %v2422_v21, 6  ;;  %v2510_v55 = vrot.slane %v2418_v26, 2  ;;  %v2520_v25 = vrot.slane %v2424_v6, 4 }
 0x13c   : > { %3034 = vmatpush1.bf16.msra.mxu1 %v7061_v43  ;;  %v2503_v49 = vsel %vm1578_vm3, %v2502_v50, %v2501_v41  ;;  %v2518_v43 = vrot.slane %v2423_v56, 5  ;;  %v2512_v5 = vrot.slane %v2419_v39, 1  ;;  %v2515_v11 = vsel %vm1576_vm2, %v2514_v15, %v2420_v18  ;;  %v8006_v39 = vld [vmem:[%s8298_s29 + $0xd0] sm:$0xf]  ;;  %v8007_v56 = vld [vmem:[%s8298_s29 + $0xd4] sm:$0xf] }
 0x13d   : > { %3035 = vmatprep.subr.bf16.mxu1 %v7070_v29  ;;  %v2505_v12 = vsel %vm1580_vm4, %v2504_v31, %v2503_v49  ;;  %v2522_v59 = vrot.slane %v2425_v51, 3  ;;  %v9668_v29 = vld [vmem:[%s12344_s2 + $0xf0] sm:$0xff]  ;;  %7100 = vmatmul.mubr.msk.bf16.gmra.mrb[4].mxu1 %vm1883_vm9, %v9613_v48  ;;  %v2517_v60 = vsel %vm1578_vm3, %v2516_v14, %v2515_v11  ;;  %v2524_v33 = vrot.slane %v2426_v40, 2  ;;  %v8008_v18 = vld [vmem:[%s8298_s29 + $0xd8] sm:$0xf] }
 0x13e   : > { %7096 = vmatmul.mubr.msk.bf16.gmra.mrb[4].mxu0 %vm1883_vm9, %v9613_v48  ;;  %v2507_v34 = vsel %vm1582_vm5, %v2506_v46, %v2505_v12  ;;  %v7067_v57 = vcombine.low %v1370_v8, %v1374_v32  ;;  %v2519_v27 = vsel %vm1580_vm4, %v2518_v43, %v2517_v60  ;;  %v2526_v35 = vrot.slane %v2427_v53, 1  ;;  %2937 = vmatprep.mubr.bf16.mxu1 %v12387_v19  ;;  %v8010_v51 = vld [vmem:[%s8298_s29 + $0xe0] sm:$0xf]  ;;  %v8011_v50 = vld [vmem:[%s8298_s29 + $0xe4] sm:$0xf] }
 0x13f   : > { %2864 = vmatprep.mubr.bf16.mxu0 %v12387_v19  ;;  %v2509_v42 = vsel %vm1584_vm6, %v2508_v37, %v2507_v34  ;;  %v7068_v38 = vcombine.high %v1370_v8, %v1374_v32  ;;  %v2521_v10 = vsel %vm1582_vm5, %v2520_v25, %v2519_v27  ;;  %v7075_v4 = vcombine.low %v9663_v2, %v9668_v29  ;;  %v8012_v53 = vld [vmem:[%s8298_s29 + $0xe8] sm:$0xf]  ;;  %v8013_v46 = vld [vmem:[%s8298_s29 + $0xec] sm:$0xf]  ;;  %v8014_v37 = vld [vmem:[%s8298_s29 + $0xf0] sm:$0xf] }
 0x140   : > { %3036 = vmatpush1.bf16.msra.mxu1 %v7069_v63  ;;  %v2511_v52 = vsel %vm1586_vm7, %v2510_v55, %v2509_v42  ;;  %v2523_v24 = vsel %vm1584_vm6, %v2522_v59, %v2521_v10  ;;  %v7076_v36 = vcombine.high %v9663_v2, %v9668_v29  ;;  %v7085_v30 = vcombine.low %v1387_v54, %v1391_v13  ;;  %v8015_v14 = vld [vmem:[%s8298_s29 + $0xf4] sm:$0xf]  ;;  %v8016_v32 = vld [vmem:[%s8298_s29 + $0xf8] sm:$0xf]  ;;  %v8017_v55 = vld [vmem:[%s8298_s29 + $0xfc] sm:$0xf]  ;;  %s12295_s29 = scalar_lea.hbm %s12352_s10, %s7298_s28 }
 0x141   : > { %3037 = vmatprep.subr.bf16.mxu1 %v7078_v1  ;;  %v2513_v63 = vsel %vm1588_vm8, %v2512_v5, %v2511_v52  ;;  %2962 = vmatprep.subr.bf16.mxu0 %v7068_v38  ;;  %v2525_v1 = vsel %vm1586_vm7, %v2524_v33, %v2523_v24  ;;  %v7086_v61 = vcombine.high %v1387_v54, %v1391_v13 }
 0x142   : > { %2963 = vmatpush1.bf16.msra.mxu0 %v7067_v57  ;;  %v7031_v45 = vcombine.low %v8002_v23, %v8002_v23  ;;  %v7032_v0 = vcombine.low %v8003_v3, %v8003_v3  ;;  %v2527_v28 = vsel %vm1588_vm8, %v2526_v35, %v2525_v1  ;;  %v7033_v7 = vcombine.low %v8004_v9, %v8004_v9  ;;  %v1395_v3 = vld [vmem:[%s12344_s2 + $0x158] sm:$0xff] }
 0x143   : > { %2964 = vmatprep.subr.bf16.mxu0 %v7076_v36  ;;  %v7034_v26 = vcombine.low %v8005_v47, %v8005_v47  ;;  %v9709_v58 = vpack.c.b16 %v2527_v28, %v2513_v63  ;;  %v7035_v21 = vcombine.low %v8006_v39, %v8006_v39  ;;  %v7036_v6 = vcombine.low %v8007_v56, %v8007_v56  ;;  %v1386_v36 = vld [vmem:[%s12344_s2 + $0x110] sm:$0xff] }
 0x144   : > { %3038 = vmatpush1.bf16.msra.mxu1 %v7077_v22  ;;  %v7037_v17 = vcombine.low %v8008_v18, %v8008_v18  ;;  %v7038_v22 = vcombine.low %v8009_v44, %v8009_v44  ;;  %v7039_v16 = vcombine.low %v8010_v51, %v8010_v51  ;;  %v7040_v40 = vcombine.low %v8011_v50, %v8011_v50  ;;  %v1398_v18 = vld [vmem:[%s12344_s2 + $0x170] sm:$0xff]  ;;  %v3116_v50 = vld [vmem:[%s12346_s4 + $0x20] sm:$0xff] }
 0x145   : > { %3039 = vmatprep.subr.bf16.mxu1 %v7086_v61  ;;  %v7041_v31 = vcombine.low %v8012_v53, %v8012_v53  ;;  %7101 = vmatmul.mubr.msk.bf16.gmra.mrb[8].mxu1 %vm1883_vm9, %v9709_v58  ;;  %v7042_v41 = vcombine.low %v8013_v46, %v8013_v46  ;;  %v7043_v15 = vcombine.low %v8014_v37, %v8014_v37  ;;  %v2429_v25 = vunpack.c.l.b16 %v7032_v0  ;;  %v1399_v0 = vld [vmem:[%s12344_s2 + $0x178] sm:$0xff] }
 0x146   : > { %7097 = vmatmul.mubr.msk.bf16.gmra.mrb[8].mxu0 %vm1883_vm9, %v9709_v58  ;;  %v7044_v8 = vcombine.low %v8015_v14, %v8015_v14  ;;  %v7045_v49 = vcombine.low %v8016_v32, %v8016_v32  ;;  %v7046_v43 = vcombine.low %v8017_v55, %v8017_v55  ;;  %v2430_v12 = vunpack.c.l.b16 %v7033_v7  ;;  %2947 = vmatprep.mubr.bf16.mxu1 %v12387_v19 }
 0x147   : > { %2965 = vmatpush1.bf16.msra.mxu0 %v7075_v4  ;;  %2874 = vmatprep.mubr.bf16.mxu0 %v12387_v19  ;;  %v2431_v5 = vunpack.c.l.b16 %v7034_v26  ;;  %v2432_v11 = vunpack.c.l.b16 %v7035_v21  ;;  %v2433_v59 = vunpack.c.l.b16 %v7036_v6  ;;  %v2434_v2 = vunpack.c.l.b16 %v7037_v17  ;;  %v1394_v6 = vld [vmem:[%s12344_s2 + $0x150] sm:$0xff] }
 0x148   : > { %3040 = vmatpush1.bf16.msra.mxu1 %v7085_v30  ;;  %v2428_v29 = vunpack.c.l.b16 %v7031_v45  ;;  %v2435_v34 = vunpack.c.l.b16 %v7038_v22  ;;  %v2437_v60 = vunpack.c.l.b16 %v7040_v40  ;;  %v2438_v33 = vunpack.c.l.b16 %v7041_v31  ;;  %v1390_v30 = vld [vmem:[%s12344_s2 + $0x130] sm:$0xff] }
 0x149   : > { %v2436_v57 = vunpack.c.l.b16 %v7039_v16  ;;  %v2439_v54 = vunpack.c.l.b16 %v7042_v41  ;;  %v2440_v13 = vunpack.c.l.b16 %v7043_v15  ;;  %v2441_v42 = vunpack.c.l.b16 %v7044_v8  ;;  %v3112_v16 = vld [vmem:[%s12346_s4] sm:$0xff] }
 0x14a   : > { %v2442_v27 = vunpack.c.l.b16 %v7045_v49  ;;  %v2528_v35 = vrot.slane %v2429_v25, 7  ;;  %v2530_v38 = vrot.slane %v2430_v12, 6  ;;  %v2532_v52 = vrot.slane %v2431_v5, 5  ;;  %v3120_v12 = vld [vmem:[%s12346_s4 + $0x40] sm:$0xff] }
 0x14b   : > { %v2443_v10 = vunpack.c.l.b16 %v7046_v43  ;;  %v2534_v4 = vrot.slane %v2432_v11, 4  ;;  %v2536_v63 = vrot.slane %v2433_v59, 3  ;;  %v2538_v24 = vrot.slane %v2434_v2, 2  ;;  %v3124_v5 = vld [vmem:[%s12346_s4 + $0x60] sm:$0xff]  ;;  %v3113_v59 = vld [vmem:[%s12346_s4 + $0x8] sm:$0xff] }
 0x14c   : > { %v2529_v1 = vsel %vm1576_vm2, %v2528_v35, %v2428_v29  ;;  %v2542_v61 = vrot.slane %v2437_v60, 7  ;;  %v2544_v23 = vrot.slane %v2438_v33, 6  ;;  %v2546_v45 = vrot.slane %v2439_v54, 5  ;;  %v3117_v29 = vld [vmem:[%s12346_s4 + $0x28] sm:$0xff]  ;;  %v3118_v60 = vld [vmem:[%s12346_s4 + $0x30] sm:$0xff] }
 0x14d   : > { %v2531_v28 = vsel %vm1578_vm3, %v2530_v38, %v2529_v1  ;;  %v2540_v9 = vrot.slane %v2435_v34, 1  ;;  %v2548_v7 = vrot.slane %v2440_v13, 4  ;;  %v2550_v47 = vrot.slane %v2441_v42, 3  ;;  %v3114_v34 = vld [vmem:[%s12346_s4 + $0x10] sm:$0xff]  ;;  %v7735_v13 = vld [vmem:[%s9147_s11 + $0x18] sm:$0xff]  }
 0x14e   : > { %v2533_v26 = vsel %vm1580_vm4, %v2532_v52, %v2531_v28  ;;  %v2543_v39 = vsel %vm1576_vm2, %v2542_v61, %v2436_v57  ;;  %v2552_v21 = vrot.slane %v2442_v27, 2  ;;  %v7083_v56 = vcombine.low %v1386_v36, %v1390_v30  ;;  %v3122_v27 = vld [vmem:[%s12346_s4 + $0x50] sm:$0xff]  ;;  %v3115_v52 = vld [vmem:[%s12346_s4 + $0x18] sm:$0xff] }
 0x14f   : > { %v2535_v17 = vsel %vm1582_vm5, %v2534_v4, %v2533_v26  ;;  %v2545_v44 = vsel %vm1578_vm3, %v2544_v23, %v2543_v39  ;;  %v7084_v22 = vcombine.high %v1386_v36, %v1390_v30  ;;  %v7093_v51 = vcombine.low %v1395_v3, %v1399_v0  ;;  %v3126_v35 = vld [vmem:[%s12346_s4 + $0x70] sm:$0xff]  ;;  %v3123_v1 = vld [vmem:[%s12346_s4 + $0x58] sm:$0xff]  ;;  %v7736_v23 = vld [vmem:[%s9147_s11 + $0x8] sm:$0xff]  }
 0x150   : > { %v2537_v40 = vsel %vm1584_vm6, %v2536_v63, %v2535_v17  ;;  %v2547_v53 = vsel %vm1580_vm4, %v2546_v45, %v2545_v44  ;;  %v2554_v31 = vrot.slane %v2443_v10, 1  ;;  %v7094_v46 = vcombine.high %v1395_v3, %v1399_v0  ;;  %v3119_v10 = vld [vmem:[%s12346_s4 + $0x38] sm:$0xff]  ;;  %v7737_v28 = vld [vmem:[%s9147_s11 + $0x10] sm:$0xff]  }
 0x151   : > { %v2539_v41 = vsel %vm1586_vm7, %v2538_v24, %v2537_v40  ;;  %v2549_v37 = vsel %vm1582_vm5, %v2548_v7, %v2547_v53  ;;  %2966 = vmatprep.subr.bf16.mxu0 %v7084_v22  ;;  %v7091_v15 = vcombine.low %v1394_v6, %v1398_v18  ;;  %v7092_v14 = vcombine.high %v1394_v6, %v1398_v18  ;;  %v3127_v61 = vld [vmem:[%s12346_s4 + $0x78] sm:$0xff] }
 0x152   : > { %v2541_v8 = vsel %vm1588_vm8, %v2540_v9, %v2539_v41  ;;  %v2551_v32 = vsel %vm1584_vm6, %v2550_v47, %v2549_v37  ;;  %2967 = vmatpush1.bf16.msra.mxu0 %v7083_v56  ;;  %3041 = vmatprep.subr.bf16.mxu1 %v7094_v46  ;;  %v7116_v49 = vcombine.high %v3112_v16, %v3116_v50  ;;  %v3601_v39 = vsub.s32 0, %v8239_v20 }
 0x153   : > { %v2553_v55 = vsel %vm1586_vm7, %v2552_v21, %v2551_v32  ;;  %3042 = vmatpush1.bf16.msra.mxu1 %v7093_v51  ;;  %2968 = vmatprep.subr.bf16.mxu0 %v7092_v14  ;;  %v7115_v11 = vcombine.low %v3112_v16, %v3116_v50  ;;  %v7124_v2 = vcombine.high %v3120_v12, %v3124_v5  ;;  %v9873_v21 = vld [vmem:[%s12347_s5] sm:$0xff]  ;;  %v3605_v56 = vsub.s32 1, %v8239_v20 }
 0x154   : > { %v2555_v43 = vsel %vm1588_vm8, %v2554_v31, %v2553_v55  ;;  %7495 = vmatprep.subr.bf16.mxu1 %v7116_v49  ;;  %v7123_v33 = vcombine.low %v3120_v12, %v3124_v5  ;;  %v7118_v57 = vcombine.high %v3113_v59, %v3117_v29  ;;  %v7120_v54 = vcombine.high %v3114_v34, %v3118_v60 }
 0x155   : > { %v2559_v25 = vpack.c.b16 %v2555_v43, %v2541_v8  ;;  %v7117_v42 = vcombine.low %v3113_v59, %v3117_v29  ;;  %v7119_v4 = vcombine.low %v3114_v34, %v3118_v60  ;;  %v7128_v63 = vcombine.high %v3122_v27, %v3126_v35 }
 0x156   : > { %2969 = vmatpush1.bf16.msra.mxu0 %v7091_v15  ;;  %v7122_v36 = vcombine.high %v3115_v52, %v3119_v10  ;;  %v7127_v30 = vcombine.low %v3122_v27, %v3126_v35  ;;  %v7121_v45 = vcombine.low %v3115_v52, %v3119_v10  ;;  %v7130_v3 = vcombine.high %v3123_v1, %v3127_v61 }
 0x157   : > { %7098 = vmatmul.mubr.msk.bf16.gmra.mrb[12].mxu0 %vm1883_vm9, %v2559_v25  ;;  %7102 = vmatmul.mubr.msk.bf16.gmra.mrb[12].mxu1 %vm1883_vm9, %v2559_v25  ;;  %v7129_v0 = vcombine.low %v3123_v1, %v3127_v61  ;;  %v9877_v6 = vrot.slane %v9873_v21, %v3601_v39 }
 0x158   : > { %2990 = vmatprep.mubr.bf16.mxu0 %v12387_v19  ;;  %3063 = vmatprep.mubr.bf16.mxu1 %v12387_v19 }
 0x159   : > { %3241 = vmatprep.subr.bf16.mxu0 %v7116_v49 }
 0x15f   : > { %7103 = vmatmul.mubr.msk.bf16.vlgmr.msra.gmra.mrb[16].mxu0 %vm1883_vm9, %v9546_v62  ;;  %7107 = vmatmul.mubr.msk.bf16.vlgmr.msra.gmra.mrb[16].mxu1 %vm1883_vm9, %v9546_v62  ;;  %v3121_v62 = vld [vmem:[%s12346_s4 + $0x48] sm:$0xff] }
 0x160   : > { %7497 = vmatpush1.bf16.msra.mxu1 %v7115_v11  ;;  %3242 = vmatpush1.bf16.msra.mxu0 %v7115_v11 }
 0x161   : > { %3000 = vmatprep.mubr.bf16.mxu0 %v12387_v19  ;;  %3073 = vmatprep.mubr.bf16.mxu1 %v12387_v19 }
 0x162   : > { %7496 = vmatprep.subr.bf16.mxu1 %v7124_v2  ;;  %3243 = vmatprep.subr.bf16.mxu0 %v7124_v2 }
 0x164   : > { %7498 = vmatpush1.bf16.msra.mxu1 %v7123_v33  ;;  %3244 = vmatpush1.bf16.msra.mxu0 %v7123_v33 }
 0x165   : > { %3314 = vmatprep.subr.bf16.mxu1 %v7118_v57  ;;  %3387 = vmatprep.subr.bf16.mxu0 %v7120_v54 }
 0x167   : > { %7104 = vmatmul.mubr.msk.bf16.gmra.mrb[20].mxu0 %vm1883_vm9, %v9613_v48  ;;  %7108 = vmatmul.mubr.msk.bf16.gmra.mrb[20].mxu1 %vm1883_vm9, %v9613_v48  ;;  %v3125_v48 = vld [vmem:[%s12346_s4 + $0x68] sm:$0xff] }
 0x168   : > { %3010 = vmatprep.mubr.bf16.mxu0 %v12387_v19  ;;  %3083 = vmatprep.mubr.bf16.mxu1 %v12387_v19  ;;  %v7126_v38 = vcombine.high %v3121_v62, %v3125_v48  ;;  %v7125_v24 = vcombine.low %v3121_v62, %v3125_v48 }
 0x16f   : > { %7105 = vmatmul.mubr.msk.bf16.gmra.mrb[24].mxu0 %vm1883_vm9, %v9709_v58  ;;  %7109 = vmatmul.mubr.msk.bf16.gmra.mrb[24].mxu1 %vm1883_vm9, %v9709_v58  ;;  %v7734_v58 = vld [vmem:[%s9147_s11] sm:$0xff]   ;;  %s8024_s11 = sshll.u32 %s8086_s25, 4  ;;  %s8025_s11 = int_to_ptr.vmem [resolvable:$false] %s8024_s11 }
 0x170   : > { %3020 = vmatprep.mubr.bf16.mxu0 %v12387_v19  ;;  %3093 = vmatprep.mubr.bf16.mxu1 %v12387_v19  ;;  %s8026_s26 = scalar_lea.vmem %s8025_s11, 2048  ;;  %p8027_p1 = scmp.lt.s32.totalorder %s12297_s30, %s8025_s11 }
 0x171   : > { %p8028_p2 = scmp.lt.s32.totalorder %s8026_s26, %s8020_s21 }
 0x173   : > { %p8029_p3 = por %p8028_p2, %p8027_p1 }
 0x175   : > { %p8030_p4 = pnand %p8029_p3, %p8023_p0 }
 0x177   : > { %7106 = vmatmul.mubr.msk.bf16.gmra.mrb[28].mxu0 %vm1883_vm9, %v2559_v25  ;;  %7110 = vmatmul.mubr.msk.bf16.gmra.mrb[28].mxu1 %vm1883_vm9, %v2559_v25 }
 0x178   : > { %3273 = vmatprep.mubr.bf16.mxu0 %v12387_v19  ;;  %3303 = vmatprep.mubr.bf16.mxu1 %v12387_v19 }
 0x17f   : > { %7131 = vmatmul.mubr.msk.bf16.vlgmr.msra.gmra.mrb[0].mxu0 %vm3228_vm10, %v7734_v58  ;;  %7134 = vmatmul.mubr.msk.bf16.vlgmr.msra.gmra.mrb[32].mxu1 %vm3228_vm10, %v7735_v13 }
 0x180   : > { %3315 = vmatpush1.bf16.msra.mxu1 %v7117_v42  ;;  %3283 = vmatprep.mubr.bf16.mxu0 %v12387_v19 }
 0x181   : > { %3316 = vmatprep.subr.bf16.mxu1 %v7126_v38  ;;  %3346 = vmatprep.mubr.bf16.mxu1 %v12387_v19 }
 0x182   : > { %3388 = vmatpush1.bf16.msra.mxu0 %v7119_v4 }
 0x183   : > { %3389 = vmatprep.subr.bf16.mxu0 %v7128_v63 }
 0x184   : > { %3317 = vmatpush1.bf16.msra.mxu1 %v7125_v24 }
 0x185   : > { %3460 = vmatprep.subr.bf16.mxu1 %v7122_v36 }
 0x186   : > { %3390 = vmatpush1.bf16.msra.mxu0 %v7127_v30 }
 0x187   : > { %7132 = vmatmul.mubr.msk.bf16.gmra.mrb[4].mxu0 %vm3228_vm10, %v7736_v23  ;;  %7135 = vmatmul.mubr.msk.bf16.vlgmr.msra.gmra.mrb[0].mxu1 %vm3228_vm10, %v7734_v58 }
 0x188   : > { %3461 = vmatpush1.bf16.msra.mxu1 %v7121_v45  ;;  %3293 = vmatprep.mubr.bf16.mxu0 %v12387_v19 }
 0x189   : > { %3356 = vmatprep.mubr.bf16.mxu1 %v12387_v19  ;;  %3462 = vmatprep.subr.bf16.mxu1 %v7130_v3 }
 0x18c   : > { %3463 = vmatpush1.bf16.msra.mxu1 %v7129_v0 }
 0x18f   : > { %7133 = vmatmul.mubr.msk.bf16.gmra.mrb[8].mxu0 %vm3228_vm10, %v7737_v28  ;;  %7136 = vmatmul.mubr.msk.bf16.gmra.mrb[4].mxu1 %vm3228_vm10, %v7736_v23 }
 0x190   : > { %3366 = vmatprep.mubr.bf16.mxu1 %v12387_v19  ;;  %3419 = vmatprep.mubr.bf16.mxu0 %v12387_v19 }
 0x197   : > { %7137 = vmatmul.mubr.msk.bf16.gmra.mrb[8].mxu1 %vm3228_vm10, %v7737_v28  ;;  %7139 = vmatmul.mubr.msk.bf16.vlgmr.msra.gmra.mrb[16].mxu0 %vm3228_vm10, %v7734_v58 }
 0x198   : > { %3376 = vmatprep.mubr.bf16.mxu1 %v12387_v19  ;;  %3429 = vmatprep.mubr.bf16.mxu0 %v12387_v19 }
 0x19f   : > { %7138 = vmatmul.mubr.msk.bf16.gmra.mrb[12].mxu1 %vm3228_vm10, %v7735_v13  ;;  %7140 = vmatmul.mubr.msk.bf16.gmra.mrb[20].mxu0 %vm3228_vm10, %v7736_v23 }
 0x1a0   : > { %3439 = vmatprep.mubr.bf16.mxu0 %v12387_v19  ;;  %3492 = vmatprep.mubr.bf16.mxu1 %v12387_v19 }
 0x1a7   : > { %7141 = vmatmul.mubr.msk.bf16.gmra.mrb[24].mxu0 %vm3228_vm10, %v7737_v28  ;;  %7143 = vmatmul.mubr.msk.bf16.vlgmr.msra.gmra.mrb[16].mxu1 %vm3228_vm10, %v7734_v58 }
 0x1a8   : > { %3449 = vmatprep.mubr.bf16.mxu0 %v12387_v19  ;;  %3502 = vmatprep.mubr.bf16.mxu1 %v12387_v19 }
 0x1af   : > { %7142 = vmatmul.mubr.msk.bf16.gmra.mrb[28].mxu0 %vm3228_vm10, %v7735_v13  ;;  %7144 = vmatmul.mubr.msk.bf16.gmra.mrb[20].mxu1 %vm3228_vm10, %v7736_v23 }
 0x1b0   : > { %3512 = vmatprep.mubr.bf16.mxu1 %v12387_v19 }
 0x1b7   : > { %7145 = vmatmul.mubr.msk.bf16.gmra.mrb[24].mxu1 %vm3228_vm10, %v7737_v28 }
 0x1b8   : > { %3522 = vmatprep.mubr.bf16.mxu1 %v12387_v19  ;;  %v9880_v19 = vrot.slane %v9873_v21, %v3605_v56 }
 0x1bf   : > { %7146 = vmatmul.mubr.msk.bf16.gmra.mrb[28].mxu1 %vm3228_vm10, %v7735_v13 }
 0x22a   : > { %v2876_v9 = vpop.f32.mrb[12].mxu0 }
 0x22b   : > { %v2878_v7 = vpop.f32.mrb[13].mxu0 }
 0x22c   : > { %v2880_v47 = vpop.f32.mrb[14].mxu0 }
 0x22d   : > { %v2882_v26 = vpop.f32.mrb[15].mxu0 }
 0x252   : > { %v3275_v18 = vpop.f32.mrb[0].mxu0  ;;  %v3305_v17 = vpop.f32.mrb[32].mxu1 }
 0x253   : > { %v9883_v44 = vadd.f32 %v9877_v6, %v3275_v18  ;;  %v7499_v22 = vadd.f32 %v3305_v17, %v2876_v9  ;;  %v3277_v51 = vpop.f32.mrb[1].mxu0  ;;  %v3307_v16 = vpop.f32.mrb[33].mxu1 }
 0x254   : > { %v9886_v50 = vadd.f32 %v9880_v19, %v3277_v51  ;;  %v7500_v40 = vadd.f32 %v3307_v16, %v2878_v7  ;;  %v3279_v53 = vpop.f32.mrb[2].mxu0  ;;  %v3309_v31 = vpop.f32.mrb[34].mxu1 }
 0x255   : > { %v3767_v46 = vmul.f32 0.70710677, %v9883_v44  ;;  %v9890_v41 = vadd.f32 %v9877_v6, %v3279_v53  ;;  %v9892_v37 = vpop.f32.mrb[3].mxu0  ;;  %v3311_v15 = vpop.f32.mrb[35].mxu1  ;;  %v9895_v14 = vadd.f32 %v7499_v22, %v9877_v6  ;;  %v9901_v49 = vadd.f32 %v3309_v31, %v2880_v47 }
 0x256   : > { %v3768_v8 = vmul.f32 0.70710677, %v9886_v50  ;;  %v9899_v32 = vadd.f32 %v7500_v40, %v9880_v19  ;;  %v9920_v29 = vadd.f32 %v3311_v15, %v2882_v26 }
 0x257   : > { %12408 = vst [vmem:[#allocation5_spill] sm:$0xff] %v9895_v14  ;;  %v9903_v55 = vclamps-f32 %v3767_v46, 4.0  ;;  %v3775_v12 = vmul.f32 0.70710677, %v9890_v41  ;;  %v3815_v11 = vmul.f32 0.70710677, %v9895_v14 }
 0x258   : > { %12409 = vst [vmem:[#allocation6_spill] sm:$0xff] %v9899_v32  ;;  %v9905_v43 = vclamps-f32 %v3768_v8, 4.0  ;;  %v3816_v25 = vmul.f32 0.70710677, %v9899_v32  ;;  %v3609_v46 = vsub.s32 2, %v8239_v20 }
 0x259   : > { %v9911_v5 = vmul.f32 %v9903_v55, %v9903_v55  ;;  %v9918_v2 = vclamps-f32 %v3775_v12, 4.0  ;;  %v9942_v52 = vclamps-f32 %v3815_v11, 4.0 }
 0x25a   : > { %v9916_v59 = vmul.f32 %v9905_v43, %v9905_v43  ;;  %v9922_v34 = vpop.f32.mrb[4].mxu0  ;;  %v9924_v60 = vpop.f32.mrb[0].mxu1  ;;  %v9931_v48 = vclamps-f32 %v3816_v25, 4.0 }
 0x25b   : > { %v4023_v33 = vmul.f32 0.00022905065, %v9911_v5  ;;  %v4535_v57 = vmul.f32 -1.1791603e-07, %v9911_v5  ;;  %v9928_v54 = vpop.f32.mrb[5].mxu0  ;;  %v9935_v58 = vmul.f32 %v9918_v2, %v9918_v2  ;;  %v9937_v13 = vpop.f32.mrb[1].mxu1  ;;  %v9961_v28 = vmul.f32 %v9942_v52, %v9942_v52 }
 0x25c   : > { %v4536_v62 = vmul.f32 -1.1791603e-07, %v9916_v59  ;;  %12410 = vst [vmem:[#allocation7_spill] sm:$0xff] %v9931_v48  ;;  %v9939_v42 = vpop.f32.mrb[6].mxu0  ;;  %v4024_v38 = vmul.f32 0.00022905065, %v9916_v59  ;;  %v9954_v61 = vmul.f32 %v9931_v48, %v9931_v48 }
 0x25d   : > { %v4087_v27 = vadd.f32 0.003408291, %v4023_v33  ;;  %v4599_v35 = vadd.f32 2.3547966e-05, %v4535_v57  ;;  %12411 = vst [vmem:[#allocation8_spill] sm:$0xff] %v9942_v52  ;;  %v9946_v24 = vpop.f32.mrb[2].mxu1 }
 0x25e   : > { %v4600_v10 = vadd.f32 2.3547966e-05, %v4536_v62  ;;  %v4031_v63 = vmul.f32 0.00022905065, %v9935_v58  ;;  %v9948_v36 = vpop.f32.mrb[7].mxu0  ;;  %12412 = vst [vmem:[#allocation9_spill] sm:$0xff] %v9954_v61 }
 0x25f   : > { %v4663_v4 = vmul.f32 %v4599_v35, %v9911_v5  ;;  %v4151_v30 = vmul.f32 %v4087_v27, %v9911_v5  ;;  %v4543_v23 = vmul.f32 -1.1791603e-07, %v9935_v58  ;;  %v9957_v45 = vpop.f32.mrb[3].mxu1  ;;  %v4088_v0 = vadd.f32 0.003408291, %v4024_v38  ;;  %12413 = vst [vmem:[#allocation10_spill] sm:$0xff] %v9961_v28 }
 0x260   : > { %v4664_v1 = vmul.f32 %v4600_v10, %v9916_v59  ;;  %v4095_v26 = vadd.f32 0.003408291, %v4031_v63  ;;  %v4072_v22 = vmul.f32 0.00022905065, %v9954_v61  ;;  %v4071_v15 = vmul.f32 0.00022905065, %v9961_v28 }
 0x261   : > { %v4727_v3 = vadd.f32 0.0010179626, %v4663_v4  ;;  %v4607_v7 = vadd.f32 2.3547966e-05, %v4543_v23  ;;  %v4215_v18 = vadd.f32 0.050955694, %v4151_v30  ;;  %v4152_v31 = vmul.f32 %v4088_v0, %v9916_v59 }
 0x262   : > { %v4728_v9 = vadd.f32 0.0010179626, %v4664_v1  ;;  %v9964_v39 = vpop.f32.mrb[8].mxu0  ;;  %v9966_v56 = vpop.f32.mrb[4].mxu1  ;;  %v4159_v11 = vmul.f32 %v4095_v26, %v9935_v58  ;;  %v4136_v38 = vadd.f32 0.003408291, %v4072_v22 }
 0x263   : > { %v4791_v47 = vmul.f32 %v4727_v3, %v9911_v5  ;;  %v4671_v51 = vmul.f32 %v4607_v7, %v9935_v58  ;;  %v9971_v16 = vpop.f32.mrb[9].mxu0  ;;  %v9973_v40 = vpop.f32.mrb[5].mxu1  ;;  %v4279_v27 = vmul.f32 %v4215_v18, %v9911_v5  ;;  %v9993_v30 = vmul.f32 0.5, %v9883_v44 }
 0x264   : > { %v4792_v17 = vmul.f32 %v4728_v9, %v9916_v59  ;;  %v9981_v57 = vpop.f32.mrb[10].mxu0  ;;  %v9983_v62 = vpop.f32.mrb[6].mxu1  ;;  %v4216_v23 = vadd.f32 0.050955694, %v4152_v31  ;;  %v9997_v3 = vadd.f32 %v9901_v49, %v9877_v6  ;;  %v4135_v0 = vadd.f32 0.003408291, %v4071_v15 }
 0x265   : > { %v4855_v53 = vadd.f32 0.01407047, %v4791_v47  ;;  %v4735_v25 = vadd.f32 0.0010179626, %v4671_v51  ;;  %v9988_v4 = vpop.f32.mrb[11].mxu0  ;;  %v9990_v63 = vpop.f32.mrb[7].mxu1  ;;  %v10000_v47 = vrot.slane %v9873_v21, %v3609_v46  ;;  %v10009_v44 = vadd.f32 %v9920_v29, %v9880_v19 }
 0x266   : > { %v4856_v8 = vadd.f32 0.01407047, %v4792_v17  ;;  %12414 = vst [vmem:[#allocation11_spill] sm:$0xff] %v9997_v3  ;;  %v4223_v18 = vadd.f32 0.050955694, %v4159_v11  ;;  %v10005_v17 = vadd.f32 %v9880_v19, %v9892_v37  ;;  %v4280_v37 = vmul.f32 %v4216_v23, %v9916_v59 }
 0x267   : > { %v4919_v12 = vmul.f32 %v4855_v53, %v9911_v5  ;;  %v4799_v10 = vmul.f32 %v4735_v25, %v9935_v58  ;;  %12415 = vst [vmem:[#allocation12_spill] sm:$0xff] %v10009_v44  ;;  %v4343_v49 = vadd.f32 0.18520832, %v4279_v27  ;;  %v4200_v53 = vmul.f32 %v4136_v38, %v9954_v61 }
 0x268   : > { %v4920_v35 = vmul.f32 %v4856_v8, %v9916_v59  ;;  %v10019_v8 = vmul.f32 0.5, %v9886_v50  ;;  %v3823_v29 = vmul.f32 0.70710677, %v9997_v3  ;;  %v4199_v25 = vmul.f32 %v4135_v0, %v9961_v28 }
 0x269   : > { %v4983_v1 = vadd.f32 0.11098505, %v4919_v12  ;;  %v4863_v7 = vadd.f32 0.01407047, %v4799_v10  ;;  %v10026_v27 = vadd.f32 %v9877_v6, %v9922_v34  ;;  %v4287_v38 = vmul.f32 %v4223_v18, %v9935_v58  ;;  %v7738_v18 = vld [vmem:[%s12348_s6 + $0x40] sm:$0xff]  }
 0x26a   : > { %v4984_v9 = vadd.f32 0.11098505, %v4920_v35  ;;  %v10011_v22 = vpop.f32.mrb[8].mxu1  ;;  %v10016_v46 = vpop.f32.mrb[16].mxu0  ;;  %v10030_v10 = vclamps-f32 %v3823_v29, 4.0  ;;  %v10055_v29 = vadd.f32 %v10000_v47, %v9924_v60  ;;  %7299 = vmatprep.subr.bf16.mxu0 %v7738_v18 }
 0x26b   : > { %v5047_v26 = vmul.f32 %v4983_v1, %v9911_v5  ;;  %v4927_v31 = vmul.f32 %v4863_v7, %v9935_v58  ;;  %v3776_v50 = vmul.f32 0.70710677, %v10005_v17  ;;  %v4407_v1 = vmul.f32 %v4343_v49, %v9911_v5  ;;  %v10083_v32 = vpop.f32.mrb[17].mxu0 }
 0x26c   : > { %v5048_v51 = vmul.f32 %v4984_v9, %v9916_v59  ;;  %12416 = vst [vmem:[#allocation13_spill] sm:$0xff] %v10030_v10  ;;  %v4264_v23 = vadd.f32 0.050955694, %v4200_v53  ;;  %v3824_v0 = vmul.f32 0.70710677, %v10009_v44  ;;  %12420 = vst [vmem:[#allocation17_spill] sm:$0xff] %v10083_v32 }
 0x26d   : > { %v5111_v15 = vadd.f32 0.49746925, %v5047_v26  ;;  %v4991_v11 = vadd.f32 0.11098505, %v4927_v31  ;;  %v4344_v26 = vadd.f32 0.18520832, %v4280_v37 }
 0x26e   : > { %v5112_v12 = vadd.f32 0.49746925, %v5048_v51  ;;  %v10037_v51 = vclamps-f32 %v3776_v50, 4.0  ;;  %v3783_v49 = vmul.f32 0.70710677, %v10026_v27 }
 0x26f   : > { %v5175_v35 = vmul.f32 %v5111_v15, %v9911_v5  ;;  %v5055_v9 = vmul.f32 %v4991_v11, %v9935_v58  ;;  %v10044_v15 = vmul.f32 %v10030_v10, %v10030_v10  ;;  %v10046_v5 = vclamps-f32 %v3824_v0, 4.0 }
 0x270   : > { %v5176_v34 = vmul.f32 %v5112_v12, %v9916_v59  ;;  %v4351_v53 = vadd.f32 0.18520832, %v4287_v38  ;;  %v10051_v37 = vmul.f32 %v10037_v51, %v10037_v51  ;;  %v4471_v12 = vadd.f32 1.1283791, %v4407_v1 }
 0x271   : > { %v5239_v7 = vadd.f32 1.0, %v5175_v35  ;;  %v5119_v31 = vadd.f32 0.49746925, %v5055_v9  ;;  %12417 = vst [vmem:[#allocation14_spill] sm:$0xff] %v10044_v15  ;;  %12418 = vst [vmem:[#allocation15_spill] sm:$0xff] %v10046_v5  ;;  %v10060_v35 = vmul.f32 %v10046_v5, %v10046_v5  ;;  %v10062_v50 = vclamps-f32 %v3783_v49, 4.0 }
 0x272   : > { %v10064_v9 = vpop.f32.mrb[9].mxu1  ;;  %v4408_v38 = vmul.f32 %v4344_v26, %v9916_v59  ;;  %v5240_v0 = vadd.f32 1.0, %v5176_v34  ;;  %v4544_v60 = vmul.f32 -1.1791603e-07, %v10051_v37  ;;  %v4079_v1 = vmul.f32 0.00022905065, %v10044_v15 }
 0x273   : > { %7810 = vrcp.f32 %v5239_v7  ;;  %v5183_v11 = vmul.f32 %v5119_v31, %v9935_v58  ;;  %12419 = vst [vmem:[#allocation16_spill] sm:$0xff] %v10060_v35  ;;  %v4032_v7 = vmul.f32 0.00022905065, %v10051_v37  ;;  %v4080_v18 = vmul.f32 0.00022905065, %v10060_v35 }
 0x274   : > { %v10073_v31 = vmul.f32 %v10062_v50, %v10062_v50  ;;  %v4415_v49 = vmul.f32 %v4351_v53, %v9935_v58  ;;  %v4608_v14 = vadd.f32 2.3547966e-05, %v4544_v60  ;;  %v3769_v59 = vmul.f32 0.70710677, %v10055_v29 }
 0x275   : > { %v5247_v33 = vadd.f32 1.0, %v5183_v11  ;;  %v4096_v3 = vadd.f32 0.003408291, %v4032_v7  ;;  %v4144_v26 = vadd.f32 0.003408291, %v4080_v18  ;;  %v4328_v58 = vmul.f32 %v4264_v23, %v9954_v61 }
 0x276   : > { %v4039_v34 = vmul.f32 0.00022905065, %v10073_v31  ;;  %v4551_v11 = vmul.f32 -1.1791603e-07, %v10073_v31  ;;  %v4672_v52 = vmul.f32 %v4608_v14, %v10051_v37  ;;  %v10081_v44 = vclamps-f32 %v3769_v59, 4.0 }
 0x277   : > { %7812 = vrcp.f32 %v5247_v33  ;;  %v4160_v10 = vmul.f32 %v4096_v3, %v10051_v37  ;;  %v3711_v53 = vmul.f32 0.5, %v9890_v41  ;;  %v4208_v33 = vmul.f32 %v4144_v26, %v10060_v35 }
 0x278   : > { %7814 = vrcp.f32 %v5240_v0  ;;  %v4615_v7 = vadd.f32 2.3547966e-05, %v4551_v11  ;;  %v10088_v60 = vadd.f32 0.050955694, %v4199_v25  ;;  %v4143_v18 = vadd.f32 0.003408291, %v4079_v1 }
 0x279   : > { %v4736_v5 = vadd.f32 0.0010179626, %v4672_v52  ;;  %v4472_v0 = vadd.f32 1.1283791, %v4408_v38  ;;  %v4224_v48 = vadd.f32 0.050955694, %v4160_v10  ;;  %v5303_v28 = vmul.f32 %v9903_v55, %v4471_v12 }
 0x27a   : > { %12421 = vst [vmem:[#allocation18_spill] sm:$0xff] %v10088_v60  ;;  %v4103_v3 = vadd.f32 0.003408291, %v4039_v34  ;;  %v4679_v14 = vmul.f32 %v4615_v7, %v10073_v31  ;;  %v4479_v32 = vadd.f32 1.1283791, %v4415_v49  ;;  %v10095_v41 = vmul.f32 %v10081_v44, %v10081_v44 }
 0x27b   : > { %v4800_v23 = vmul.f32 %v4736_v5, %v10051_v37  ;;  %v10097_v26 = vadd.f32 0.18520832, %v4328_v58  ;;  %v4272_v25 = vadd.f32 0.050955694, %v4208_v33  ;;  %v12422_v52 = vsub.s32 3, %v8239_v20 }
 0x27c   : > { %v4743_v1 = vadd.f32 0.0010179626, %v4679_v14  ;;  %v4207_v34 = vmul.f32 %v4143_v18, %v10044_v15  ;;  %v3656_v5 = vadd.f32 %v9880_v19, %v9928_v54  ;;  %v5304_v12 = vmul.f32 %v9905_v43, %v4472_v0 }
 0x27d   : > { %v7811_v59 = vpop.eup %7810  ;;  %v10102_v10 = vrot.slane %v9873_v21, %v12422_v52  ;;  %v4864_v55 = vadd.f32 0.01407047, %v4800_v23  ;;  %v4288_v49 = vmul.f32 %v4224_v48, %v10051_v37  ;;  %v4167_v11 = vmul.f32 %v4103_v3, %v10073_v31 }
 0x27e   : > { %v5431_v38 = vmul.f32 %v7811_v59, %v5303_v28  ;;  %v4807_v58 = vmul.f32 %v4743_v1, %v10073_v31  ;;  %v5311_v33 = vmul.f32 %v9918_v2, %v4479_v32  ;;  %v10113_v21 = vmul.f32 0.5, %v10005_v17  ;;  %v7739_v59 = vld [vmem:[%s12348_s6] sm:$0xff]  }
 0x27f   : > { %v4928_v28 = vmul.f32 %v4864_v55, %v10051_v37  ;;  %v4025_v7 = vmul.f32 0.00022905065, %v10095_v41  ;;  %v4336_v54 = vmul.f32 %v4272_v25, %v10060_v35  ;;  %v10119_v43 = vmul.f32 0.5, %v10026_v27  ;;  %7300 = vmatpush3.bf16.msra.mxu0 %v7739_v59 }
 0x280   : > { %v4871_v48 = vadd.f32 0.01407047, %v4807_v58  ;;  %v10122_v0 = vmul.f32 0.5, %v10055_v29  ;;  %v5495_v14 = vadd.f32 1.0, %v5431_v38  ;;  %v10124_v2 = vadd.f32 0.050955694, %v4207_v34 }
 0x281   : > { %v7813_v18 = vpop.eup %7812  ;;  %v3784_v17 = vmul.f32 0.70710677, %v3656_v5  ;;  %v4352_v23 = vadd.f32 0.18520832, %v4288_v49  ;;  %v4992_v1 = vadd.f32 0.11098505, %v4928_v28  ;;  %v3649_v15 = vadd.f32 %v10000_v47, %v9946_v24 }
 0x282   : > { %v7815_v3 = vpop.eup %7814  ;;  %v5439_v32 = vmul.f32 %v7813_v18, %v5311_v33  ;;  %12423 = vst [vmem:[#allocation19_spill] sm:$0xff] %v10124_v2  ;;  %v4231_v25 = vadd.f32 0.050955694, %v4167_v11  ;;  %v4935_v27 = vmul.f32 %v4871_v48, %v10073_v31  ;;  %v4089_v55 = vadd.f32 0.003408291, %v4025_v7  ;;  %v10136_v2 = vpop.f32.mrb[10].mxu1 }
 0x283   : > { %v4537_v29 = vmul.f32 -1.1791603e-07, %v10095_v41  ;;  %v10131_v58 = vmul.f32 0.5, %v3656_v5  ;;  %v5432_v38 = vmul.f32 %v7815_v3, %v5304_v12  ;;  %v5056_v34 = vmul.f32 %v4992_v1, %v10051_v37  ;;  %v10151_v3 = vpop.f32.mrb[18].mxu0 }
 0x284   : > { %v5503_v52 = vadd.f32 1.0, %v5439_v32  ;;  %v10134_v33 = vadd.f32 0.18520832, %v4336_v54  ;;  %v4999_v18 = vadd.f32 0.11098505, %v4935_v27  ;;  %v10139_v49 = vmul.f32 %v5495_v14, %v9993_v30 }
 0x285   : > { %v4601_v28 = vadd.f32 2.3547966e-05, %v4537_v29  ;;  %v10143_v7 = vclamps-f32 %v3784_v17, 4.0  ;;  %v5120_v48 = vadd.f32 0.49746925, %v5056_v34  ;;  %v4295_v5 = vmul.f32 %v4231_v25, %v10073_v31 }
 0x286   : > { %12424 = vst [vmem:[#allocation20_spill] sm:$0xff] %v10134_v33  ;;  %12425 = vst [vmem:[#allocation21_spill] sm:$0xff] %v10139_v49  ;;  %v10141_v11 = vmul.f32 %v5503_v52, %v3711_v53  ;;  %v5063_v12 = vmul.f32 %v4999_v18, %v10073_v31  ;;  %v10149_v54 = vadd.f32 %v10102_v10, %v9937_v13  ;;  %v3777_v35 = vmul.f32 0.70710677, %v3649_v15 }
 0x287   : > { %v4153_v53 = vmul.f32 %v4089_v55, %v10095_v41  ;;  %v4665_v14 = vmul.f32 %v4601_v28, %v10095_v41  ;;  %v10159_v32 = vmul.f32 %v10143_v7, %v10143_v7  ;;  %v4416_v17 = vmul.f32 %v4352_v23, %v10051_v37 }
 0x288   : > { %12426 = vst [vmem:[#allocation22_spill] sm:$0xff] %v10141_v11  ;;  %v5184_v59 = vmul.f32 %v5120_v48, %v10051_v37  ;;  %v5127_v1 = vadd.f32 0.49746925, %v5063_v12  ;;  %v3770_v13 = vmul.f32 0.70710677, %v10149_v54  ;;  %v10171_v18 = vadd.f32 %v9877_v6, %v9939_v42 }
 0x289   : > { %v4729_v25 = vadd.f32 0.0010179626, %v4665_v14  ;;  %v4040_v27 = vmul.f32 0.00022905065, %v10159_v32  ;;  %v4552_v52 = vmul.f32 -1.1791603e-07, %v10159_v32 }
 0x28a   : > { %v4359_v29 = vadd.f32 0.18520832, %v4295_v5  ;;  %v5191_v55 = vmul.f32 %v5127_v1, %v10073_v31  ;;  %v10167_v34 = vclamps-f32 %v3770_v13, 4.0  ;;  %v4217_v23 = vadd.f32 0.050955694, %v4153_v53 }
 0x28b   : > { %v4793_v37 = vmul.f32 %v4729_v25, %v10095_v41  ;;  %v4104_v28 = vadd.f32 0.003408291, %v4040_v27  ;;  %v4616_v48 = vadd.f32 2.3547966e-05, %v4552_v52  ;;  %v5496_v12 = vadd.f32 1.0, %v5432_v38 }
 0x28c   : > { %v4480_v14 = vadd.f32 1.1283791, %v4416_v17  ;;  %v5248_v30 = vadd.f32 1.0, %v5184_v59  ;;  %v10176_v60 = vmul.f32 %v10167_v34, %v10167_v34  ;;  %v5255_v5 = vadd.f32 1.0, %v5191_v55 }
 0x28d   : > { %v4857_v1 = vadd.f32 0.01407047, %v4793_v37  ;;  %v4168_v13 = vmul.f32 %v4104_v28, %v10159_v32  ;;  %v4680_v33 = vmul.f32 %v4616_v48, %v10159_v32  ;;  %v4423_v42 = vmul.f32 %v4359_v29, %v10073_v31  ;;  %v10188_v48 = vpop.f32.mrb[11].mxu1 }
 0x28e   : > { %v4026_v53 = vmul.f32 0.00022905065, %v10176_v60  ;;  %v4538_v25 = vmul.f32 -1.1791603e-07, %v10176_v60  ;;  %v3791_v38 = vmul.f32 0.70710677, %v10171_v18  ;;  %v4281_v17 = vmul.f32 %v4217_v23, %v10095_v41 }
 0x28f   : > { %v4921_v59 = vmul.f32 %v4857_v1, %v10095_v41  ;;  %v4232_v27 = vadd.f32 0.050955694, %v4168_v13  ;;  %v4744_v52 = vadd.f32 0.0010179626, %v4680_v33  ;;  %7816 = vrcp.f32 %v5248_v30 }
 0x290   : > { %v4090_v55 = vadd.f32 0.003408291, %v4026_v53  ;;  %v4602_v37 = vadd.f32 2.3547966e-05, %v4538_v25  ;;  %v10186_v28 = vclamps-f32 %v3791_v38, 4.0  ;;  %7818 = vrcp.f32 %v5255_v5 }
 0x291   : > { %v4985_v31 = vadd.f32 0.11098505, %v4921_v59  ;;  %v4808_v29 = vmul.f32 %v4744_v52, %v10159_v32  ;;  %v4296_v23 = vmul.f32 %v4232_v27, %v10159_v32  ;;  %v4487_v13 = vadd.f32 1.1283791, %v4423_v42 }
 0x292   : > { %v4154_v1 = vmul.f32 %v4090_v55, %v10176_v60  ;;  %v4666_v33 = vmul.f32 %v4602_v37, %v10176_v60  ;;  %v10198_v30 = vmul.f32 %v10186_v28, %v10186_v28  ;;  %v4345_v53 = vadd.f32 0.18520832, %v4281_v17 }
 0x293   : > { %v5049_v5 = vmul.f32 %v4985_v31, %v10095_v41  ;;  %v4872_v25 = vadd.f32 0.01407047, %v4808_v29  ;;  %v10203_v38 = vmul.f32 %v10097_v26, %v9954_v61  ;;  %v10209_v42 = vmul.f32 %v5496_v12, %v10019_v8 }
 0x294   : > { %v4218_v24 = vadd.f32 0.050955694, %v4154_v1  ;;  %v4730_v59 = vadd.f32 0.0010179626, %v4666_v33  ;;  %v4047_v27 = vmul.f32 0.00022905065, %v10198_v30  ;;  %v5312_v26 = vmul.f32 %v10037_v51, %v4480_v14 }
 0x295   : > { %12427 = vst [vmem:[#allocation23_spill] sm:$0xff] %v10203_v38  ;;  %v5113_v52 = vadd.f32 0.49746925, %v5049_v5  ;;  %v4936_v55 = vmul.f32 %v4872_v25, %v10159_v32  ;;  %v4559_v37 = vmul.f32 -1.1791603e-07, %v10198_v30  ;;  %12428 = vst [vmem:[#allocation24_spill] sm:$0xff] %v10209_v42  ;;  %v4409_v1 = vmul.f32 %v4345_v53, %v10095_v41 }
 0x296   : > { %v4360_v17 = vadd.f32 0.18520832, %v4296_v23  ;;  %v4794_v31 = vmul.f32 %v4730_v59, %v10176_v60  ;;  %v4111_v29 = vadd.f32 0.003408291, %v4047_v27  ;;  %v10215_v5 = vpop.f32.mrb[19].mxu0  ;;  %v4282_v25 = vmul.f32 %v4218_v24, %v10176_v60 }
 0x297   : > { %v5177_v33 = vmul.f32 %v5113_v52, %v10095_v41  ;;  %v5000_v38 = vadd.f32 0.11098505, %v4936_v55  ;;  %v4623_v8 = vadd.f32 2.3547966e-05, %v4559_v37  ;;  %v5319_v12 = vmul.f32 %v10062_v50, %v4487_v13 }
 0x298   : > { %v4858_v61 = vadd.f32 0.01407047, %v4794_v31  ;;  %v4175_v49 = vmul.f32 %v4111_v29, %v10198_v30  ;;  %v10221_v27 = vclamps-f32 %v3777_v35, 4.0  ;;  %v4424_v14 = vmul.f32 %v4360_v17, %v10159_v32 }
 0x299   : > { %v5241_v23 = vadd.f32 1.0, %v5177_v33  ;;  %v5064_v59 = vmul.f32 %v5000_v38, %v10159_v32  ;;  %v7817_v51 = vpop.eup %7816  ;;  %v10225_v41 = vmul.f32 0.5, %v10149_v54  ;;  %v10229_v24 = vmul.f32 0.5, %v10171_v18 }
 0x29a   : > { %v4922_v53 = vmul.f32 %v4858_v61, %v10176_v60  ;;  %v7819_v52 = vpop.eup %7818  ;;  %v4473_v55 = vadd.f32 1.1283791, %v4409_v1  ;;  %v10231_v50 = vmul.f32 0.5, %v3649_v15  ;;  %v3664_v35 = vadd.f32 %v9880_v19, %v9948_v36 }
 0x29b   : > { %v5128_v37 = vadd.f32 0.49746925, %v5064_v59  ;;  %v4346_v13 = vadd.f32 0.18520832, %v4282_v25  ;;  %v4239_v31 = vadd.f32 0.050955694, %v4175_v49  ;;  %v4687_v17 = vmul.f32 %v4623_v8, %v10198_v30 }
 0x29c   : > { %v4986_v38 = vadd.f32 0.11098505, %v4922_v53  ;;  %v5440_v54 = vmul.f32 %v7817_v51, %v5312_v26  ;;  %7820 = vrcp.f32 %v5241_v23  ;;  %v10239_v18 = vmul.f32 %v10221_v27, %v10221_v27  ;;  %v7741_v51 = vld [vmem:[%s12348_s6 + $0x8] sm:$0xff]  }
 0x29d   : > { %v5192_v61 = vmul.f32 %v5128_v37, %v10159_v32  ;;  %v5447_v29 = vmul.f32 %v7819_v52, %v5319_v12  ;;  %v4488_v1 = vadd.f32 1.1283791, %v4424_v14  ;;  %v4751_v33 = vadd.f32 0.0010179626, %v4687_v17  ;;  %v7740_v32 = vld [vmem:[%s12348_s6 + $0x48] sm:$0xff]  }
 0x29e   : > { %v5050_v15 = vmul.f32 %v4986_v38, %v10176_v60  ;;  %v4033_v36 = vmul.f32 0.00022905065, %v10239_v18  ;;  %v4545_v49 = vmul.f32 -1.1791603e-07, %v10239_v18  ;;  %v3650_v26 = vadd.f32 %v10102_v10, %v9957_v45  ;;  %7301 = vmatprep.subr.bf16.mxu0 %v7740_v32 }
 0x29f   : > { %v5256_v59 = vadd.f32 1.0, %v5192_v61  ;;  %v4410_v25 = vmul.f32 %v4346_v13, %v10176_v60  ;;  %v4303_v8 = vmul.f32 %v4239_v31, %v10198_v30  ;;  %v4815_v12 = vmul.f32 %v4751_v33, %v10198_v30  ;;  %7302 = vmatpush3.bf16.msra.mxu0 %v7741_v51  ;;  %v10276_v51 = vpop.f32.mrb[12].mxu1 }
 0x2a0   : > { %v3792_v23 = vmul.f32 0.70710677, %v3664_v35  ;;  %v5305_v14 = vmul.f32 %v10081_v44, %v4473_v55  ;;  %v5114_v53 = vadd.f32 0.49746925, %v5050_v15  ;;  %v4097_v52 = vadd.f32 0.003408291, %v4033_v36 }
 0x2a1   : > { %v4609_v45 = vadd.f32 2.3547966e-05, %v4545_v49  ;;  %v5504_v37 = vadd.f32 1.0, %v5440_v54  ;;  %v5511_v38 = vadd.f32 1.0, %v5447_v29  ;;  %v4879_v17 = vadd.f32 0.01407047, %v4815_v12 }
 0x2a2   : > { %v10256_v61 = vclamps-f32 %v3792_v23, 4.0  ;;  %7822 = vrcp.f32 %v5256_v59  ;;  %v4161_v13 = vmul.f32 %v4097_v52, %v10239_v18  ;;  %v3778_v33 = vmul.f32 0.70710677, %v3650_v26  ;;  %v7742_v44 = vld [vmem:[%s12348_s6 + $0xc0] sm:$0xff]  }
 0x2a3   : > { %v4673_v31 = vmul.f32 %v4609_v45, %v10239_v18  ;;  %v4474_v55 = vadd.f32 1.1283791, %v4410_v25  ;;  %v4367_v15 = vadd.f32 0.18520832, %v4303_v8  ;;  %v4943_v36 = vmul.f32 %v4879_v17, %v10198_v30  ;;  %7339 = vmatprep.subr.bf16.mxu1 %v7742_v44 }
 0x2a4   : > { %v10266_v54 = vmul.f32 %v10256_v61, %v10256_v61  ;;  %v5178_v29 = vmul.f32 %v5114_v53, %v10176_v60  ;;  %v4225_v59 = vadd.f32 0.050955694, %v4161_v13  ;;  %v10269_v32 = vclamps-f32 %v3778_v33, 4.0 }
 0x2a5   : > { %v4737_v49 = vadd.f32 0.0010179626, %v4673_v31  ;;  %v10272_v12 = vmul.f32 %v5504_v37, %v10113_v21  ;;  %v5320_v23 = vmul.f32 %v10143_v7, %v4488_v1  ;;  %v5007_v25 = vadd.f32 0.11098505, %v4943_v36  ;;  %v10285_v21 = vpop.f32.mrb[20].mxu0 }
 0x2a6   : > { %v4048_v8 = vmul.f32 0.00022905065, %v10266_v54  ;;  %v7821_v52 = vpop.eup %7820  ;;  %v4289_v45 = vmul.f32 %v4225_v59, %v10239_v18  ;;  %v4560_v53 = vmul.f32 -1.1791603e-07, %v10266_v54  ;;  %v10283_v17 = vmul.f32 %v10269_v32, %v10269_v32 }
 0x2a7   : > { %12429 = vst [vmem:[#allocation25_spill] sm:$0xff] %v10272_v12  ;;  %v4801_v60 = vmul.f32 %v4737_v49, %v10239_v18  ;;  %v10288_v7 = vmul.f32 %v5511_v38, %v10119_v43  ;;  %v4431_v1 = vmul.f32 %v4367_v15, %v10198_v30  ;;  %v10291_v37 = vmul.f32 0.5, %v3664_v35 }
 0x2a8   : > { %v4112_v13 = vadd.f32 0.003408291, %v4048_v8  ;;  %v5242_v31 = vadd.f32 1.0, %v5178_v29  ;;  %v5071_v33 = vmul.f32 %v5007_v25, %v10198_v30  ;;  %v4624_v36 = vadd.f32 2.3547966e-05, %v4560_v53  ;;  %v7743_v29 = vld [vmem:[%s12348_s6 + $0x50] sm:$0xff]  }
 0x2a9   : > { %12430 = vst [vmem:[#allocation26_spill] sm:$0xff] %v10288_v7  ;;  %v4865_v44 = vadd.f32 0.01407047, %v4801_v60  ;;  %v5433_v59 = vmul.f32 %v7821_v52, %v5305_v14  ;;  %v4034_v11 = vmul.f32 0.00022905065, %v10283_v17  ;;  %v3671_v12 = vadd.f32 %v9877_v6, %v9964_v39  ;;  %v7744_v39 = vld [vmem:[%s12348_s6 + $0x80] sm:$0xff]   ;;  %7303 = vmatprep.subr.bf16.mxu0 %v7743_v29 }
 0x2aa   : > { %v4176_v49 = vmul.f32 %v4112_v13, %v10266_v54  ;;  %v4353_v43 = vadd.f32 0.18520832, %v4289_v45  ;;  %v4688_v35 = vmul.f32 %v4624_v36, %v10266_v54  ;;  %v4546_v15 = vmul.f32 -1.1791603e-07, %v10283_v17  ;;  %7340 = vmatpush3.bf16.msra.mxu1 %v7744_v39 }
 0x2ab   : > { %v4929_v38 = vmul.f32 %v4865_v44, %v10239_v18  ;;  %v10305_v14 = vmul.f32 %v10167_v34, %v4474_v55  ;;  %v4495_v25 = vadd.f32 1.1283791, %v4431_v1  ;;  %v10307_v8 = vmul.f32 0.5, %v3650_v26  ;;  %v10313_v55 = vpop.f32.mrb[13].mxu1 }
 0x2ac   : > { %v4098_v52 = vadd.f32 0.003408291, %v4034_v11  ;;  %v7823_v45 = vpop.eup %7822  ;;  %7824 = vrcp.f32 %v5242_v31  ;;  %v5135_v60 = vadd.f32 0.49746925, %v5071_v33  ;;  %v4752_v13 = vadd.f32 0.0010179626, %v4688_v35 }
 0x2ad   : > { %v4993_v53 = vadd.f32 0.11098505, %v4929_v38  ;;  %v5497_v44 = vadd.f32 1.0, %v5433_v59  ;;  %v4240_v36 = vadd.f32 0.050955694, %v4176_v49  ;;  %v4417_v11 = vmul.f32 %v4353_v43, %v10239_v18 }
 0x2ae   : > { %v4162_v7 = vmul.f32 %v4098_v52, %v10283_v17  ;;  %v3799_v34 = vmul.f32 0.70710677, %v3671_v12  ;;  %v4816_v1 = vmul.f32 %v4752_v13, %v10266_v54  ;;  %v4610_v42 = vadd.f32 2.3547966e-05, %v4546_v15 }
 0x2af   : > { %v5057_v26 = vmul.f32 %v4993_v53, %v10239_v18  ;;  %v5448_v31 = vmul.f32 %v7823_v45, %v5320_v23  ;;  %v10319_v33 = vmul.f32 %v10186_v28, %v4495_v25  ;;  %v3657_v59 = vadd.f32 %v10000_v47, %v9966_v56 }
 0x2b0   : > { %v4226_v38 = vadd.f32 0.050955694, %v4162_v7  ;;  %v5199_v49 = vmul.f32 %v5135_v60, %v10198_v30  ;;  %v4880_v29 = vadd.f32 0.01407047, %v4816_v1  ;;  %v4674_v52 = vmul.f32 %v4610_v42, %v10283_v17  ;;  %v10335_v30 = vpop.f32.mrb[21].mxu0 }
 0x2b1   : > { %v5121_v35 = vadd.f32 0.49746925, %v5057_v26  ;;  %v10326_v43 = vmul.f32 %v5497_v44, %v10122_v0  ;;  %v4304_v39 = vmul.f32 %v4240_v36, %v10266_v54  ;;  %v10329_v15 = vmul.f32 0.5, %v3671_v12 }
 0x2b2   : > { %v10331_v23 = vclamps-f32 %v3799_v34, 4.0  ;;  %v4481_v28 = vadd.f32 1.1283791, %v4417_v11  ;;  %v4944_v56 = vmul.f32 %v4880_v29, %v10266_v54  ;;  %v4738_v25 = vadd.f32 0.0010179626, %v4674_v52 }
 0x2b3   : > { %12431 = vst [vmem:[#allocation27_spill] sm:$0xff] %v10326_v43  ;;  %v5185_v7 = vmul.f32 %v5121_v35, %v10239_v18  ;;  %v5512_v45 = vadd.f32 1.0, %v5448_v31  ;;  %v4290_v42 = vmul.f32 %v4226_v38, %v10283_v17  ;;  %v3785_v60 = vmul.f32 0.70710677, %v3657_v59 }
 0x2b4   : > { %v10340_v0 = vmul.f32 %v10331_v23, %v10331_v23  ;;  %v5263_v12 = vadd.f32 1.0, %v5199_v49  ;;  %v5008_v13 = vadd.f32 0.11098505, %v4944_v56  ;;  %v4802_v44 = vmul.f32 %v4738_v25, %v10283_v17  ;;  %v7745_v25 = vld [vmem:[%s12348_s6 + $0x10] sm:$0xff]  }
 0x2b5   : > { %v5249_v53 = vadd.f32 1.0, %v5185_v7  ;;  %v4368_v36 = vadd.f32 0.18520832, %v4304_v39  ;;  %v10347_v11 = vadd.f32 %v9880_v19, %v9971_v16  ;;  %v10350_v38 = vclamps-f32 %v3785_v60, 4.0  ;;  %7304 = vmatpush3.bf16.msra.mxu0 %v7745_v25 }
 0x2b6   : > { %v4055_v18 = vmul.f32 0.00022905065, %v10340_v0  ;;  %v4567_v34 = vmul.f32 -1.1791603e-07, %v10340_v0  ;;  %v7825_v26 = vpop.eup %7824  ;;  %v5072_v1 = vmul.f32 %v5008_v13, %v10266_v54  ;;  %v4866_v31 = vadd.f32 0.01407047, %v4802_v44 }
 0x2b7   : > { %7826 = vrcp.f32 %v5249_v53  ;;  %v5313_v49 = vmul.f32 %v10221_v27, %v4481_v28  ;;  %v4354_v35 = vadd.f32 0.18520832, %v4290_v42  ;;  %v10354_v39 = vmul.f32 %v5512_v45, %v10131_v58  ;;  %v10370_v13 = vpop.f32.mrb[14].mxu1 }
 0x2b8   : > { %v4119_v29 = vadd.f32 0.003408291, %v4055_v18  ;;  %v4631_v52 = vadd.f32 2.3547966e-05, %v4567_v34  ;;  %v5136_v7 = vadd.f32 0.49746925, %v5072_v1  ;;  %v4930_v56 = vmul.f32 %v4866_v31, %v10283_v17 }
 0x2b9   : > { %12432 = vst [vmem:[#allocation28_spill] sm:$0xff] %v10354_v39  ;;  %v10359_v16 = vmul.f32 %v10350_v38, %v10350_v38  ;;  %7828 = vrcp.f32 %v5263_v12  ;;  %v3800_v42 = vmul.f32 0.70710677, %v10347_v11  ;;  %v5434_v58 = vmul.f32 %v7825_v26, %v10305_v14  ;;  %12433 = vst [vmem:[#allocation29_spill] sm:$0xff] %v10370_v13 }
 0x2ba   : > { %v4183_v27 = vmul.f32 %v4119_v29, %v10340_v0  ;;  %v4695_v28 = vmul.f32 %v4631_v52, %v10340_v0  ;;  %v4432_v45 = vmul.f32 %v4368_v36, %v10266_v54  ;;  %v4994_v60 = vadd.f32 0.11098505, %v4930_v56 }
 0x2bb   : > { %v4041_v53 = vmul.f32 0.00022905065, %v10359_v16  ;;  %v4418_v44 = vmul.f32 %v4354_v35, %v10283_v17  ;;  %v10373_v12 = vmul.f32 0.5, %v3657_v59  ;;  %v4553_v34 = vmul.f32 -1.1791603e-07, %v10359_v16 }
 0x2bc   : > { %v4759_v18 = vadd.f32 0.0010179626, %v4695_v28  ;;  %v5200_v1 = vmul.f32 %v5136_v7, %v10266_v54  ;;  %v5058_v31 = vmul.f32 %v4994_v60, %v10283_v17  ;;  %v4247_v14 = vadd.f32 0.050955694, %v4183_v27 }
 0x2bd   : > { %v4105_v26 = vadd.f32 0.003408291, %v4041_v53  ;;  %v4617_v29 = vadd.f32 2.3547966e-05, %v4553_v34  ;;  %v10379_v52 = vclamps-f32 %v3800_v42, 4.0  ;;  %v10383_v56 = vadd.f32 %v10102_v10, %v9973_v40 }
 0x2be   : > { %v4823_v36 = vmul.f32 %v4759_v18, %v10340_v0  ;;  %v5498_v35 = vadd.f32 1.0, %v5434_v58  ;;  %v4496_v59 = vadd.f32 1.1283791, %v4432_v45  ;;  %v5122_v25 = vadd.f32 0.49746925, %v5058_v31 }
 0x2bf   : > { %v4169_v28 = vmul.f32 %v4105_v26, %v10359_v16  ;;  %v4482_v39 = vadd.f32 1.1283791, %v4418_v44  ;;  %v4681_v7 = vmul.f32 %v4617_v29, %v10359_v16  ;;  %v10389_v27 = vmul.f32 %v10379_v52, %v10379_v52 }
 0x2c0   : > { %v4887_v54 = vadd.f32 0.01407047, %v4823_v36  ;;  %v5264_v42 = vadd.f32 1.0, %v5200_v1  ;;  %v5186_v53 = vmul.f32 %v5122_v25, %v10283_v17  ;;  %v4311_v40 = vmul.f32 %v4247_v14, %v10340_v0 }
 0x2c1   : > { %v7827_v60 = vpop.eup %7826  ;;  %v4233_v18 = vadd.f32 0.050955694, %v4169_v28  ;;  %v4745_v34 = vadd.f32 0.0010179626, %v4681_v7  ;;  %v3786_v44 = vmul.f32 0.70710677, %v10383_v56  ;;  %v10396_v31 = vmul.f32 %v5498_v35, %v10225_v41 }
 0x2c2   : > { %v5441_v58 = vmul.f32 %v7827_v60, %v5313_v49  ;;  %v4951_v45 = vmul.f32 %v4887_v54, %v10340_v0  ;;  %v5250_v26 = vadd.f32 1.0, %v5186_v53  ;;  %v4056_v36 = vmul.f32 0.00022905065, %v10389_v27  ;;  %v10410_v53 = vpop.f32.mrb[22].mxu0 }
 0x2c3   : > { %12434 = vst [vmem:[#allocation30_spill] sm:$0xff] %v10396_v31  ;;  %v4568_v29 = vmul.f32 -1.1791603e-07, %v10389_v27  ;;  %v7829_v1 = vpop.eup %7828  ;;  %v4809_v14 = vmul.f32 %v4745_v34, %v10359_v16  ;;  %v10403_v49 = vadd.f32 %v9877_v6, %v9981_v57  ;;  %7830 = vrcp.f32 %v5264_v42 }
 0x2c4   : > { %v5505_v13 = vadd.f32 1.0, %v5441_v58  ;;  %v5015_v17 = vadd.f32 0.11098505, %v4951_v45  ;;  %v4375_v25 = vadd.f32 0.18520832, %v4311_v40  ;;  %v4297_v7 = vmul.f32 %v4233_v18, %v10359_v16 }
 0x2c5   : > { %v4120_v28 = vadd.f32 0.003408291, %v4056_v36  ;;  %v4632_v54 = vadd.f32 2.3547966e-05, %v4568_v29  ;;  %v4873_v60 = vadd.f32 0.01407047, %v4809_v14  ;;  %7832 = vrcp.f32 %v5250_v26 }
 0x2c6   : > { %v10406_v41 = vmul.f32 %v5505_v13, %v10231_v50  ;;  %v5079_v35 = vmul.f32 %v5015_v17, %v10340_v0  ;;  %v10414_v57 = vclamps-f32 %v3786_v44, 4.0  ;;  %v5455_v42 = vmul.f32 %v7829_v1, %v10319_v33 }
 0x2c7   : > { %v4184_v58 = vmul.f32 %v4120_v28, %v10389_v27  ;;  %v4696_v6 = vmul.f32 %v4632_v54, %v10389_v27  ;;  %v4937_v40 = vmul.f32 %v4873_v60, %v10359_v16  ;;  %v4439_v18 = vmul.f32 %v4375_v25, %v10340_v0 }
 0x2c8   : > { %12435 = vst [vmem:[#allocation31_spill] sm:$0xff] %v10406_v41  ;;  %v5143_v13 = vadd.f32 0.49746925, %v5079_v35  ;;  %v10423_v26 = vmul.f32 %v10414_v57, %v10414_v57  ;;  %v5328_v36 = vmul.f32 %v10256_v61, %v4496_v59  ;;  %v10428_v33 = vmul.f32 0.5, %v10347_v11 }
 0x2c9   : > { %v4248_v45 = vadd.f32 0.050955694, %v4184_v58  ;;  %v4760_v34 = vadd.f32 0.0010179626, %v4696_v6  ;;  %v5001_v29 = vadd.f32 0.11098505, %v4937_v40 }
 0x2ca   : > { %v5207_v44 = vmul.f32 %v5143_v13, %v10340_v0  ;;  %v4361_v1 = vadd.f32 0.18520832, %v4297_v7  ;;  %v4042_v14 = vmul.f32 0.00022905065, %v10423_v26  ;;  %v3807_v25 = vmul.f32 0.70710677, %v10403_v49 }
 0x2cb   : > { %v4824_v17 = vmul.f32 %v4760_v34, %v10389_v27  ;;  %v5519_v28 = vadd.f32 1.0, %v5455_v42  ;;  %v5065_v54 = vmul.f32 %v5001_v29, %v10359_v16  ;;  %v4312_v35 = vmul.f32 %v4248_v45, %v10389_v27  ;;  %v10439_v40 = vpop.f32.mrb[15].mxu1 }
 0x2cc   : > { %v4554_v61 = vmul.f32 -1.1791603e-07, %v10423_v26  ;;  %v5314_v0 = vmul.f32 %v10269_v32, %v4482_v39  ;;  %v4503_v59 = vadd.f32 1.1283791, %v4439_v18  ;;  %v4106_v11 = vadd.f32 0.003408291, %v4042_v14 }
 0x2cd   : > { %v4888_v60 = vadd.f32 0.01407047, %v4824_v17  ;;  %v5271_v58 = vadd.f32 1.0, %v5207_v44  ;;  %v5129_v7 = vadd.f32 0.49746925, %v5065_v54  ;;  %v3665_v13 = vadd.f32 %v10000_v47, %v9983_v62  ;;  %v7831_v42 = vpop.eup %7830 }
 0x2ce   : > { %v4618_v6 = vadd.f32 2.3547966e-05, %v4554_v61  ;;  %v4425_v34 = vmul.f32 %v4361_v1, %v10359_v16  ;;  %v4170_v29 = vmul.f32 %v4106_v11, %v10423_v26  ;;  %v10444_v50 = vclamps-f32 %v3807_v25, 4.0  ;;  %v10461_v11 = vpop.f32.mrb[23].mxu0 }
 0x2cf   : > { %v4952_v45 = vmul.f32 %v4888_v60, %v10389_v27  ;;  %v10447_v32 = vmul.f32 %v5519_v28, %v10229_v24  ;;  %v4376_v39 = vadd.f32 0.18520832, %v4312_v35  ;;  %v10450_v18 = vmul.f32 0.5, %v10383_v56  ;;  %v7833_v44 = vpop.eup %7832 }
 0x2d0   : > { %v4682_v62 = vmul.f32 %v4618_v6, %v10423_v26  ;;  %v5193_v17 = vmul.f32 %v5129_v7, %v10359_v16  ;;  %v4234_v1 = vadd.f32 0.050955694, %v4170_v29  ;;  %v10456_v54 = vmul.f32 %v10444_v50, %v10444_v50 }
 0x2d1   : > { %12436 = vst [vmem:[#allocation32_spill] sm:$0xff] %v10447_v32  ;;  %v5016_v14 = vadd.f32 0.11098505, %v4952_v45  ;;  %v5456_v25 = vmul.f32 %v7831_v42, %v5328_v36  ;;  %7834 = vrcp.f32 %v5271_v58  ;;  %v3793_v24 = vmul.f32 0.70710677, %v3665_v13 }
 0x2d2   : > { %v4746_v61 = vadd.f32 0.0010179626, %v4682_v62  ;;  %v5335_v28 = vmul.f32 %v10331_v23, %v4503_v59  ;;  %v4489_v35 = vadd.f32 1.1283791, %v4425_v34  ;;  %v4063_v60 = vmul.f32 0.00022905065, %v10456_v54 }
 0x2d3   : > { %v5080_v56 = vmul.f32 %v5016_v14, %v10389_v27  ;;  %v5442_v16 = vmul.f32 %v7833_v44, %v5314_v0  ;;  %v4440_v7 = vmul.f32 %v4376_v39, %v10389_v27  ;;  %v4575_v45 = vmul.f32 -1.1791603e-07, %v10456_v54  ;;  %v7746_v14 = vld [vmem:[%s12348_s6 + $0xc8] sm:$0xff]  }
 0x2d4   : > { %v4810_v6 = vmul.f32 %v4746_v61, %v10423_v26  ;;  %v5257_v36 = vadd.f32 1.0, %v5193_v17  ;;  %v4298_v58 = vmul.f32 %v4234_v1, %v10423_v26  ;;  %v4127_v42 = vadd.f32 0.003408291, %v4063_v60  ;;  %v7749_v61 = vld [vmem:[%s12348_s6 + $0x18] sm:$0xff]   ;;  %7341 = vmatprep.subr.bf16.mxu1 %v7746_v14 }
 0x2d5   : > { %v3680_v23 = vadd.f32 %v9880_v19, %v9988_v4  ;;  %v5520_v59 = vadd.f32 1.0, %v5456_v25  ;;  %v4639_v29 = vadd.f32 2.3547966e-05, %v4575_v45  ;;  %v10469_v62 = vclamps-f32 %v3793_v24, 4.0  ;;  %v7747_v19 = vld [vmem:[%s12348_s6 + $0x58] sm:$0xff]  }
 0x2d6   : > { %v4874_v34 = vadd.f32 0.01407047, %v4810_v6  ;;  %v10472_v0 = vmul.f32 %v10350_v38, %v4489_v35  ;;  %v5144_v39 = vadd.f32 0.49746925, %v5080_v56  ;;  %v10475_v44 = vmul.f32 0.5, %v10403_v49  ;;  %v7748_v49 = vld [vmem:[%s12348_s6 + $0x88] sm:$0xff]   ;;  %7305 = vmatprep.subr.bf16.mxu0 %v7747_v19 }
 0x2d7   : > { %v4191_v17 = vmul.f32 %v4127_v42, %v10456_v54  ;;  %v4504_v4 = vadd.f32 1.1283791, %v4440_v7  ;;  %v4703_v38 = vmul.f32 %v4639_v29, %v10456_v54  ;;  %v10488_v25 = vmul.f32 %v10469_v62, %v10469_v62  ;;  %7342 = vmatpush3.bf16.msra.mxu1 %v7748_v49  ;;  %7306 = vmatpush3.bf16.msra.mxu0 %v7749_v61 }
 0x2d8   : > { %v4938_v1 = vmul.f32 %v4874_v34, %v10423_v26  ;;  %v5506_v24 = vadd.f32 1.0, %v5442_v16  ;;  %7836 = vrcp.f32 %v5257_v36  ;;  %v4362_v35 = vadd.f32 0.18520832, %v4298_v58 }
 0x2d9   : > { %v3808_v56 = vmul.f32 0.70710677, %v3680_v23  ;;  %v10497_v60 = vmul.f32 %v5520_v59, %v10291_v37  ;;  %v4767_v6 = vadd.f32 0.0010179626, %v4703_v38  ;;  %v4049_v45 = vmul.f32 0.00022905065, %v10488_v25 }
 0x2da   : > { %v5002_v7 = vadd.f32 0.11098505, %v4938_v1  ;;  %v5208_v42 = vmul.f32 %v5144_v39, %v10389_v27  ;;  %v4255_v34 = vadd.f32 0.050955694, %v4191_v17  ;;  %v10501_v29 = vmul.f32 0.5, %v3665_v13  ;;  %v7750_v37 = vld [vmem:[%s12348_s6 + $0xd0] sm:$0xff]  }
 0x2db   : > { %12437 = vst [vmem:[#allocation33_spill] sm:$0xff] %v10497_v60  ;;  %v10505_v16 = vadd.f32 %v10102_v10, %v9990_v63  ;;  %v7835_v36 = vpop.eup %7834  ;;  %v4831_v59 = vmul.f32 %v4767_v6, %v10456_v54  ;;  %v4113_v14 = vadd.f32 0.003408291, %v4049_v45  ;;  %v4561_v19 = vmul.f32 -1.1791603e-07, %v10488_v25  ;;  %7343 = vmatprep.subr.bf16.mxu1 %v7750_v37  ;;  %v10522_v17 = vpop.f32.mrb[24].mxu0 }
 0x2dc   : > { %v5066_v58 = vmul.f32 %v5002_v7, %v10423_v26  ;;  %v10514_v27 = vmul.f32 %v5506_v24, %v10307_v8  ;;  %v10517_v13 = vmul.f32 %v10379_v52, %v4504_v4  ;;  %v4426_v63 = vmul.f32 %v4362_v35, %v10423_v26 }
 0x2dd   : > { %v10520_v39 = vclamps-f32 %v3808_v56, 4.0  ;;  %v4895_v38 = vadd.f32 0.01407047, %v4831_v59  ;;  %v4177_v49 = vmul.f32 %v4113_v14, %v10488_v25  ;;  %v4625_v61 = vadd.f32 2.3547966e-05, %v4561_v19 }
 0x2de   : > { %12438 = vst [vmem:[#allocation34_spill] sm:$0xff] %v10514_v27  ;;  %v5130_v1 = vadd.f32 0.49746925, %v5066_v58  ;;  %v5463_v7 = vmul.f32 %v7835_v36, %v5335_v28  ;;  %v5272_v6 = vadd.f32 1.0, %v5208_v42  ;;  %v3794_v52 = vmul.f32 0.70710677, %v10505_v16 }
 0x2df   : > { %v10527_v8 = vmul.f32 %v10520_v39, %v10520_v39  ;;  %v4319_v4 = vmul.f32 %v4255_v34, %v10456_v54  ;;  %v4959_v24 = vmul.f32 %v4895_v38, %v10456_v54  ;;  %v4241_v35 = vadd.f32 0.050955694, %v4177_v49 }
 0x2e0   : > { %v4689_v56 = vmul.f32 %v4625_v61, %v10488_v25  ;;  %v5194_v45 = vmul.f32 %v5130_v1, %v10423_v26  ;;  %v10534_v37 = vmul.f32 0.5, %v3680_v23  ;;  %v10537_v42 = vclamps-f32 %v3794_v52, 4.0 }
 0x2e1   : > { %v4064_v28 = vmul.f32 0.00022905065, %v10527_v8  ;;  %v4490_v36 = vadd.f32 1.1283791, %v4426_v63  ;;  %v5023_v58 = vadd.f32 0.11098505, %v4959_v24  ;;  %v10541_v14 = vadd.f32 %v10000_v47, %v10011_v22 }
 0x2e2   : > { %v4753_v59 = vadd.f32 0.0010179626, %v4689_v56  ;;  %v7837_v34 = vpop.eup %7836  ;;  %v5527_v19 = vadd.f32 1.0, %v5463_v7  ;;  %7838 = vrcp.f32 %v5272_v6  ;;  %v4576_v49 = vmul.f32 -1.1791603e-07, %v10527_v8  ;;  %v10552_v7 = vpop.f32.mrb[16].mxu1 }
 0x2e3   : > { %v4128_v38 = vadd.f32 0.003408291, %v4064_v28  ;;  %v4383_v26 = vadd.f32 0.18520832, %v4319_v4  ;;  %v5087_v23 = vmul.f32 %v5023_v58, %v10456_v54  ;;  %v4305_v1 = vmul.f32 %v4241_v35, %v10488_v25 }
 0x2e4   : > { %v4817_v61 = vmul.f32 %v4753_v59, %v10488_v25  ;;  %v5258_v63 = vadd.f32 1.0, %v5194_v45  ;;  %v4640_v24 = vadd.f32 2.3547966e-05, %v4576_v49  ;;  %v10550_v22 = vmul.f32 %v10537_v42, %v10537_v42 }
 0x2e5   : > { %v4192_v52 = vmul.f32 %v4128_v38, %v10527_v8  ;;  %v5449_v6 = vmul.f32 %v7837_v34, %v10472_v0  ;;  %v10556_v4 = vmul.f32 %v10414_v57, %v4490_v36  ;;  %v5151_v56 = vadd.f32 0.49746925, %v5087_v23 }
 0x2e6   : > { %v4881_v28 = vadd.f32 0.01407047, %v4817_v61  ;;  %v4704_v58 = vmul.f32 %v4640_v24, %v10527_v8  ;;  %v4050_v45 = vmul.f32 0.00022905065, %v10550_v22  ;;  %v4562_v59 = vmul.f32 -1.1791603e-07, %v10550_v22 }
 0x2e7   : > { %v4256_v35 = vadd.f32 0.050955694, %v4192_v52  ;;  %v10562_v38 = vmul.f32 %v5527_v19, %v10329_v15  ;;  %v4447_v49 = vmul.f32 %v4383_v26, %v10456_v54  ;;  %v4369_v32 = vadd.f32 0.18520832, %v4305_v1  ;;  %v7751_v15 = vld [vmem:[%s12348_s6 + $0x60] sm:$0xff]  }
 0x2e8   : > { %v4945_v0 = vmul.f32 %v4881_v28, %v10488_v25  ;;  %7840 = vrcp.f32 %v5258_v63  ;;  %v4768_v57 = vadd.f32 0.0010179626, %v4704_v58  ;;  %v4114_v36 = vadd.f32 0.003408291, %v4050_v45  ;;  %7307 = vmatprep.subr.bf16.mxu0 %v7751_v15  ;;  %v10594_v15 = vpop.f32.mrb[25].mxu0 }
 0x2e9   : > { %12439 = vst [vmem:[#allocation35_spill] sm:$0xff] %v10562_v38  ;;  %v4626_v34 = vadd.f32 2.3547966e-05, %v4562_v59  ;;  %v5513_v23 = vadd.f32 1.0, %v5449_v6  ;;  %v5215_v61 = vmul.f32 %v5151_v56, %v10456_v54  ;;  %v10568_v24 = vmul.f32 0.5, %v10505_v16  ;;  %v7752_v54 = vld [vmem:[%s12348_s6 + $0x90] sm:$0xff]  }
 0x2ea   : > { %v5009_v52 = vadd.f32 0.11098505, %v4945_v0  ;;  %v4320_v19 = vmul.f32 %v4256_v35, %v10527_v8  ;;  %v4832_v26 = vmul.f32 %v4768_v57, %v10527_v8  ;;  %v4178_v1 = vmul.f32 %v4114_v36, %v10550_v22  ;;  %7344 = vmatpush3.bf16.msra.mxu1 %v7752_v54  ;;  %v10596_v38 = vpop.f32.mrb[17].mxu1 }
 0x2eb   : > { %v4690_v63 = vmul.f32 %v4626_v34, %v10550_v22  ;;  %v4511_v6 = vadd.f32 1.1283791, %v4447_v49  ;;  %v3801_v56 = vmul.f32 0.70710677, %v10541_v14  ;;  %v3617_v28 = vsub.s32 4, %v8239_v20  ;;  %v10589_v49 = vld [vmem:[%s12347_s5] sm:$0xff] }
 0x2ec   : > { %v5073_v16 = vmul.f32 %v5009_v52, %v10488_v25  ;;  %v7839_v58 = vpop.eup %7838  ;;  %v4433_v35 = vmul.f32 %v4369_v32, %v10488_v25  ;;  %v4896_v45 = vadd.f32 0.01407047, %v4832_v26  ;;  %v4242_v59 = vadd.f32 0.050955694, %v4178_v1 }
 0x2ed   : > { %v4754_v0 = vadd.f32 0.0010179626, %v4690_v63  ;;  %v5279_v57 = vadd.f32 1.0, %v5215_v61  ;;  %v10584_v34 = vclamps-f32 %v3801_v56, 4.0  ;;  %v10592_v52 = vrot.slane %v10589_v49, %v3617_v28 }
 0x2ee   : > { %v5137_v36 = vadd.f32 0.49746925, %v5073_v16  ;;  %v10599_v32 = vmul.f32 %v5513_v23, %v10373_v12  ;;  %v4384_v26 = vadd.f32 0.18520832, %v4320_v19  ;;  %v4960_v61 = vmul.f32 %v4896_v45, %v10527_v8 }
 0x2ef   : > { %v4306_v1 = vmul.f32 %v4242_v59, %v10550_v22  ;;  %v10604_v63 = vmul.f32 %v10444_v50, %v4511_v6  ;;  %v4818_v54 = vmul.f32 %v4754_v0, %v10550_v22  ;;  %v10609_v16 = vmul.f32 %v10584_v34, %v10584_v34 }
 0x2f0   : > { %12440 = vst [vmem:[#allocation36_spill] sm:$0xff] %v10599_v32  ;;  %v10613_v56 = vadd.f32 %v10592_v52, %v10016_v46  ;;  %v5464_v12 = vmul.f32 %v7839_v58, %v10517_v13  ;;  %v5201_v23 = vmul.f32 %v5137_v36, %v10488_v25  ;;  %v5024_v19 = vadd.f32 0.11098505, %v4960_v61 }
 0x2f1   : > { %v10618_v28 = vmul.f32 0.5, %v10541_v14  ;;  %7842 = vrcp.f32 %v5279_v57  ;;  %v4497_v50 = vadd.f32 1.1283791, %v4433_v35  ;;  %v4882_v6 = vadd.f32 0.01407047, %v4818_v54 }
 0x2f2   : > { %v4057_v45 = vmul.f32 0.00022905065, %v10609_v16  ;;  %v7841_v59 = vpop.eup %7840  ;;  %v4448_v0 = vmul.f32 %v4384_v26, %v10527_v8  ;;  %v5088_v32 = vmul.f32 %v5024_v19, %v10527_v8  ;;  %v4370_v46 = vadd.f32 0.18520832, %v4306_v1 }
 0x2f3   : > { %v4569_v43 = vmul.f32 -1.1791603e-07, %v10609_v16  ;;  %v4946_v13 = vmul.f32 %v4882_v6, %v10550_v22  ;;  %v3771_v58 = vmul.f32 0.70710677, %v10613_v56  ;;  %v10628_v14 = vadd.f32 %v10102_v10, %v10064_v9 }
 0x2f4   : > { %v4121_v25 = vadd.f32 0.003408291, %v4057_v45  ;;  %v5528_v35 = vadd.f32 1.0, %v5464_v12  ;;  %v5265_v57 = vadd.f32 1.0, %v5201_v23  ;;  %v5152_v36 = vadd.f32 0.49746925, %v5088_v32 }
 0x2f5   : > { %v4633_v61 = vadd.f32 2.3547966e-05, %v4569_v43  ;;  %v5450_v26 = vmul.f32 %v7841_v59, %v10556_v4  ;;  %v5010_v54 = vadd.f32 0.11098505, %v4946_v13  ;;  %v10632_v19 = vclamps-f32 %v3771_v58, 4.0 }
 0x2f6   : > { %v4185_v1 = vmul.f32 %v4121_v25, %v10609_v16  ;;  %v4512_v41 = vadd.f32 1.1283791, %v4448_v0  ;;  %v5216_v6 = vmul.f32 %v5152_v36, %v10527_v8  ;;  %v4434_v45 = vmul.f32 %v4370_v46, %v10550_v22  ;;  %v7753_v8 = vld [vmem:[%s12348_s6 + $0x20] sm:$0xff]  }
 0x2f7   : > { %v4697_v27 = vmul.f32 %v4633_v61, %v10609_v16  ;;  %v5074_v9 = vmul.f32 %v5010_v54, %v10550_v22  ;;  %v10640_v43 = vmul.f32 %v10632_v19, %v10632_v19  ;;  %v3802_v4 = vmul.f32 0.70710677, %v10628_v14  ;;  %7308 = vmatpush3.bf16.msra.mxu0 %v7753_v8 }
 0x2f8   : > { %v4249_v12 = vadd.f32 0.050955694, %v4185_v1  ;;  %7844 = vrcp.f32 %v5265_v57  ;;  %v5280_v32 = vadd.f32 1.0, %v5216_v6  ;;  %v3621_v59 = vsub.s32 5, %v8239_v20 }
 0x2f9   : > { %v4761_v23 = vadd.f32 0.0010179626, %v4697_v27  ;;  %v10648_v0 = vmul.f32 %v5528_v35, %v10428_v33  ;;  %v5138_v46 = vadd.f32 0.49746925, %v5074_v9  ;;  %v4027_v13 = vmul.f32 0.00022905065, %v10640_v43 }
 0x2fa   : > { %v4539_v25 = vmul.f32 -1.1791603e-07, %v10640_v43  ;;  %v5514_v58 = vadd.f32 1.0, %v5450_v26  ;;  %v5329_v36 = vmul.f32 %v10469_v62, %v4497_v50  ;;  %v10654_v27 = vclamps-f32 %v3802_v4, 4.0  ;;  %v10667_v50 = vpop.f32.mrb[26].mxu0 }
 0x2fb   : > { %12441 = vst [vmem:[#allocation37_spill] sm:$0xff] %v10648_v0  ;;  %v4825_v57 = vmul.f32 %v4761_v23, %v10609_v16  ;;  %v7843_v61 = vpop.eup %7842  ;;  %v10657_v54 = vmul.f32 %v10520_v39, %v4512_v41  ;;  %v4313_v33 = vmul.f32 %v4249_v12, %v10609_v16  ;;  %v4091_v35 = vadd.f32 0.003408291, %v4027_v13 }
 0x2fc   : > { %v4603_v1 = vadd.f32 2.3547966e-05, %v4539_v25  ;;  %v4498_v6 = vadd.f32 1.1283791, %v4434_v45  ;;  %v10662_v26 = vmul.f32 %v10654_v27, %v10654_v27  ;;  %v10665_v62 = vrot.slane %v10589_v49, %v3621_v59  ;;  %v10678_v49 = vpop.f32.mrb[18].mxu1 }
 0x2fd   : > { %v4889_v9 = vadd.f32 0.01407047, %v4825_v57  ;;  %7846 = vrcp.f32 %v5280_v32  ;;  %v5202_v4 = vmul.f32 %v5138_v46, %v10550_v22  ;;  %v4155_v41 = vmul.f32 %v4091_v35, %v10640_v43  ;;  %v12442_v35 = vld [vmem:[#allocation17_spill] sm:$0xff] }
 0x2fe   : > { %v4667_v39 = vmul.f32 %v4603_v1, %v10640_v43  ;;  %v10674_v45 = vmul.f32 0.5, %v10613_v56  ;;  %v4058_v23 = vmul.f32 0.00022905065, %v10662_v26  ;;  %v4570_v8 = vmul.f32 -1.1791603e-07, %v10662_v26 }
 0x2ff   : > { %v4953_v12 = vmul.f32 %v4889_v9, %v10609_v16  ;;  %v5471_v59 = vmul.f32 %v7843_v61, %v10604_v63  ;;  %v4377_v32 = vadd.f32 0.18520832, %v4313_v33  ;;  %v3681_v22 = vadd.f32 %v10000_v47, %v10136_v2 }
 0x300   : > { %v4731_v13 = vadd.f32 0.0010179626, %v4667_v39  ;;  %v4219_v25 = vadd.f32 0.050955694, %v4155_v41  ;;  %v4122_v57 = vadd.f32 0.003408291, %v4058_v23  ;;  %v3644_v56 = vadd.f32 %v10665_v62, %v12442_v35 }
 0x301   : > { %v5017_v46 = vadd.f32 0.11098505, %v4953_v12  ;;  %v10686_v1 = vmul.f32 %v5514_v58, %v10450_v18  ;;  %v5266_v9 = vadd.f32 1.0, %v5202_v4  ;;  %v4634_v31 = vadd.f32 2.3547966e-05, %v4570_v8 }
 0x302   : > { %v4795_v0 = vmul.f32 %v4731_v13, %v10640_v43  ;;  %v7845_v60 = vpop.eup %7844  ;;  %v10690_v63 = vmul.f32 %v10537_v42, %v4498_v6  ;;  %v10694_v2 = vmul.f32 0.5, %v10628_v14  ;;  %v4186_v33 = vmul.f32 %v4122_v57, %v10662_v26 }
 0x303   : > { %12443 = vst [vmem:[#allocation17_spill] sm:$0xff] %v10686_v1  ;;  %v5081_v61 = vmul.f32 %v5017_v46, %v10609_v16  ;;  %v5535_v41 = vadd.f32 1.0, %v5471_v59  ;;  %v4698_v18 = vmul.f32 %v4634_v31, %v10662_v26  ;;  %v3772_v58 = vmul.f32 0.70710677, %v3644_v56 }
 0x304   : > { %v4859_v39 = vadd.f32 0.01407047, %v4795_v0  ;;  %v4441_v4 = vmul.f32 %v4377_v32, %v10609_v16  ;;  %v4283_v23 = vmul.f32 %v4219_v25, %v10640_v43  ;;  %v3809_v8 = vmul.f32 0.70710677, %v3681_v22 }
 0x305   : > { %v5145_v12 = vadd.f32 0.49746925, %v5081_v61  ;;  %v5457_v42 = vmul.f32 %v7845_v60, %v5329_v36  ;;  %7848 = vrcp.f32 %v5266_v9  ;;  %v4762_v13 = vadd.f32 0.0010179626, %v4698_v18  ;;  %v10720_v61 = vpop.f32.mrb[27].mxu0 }
 0x306   : > { %v4923_v6 = vmul.f32 %v4859_v39, %v10640_v43  ;;  %v4250_v46 = vadd.f32 0.050955694, %v4186_v33  ;;  %v10702_v57 = vclamps-f32 %v3772_v58, 4.0  ;;  %v10704_v0 = vclamps-f32 %v3809_v8, 4.0 }
 0x307   : > { %v5209_v14 = vmul.f32 %v5145_v12, %v10609_v16  ;;  %v7847_v31 = vpop.eup %7846  ;;  %v10707_v59 = vmul.f32 %v5535_v41, %v10475_v44  ;;  %v4826_v25 = vmul.f32 %v4762_v13, %v10662_v26  ;;  %v10710_v35 = vmul.f32 0.5, %v3681_v22 }
 0x308   : > { %v4987_v32 = vadd.f32 0.11098505, %v4923_v6  ;;  %v4347_v36 = vadd.f32 0.18520832, %v4283_v23  ;;  %v10714_v9 = vmul.f32 %v10702_v57, %v10702_v57  ;;  %v10718_v16 = vmul.f32 %v10704_v0, %v10704_v0 }
 0x309   : > { %12444 = vst [vmem:[#allocation38_spill] sm:$0xff] %v10707_v59  ;;  %v5273_v60 = vadd.f32 1.0, %v5209_v14  ;;  %v5521_v33 = vadd.f32 1.0, %v5457_v42  ;;  %v4505_v44 = vadd.f32 1.1283791, %v4441_v4  ;;  %v5472_v22 = vmul.f32 %v7847_v31, %v10657_v54 }
 0x30a   : > { %v5051_v41 = vmul.f32 %v4987_v32, %v10640_v43  ;;  %v4890_v39 = vadd.f32 0.01407047, %v4826_v25  ;;  %v4314_v18 = vmul.f32 %v4250_v46, %v10662_v26  ;;  %v10725_v58 = vmul.f32 0.5, %v3644_v56 }
 0x30b   : > { %v4028_v12 = vmul.f32 0.00022905065, %v10714_v9  ;;  %v4540_v6 = vmul.f32 -1.1791603e-07, %v10714_v9  ;;  %v4065_v13 = vmul.f32 0.00022905065, %v10718_v16  ;;  %7850 = vrcp.f32 %v5273_v60 }
 0x30c   : > { %v5115_v23 = vadd.f32 0.49746925, %v5051_v41  ;;  %v4954_v8 = vmul.f32 %v4890_v39, %v10662_v26  ;;  %v4411_v4 = vmul.f32 %v4347_v36, %v10640_v43  ;;  %v10734_v54 = vadd.f32 %v10592_v52, %v10151_v3 }
 0x30d   : > { %v4092_v42 = vadd.f32 0.003408291, %v4028_v12  ;;  %v4604_v46 = vadd.f32 2.3547966e-05, %v4540_v6  ;;  %v4129_v31 = vadd.f32 0.003408291, %v4065_v13  ;;  %v5337_v1 = vmul.f32 %v10584_v34, %v4505_v44 }
 0x30e   : > { %v5179_v56 = vmul.f32 %v5115_v23, %v10640_v43  ;;  %v5018_v14 = vadd.f32 0.11098505, %v4954_v8  ;;  %v5536_v32 = vadd.f32 1.0, %v5472_v22  ;;  %v4378_v25 = vadd.f32 0.18520832, %v4314_v18 }
 0x30f   : > { %v4156_v41 = vmul.f32 %v4092_v42, %v10714_v9  ;;  %v4577_v39 = vmul.f32 -1.1791603e-07, %v10718_v16  ;;  %v7849_v59 = vpop.eup %7848  ;;  %v4668_v12 = vmul.f32 %v4604_v46, %v10714_v9  ;;  %v4193_v3 = vmul.f32 %v4129_v31, %v10718_v16  ;;  %v10752_v31 = vpop.f32.mrb[19].mxu1 }
 0x310   : > { %v5243_v60 = vadd.f32 1.0, %v5179_v56  ;;  %v5082_v36 = vmul.f32 %v5018_v14, %v10662_v26  ;;  %v3779_v8 = vmul.f32 0.70710677, %v10734_v54  ;;  %v10745_v22 = vmul.f32 %v5521_v33, %v10501_v29 }
 0x311   : > { %v4220_v43 = vadd.f32 0.050955694, %v4156_v41  ;;  %v4641_v23 = vadd.f32 2.3547966e-05, %v4577_v39  ;;  %v4732_v6 = vadd.f32 0.0010179626, %v4668_v12  ;;  %v3682_v46 = vadd.f32 %v10102_v10, %v10188_v48 }
 0x312   : > { %12445 = vst [vmem:[#allocation39_spill] sm:$0xff] %v10745_v22  ;;  %v5146_v18 = vadd.f32 0.49746925, %v5082_v36  ;;  %v4257_v13 = vadd.f32 0.050955694, %v4193_v3  ;;  %v10748_v14 = vclamps-f32 %v3779_v8, 4.0  ;;  %v5458_v34 = vmul.f32 %v7849_v59, %v10690_v63 }
 0x313   : > { %v4475_v42 = vadd.f32 1.1283791, %v4411_v4  ;;  %v4705_v56 = vmul.f32 %v4641_v23, %v10718_v16  ;;  %v4442_v44 = vmul.f32 %v4378_v25, %v10662_v26  ;;  %v4796_v33 = vmul.f32 %v4732_v6, %v10714_v9  ;;  %v7754_v4 = vld [vmem:[%s12348_s6 + $0xd8] sm:$0xff]   ;;  %v7755_v41 = vld [vmem:[%s12348_s6 + $0x68] sm:$0xff]  }
 0x314   : > { %v5210_v29 = vmul.f32 %v5146_v18, %v10662_v26  ;;  %v10765_v48 = vmul.f32 %v5536_v32, %v10534_v37  ;;  %v4284_v39 = vmul.f32 %v4220_v43, %v10714_v9  ;;  %v10770_v59 = vmul.f32 %v10748_v14, %v10748_v14  ;;  %v7756_v26 = vld [vmem:[%s12348_s6 + $0x98] sm:$0xff]   ;;  %v7757_v25 = vld [vmem:[%s12348_s6 + $0x28] sm:$0xff]   ;;  %7345 = vmatprep.subr.bf16.mxu1 %v7754_v4 }
 0x315   : > { %v4769_v63 = vadd.f32 0.0010179626, %v4705_v56  ;;  %7852 = vrcp.f32 %v5243_v60  ;;  %v4860_v12 = vadd.f32 0.01407047, %v4796_v33  ;;  %v4321_v37 = vmul.f32 %v4257_v13, %v10718_v16  ;;  %7309 = vmatprep.subr.bf16.mxu0 %v7755_v41  ;;  %v7851_v32 = vpop.eup %7850  ;;  %7346 = vmatpush3.bf16.msra.mxu1 %v7756_v26  ;;  %v7758_v13 = vld [vmem:[%s12348_s6 + $0xe0] sm:$0xff]  }
 0x316   : > { %12446 = vst [vmem:[#allocation40_spill] sm:$0xff] %v10765_v48  ;;  %v5274_v36 = vadd.f32 1.0, %v5210_v29  ;;  %v4035_v43 = vmul.f32 0.00022905065, %v10770_v59  ;;  %v4547_v23 = vmul.f32 -1.1791603e-07, %v10770_v59  ;;  %7310 = vmatpush3.bf16.msra.mxu0 %v7757_v25  ;;  %v5307_v6 = vmul.f32 %v10632_v19, %v4475_v42  ;;  %7347 = vmatprep.subr.bf16.mxu1 %v7758_v13 }
 0x317   : > { %v4833_v3 = vmul.f32 %v4769_v63, %v10718_v16  ;;  %v3810_v8 = vmul.f32 0.70710677, %v3682_v46  ;;  %v5522_v18 = vadd.f32 1.0, %v5458_v34  ;;  %v4506_v60 = vadd.f32 1.1283791, %v4442_v44 }
 0x318   : > { %v4924_v56 = vmul.f32 %v4860_v12, %v10714_v9  ;;  %v4348_v29 = vadd.f32 0.18520832, %v4284_v39  ;;  %v4099_v4 = vadd.f32 0.003408291, %v4035_v43  ;;  %v10789_v41 = vadd.f32 %v10665_v62, %v10215_v5  ;;  %v10795_v12 = vpop.f32.mrb[28].mxu0 }
 0x319   : > { %v4897_v33 = vadd.f32 0.01407047, %v4833_v3  ;;  %7854 = vrcp.f32 %v5274_v36  ;;  %v4385_v26 = vadd.f32 0.18520832, %v4321_v37  ;;  %v4611_v34 = vadd.f32 2.3547966e-05, %v4547_v23 }
 0x31a   : > { %v4988_v63 = vadd.f32 0.11098505, %v4924_v56  ;;  %v5465_v19 = vmul.f32 %v7851_v32, %v5337_v1  ;;  %v4163_v44 = vmul.f32 %v4099_v4, %v10770_v59  ;;  %v10793_v25 = vclamps-f32 %v3810_v8, 4.0 }
 0x31b   : > { %v4961_v42 = vmul.f32 %v4897_v33, %v10718_v16  ;;  %v10798_v39 = vmul.f32 %v5522_v18, %v10568_v24  ;;  %v10802_v36 = vmul.f32 0.5, %v10734_v54  ;;  %v4675_v37 = vmul.f32 %v4611_v34, %v10770_v59 }
 0x31c   : > { %v5052_v5 = vmul.f32 %v4988_v63, %v10714_v9  ;;  %v4412_v1 = vmul.f32 %v4348_v29, %v10714_v9  ;;  %v4227_v3 = vadd.f32 0.050955694, %v4163_v44  ;;  %v10808_v43 = vmul.f32 %v10793_v25, %v10793_v25  ;;  %v10816_v29 = vpop.f32.mrb[20].mxu1 }
 0x31d   : > { %12447 = vst [vmem:[#allocation41_spill] sm:$0xff] %v10798_v39  ;;  %v5025_v32 = vadd.f32 0.11098505, %v4961_v42  ;;  %v4449_v8 = vmul.f32 %v4385_v26, %v10718_v16  ;;  %v4739_v24 = vadd.f32 0.0010179626, %v4675_v37  ;;  %v5529_v56 = vadd.f32 1.0, %v5465_v19 }
 0x31e   : > { %v5116_v23 = vadd.f32 0.49746925, %v5052_v5  ;;  %v3780_v18 = vmul.f32 0.70710677, %v10789_v41  ;;  %v5338_v54 = vmul.f32 %v10654_v27, %v4506_v60  ;;  %v10813_v13 = vmul.f32 0.5, %v3682_v46 }
 0x31f   : > { %v4066_v33 = vmul.f32 0.00022905065, %v10808_v43  ;;  %v7853_v4 = vpop.eup %7852  ;;  %v5089_v63 = vmul.f32 %v5025_v32, %v10718_v16  ;;  %v4803_v34 = vmul.f32 %v4739_v24, %v10770_v59  ;;  %v4578_v42 = vmul.f32 -1.1791603e-07, %v10808_v43 }
 0x320   : > { %v10821_v26 = vclamps-f32 %v3780_v18, 4.0  ;;  %v4476_v44 = vadd.f32 1.1283791, %v4412_v1  ;;  %v5180_v19 = vmul.f32 %v5116_v23, %v10714_v9  ;;  %v4291_v27 = vmul.f32 %v4227_v3, %v10770_v59 }
 0x321   : > { %v4130_v46 = vadd.f32 0.003408291, %v4066_v33  ;;  %v4513_v60 = vadd.f32 1.1283791, %v4449_v8  ;;  %v4867_v5 = vadd.f32 0.01407047, %v4803_v34  ;;  %v10830_v32 = vmul.f32 %v5529_v56, %v10618_v28 }
 0x322   : > { %v4642_v37 = vadd.f32 2.3547966e-05, %v4578_v42  ;;  %v10827_v22 = vmul.f32 %v10821_v26, %v10821_v26  ;;  %v5435_v24 = vmul.f32 %v7853_v4, %v5307_v6  ;;  %v10835_v1 = vadd.f32 %v10000_v47, %v10276_v51  ;;  %v7759_v28 = vld [vmem:[%s12348_s6 + $0x70] sm:$0xff]  }
 0x323   : > { %12448 = vst [vmem:[#allocation42_spill] sm:$0xff] %v10830_v32  ;;  %v4194_v18 = vmul.f32 %v4130_v46, %v10808_v43  ;;  %v7855_v9 = vpop.eup %7854  ;;  %v5153_v3 = vadd.f32 0.49746925, %v5089_v63  ;;  %v4931_v23 = vmul.f32 %v4867_v5, %v10770_v59  ;;  %v5244_v56 = vadd.f32 1.0, %v5180_v19  ;;  %7311 = vmatprep.subr.bf16.mxu0 %v7759_v28 }
 0x324   : > { %v4706_v8 = vmul.f32 %v4642_v37, %v10808_v43  ;;  %v4036_v33 = vmul.f32 0.00022905065, %v10827_v22  ;;  %v10844_v6 = vmul.f32 %v10702_v57, %v4476_v44  ;;  %v4355_v4 = vadd.f32 0.18520832, %v4291_v27  ;;  %v7760_v57 = vld [vmem:[%s12348_s6 + $0xa0] sm:$0xff]   ;;  %v10855_v44 = vpop.f32.mrb[29].mxu0 }
 0x325   : > { %v4258_v34 = vadd.f32 0.050955694, %v4194_v18  ;;  %v10847_v51 = vmul.f32 %v10704_v0, %v4513_v60  ;;  %v4995_v63 = vadd.f32 0.11098505, %v4931_v23  ;;  %v5499_v5 = vadd.f32 1.0, %v5435_v24  ;;  %7348 = vmatpush3.bf16.msra.mxu1 %v7760_v57  ;;  %v10917_v48 = vpop.f32.mrb[30].mxu0 }
 0x326   : > { %v4770_v42 = vadd.f32 0.0010179626, %v4706_v8  ;;  %v4100_v46 = vadd.f32 0.003408291, %v4036_v33  ;;  %v5466_v37 = vmul.f32 %v7855_v9, %v5338_v54  ;;  %v3659_v39 = vadd.f32 %v10592_v52, %v10285_v21  ;;  %12452 = vst [vmem:[#allocation46_spill] sm:$0xff] %v10917_v48 }
 0x327   : > { %v4322_v32 = vmul.f32 %v4258_v34, %v10808_v43  ;;  %v5059_v0 = vmul.f32 %v4995_v63, %v10770_v59  ;;  %v4548_v60 = vmul.f32 -1.1791603e-07, %v10827_v22  ;;  %v5217_v54 = vmul.f32 %v5153_v3, %v10718_v16 }
 0x328   : > { %v4834_v19 = vmul.f32 %v4770_v42, %v10808_v43  ;;  %v4164_v27 = vmul.f32 %v4100_v46, %v10827_v22  ;;  %v4419_v24 = vmul.f32 %v4355_v4, %v10770_v59  ;;  %v10864_v21 = vmul.f32 0.5, %v10789_v41 }
 0x329   : > { %v3817_v18 = vmul.f32 0.70710677, %v10835_v1  ;;  %7856 = vrcp.f32 %v5244_v56  ;;  %v5123_v9 = vadd.f32 0.49746925, %v5059_v0  ;;  %v4386_v23 = vadd.f32 0.18520832, %v4322_v32 }
 0x32a   : > { %v4898_v8 = vadd.f32 0.01407047, %v4834_v19  ;;  %v5530_v33 = vadd.f32 1.0, %v5466_v37  ;;  %v4612_v28 = vadd.f32 2.3547966e-05, %v4548_v60  ;;  %v10870_v42 = vmul.f32 %v5499_v5, %v10674_v45  ;;  %v10888_v60 = vpop.f32.mrb[21].mxu1 }
 0x32b   : > { %v10867_v34 = vclamps-f32 %v3817_v18, 4.0  ;;  %v3787_v63 = vmul.f32 0.70710677, %v3659_v39  ;;  %v5187_v16 = vmul.f32 %v5123_v9, %v10770_v59  ;;  %v4228_v3 = vadd.f32 0.050955694, %v4164_v27  ;;  %12451 = vst [vmem:[#allocation45_spill] sm:$0xff] %v10888_v60 }
 0x32c   : > { %12449 = vst [vmem:[#allocation43_spill] sm:$0xff] %v10870_v42  ;;  %v4962_v41 = vmul.f32 %v4898_v8, %v10808_v43  ;;  %v5281_v4 = vadd.f32 1.0, %v5217_v54  ;;  %v4676_v46 = vmul.f32 %v4612_v28, %v10827_v22  ;;  %v4483_v37 = vadd.f32 1.1283791, %v4419_v24 }
 0x32d   : > { %v10877_v32 = vmul.f32 %v10867_v34, %v10867_v34  ;;  %v10879_v56 = vclamps-f32 %v3787_v63, 4.0  ;;  %v5251_v57 = vadd.f32 1.0, %v5187_v16  ;;  %v3690_v45 = vadd.f32 %v10102_v10, %v10313_v55 }
 0x32e   : > { %v5026_v0 = vadd.f32 0.11098505, %v4962_v41  ;;  %v10884_v59 = vmul.f32 %v5530_v33, %v10694_v2  ;;  %v4450_v5 = vmul.f32 %v4386_v23, %v10808_v43  ;;  %v4740_v19 = vadd.f32 0.0010179626, %v4676_v46 }
 0x32f   : > { %v4073_v27 = vmul.f32 0.00022905065, %v10877_v32  ;;  %7858 = vrcp.f32 %v5251_v57  ;;  %v4292_v24 = vmul.f32 %v4228_v3, %v10827_v22  ;;  %v4585_v18 = vmul.f32 -1.1791603e-07, %v10877_v32 }
 0x330   : > { %12450 = vst [vmem:[#allocation44_spill] sm:$0xff] %v10884_v59  ;;  %v5090_v54 = vmul.f32 %v5026_v0, %v10808_v43  ;;  %7860 = vrcp.f32 %v5281_v4  ;;  %v4804_v55 = vmul.f32 %v4740_v19, %v10827_v22  ;;  %v10896_v2 = vmul.f32 %v10879_v56, %v10879_v56  ;;  %v7761_v4 = vld [vmem:[%s12348_s6 + $0x30] sm:$0xff]  }
 0x331   : > { %v4137_v9 = vadd.f32 0.003408291, %v4073_v27  ;;  %v10899_v8 = vmul.f32 0.5, %v10835_v1  ;;  %v4649_v33 = vadd.f32 2.3547966e-05, %v4585_v18  ;;  %v10901_v28 = vmul.f32 0.5, %v3659_v39  ;;  %7312 = vmatpush3.bf16.msra.mxu0 %v7761_v4 }
 0x332   : > { %v5154_v23 = vadd.f32 0.49746925, %v5090_v54  ;;  %v4868_v63 = vadd.f32 0.01407047, %v4804_v55  ;;  %v4043_v41 = vmul.f32 0.00022905065, %v10896_v2  ;;  %v3660_v3 = vadd.f32 %v10665_v62, %v10335_v30 }
 0x333   : > { %v4201_v16 = vmul.f32 %v4137_v9, %v10877_v32  ;;  %v7857_v46 = vpop.eup %7856  ;;  %v4514_v57 = vadd.f32 1.1283791, %v4450_v5  ;;  %v4356_v0 = vadd.f32 0.18520832, %v4292_v24  ;;  %v4713_v39 = vmul.f32 %v4649_v33, %v10877_v32 }
 0x334   : > { %v5218_v1 = vmul.f32 %v5154_v23, %v10808_v43  ;;  %v4932_v19 = vmul.f32 %v4868_v63, %v10827_v22  ;;  %v4107_v54 = vadd.f32 0.003408291, %v4043_v41  ;;  %v4555_v18 = vmul.f32 -1.1791603e-07, %v10896_v2 }
 0x335   : > { %v4265_v27 = vadd.f32 0.050955694, %v4201_v16  ;;  %v5315_v30 = vmul.f32 %v10748_v14, %v4483_v37  ;;  %v4777_v55 = vadd.f32 0.0010179626, %v4713_v39  ;;  %v10915_v9 = vmul.f32 0.5, %v3690_v45 }
 0x336   : > { %v3818_v59 = vmul.f32 0.70710677, %v3690_v45  ;;  %v5282_v5 = vadd.f32 1.0, %v5218_v1  ;;  %v4996_v43 = vadd.f32 0.11098505, %v4932_v19  ;;  %v4171_v24 = vmul.f32 %v4107_v54, %v10896_v2 }
 0x337   : > { %v4619_v23 = vadd.f32 2.3547966e-05, %v4555_v18  ;;  %v5436_v33 = vmul.f32 %v7857_v46, %v10844_v6  ;;  %v4841_v63 = vmul.f32 %v4777_v55, %v10877_v32  ;;  %v10924_v41 = vmul.f32 0.5, %v3660_v3 }
 0x338   : > { %v10922_v16 = vclamps-f32 %v3818_v59, 4.0  ;;  %v10927_v14 = vmul.f32 %v10793_v25, %v4514_v57  ;;  %v5060_v37 = vmul.f32 %v4996_v43, %v10827_v22  ;;  %v3788_v4 = vmul.f32 0.70710677, %v3660_v3 }
 0x339   : > { %v4683_v45 = vmul.f32 %v4619_v23, %v10896_v2  ;;  %v7859_v1 = vpop.eup %7858  ;;  %v4420_v39 = vmul.f32 %v4356_v0, %v10827_v22  ;;  %v4329_v19 = vmul.f32 %v4265_v27, %v10877_v32  ;;  %v4905_v6 = vadd.f32 0.01407047, %v4841_v63 }
 0x33a   : > { %v10935_v59 = vmul.f32 %v10922_v16, %v10922_v16  ;;  %v7861_v46 = vpop.eup %7860  ;;  %v5443_v54 = vmul.f32 %v7859_v1, %v5315_v30  ;;  %7862 = vrcp.f32 %v5282_v5  ;;  %v5124_v25 = vadd.f32 0.49746925, %v5060_v37 }
 0x33b   : > { %v4235_v57 = vadd.f32 0.050955694, %v4171_v24  ;;  %v4969_v18 = vmul.f32 %v4905_v6, %v10877_v32  ;;  %v4747_v55 = vadd.f32 0.0010179626, %v4683_v45  ;;  %v5500_v0 = vadd.f32 1.0, %v5436_v33  ;;  %v10948_v6 = vpop.f32.mrb[22].mxu1 }
 0x33c   : > { %v4074_v3 = vmul.f32 0.00022905065, %v10935_v59  ;;  %v4586_v43 = vmul.f32 -1.1791603e-07, %v10935_v59  ;;  %v5507_v23 = vadd.f32 1.0, %v5443_v54  ;;  %v5188_v27 = vmul.f32 %v5124_v25, %v10827_v22 }
 0x33d   : > { %v10941_v63 = vclamps-f32 %v3788_v4, 4.0  ;;  %v5033_v48 = vadd.f32 0.11098505, %v4969_v18  ;;  %v4811_v60 = vmul.f32 %v4747_v55, %v10896_v2  ;;  %v4393_v45 = vadd.f32 0.18520832, %v4329_v19 }
 0x33e   : > { %v4138_v30 = vadd.f32 0.003408291, %v4074_v3  ;;  %v4650_v5 = vadd.f32 2.3547966e-05, %v4586_v43  ;;  %v10945_v24 = vmul.f32 %v5507_v23, %v10802_v36  ;;  %v5252_v37 = vadd.f32 1.0, %v5188_v27  ;;  %v12454_v23 = vld [vmem:[#allocation29_spill] sm:$0xff] }
 0x33f   : > { %v4299_v1 = vmul.f32 %v4235_v57, %v10896_v2  ;;  %v5097_v33 = vmul.f32 %v5033_v48, %v10877_v32  ;;  %v4875_v54 = vadd.f32 0.01407047, %v4811_v60  ;;  %v5473_v25 = vmul.f32 %v7861_v46, %v10847_v51 }
 0x340   : > { %12453 = vst [vmem:[#allocation47_spill] sm:$0xff] %v10945_v24  ;;  %v4202_v22 = vmul.f32 %v4138_v30, %v10935_v59  ;;  %v4714_v4 = vmul.f32 %v4650_v5, %v10935_v59  ;;  %v4484_v36 = vadd.f32 1.1283791, %v4420_v39  ;;  %v10958_v19 = vmul.f32 %v10941_v63, %v10941_v63 }
 0x341   : > { %v5161_v57 = vadd.f32 0.49746925, %v5097_v33  ;;  %v4939_v55 = vmul.f32 %v4875_v54, %v10896_v2  ;;  %7864 = vrcp.f32 %v5252_v37  ;;  %v3697_v51 = vadd.f32 %v10000_v47, %v12454_v23  ;;  %v10973_v23 = vpop.f32.mrb[31].mxu0 }
 0x342   : > { %v4266_v3 = vadd.f32 0.050955694, %v4202_v22  ;;  %v4778_v48 = vadd.f32 0.0010179626, %v4714_v4  ;;  %v4044_v60 = vmul.f32 0.00022905065, %v10958_v19  ;;  %v4457_v46 = vmul.f32 %v4393_v45, %v10877_v32 }
 0x343   : > { %v4556_v43 = vmul.f32 -1.1791603e-07, %v10958_v19  ;;  %v4363_v39 = vadd.f32 0.18520832, %v4299_v1  ;;  %v5003_v27 = vadd.f32 0.11098505, %v4939_v55  ;;  %v10968_v33 = vmul.f32 %v5500_v0, %v10725_v58 }
 0x344   : > { %v4842_v30 = vmul.f32 %v4778_v48, %v10935_v59  ;;  %v7863_v5 = vpop.eup %7862  ;;  %v5225_v54 = vmul.f32 %v5161_v57, %v10877_v32  ;;  %v4108_v37 = vadd.f32 0.003408291, %v4044_v60  ;;  %v5537_v4 = vadd.f32 1.0, %v5473_v25 }
 0x345   : > { %12455 = vst [vmem:[#allocation29_spill] sm:$0xff] %v10968_v33  ;;  %v4620_v22 = vadd.f32 2.3547966e-05, %v4556_v43  ;;  %v5067_v18 = vmul.f32 %v5003_v27, %v10896_v2  ;;  %v4330_v42 = vmul.f32 %v4266_v3, %v10935_v59  ;;  %v5316_v45 = vmul.f32 %v10821_v26, %v4484_v36 }
 0x346   : > { %v4906_v47 = vadd.f32 0.01407047, %v4842_v30  ;;  %v4172_v1 = vmul.f32 %v4108_v37, %v10958_v19  ;;  %v3825_v58 = vmul.f32 0.70710677, %v3697_v51  ;;  %v4521_v0 = vadd.f32 1.1283791, %v4457_v46 }
 0x347   : > { %v4684_v55 = vmul.f32 %v4620_v22, %v10958_v19  ;;  %v4427_v32 = vmul.f32 %v4363_v39, %v10896_v2  ;;  %v5131_v57 = vadd.f32 0.49746925, %v5067_v18  ;;  %v5474_v48 = vmul.f32 %v7863_v5, %v10927_v14  ;;  %v10987_v37 = vpop.f32.mrb[23].mxu1 }
 0x348   : > { %v4970_v25 = vmul.f32 %v4906_v47, %v10935_v59  ;;  %v5289_v60 = vadd.f32 1.0, %v5225_v54  ;;  %v10981_v43 = vclamps-f32 %v3825_v58, 4.0  ;;  %v10984_v27 = vmul.f32 %v5537_v4, %v10710_v35 }
 0x349   : > { %v4748_v3 = vadd.f32 0.0010179626, %v4684_v55  ;;  %v5195_v26 = vmul.f32 %v5131_v57, %v10896_v2  ;;  %v4394_v36 = vadd.f32 0.18520832, %v4330_v42  ;;  %v4236_v46 = vadd.f32 0.050955694, %v4172_v1 }
 0x34a   : > { %v5034_v30 = vadd.f32 0.11098505, %v4970_v25  ;;  %v10992_v39 = vmul.f32 %v10981_v43, %v10981_v43  ;;  %v3667_v14 = vadd.f32 %v10592_v52, %v10410_v53  ;;  %v10997_v5 = vmul.f32 %v10867_v34, %v4521_v0 }
 0x34b   : > { %v4812_v18 = vmul.f32 %v4748_v3, %v10958_v19  ;;  %v4491_v35 = vadd.f32 1.1283791, %v4427_v32  ;;  %v5259_v54 = vadd.f32 1.0, %v5195_v26  ;;  %v7865_v2 = vpop.eup %7864  ;;  %v5538_v22 = vadd.f32 1.0, %v5474_v48 }
 0x34c   : > { %v5098_v42 = vmul.f32 %v5034_v30, %v10935_v59  ;;  %7866 = vrcp.f32 %v5289_v60  ;;  %v4081_v47 = vmul.f32 0.00022905065, %v10992_v39  ;;  %v4458_v1 = vmul.f32 %v4394_v36, %v10935_v59 }
 0x34d   : > { %v4876_v4 = vadd.f32 0.01407047, %v4812_v18  ;;  %v4593_v58 = vmul.f32 -1.1791603e-07, %v10992_v39  ;;  %v11005_v53 = vadd.f32 %v10102_v10, %v10439_v40  ;;  %v4300_v34 = vmul.f32 %v4236_v46, %v10958_v19 }
 0x34e   : > { %v5162_v55 = vadd.f32 0.49746925, %v5098_v42  ;;  %v4145_v32 = vadd.f32 0.003408291, %v4081_v47  ;;  %v3795_v57 = vmul.f32 0.70710677, %v3667_v14  ;;  %v5444_v25 = vmul.f32 %v7865_v2, %v5316_v45 }
 0x34f   : > { %v4940_v0 = vmul.f32 %v4876_v4, %v10958_v19  ;;  %7868 = vrcp.f32 %v5259_v54  ;;  %v4657_v48 = vadd.f32 2.3547966e-05, %v4593_v58  ;;  %v11011_v60 = vadd.f32 %v10665_v62, %v10461_v11 }
 0x350   : > { %v5226_v3 = vmul.f32 %v5162_v55, %v10935_v59  ;;  %v4209_v36 = vmul.f32 %v4145_v32, %v10992_v39  ;;  %v11015_v10 = vclamps-f32 %v3795_v57, 4.0  ;;  %v5323_v40 = vmul.f32 %v10879_v56, %v4491_v35 }
 0x351   : > { %v5004_v26 = vadd.f32 0.11098505, %v4940_v0  ;;  %v11018_v30 = vmul.f32 0.5, %v3697_v51  ;;  %v4721_v46 = vmul.f32 %v4657_v48, %v10992_v39  ;;  %v3826_v45 = vmul.f32 0.70710677, %v11005_v53 }
 0x352   : > { %v4522_v18 = vadd.f32 1.1283791, %v4458_v1  ;;  %v4364_v54 = vadd.f32 0.18520832, %v4300_v34  ;;  %v4273_v42 = vadd.f32 0.050955694, %v4209_v36  ;;  %v11025_v4 = vmul.f32 %v11015_v10, %v11015_v10 }
 0x353   : > { %v5068_v11 = vmul.f32 %v5004_v26, %v10958_v19  ;;  %v5508_v2 = vadd.f32 1.0, %v5444_v25  ;;  %v4785_v59 = vadd.f32 0.0010179626, %v4721_v46  ;;  %v11027_v47 = vclamps-f32 %v3826_v45, 4.0  ;;  %v7762_v1 = vld [vmem:[%s12348_s6 + $0xe8] sm:$0xff]   ;;  %v7765_v36 = vld [vmem:[%s12348_s6 + $0x38] sm:$0xff]  }
 0x354   : > { %v11030_v56 = vmul.f32 %v5538_v22, %v10813_v13  ;;  %v5290_v51 = vadd.f32 1.0, %v5226_v3  ;;  %v3796_v55 = vmul.f32 0.70710677, %v11011_v60  ;;  %v4051_v34 = vmul.f32 0.00022905065, %v11025_v4  ;;  %v7763_v13 = vld [vmem:[%s12348_s6 + $0x78] sm:$0xff]   ;;  %7349 = vmatprep.subr.bf16.mxu1 %v7762_v1 }
 0x355   : > { %v5132_v35 = vadd.f32 0.49746925, %v5068_v11  ;;  %v4849_v58 = vmul.f32 %v4785_v59, %v10992_v39  ;;  %v4563_v0 = vmul.f32 -1.1791603e-07, %v11025_v4  ;;  %v11041_v32 = vmul.f32 %v11027_v47, %v11027_v47  ;;  %v7764_v22 = vld [vmem:[%s12348_s6 + $0xa8] sm:$0xff]   ;;  %7313 = vmatprep.subr.bf16.mxu0 %v7763_v13  ;;  %v11083_v13 = vpop.f32.mrb[24].mxu1 }
 0x356   : > { %v7867_v57 = vpop.eup %7866  ;;  %v11050_v25 = vmul.f32 %v10922_v16, %v4522_v18  ;;  %v4337_v48 = vmul.f32 %v4273_v42, %v10992_v39  ;;  %v11053_v3 = vmul.f32 0.5, %v3667_v14  ;;  %v11055_v26 = vclamps-f32 %v3796_v55, 4.0  ;;  %7350 = vmatpush3.bf16.msra.mxu1 %v7764_v22  ;;  %7314 = vmatpush3.bf16.msra.mxu0 %v7765_v36  ;;  %v7766_v42 = vld [vmem:[%s12348_s6 + $0xf0] sm:$0xff]  }
 0x357   : > { %v4428_v46 = vmul.f32 %v4364_v54, %v10958_v19  ;;  %v4913_v45 = vadd.f32 0.01407047, %v4849_v58  ;;  %v4115_v11 = vadd.f32 0.003408291, %v4051_v34  ;;  %v4627_v59 = vadd.f32 2.3547966e-05, %v4563_v0  ;;  %7351 = vmatprep.subr.bf16.mxu1 %v7766_v42 }
 0x358   : > { %v11062_v16 = vmul.f32 %v5508_v2, %v10864_v21  ;;  %7870 = vrcp.f32 %v5290_v51  ;;  %v5196_v14 = vmul.f32 %v5132_v35, %v10958_v19  ;;  %v4082_v18 = vmul.f32 0.00022905065, %v11041_v32  ;;  %v7768_v54 = vld [vmem:[%s12348_s6 + $0x140] sm:$0xff]   ;;  %v7767_v51 = vld [vmem:[%s12348_s6 + $0xb0] sm:$0xff]  }
 0x359   : > { %v7869_v55 = vpop.eup %7868  ;;  %v4977_v1 = vmul.f32 %v4913_v45, %v10992_v39  ;;  %v4179_v21 = vmul.f32 %v4115_v11, %v11025_v4  ;;  %v4691_v2 = vmul.f32 %v4627_v59, %v11025_v4  ;;  %v4594_v19 = vmul.f32 -1.1791603e-07, %v11041_v32  ;;  %7379 = vmatprep.subr.bf16.mxu0 %v7768_v54 }
 0x35a   : > { %12456 = vst [vmem:[#allocation48_spill] sm:$0xff] %v11062_v16  ;;  %v5481_v35 = vmul.f32 %v7867_v57, %v10997_v5  ;;  %v4401_v58 = vadd.f32 0.18520832, %v4337_v48  ;;  %v11081_v34 = vmul.f32 0.5, %v11005_v53  ;;  %v4146_v0 = vadd.f32 0.003408291, %v4082_v18  ;;  %7352 = vmatpush3.bf16.msra.mxu1 %v7767_v51 }
 0x35b   : > { %v5041_v22 = vadd.f32 0.11098505, %v4977_v1  ;;  %v4243_v36 = vadd.f32 0.050955694, %v4179_v21  ;;  %v4755_v45 = vadd.f32 0.0010179626, %v4691_v2  ;;  %v11087_v11 = vmul.f32 %v11055_v26, %v11055_v26 }
 0x35c   : > { %v5451_v59 = vmul.f32 %v7869_v55, %v5323_v40  ;;  %v5260_v24 = vadd.f32 1.0, %v5196_v14  ;;  %v4210_v5 = vmul.f32 %v4146_v0, %v11041_v32  ;;  %v4658_v57 = vadd.f32 2.3547966e-05, %v4594_v19  ;;  %v11090_v53 = vpop.f32.mrb[25].mxu1 }
 0x35d   : > { %v4492_v48 = vadd.f32 1.1283791, %v4428_v46  ;;  %v5105_v18 = vmul.f32 %v5041_v22, %v10992_v39  ;;  %v4819_v42 = vmul.f32 %v4755_v45, %v11025_v4  ;;  %v4052_v54 = vmul.f32 0.00022905065, %v11087_v11  ;;  %v11099_v16 = vpop.f32.mrb[26].mxu1 }
 0x35e   : > { %v5545_v1 = vadd.f32 1.0, %v5481_v35  ;;  %v4274_v21 = vadd.f32 0.050955694, %v4210_v5  ;;  %v4722_v2 = vmul.f32 %v4658_v57, %v11041_v32  ;;  %v4564_v51 = vmul.f32 -1.1791603e-07, %v11087_v11 }
 0x35f   : > { %v4465_v40 = vmul.f32 %v4401_v58, %v10992_v39  ;;  %v5169_v14 = vadd.f32 0.49746925, %v5105_v18  ;;  %v4307_v55 = vmul.f32 %v4243_v36, %v11025_v4  ;;  %v4883_v19 = vadd.f32 0.01407047, %v4819_v42 }
 0x360   : > { %v5515_v0 = vadd.f32 1.0, %v5451_v59  ;;  %7872 = vrcp.f32 %v5260_v24  ;;  %v4786_v46 = vadd.f32 0.0010179626, %v4722_v2  ;;  %v4116_v22 = vadd.f32 0.003408291, %v4052_v54 }
 0x361   : > { %v5233_v45 = vmul.f32 %v5169_v14, %v10992_v39  ;;  %v4947_v35 = vmul.f32 %v4883_v19, %v11025_v4  ;;  %v4338_v5 = vmul.f32 %v4274_v21, %v11041_v32  ;;  %v4628_v57 = vadd.f32 2.3547966e-05, %v4564_v51 }
 0x362   : > { %v7871_v33 = vpop.eup %7870  ;;  %v5324_v58 = vmul.f32 %v10941_v63, %v4492_v48  ;;  %v4850_v18 = vmul.f32 %v4786_v46, %v11041_v32  ;;  %v11107_v36 = vmul.f32 0.5, %v11011_v60  ;;  %v4180_v24 = vmul.f32 %v4116_v22, %v11087_v11 }
 0x363   : > { %v4371_v59 = vadd.f32 0.18520832, %v4307_v55  ;;  %v5011_v42 = vadd.f32 0.11098505, %v4947_v35  ;;  %v4692_v54 = vmul.f32 %v4628_v57, %v11087_v11  ;;  %v3675_v39 = vadd.f32 %v10592_v52, %v10522_v17 }
 0x364   : > { %v11114_v21 = vmul.f32 %v5545_v1, %v10899_v8  ;;  %v4529_v2 = vadd.f32 1.1283791, %v4465_v40  ;;  %v5297_v51 = vadd.f32 1.0, %v5233_v45  ;;  %v4914_v63 = vadd.f32 0.01407047, %v4850_v18 }
 0x365   : > { %v11117_v48 = vmul.f32 %v5515_v0, %v10901_v28  ;;  %v5482_v60 = vmul.f32 %v7871_v33, %v11050_v25  ;;  %v5075_v14 = vmul.f32 %v5011_v42, %v11025_v4  ;;  %v4402_v55 = vadd.f32 0.18520832, %v4338_v5 }
 0x366   : > { %12457 = vst [vmem:[#allocation49_spill] sm:$0xff] %v11114_v21  ;;  %v4978_v19 = vmul.f32 %v4914_v63, %v11041_v32  ;;  %v4244_v46 = vadd.f32 0.050955694, %v4180_v24  ;;  %v4756_v22 = vadd.f32 0.0010179626, %v4692_v54  ;;  %v11124_v17 = vadd.f32 %v10665_v62, %v10594_v15  ;;  %v8019_v15 = vld [vmem:[%s12347_s5] sm:$0xff] }
 0x367   : > { %12458 = vst [vmem:[#allocation50_spill] sm:$0xff] %v11117_v48  ;;  %v4435_v8 = vmul.f32 %v4371_v59, %v11025_v4  ;;  %v5139_v1 = vadd.f32 0.49746925, %v5075_v14  ;;  %v3803_v40 = vmul.f32 0.70710677, %v3675_v39  ;;  %v3625_v28 = vsub.s32 6, %v8239_v20 }
 0x368   : > { %v5361_v0 = vmul.f32 %v10981_v43, %v4529_v2  ;;  %7874 = vrcp.f32 %v5297_v51  ;;  %v5042_v33 = vadd.f32 0.11098505, %v4978_v19  ;;  %v4820_v25 = vmul.f32 %v4756_v22, %v11087_v11  ;;  %v11153_v19 = vpop.f32.mrb[27].mxu1 }
 0x369   : > { %v5203_v45 = vmul.f32 %v5139_v1, %v11025_v4  ;;  %v4466_v35 = vmul.f32 %v4402_v55, %v11041_v32  ;;  %v11132_v5 = vclamps-f32 %v3803_v40, 4.0  ;;  %v11137_v57 = vrot.slane %v8019_v15, %v3625_v28 }
 0x36a   : > { %v7873_v18 = vpop.eup %7872  ;;  %v5546_v24 = vadd.f32 1.0, %v5482_v60  ;;  %v5106_v43 = vmul.f32 %v5042_v33, %v11041_v32  ;;  %v4308_v59 = vmul.f32 %v4244_v46, %v11087_v11  ;;  %v4884_v42 = vadd.f32 0.01407047, %v4820_v25 }
 0x36b   : > { %v4499_v54 = vadd.f32 1.1283791, %v4435_v8  ;;  %v11143_v4 = vmul.f32 %v11132_v5, %v11132_v5  ;;  %v11147_v2 = vadd.f32 %v11137_v57, %v10552_v7  ;;  %v3804_v51 = vmul.f32 0.70710677, %v11124_v17 }
 0x36c   : > { %v5267_v63 = vadd.f32 1.0, %v5203_v45  ;;  %v5170_v14 = vadd.f32 0.49746925, %v5106_v43  ;;  %v4948_v60 = vmul.f32 %v4884_v42, %v11087_v11  ;;  %v11151_v55 = vmul.f32 0.5, %v3675_v39 }
 0x36d   : > { %v5452_v46 = vmul.f32 %v7873_v18, %v5324_v58  ;;  %v4530_v22 = vadd.f32 1.1283791, %v4466_v35  ;;  %v4059_v8 = vmul.f32 0.00022905065, %v11143_v4  ;;  %v4571_v1 = vmul.f32 -1.1791603e-07, %v11143_v4 }
 0x36e   : > { %v5234_v40 = vmul.f32 %v5170_v14, %v11041_v32  ;;  %v4372_v7 = vadd.f32 0.18520832, %v4308_v59  ;;  %v5012_v28 = vadd.f32 0.11098505, %v4948_v60  ;;  %v3773_v33 = vmul.f32 0.70710677, %v11147_v2 }
 0x36f   : > { %v11160_v25 = vmul.f32 %v5546_v24, %v10915_v9  ;;  %v4123_v45 = vadd.f32 0.003408291, %v4059_v8  ;;  %v4635_v39 = vadd.f32 2.3547966e-05, %v4571_v1  ;;  %v11162_v43 = vclamps-f32 %v3804_v51, 4.0  ;;  %v7770_v58 = vld [vmem:[%s12348_s6 + $0xf8] sm:$0xff]  }
 0x370   : > { %7876 = vrcp.f32 %v5267_v63  ;;  %v5076_v35 = vmul.f32 %v5012_v28, %v11087_v11  ;;  %v11168_v18 = vclamps-f32 %v3773_v33, 4.0  ;;  %v3629_v32 = vsub.s32 7, %v8239_v20  ;;  %v7771_v9 = vld [vmem:[%s12348_s6 + $0xb8] sm:$0xff]   ;;  %7353 = vmatprep.subr.bf16.mxu1 %v7770_v58 }
 0x371   : > { %12459 = vst [vmem:[#allocation51_spill] sm:$0xff] %v11160_v25  ;;  %v5331_v24 = vmul.f32 %v11015_v10, %v4499_v54  ;;  %v4187_v59 = vmul.f32 %v4123_v45, %v11143_v4  ;;  %v4699_v42 = vmul.f32 %v4635_v39, %v11143_v4  ;;  %v11179_v51 = vmul.f32 %v11162_v43, %v11162_v43  ;;  %v7774_v39 = vld [vmem:[%s12348_s6 + $0x1c0] sm:$0xff]  }
 0x372   : > { %v7875_v63 = vpop.eup %7874  ;;  %v5516_v14 = vadd.f32 1.0, %v5452_v46  ;;  %v5298_v60 = vadd.f32 1.0, %v5234_v40  ;;  %v5140_v8 = vadd.f32 0.49746925, %v5076_v35  ;;  %v11183_v20 = vmul.f32 %v11168_v18, %v11168_v18  ;;  %7354 = vmatpush3.bf16.msra.mxu1 %v7771_v9  ;;  %v11199_v9 = vpop.f32.mrb[28].mxu1 }
 0x373   : > { %v11186_v10 = vmul.f32 %v11027_v47, %v4530_v22  ;;  %v4251_v54 = vadd.f32 0.050955694, %v4187_v59  ;;  %v4763_v1 = vadd.f32 0.0010179626, %v4699_v42  ;;  %v4060_v28 = vmul.f32 0.00022905065, %v11179_v51  ;;  %7419 = vmatprep.subr.bf16.mxu1 %v7774_v39 }
 0x374   : > { %v4436_v33 = vmul.f32 %v4372_v7, %v11087_v11  ;;  %v4029_v45 = vmul.f32 0.00022905065, %v11183_v20  ;;  %v4541_v46 = vmul.f32 -1.1791603e-07, %v11183_v20  ;;  %v11192_v40 = vrot.slane %v8019_v15, %v3629_v32 }
 0x375   : > { %v5489_v58 = vmul.f32 %v7875_v63, %v5361_v0  ;;  %v4827_v47 = vmul.f32 %v4763_v1, %v11143_v4  ;;  %v4124_v22 = vadd.f32 0.003408291, %v4060_v28  ;;  %v4572_v35 = vmul.f32 -1.1791603e-07, %v11179_v51 }
 0x376   : > { %7878 = vrcp.f32 %v5298_v60  ;;  %v5204_v7 = vmul.f32 %v5140_v8, %v11087_v11  ;;  %v4093_v59 = vadd.f32 0.003408291, %v4029_v45  ;;  %v4605_v42 = vadd.f32 2.3547966e-05, %v4541_v46 }
 0x377   : > { %v11203_v15 = vmul.f32 %v5516_v14, %v10924_v41  ;;  %v4315_v32 = vmul.f32 %v4251_v54, %v11143_v4  ;;  %v4891_v48 = vadd.f32 0.01407047, %v4827_v47  ;;  %v4636_v0 = vadd.f32 2.3547966e-05, %v4572_v35 }
 0x378   : > { %v4500_v63 = vadd.f32 1.1283791, %v4436_v33  ;;  %v4669_v1 = vmul.f32 %v4605_v42, %v11183_v20  ;;  %v4188_v28 = vmul.f32 %v4124_v22, %v11179_v51  ;;  %v3646_v60 = vadd.f32 %v11192_v40, %v10596_v38 }
 0x379   : > { %12460 = vst [vmem:[#allocation52_spill] sm:$0xff] %v11203_v15  ;;  %v5553_v21 = vadd.f32 1.0, %v5489_v58  ;;  %v4955_v11 = vmul.f32 %v4891_v48, %v11143_v4  ;;  %v4157_v8 = vmul.f32 %v4093_v59, %v11183_v20  ;;  %v4700_v41 = vmul.f32 %v4636_v0, %v11179_v51 }
 0x37a   : > { %v7877_v14 = vpop.eup %7876  ;;  %v5268_v45 = vadd.f32 1.0, %v5204_v7  ;;  %v11214_v54 = vmul.f32 0.5, %v11147_v2  ;;  %v4733_v33 = vadd.f32 0.0010179626, %v4669_v1  ;;  %v11217_v46 = vmul.f32 0.5, %v11124_v17 }
 0x37b   : > { %v4379_v39 = vadd.f32 0.18520832, %v4315_v32  ;;  %v5019_v47 = vadd.f32 0.11098505, %v4955_v11  ;;  %v4764_v22 = vadd.f32 0.0010179626, %v4700_v41  ;;  %v3683_v38 = vadd.f32 %v10592_v52, %v10667_v50 }
 0x37c   : > { %v11222_v48 = vmul.f32 %v11055_v26, %v4500_v63  ;;  %v4797_v58 = vmul.f32 %v4733_v33, %v11183_v20  ;;  %v4252_v35 = vadd.f32 0.050955694, %v4188_v28  ;;  %v3774_v7 = vmul.f32 0.70710677, %v3646_v60  ;;  %v11235_v11 = vpop.f32.mrb[29].mxu1 }
 0x37d   : > { %v11226_v2 = vmul.f32 %v5553_v21, %v11018_v30  ;;  %v5459_v59 = vmul.f32 %v7877_v14, %v5331_v24  ;;  %v5083_v17 = vmul.f32 %v5019_v47, %v11143_v4  ;;  %v4221_v42 = vadd.f32 0.050955694, %v4157_v8 }
 0x37e   : > { %v4861_v32 = vadd.f32 0.01407047, %v4797_v58  ;;  %v4828_v0 = vmul.f32 %v4764_v22, %v11179_v51  ;;  %v11230_v1 = vmul.f32 0.5, %v3646_v60  ;;  %v11232_v50 = vclamps-f32 %v3774_v7, 4.0 }
 0x37f   : > { %12461 = vst [vmem:[#allocation53_spill] sm:$0xff] %v11226_v2  ;;  %7880 = vrcp.f32 %v5268_v45  ;;  %v4443_v26 = vmul.f32 %v4379_v39, %v11143_v4  ;;  %v5147_v63 = vadd.f32 0.49746925, %v5083_v17  ;;  %v3811_v28 = vmul.f32 0.70710677, %v3683_v38  ;;  %v11247_v39 = vpop.f32.mrb[30].mxu1 }
 0x380   : > { %v7879_v30 = vpop.eup %7878  ;;  %v4925_v21 = vmul.f32 %v4861_v32, %v11183_v20  ;;  %v4316_v24 = vmul.f32 %v4252_v35, %v11179_v51  ;;  %v4892_v8 = vadd.f32 0.01407047, %v4828_v0  ;;  %v11241_v41 = vmul.f32 %v11232_v50, %v11232_v50  ;;  %v11279_v25 = vpop.f32.mrb[31].mxu1 }
 0x381   : > { %v5523_v60 = vadd.f32 1.0, %v5459_v59  ;;  %v5211_v14 = vmul.f32 %v5147_v63, %v11143_v4  ;;  %v4285_v45 = vmul.f32 %v4221_v42, %v11183_v20  ;;  %v11245_v33 = vclamps-f32 %v3811_v28, 4.0 }
 0x382   : > { %v4989_v47 = vadd.f32 0.11098505, %v4925_v21  ;;  %v4956_v22 = vmul.f32 %v4892_v8, %v11179_v51  ;;  %v4030_v58 = vmul.f32 0.00022905065, %v11241_v41  ;;  %v11251_v35 = vmul.f32 0.5, %v3683_v38 }
 0x383   : > { %v5490_v7 = vmul.f32 %v7879_v30, %v11186_v10  ;;  %v4507_v17 = vadd.f32 1.1283791, %v4443_v26  ;;  %v5275_v32 = vadd.f32 1.0, %v5211_v14  ;;  %v4542_v59 = vmul.f32 -1.1791603e-07, %v11241_v41 }
 0x384   : > { %v5053_v4 = vmul.f32 %v4989_v47, %v11183_v20  ;;  %v4380_v42 = vadd.f32 0.18520832, %v4316_v24  ;;  %v5020_v0 = vadd.f32 0.11098505, %v4956_v22  ;;  %v4094_v63 = vadd.f32 0.003408291, %v4030_v58 }
 0x385   : > { %7882 = vrcp.f32 %v5275_v32  ;;  %v4349_v28 = vadd.f32 0.18520832, %v4285_v45  ;;  %v4606_v21 = vadd.f32 2.3547966e-05, %v4542_v59  ;;  %v11258_v8 = vmul.f32 %v11245_v33, %v11245_v33 }
 0x386   : > { %v5117_v38 = vadd.f32 0.49746925, %v5053_v4  ;;  %v5084_v15 = vmul.f32 %v5020_v0, %v11179_v51  ;;  %v4158_v10 = vmul.f32 %v4094_v63, %v11241_v41  ;;  %v11264_v26 = vadd.f32 %v11137_v57, %v10678_v49 }
 0x387   : > { %v5554_v30 = vadd.f32 1.0, %v5490_v7  ;;  %v4670_v24 = vmul.f32 %v4606_v21, %v11241_v41  ;;  %v4067_v14 = vmul.f32 0.00022905065, %v11258_v8  ;;  %v4579_v45 = vmul.f32 -1.1791603e-07, %v11258_v8 }
 0x388   : > { %v5181_v47 = vmul.f32 %v5117_v38, %v11183_v20  ;;  %v4444_v22 = vmul.f32 %v4380_v42, %v11179_v51  ;;  %v5148_v58 = vadd.f32 0.49746925, %v5084_v15  ;;  %v4222_v32 = vadd.f32 0.050955694, %v4158_v10 }
 0x389   : > { %v7881_v59 = vpop.eup %7880  ;;  %v11272_v4 = vmul.f32 %v5523_v60, %v11053_v3  ;;  %v4734_v0 = vadd.f32 0.0010179626, %v4670_v24  ;;  %v4131_v49 = vadd.f32 0.003408291, %v4067_v14  ;;  %v4643_v63 = vadd.f32 2.3547966e-05, %v4579_v45 }
 0x38a   : > { %v4413_v7 = vmul.f32 %v4349_v28, %v11183_v20  ;;  %v4286_v21 = vmul.f32 %v4222_v32, %v11241_v41  ;;  %v3781_v2 = vmul.f32 0.70710677, %v11264_v26  ;;  %v3684_v38 = vadd.f32 %v10665_v62, %v10720_v61 }
 0x38b   : > { %12462 = vst [vmem:[#allocation54_spill] sm:$0xff] %v11272_v4  ;;  %v5245_v15 = vadd.f32 1.0, %v5181_v47  ;;  %v4798_v42 = vmul.f32 %v4734_v0, %v11241_v41  ;;  %v4195_v3 = vmul.f32 %v4131_v49, %v11258_v8  ;;  %v4707_v60 = vmul.f32 %v4643_v63, %v11258_v8 }
 0x38c   : > { %v5339_v10 = vmul.f32 %v11132_v5, %v4507_v17  ;;  %v4508_v24 = vadd.f32 1.1283791, %v4444_v22  ;;  %v5212_v20 = vmul.f32 %v5148_v58, %v11179_v51  ;;  %v11286_v28 = vclamps-f32 %v3781_v2, 4.0 }
 0x38d   : > { %v11289_v14 = vmul.f32 %v5554_v30, %v11081_v34  ;;  %v4862_v61 = vadd.f32 0.01407047, %v4798_v42  ;;  %v4259_v45 = vadd.f32 0.050955694, %v4195_v3  ;;  %v4771_v32 = vadd.f32 0.0010179626, %v4707_v60 }
 0x38e   : > { %v5460_v47 = vmul.f32 %v7881_v59, %v11222_v48  ;;  %v4477_v0 = vadd.f32 1.1283791, %v4413_v7  ;;  %v4350_v4 = vadd.f32 0.18520832, %v4286_v21  ;;  %v11294_v49 = vmul.f32 %v11286_v28, %v11286_v28 }
 0x38f   : > { %v7883_v5 = vpop.eup %7882  ;;  %7884 = vrcp.f32 %v5245_v15  ;;  %v4926_v51 = vmul.f32 %v4862_v61, %v11241_v41  ;;  %v4835_v2 = vmul.f32 %v4771_v32, %v11258_v8  ;;  %v3812_v17 = vmul.f32 0.70710677, %v3684_v38 }
 0x390   : > { %v5276_v34 = vadd.f32 1.0, %v5212_v20  ;;  %v4037_v30 = vmul.f32 0.00022905065, %v11294_v49  ;;  %v4549_v22 = vmul.f32 -1.1791603e-07, %v11294_v49  ;;  %v3654_v48 = vadd.f32 %v11192_v40, %v10752_v31 }
 0x391   : > { %v11303_v58 = vmul.f32 %v11162_v43, %v4508_v24  ;;  %v4990_v59 = vadd.f32 0.11098505, %v4926_v51  ;;  %v4323_v63 = vmul.f32 %v4259_v45, %v11258_v8  ;;  %v4899_v7 = vadd.f32 0.01407047, %v4835_v2 }
 0x392   : > { %v5524_v21 = vadd.f32 1.0, %v5460_v47  ;;  %v4414_v15 = vmul.f32 %v4350_v4, %v11241_v41  ;;  %v4101_v42 = vadd.f32 0.003408291, %v4037_v30  ;;  %v4613_v3 = vadd.f32 2.3547966e-05, %v4549_v22 }
 0x393   : > { %v5467_v60 = vmul.f32 %v7883_v5, %v5339_v10  ;;  %v5054_v20 = vmul.f32 %v4990_v59, %v11241_v41  ;;  %v4963_v61 = vmul.f32 %v4899_v7, %v11258_v8  ;;  %v11309_v32 = vclamps-f32 %v3812_v17, 4.0 }
 0x394   : > { %7886 = vrcp.f32 %v5276_v34  ;;  %v4165_v31 = vmul.f32 %v4101_v42, %v11294_v49  ;;  %v4677_v43 = vmul.f32 %v4613_v3, %v11294_v49  ;;  %v3782_v24 = vmul.f32 0.70710677, %v3654_v48 }
 0x395   : > { %v5118_v45 = vadd.f32 0.49746925, %v5054_v20  ;;  %v4387_v51 = vadd.f32 0.18520832, %v4323_v63  ;;  %v5027_v47 = vadd.f32 0.11098505, %v4963_v61  ;;  %v11315_v4 = vmul.f32 %v11309_v32, %v11309_v32 }
 0x396   : > { %v11318_v10 = vmul.f32 %v5524_v21, %v11107_v36  ;;  %v5309_v5 = vmul.f32 %v11168_v18, %v4477_v0  ;;  %v4741_v2 = vadd.f32 0.0010179626, %v4677_v43  ;;  %v11321_v17 = vclamps-f32 %v3782_v24, 4.0 }
 0x397   : > { %v5531_v34 = vadd.f32 1.0, %v5467_v60  ;;  %v4478_v30 = vadd.f32 1.1283791, %v4414_v15  ;;  %v5182_v22 = vmul.f32 %v5118_v45, %v11241_v41  ;;  %v5091_v59 = vmul.f32 %v5027_v47, %v11258_v8 }
 0x398   : > { %v4229_v63 = vadd.f32 0.050955694, %v4165_v31  ;;  %v4805_v7 = vmul.f32 %v4741_v2, %v11294_v49  ;;  %v4068_v42 = vmul.f32 0.00022905065, %v11315_v4  ;;  %v4580_v3 = vmul.f32 -1.1791603e-07, %v11315_v4 }
 0x399   : > { %v7885_v36 = vpop.eup %7884  ;;  %v4451_v21 = vmul.f32 %v4387_v51, %v11258_v8  ;;  %v11330_v18 = vmul.f32 0.5, %v11264_v26  ;;  %v11332_v0 = vmul.f32 0.5, %v3684_v38  ;;  %v11334_v15 = vmul.f32 0.5, %v3654_v48 }
 0x39a   : > { %v5246_v41 = vadd.f32 1.0, %v5182_v22  ;;  %v4869_v60 = vadd.f32 0.01407047, %v4805_v7  ;;  %v4132_v20 = vadd.f32 0.003408291, %v4068_v42  ;;  %v11338_v61 = vmul.f32 %v11321_v17, %v11321_v17 }
 0x39b   : > { %v11341_v31 = vmul.f32 %v5531_v34, %v11151_v55  ;;  %v11344_v43 = vmul.f32 %v11232_v50, %v4478_v30  ;;  %v5155_v24 = vadd.f32 0.49746925, %v5091_v59  ;;  %v3691_v26 = vadd.f32 %v10592_v52, %v10795_v12 }
 0x39c   : > { %v4293_v38 = vmul.f32 %v4229_v63, %v11294_v49  ;;  %v4933_v48 = vmul.f32 %v4869_v60, %v11294_v49  ;;  %v4196_v45 = vmul.f32 %v4132_v20, %v11315_v4  ;;  %v4644_v51 = vadd.f32 2.3547966e-05, %v4580_v3 }
 0x39d   : > { %v5437_v47 = vmul.f32 %v7885_v36, %v5309_v5  ;;  %v4515_v2 = vadd.f32 1.1283791, %v4451_v21  ;;  %v4038_v22 = vmul.f32 0.00022905065, %v11338_v61  ;;  %v4550_v55 = vmul.f32 -1.1791603e-07, %v11338_v61 }
 0x39e   : > { %v7887_v34 = vpop.eup %7886  ;;  %7888 = vrcp.f32 %v5246_v41  ;;  %v4997_v50 = vadd.f32 0.11098505, %v4933_v48  ;;  %v4260_v30 = vadd.f32 0.050955694, %v4196_v45  ;;  %v4708_v59 = vmul.f32 %v4644_v51, %v11315_v4 }
 0x39f   : > { %v5219_v12 = vmul.f32 %v5155_v24, %v11258_v8  ;;  %v4102_v63 = vadd.f32 0.003408291, %v4038_v22  ;;  %v4614_v7 = vadd.f32 2.3547966e-05, %v4550_v55  ;;  %v3819_v42 = vmul.f32 0.70710677, %v3691_v26 }
 0x3a0   : > { %v4357_v60 = vadd.f32 0.18520832, %v4293_v38  ;;  %v5061_v3 = vmul.f32 %v4997_v50, %v11294_v49  ;;  %v4324_v5 = vmul.f32 %v4260_v30, %v11315_v4  ;;  %v4772_v36 = vadd.f32 0.0010179626, %v4708_v59 }
 0x3a1   : > { %v4166_v21 = vmul.f32 %v4102_v63, %v11338_v61  ;;  %v4678_v20 = vmul.f32 %v4614_v7, %v11338_v61  ;;  %v11359_v41 = vmul.f32 0.5, %v3691_v26  ;;  %v11361_v48 = vclamps-f32 %v3819_v42, 4.0 }
 0x3a2   : > { %v5468_v45 = vmul.f32 %v7887_v34, %v11303_v58  ;;  %v5125_v8 = vadd.f32 0.49746925, %v5061_v3  ;;  %v4836_v24 = vmul.f32 %v4772_v36, %v11315_v4  ;;  %v3661_v38 = vadd.f32 %v11137_v57, %v10816_v29 }
 0x3a3   : > { %v5501_v51 = vadd.f32 1.0, %v5437_v47  ;;  %v5283_v22 = vadd.f32 1.0, %v5219_v12  ;;  %v4742_v55 = vadd.f32 0.0010179626, %v4678_v20  ;;  %v11369_v50 = vmul.f32 %v11361_v48, %v11361_v48 }
 0x3a4   : > { %v4421_v26 = vmul.f32 %v4357_v60, %v11294_v49  ;;  %v5189_v30 = vmul.f32 %v5125_v8, %v11294_v49  ;;  %v4388_v59 = vadd.f32 0.18520832, %v4324_v5  ;;  %v4900_v63 = vadd.f32 0.01407047, %v4836_v24 }
 0x3a5   : > { %v4230_v58 = vadd.f32 0.050955694, %v4166_v21  ;;  %v4806_v34 = vmul.f32 %v4742_v55, %v11338_v61  ;;  %v4075_v7 = vmul.f32 0.00022905065, %v11369_v50  ;;  %v4587_v29 = vmul.f32 -1.1791603e-07, %v11369_v50 }
 0x3a6   : > { %v5532_v47 = vadd.f32 1.0, %v5468_v45  ;;  %v5253_v12 = vadd.f32 1.0, %v5189_v30  ;;  %v4964_v42 = vmul.f32 %v4900_v63, %v11315_v4  ;;  %v3789_v3 = vmul.f32 0.70710677, %v3661_v38 }
 0x3a7   : > { %v5347_v36 = vmul.f32 %v11245_v33, %v4515_v2  ;;  %7890 = vrcp.f32 %v5283_v22  ;;  %v4870_v60 = vadd.f32 0.01407047, %v4806_v34  ;;  %v4139_v20 = vadd.f32 0.003408291, %v4075_v7 }
 0x3a8   : > { %v7889_v49 = vpop.eup %7888  ;;  %v4485_v5 = vadd.f32 1.1283791, %v4421_v26  ;;  %7892 = vrcp.f32 %v5253_v12  ;;  %v4452_v21 = vmul.f32 %v4388_v59, %v11315_v4  ;;  %v5028_v8 = vadd.f32 0.11098505, %v4964_v42 }
 0x3a9   : > { %v4294_v24 = vmul.f32 %v4230_v58, %v11338_v61  ;;  %v4934_v55 = vmul.f32 %v4870_v60, %v11338_v61  ;;  %v4203_v45 = vmul.f32 %v4139_v20, %v11369_v50  ;;  %v4651_v30 = vadd.f32 2.3547966e-05, %v4587_v29  ;;  %v12464_v20 = vld [vmem:[#allocation45_spill] sm:$0xff] }
 0x3aa   : > { %v11383_v63 = vmul.f32 %v5501_v51, %v11214_v54  ;;  %v11386_v33 = vmul.f32 %v5532_v47, %v11217_v46  ;;  %v5092_v2 = vmul.f32 %v5028_v8, %v11315_v4  ;;  %v11389_v22 = vclamps-f32 %v3789_v3, 4.0 }
 0x3ab   : > { %v4998_v26 = vadd.f32 0.11098505, %v4934_v55  ;;  %v4267_v59 = vadd.f32 0.050955694, %v4203_v45  ;;  %v4715_v34 = vmul.f32 %v4651_v30, %v11369_v50  ;;  %v11394_v58 = vadd.f32 %v10665_v62, %v10855_v44 }
 0x3ac   : > { %12463 = vst [vmem:[#allocation55_spill] sm:$0xff] %v11383_v63  ;;  %v5438_v7 = vmul.f32 %v7889_v49, %v11344_v43  ;;  %v5317_v54 = vmul.f32 %v11286_v28, %v4485_v5  ;;  %v5156_v51 = vadd.f32 0.49746925, %v5092_v2  ;;  %v11400_v46 = vmul.f32 %v11389_v22, %v11389_v22 }
 0x3ad   : > { %v4516_v29 = vadd.f32 1.1283791, %v4452_v21  ;;  %v4358_v47 = vadd.f32 0.18520832, %v4294_v24  ;;  %v5062_v12 = vmul.f32 %v4998_v26, %v11338_v61  ;;  %v4779_v42 = vadd.f32 0.0010179626, %v4715_v34 }
 0x3ae   : > { %v5220_v3 = vmul.f32 %v5156_v51, %v11315_v4  ;;  %v4045_v60 = vmul.f32 0.00022905065, %v11400_v46  ;;  %v4557_v44 = vmul.f32 -1.1791603e-07, %v11400_v46  ;;  %v11408_v43 = vadd.f32 %v11192_v40, %v12464_v20 }
 0x3af   : > { %v5126_v28 = vadd.f32 0.49746925, %v5062_v12  ;;  %v4331_v49 = vmul.f32 %v4267_v59, %v11369_v50  ;;  %v4843_v5 = vmul.f32 %v4779_v42, %v11369_v50  ;;  %v3820_v21 = vmul.f32 0.70710677, %v11394_v58 }
 0x3b0   : > { %v5284_v8 = vadd.f32 1.0, %v5220_v3  ;;  %v11413_v24 = vmul.f32 0.5, %v3661_v38  ;;  %v4109_v55 = vadd.f32 0.003408291, %v4045_v60  ;;  %v4621_v4 = vadd.f32 2.3547966e-05, %v4557_v44 }
 0x3b1   : > { %v7891_v45 = vpop.eup %7890  ;;  %v5502_v30 = vadd.f32 1.0, %v5438_v7  ;;  %v5190_v2 = vmul.f32 %v5126_v28, %v11338_v61  ;;  %v4907_v26 = vadd.f32 0.01407047, %v4843_v5  ;;  %v11416_v34 = vclamps-f32 %v3820_v21, 4.0 }
 0x3b2   : > { %v7893_v51 = vpop.eup %7892  ;;  %v4422_v12 = vmul.f32 %v4358_v47, %v11338_v61  ;;  %v4173_v59 = vmul.f32 %v4109_v55, %v11400_v46  ;;  %v4685_v42 = vmul.f32 %v4621_v4, %v11400_v46  ;;  %v3790_v3 = vmul.f32 0.70710677, %v11408_v43 }
 0x3b3   : > { %v5445_v38 = vmul.f32 %v7893_v51, %v5317_v54  ;;  %7894 = vrcp.f32 %v5284_v8  ;;  %v4395_v60 = vadd.f32 0.18520832, %v4331_v49  ;;  %v4971_v44 = vmul.f32 %v4907_v26, %v11369_v50 }
 0x3b4   : > { %v4237_v7 = vadd.f32 0.050955694, %v4173_v59  ;;  %v4749_v20 = vadd.f32 0.0010179626, %v4685_v42  ;;  %v11425_v28 = vmul.f32 %v11416_v34, %v11416_v34  ;;  %v11427_v5 = vclamps-f32 %v3790_v3, 4.0 }
 0x3b5   : > { %v5475_v61 = vmul.f32 %v7891_v45, %v5347_v36  ;;  %v5509_v47 = vadd.f32 1.0, %v5445_v38  ;;  %v5254_v21 = vadd.f32 1.0, %v5190_v2  ;;  %v5035_v55 = vadd.f32 0.11098505, %v4971_v44 }
 0x3b6   : > { %v4301_v4 = vmul.f32 %v4237_v7, %v11400_v46  ;;  %v4813_v54 = vmul.f32 %v4749_v20, %v11400_v46  ;;  %v4076_v49 = vmul.f32 0.00022905065, %v11425_v28  ;;  %v4588_v8 = vmul.f32 -1.1791603e-07, %v11425_v28 }
 0x3b7   : > { %v11434_v26 = vmul.f32 %v5509_v47, %v11330_v18  ;;  %v4486_v51 = vadd.f32 1.1283791, %v4422_v12  ;;  %v5099_v59 = vmul.f32 %v5035_v55, %v11369_v50  ;;  %v11439_v36 = vmul.f32 %v11427_v5, %v11427_v5 }
 0x3b8   : > { %v4459_v45 = vmul.f32 %v4395_v60, %v11369_v50  ;;  %v4365_v2 = vadd.f32 0.18520832, %v4301_v4  ;;  %v4877_v42 = vadd.f32 0.01407047, %v4813_v54  ;;  %v4140_v3 = vadd.f32 0.003408291, %v4076_v49 }
 0x3b9   : > { %12465 = vst [vmem:[#allocation45_spill] sm:$0xff] %v11434_v26  ;;  %7896 = vrcp.f32 %v5254_v21  ;;  %v4652_v44 = vadd.f32 2.3547966e-05, %v4588_v8  ;;  %v4046_v18 = vmul.f32 0.00022905065, %v11439_v36  ;;  %v5539_v55 = vadd.f32 1.0, %v5475_v61 }
 0x3ba   : > { %v5163_v7 = vadd.f32 0.49746925, %v5099_v59  ;;  %v4941_v12 = vmul.f32 %v4877_v42, %v11400_v46  ;;  %v4204_v20 = vmul.f32 %v4140_v3, %v11425_v28  ;;  %v4558_v47 = vmul.f32 -1.1791603e-07, %v11439_v36  ;;  %v12466_v61 = vld [vmem:[#allocation46_spill] sm:$0xff] }
 0x3bb   : > { %v5348_v60 = vmul.f32 %v11309_v32, %v4516_v29  ;;  %v4716_v4 = vmul.f32 %v4652_v44, %v11425_v28  ;;  %v4110_v54 = vadd.f32 0.003408291, %v4046_v18  ;;  %v11451_v49 = vmul.f32 %v5502_v30, %v11230_v1 }
 0x3bc   : > { %v4523_v21 = vadd.f32 1.1283791, %v4459_v45  ;;  %v4429_v8 = vmul.f32 %v4365_v2, %v11400_v46  ;;  %v5005_v38 = vadd.f32 0.11098505, %v4941_v12  ;;  %v5318_v42 = vmul.f32 %v11321_v17, %v4486_v51 }
 0x3bd   : > { %v7895_v59 = vpop.eup %7894  ;;  %v11456_v3 = vmul.f32 0.5, %v11394_v58  ;;  %v4780_v63 = vadd.f32 0.0010179626, %v4716_v4  ;;  %v3699_v32 = vadd.f32 %v10592_v52, %v12466_v61  ;;  %v5227_v29 = vmul.f32 %v5163_v7, %v11369_v50 }
 0x3be   : > { %v5069_v44 = vmul.f32 %v5005_v38, %v11400_v46  ;;  %v4268_v1 = vadd.f32 0.050955694, %v4204_v20  ;;  %v4622_v30 = vadd.f32 2.3547966e-05, %v4558_v47  ;;  %v11463_v45 = vmul.f32 %v5539_v55, %v11251_v35 }
 0x3bf   : > { %v4844_v2 = vmul.f32 %v4780_v63, %v11425_v28  ;;  %v11467_v17 = vmul.f32 0.5, %v11408_v43  ;;  %v4174_v58 = vmul.f32 %v4110_v54, %v11439_v36  ;;  %v11471_v51 = vmul.f32 %v11361_v48, %v4523_v21 }
 0x3c0   : > { %v4493_v52 = vadd.f32 1.1283791, %v4429_v8  ;;  %v5133_v18 = vadd.f32 0.49746925, %v5069_v44  ;;  %v4686_v50 = vmul.f32 %v4622_v30, %v11439_v36  ;;  %v5476_v38 = vmul.f32 %v7895_v59, %v5348_v60 }
 0x3c1   : > { %v4908_v7 = vadd.f32 0.01407047, %v4844_v2  ;;  %v3827_v12 = vmul.f32 0.70710677, %v3699_v32  ;;  %v3669_v35 = vadd.f32 %v11137_v57, %v10948_v6  ;;  %v5291_v20 = vadd.f32 1.0, %v5227_v29 }
 0x3c2   : > { %v5197_v63 = vmul.f32 %v5133_v18, %v11400_v46  ;;  %v4332_v43 = vmul.f32 %v4268_v1, %v11425_v28  ;;  %v4750_v47 = vadd.f32 0.0010179626, %v4686_v50  ;;  %v4238_v4 = vadd.f32 0.050955694, %v4174_v58 }
 0x3c3   : > { %v7897_v55 = vpop.eup %7896  ;;  %v4972_v48 = vmul.f32 %v4908_v7, %v11425_v28  ;;  %v11479_v54 = vmul.f32 0.5, %v3699_v32  ;;  %v11481_v21 = vclamps-f32 %v3827_v12, 4.0  ;;  %v11484_v8 = vmul.f32 %v11389_v22, %v4493_v52 }
 0x3c4   : > { %v5261_v60 = vadd.f32 1.0, %v5197_v63  ;;  %v4814_v6 = vmul.f32 %v4750_v47, %v11439_v36  ;;  %v11489_v46 = vadd.f32 %v10665_v62, %v10973_v23  ;;  %v5540_v59 = vadd.f32 1.0, %v5476_v38 }
 0x3c5   : > { %v5036_v61 = vadd.f32 0.11098505, %v4972_v48  ;;  %v11493_v29 = vmul.f32 %v11481_v21, %v11481_v21  ;;  %v3797_v32 = vmul.f32 0.70710677, %v3669_v35  ;;  %v5446_v44 = vmul.f32 %v7897_v55, %v5318_v42 }
 0x3c6   : > { %7898 = vrcp.f32 %v5291_v20  ;;  %v4396_v1 = vadd.f32 0.18520832, %v4332_v43  ;;  %v4878_v30 = vadd.f32 0.01407047, %v4814_v6  ;;  %v4302_v2 = vmul.f32 %v4238_v4, %v11439_v36 }
 0x3c7   : > { %v5100_v22 = vmul.f32 %v5036_v61, %v11425_v28  ;;  %v4083_v58 = vmul.f32 0.00022905065, %v11493_v29  ;;  %v4595_v62 = vmul.f32 -1.1791603e-07, %v11493_v29  ;;  %7900 = vrcp.f32 %v5261_v60 }
 0x3c8   : > { %v4942_v23 = vmul.f32 %v4878_v30, %v11439_v36  ;;  %v11500_v52 = vclamps-f32 %v3797_v32, 4.0  ;;  %v3828_v18 = vmul.f32 0.70710677, %v11489_v46  ;;  %v11504_v42 = vmul.f32 %v5540_v59, %v11332_v0 }
 0x3c9   : > { %v5164_v50 = vadd.f32 0.49746925, %v5100_v22  ;;  %v4147_v38 = vadd.f32 0.003408291, %v4083_v58  ;;  %v4659_v7 = vadd.f32 2.3547966e-05, %v4595_v62  ;;  %v4460_v47 = vmul.f32 %v4396_v1, %v11425_v28 }
 0x3ca   : > { %v5510_v12 = vadd.f32 1.0, %v5446_v44  ;;  %v5006_v20 = vadd.f32 0.11098505, %v4942_v23  ;;  %v11508_v63 = vmul.f32 %v11500_v52, %v11500_v52  ;;  %v11510_v43 = vclamps-f32 %v3828_v18, 4.0 }
 0x3cb   : > { %v5228_v55 = vmul.f32 %v5164_v50, %v11425_v28  ;;  %v4211_v48 = vmul.f32 %v4147_v38, %v11493_v29  ;;  %v4723_v0 = vmul.f32 %v4659_v7, %v11493_v29  ;;  %v4366_v4 = vadd.f32 0.18520832, %v4302_v2 }
 0x3cc   : > { %v5070_v60 = vmul.f32 %v5006_v20, %v11439_v36  ;;  %v4053_v6 = vmul.f32 0.00022905065, %v11508_v63  ;;  %v4565_v59 = vmul.f32 -1.1791603e-07, %v11508_v63  ;;  %v11519_v44 = vmul.f32 0.5, %v3669_v35 }
 0x3cd   : > { %v4275_v61 = vadd.f32 0.050955694, %v4211_v48  ;;  %v4787_v32 = vadd.f32 0.0010179626, %v4723_v0  ;;  %v11523_v1 = vmul.f32 %v11510_v43, %v11510_v43  ;;  %v11526_v28 = vmul.f32 %v5510_v12, %v11334_v15 }
 0x3ce   : > { %v5292_v30 = vadd.f32 1.0, %v5228_v55  ;;  %v4117_v22 = vadd.f32 0.003408291, %v4053_v6  ;;  %v4629_v2 = vadd.f32 2.3547966e-05, %v4565_v59  ;;  %v4430_v35 = vmul.f32 %v4366_v4, %v11439_v36  ;;  %v12467_v6 = vld [vmem:[#allocation24_spill] sm:$0xff] }
 0x3cf   : > { %v4524_v58 = vadd.f32 1.1283791, %v4460_v47  ;;  %v5134_v62 = vadd.f32 0.49746925, %v5070_v60  ;;  %v4851_v23 = vmul.f32 %v4787_v32, %v11493_v29  ;;  %v4084_v18 = vmul.f32 0.00022905065, %v11523_v1 }
 0x3d0   : > { %v7899_v50 = vpop.eup %7898  ;;  %v4181_v38 = vmul.f32 %v4117_v22, %v11508_v63  ;;  %v4693_v7 = vmul.f32 %v4629_v2, %v11508_v63  ;;  %v4596_v20 = vmul.f32 -1.1791603e-07, %v11523_v1  ;;  %v4339_v15 = vmul.f32 %v4275_v61, %v11493_v29  ;;  %v12468_v59 = vld [vmem:[#allocation25_spill] sm:$0xff] }
 0x3d1   : > { %v4915_v12 = vadd.f32 0.01407047, %v4851_v23  ;;  %v4148_v55 = vadd.f32 0.003408291, %v4084_v18  ;;  %v3670_v47 = vadd.f32 %v11192_v40, %v10987_v37  ;;  %v7901_v48 = vpop.eup %7900  ;;  %7902 = vrcp.f32 %v5292_v30  ;;  %v7769_v32 = vld [vmem:[%s12348_s6 + $0x100] sm:$0xff]   ;;  %v7772_v30 = vld [vmem:[%s12348_s6 + $0x148] sm:$0xff]  }
 0x3d2   : > { %v4245_v0 = vadd.f32 0.050955694, %v4181_v38  ;;  %v4757_v60 = vadd.f32 0.0010179626, %v4693_v7  ;;  %v5624_v4 = vpack.c.bf16 %v12468_v59, %v12467_v6  ;;  %v11543_v22 = vmul.f32 %v11416_v34, %v4524_v58  ;;  %v12470_v6 = vld [vmem:[#allocation21_spill] sm:$0xff] }
 0x3d3   : > { %v5198_v61 = vmul.f32 %v5134_v62, %v11439_v36  ;;  %v4979_v2 = vmul.f32 %v4915_v12, %v11493_v29  ;;  %v4212_v37 = vmul.f32 %v4148_v55, %v11523_v1  ;;  %v4494_v23 = vadd.f32 1.1283791, %v4430_v35  ;;  %v12469_v12 = vld [vmem:[#allocation22_spill] sm:$0xff] }
 0x3d4   : > { %v4309_v18 = vmul.f32 %v4245_v0, %v11508_v63  ;;  %v4821_v38 = vmul.f32 %v4757_v60, %v11508_v63  ;;  %v4660_v7 = vadd.f32 2.3547966e-05, %v4596_v20  ;;  %6206 = vmatprep.mubr.bf16.mxu0 %v5624_v4  ;;  %v5483_v34 = vmul.f32 %v7899_v50, %v11471_v51  ;;  %v7773_v35 = vld [vmem:[%s12348_s6 + $0x108] sm:$0xff]  }
 0x3d5   : > { %v5453_v58 = vmul.f32 %v7901_v48, %v11484_v8  ;;  %v4403_v36 = vadd.f32 0.18520832, %v4339_v15  ;;  %v5043_v62 = vadd.f32 0.11098505, %v4979_v2  ;;  %v12471_v55 = vpack.c.bf16 %v12469_v12, %v12470_v6  ;;  %v7775_v15 = vld [vmem:[%s12348_s6 + $0x150] sm:$0xff]  }
 0x3d6   : > { %v4885_v59 = vadd.f32 0.01407047, %v4821_v38  ;;  %v4276_v0 = vadd.f32 0.050955694, %v4212_v37  ;;  %v4724_v60 = vmul.f32 %v4660_v7, %v11523_v1  ;;  %v3798_v20 = vmul.f32 0.70710677, %v3670_v47 }
 0x3d7   : > { %6207 = vmatmul.mubr.bf16.vlgmr.msra.gmra.mrb[32].mxu0 %v12471_v55  ;;  %v5262_v4 = vadd.f32 1.0, %v5198_v61  ;;  %v5107_v51 = vmul.f32 %v5043_v62, %v11493_v29  ;;  %v11564_v8 = vmul.f32 0.5, %v11489_v46  ;;  %v11568_v50 = vadd.f32 %v11137_v57, %v11083_v13 }
 0x3d8   : > { %7380 = vmatpush3.bf16.msra.mxu0 %v7769_v32  ;;  %v4373_v48 = vadd.f32 0.18520832, %v4309_v18  ;;  %v4949_v2 = vmul.f32 %v4885_v59, %v11508_v63  ;;  %v4788_v37 = vadd.f32 0.0010179626, %v4724_v60  ;;  %v11574_v32 = vclamps-f32 %v3798_v20, 4.0  ;;  %v7777_v18 = vld [vmem:[%s12348_s6 + $0x110] sm:$0xff]  }
 0x3d9   : > { %7381 = vmatprep.subr.bf16.mxu0 %v7772_v30  ;;  %v5547_v61 = vadd.f32 1.0, %v5483_v34  ;;  %v5517_v38 = vadd.f32 1.0, %v5453_v58  ;;  %v11577_v46 = vmul.f32 %v11427_v5, %v4494_v23  ;;  %v5171_v7 = vadd.f32 0.49746925, %v5107_v51  ;;  %v7779_v58 = vld [vmem:[%s12348_s6 + $0x158] sm:$0xff]  }
 0x3da   : > { %v4467_v13 = vmul.f32 %v4403_v36, %v11493_v29  ;;  %v5013_v62 = vadd.f32 0.11098505, %v4949_v2  ;;  %v4340_v30 = vmul.f32 %v4276_v0, %v11523_v1  ;;  %v4852_v12 = vmul.f32 %v4788_v37, %v11523_v1 }
 0x3db   : > { %7904 = vrcp.f32 %v5262_v4  ;;  %v5235_v34 = vmul.f32 %v5171_v7, %v11493_v29  ;;  %v11588_v5 = vmul.f32 %v11574_v32, %v11574_v32  ;;  %v3805_v23 = vmul.f32 0.70710677, %v11568_v50  ;;  %v7903_v36 = vpop.eup %7902 }
 0x3dc   : > { %7382 = vmatpush3.bf16.msra.mxu0 %v7773_v35  ;;  %v4437_v6 = vmul.f32 %v4373_v48, %v11508_v63  ;;  %v5077_v55 = vmul.f32 %v5013_v62, %v11508_v63  ;;  %v4916_v35 = vadd.f32 0.01407047, %v4852_v12  ;;  %v11596_v59 = vmul.f32 0.5, %v3670_v47  ;;  %v7781_v47 = vld [vmem:[%s12348_s6 + $0x118] sm:$0xff]  }
 0x3dd   : > { %7383 = vmatprep.subr.bf16.mxu0 %v7775_v15  ;;  %v5299_v29 = vadd.f32 1.0, %v5235_v34  ;;  %v4054_v0 = vmul.f32 0.00022905065, %v11588_v5  ;;  %v11599_v60 = vclamps-f32 %v3805_v23, 4.0  ;;  %v11603_v20 = vadd.f32 %v11192_v40, %v11090_v53 }
 0x3de   : > { %v11606_v4 = vmul.f32 %v5547_v61, %v11359_v41  ;;  %v4404_v51 = vadd.f32 0.18520832, %v4340_v30  ;;  %v4980_v15 = vmul.f32 %v4916_v35, %v11523_v1  ;;  %v4566_v48 = vmul.f32 -1.1791603e-07, %v11588_v5  ;;  %v7783_v41 = vld [vmem:[%s12348_s6 + $0x160] sm:$0xff]  }
 0x3df   : > { %v11614_v2 = vmul.f32 %v5517_v38, %v11413_v24  ;;  %v5484_v37 = vmul.f32 %v7903_v36, %v11543_v22  ;;  %v4531_v53 = vadd.f32 1.1283791, %v4467_v13  ;;  %v4118_v7 = vadd.f32 0.003408291, %v4054_v0 }
 0x3e0   : > { %12472 = vst [vmem:[#allocation46_spill] sm:$0xff] %v11606_v4  ;;  %7384 = vmatpush3.bf16.msra.mxu0 %v7777_v18  ;;  %v5141_v61 = vadd.f32 0.49746925, %v5077_v55  ;;  %v5044_v62 = vadd.f32 0.11098505, %v4980_v15  ;;  %v11622_v12 = vmul.f32 %v11599_v60, %v11599_v60  ;;  %7906 = vrcp.f32 %v5299_v29  ;;  %v7787_v29 = vld [vmem:[%s12348_s6 + $0x168] sm:$0xff]  }
 0x3e1   : > { %7385 = vmatprep.subr.bf16.mxu0 %v7779_v58  ;;  %v4630_v30 = vadd.f32 2.3547966e-05, %v4566_v48  ;;  %v4501_v18 = vadd.f32 1.1283791, %v4437_v6  ;;  %v4182_v24 = vmul.f32 %v4118_v7, %v11588_v5  ;;  %v3806_v22 = vmul.f32 0.70710677, %v11603_v20 }
 0x3e2   : > { %v4468_v38 = vmul.f32 %v4404_v51, %v11523_v1  ;;  %v5108_v13 = vmul.f32 %v5044_v62, %v11523_v1  ;;  %v4061_v23 = vmul.f32 0.00022905065, %v11622_v12  ;;  %v7785_v58 = vld [vmem:[%s12348_s6 + $0x120] sm:$0xff]   ;;  %v5363_v36 = vmul.f32 %v11481_v21, %v4531_v53 }
 0x3e3   : > { %v4694_v34 = vmul.f32 %v4630_v30, %v11588_v5  ;;  %v4246_v6 = vadd.f32 0.050955694, %v4182_v24  ;;  %v4573_v55 = vmul.f32 -1.1791603e-07, %v11622_v12  ;;  %v11635_v35 = vclamps-f32 %v3806_v22, 4.0 }
 0x3e4   : > { %7386 = vmatpush3.bf16.msra.mxu0 %v7781_v47  ;;  %v5205_v0 = vmul.f32 %v5141_v61, %v11508_v63  ;;  %v5172_v51 = vadd.f32 0.49746925, %v5108_v13  ;;  %v4125_v48 = vadd.f32 0.003408291, %v4061_v23  ;;  %v5548_v7 = vadd.f32 1.0, %v5484_v37  ;;  %v7789_v37 = vld [vmem:[%s12348_s6 + $0x128] sm:$0xff]  }
 0x3e5   : > { %7387 = vmatprep.subr.bf16.mxu0 %v7783_v41  ;;  %v4758_v15 = vadd.f32 0.0010179626, %v4694_v34  ;;  %v7905_v47 = vpop.eup %7904  ;;  %v11642_v62 = vmul.f32 0.5, %v11568_v50  ;;  %v4637_v21 = vadd.f32 2.3547966e-05, %v4573_v55  ;;  %v11646_v53 = vmul.f32 %v11635_v35, %v11635_v35 }
 0x3e6   : > { %v11649_v41 = vmul.f32 %v11500_v52, %v4501_v18  ;;  %v4532_v30 = vadd.f32 1.1283791, %v4468_v38  ;;  %v4310_v24 = vmul.f32 %v4246_v6, %v11588_v5  ;;  %v4189_v50 = vmul.f32 %v4125_v48, %v11622_v12  ;;  %v7791_v52 = vld [vmem:[%s12348_s6 + $0x170] sm:$0xff]  }
 0x3e7   : > { %v4822_v63 = vmul.f32 %v4758_v15, %v11588_v5  ;;  %v4701_v61 = vmul.f32 %v4637_v21, %v11622_v12  ;;  %v4062_v22 = vmul.f32 0.00022905065, %v11646_v53  ;;  %v4574_v13 = vmul.f32 -1.1791603e-07, %v11646_v53 }
 0x3e8   : > { %7388 = vmatpush3.bf16.msra.mxu0 %v7785_v58  ;;  %v5454_v18 = vmul.f32 %v7905_v47, %v11577_v46  ;;  %v5269_v38 = vadd.f32 1.0, %v5205_v0  ;;  %v5236_v34 = vmul.f32 %v5172_v51, %v11523_v1  ;;  %v11666_v58 = vmul.f32 %v5548_v7, %v11456_v3  ;;  %v7793_v1 = vld [vmem:[%s12348_s6 + $0x130] sm:$0xff]   ;;  %v7795_v47 = vld [vmem:[%s12348_s6 + $0x178] sm:$0xff]  }
 0x3e9   : > { %7389 = vmatprep.subr.bf16.mxu0 %v7787_v29  ;;  %v4886_v23 = vadd.f32 0.01407047, %v4822_v63  ;;  %v4765_v6 = vadd.f32 0.0010179626, %v4701_v61  ;;  %v4126_v55 = vadd.f32 0.003408291, %v4062_v22  ;;  %v11669_v48 = vmul.f32 %v11510_v43, %v4532_v30 }
 0x3ea   : > { %v4638_v15 = vadd.f32 2.3547966e-05, %v4574_v13  ;;  %v4374_v29 = vadd.f32 0.18520832, %v4310_v24  ;;  %v3685_v26 = vadd.f32 %v11137_v57, %v11099_v16  ;;  %v7907_v46 = vpop.eup %7906  ;;  %v4253_v3 = vadd.f32 0.050955694, %v4189_v50 }
 0x3eb   : > { %v4950_v21 = vmul.f32 %v4886_v23, %v11588_v5  ;;  %v4829_v0 = vmul.f32 %v4765_v6, %v11622_v12  ;;  %v4190_v51 = vmul.f32 %v4126_v55, %v11646_v53  ;;  %v5518_v7 = vadd.f32 1.0, %v5454_v18  ;;  %v7797_v18 = vld [vmem:[%s12348_s6 + $0x138] sm:$0xff]   ;;  %v12474_v55 = vld [vmem:[#allocation33_spill] sm:$0xff] }
 0x3ec   : > { %7390 = vmatpush3.bf16.msra.mxu0 %v7789_v37  ;;  %v4702_v43 = vmul.f32 %v4638_v15, %v11646_v53  ;;  %7908 = vrcp.f32 %v5269_v38  ;;  %v5300_v16 = vadd.f32 1.0, %v5236_v34  ;;  %v11684_v63 = vmul.f32 0.5, %v11603_v20  ;;  %v12473_v6 = vld [vmem:[#allocation28_spill] sm:$0xff] }
 0x3ed   : > { %7391 = vmatprep.subr.bf16.mxu0 %v7791_v52  ;;  %v5014_v30 = vadd.f32 0.11098505, %v4950_v21  ;;  %v4893_v24 = vadd.f32 0.01407047, %v4829_v0  ;;  %v3686_v50 = vadd.f32 %v11192_v40, %v11153_v19  ;;  %v5491_v61 = vmul.f32 %v7907_v46, %v5363_v36  ;;  %v12475_v46 = vld [vmem:[#allocation30_spill] sm:$0xff] }
 0x3ee   : > { %v4766_v37 = vadd.f32 0.0010179626, %v4702_v43  ;;  %v4438_v22 = vmul.f32 %v4374_v29, %v11588_v5  ;;  %v3813_v52 = vmul.f32 0.70710677, %v3685_v26  ;;  %v4317_v38 = vmul.f32 %v4253_v3, %v11622_v12  ;;  %v12476_v3 = vld [vmem:[#allocation34_spill] sm:$0xff] }
 0x3ef   : > { %v5078_v13 = vmul.f32 %v5014_v30, %v11588_v5  ;;  %v4957_v20 = vmul.f32 %v4893_v24, %v11622_v12  ;;  %v4254_v34 = vadd.f32 0.050955694, %v4190_v51  ;;  %7910 = vrcp.f32 %v5300_v16  ;;  %v7776_v51 = vld [vmem:[%s12348_s6 + $0x180] sm:$0xff]  }
 0x3f0   : > { %7392 = vmatpush3.bf16.msra.mxu0 %v7793_v1  ;;  %v4830_v23 = vmul.f32 %v4766_v37, %v11646_v53  ;;  %v11696_v36 = vclamps-f32 %v3813_v52, 4.0  ;;  %v5632_v15 = vpack.c.bf16 %v12474_v55, %v12473_v6  ;;  %v11701_v29 = vmul.f32 %v5518_v7, %v11467_v17  ;;  %v7782_v55 = vld [vmem:[%s12348_s6 + $0x1d0] sm:$0xff]  }
 0x3f1   : > { %7393 = vmatprep.subr.bf16.mxu0 %v7795_v47  ;;  %v5142_v19 = vadd.f32 0.49746925, %v5078_v13  ;;  %v5021_v21 = vadd.f32 0.11098505, %v4957_v20  ;;  %v11703_v1 = vmul.f32 0.5, %v3685_v26  ;;  %v5626_v0 = vpack.c.bf16 %v12476_v3, %v12475_v46  ;;  %v7778_v26 = vld [vmem:[%s12348_s6 + $0x1c8] sm:$0xff]  }
 0x3f2   : > { %v4502_v43 = vadd.f32 1.1283791, %v4438_v22  ;;  %v4894_v16 = vadd.f32 0.01407047, %v4830_v23  ;;  %v11713_v30 = vmul.f32 %v11696_v36, %v11696_v36  ;;  %6214 = vmatprep.mubr.bf16.mxu0 %v5632_v15  ;;  %v4381_v17 = vadd.f32 0.18520832, %v4317_v38 }
 0x3f3   : > { %v5206_v47 = vmul.f32 %v5142_v19, %v11588_v5  ;;  %v5085_v7 = vmul.f32 %v5021_v21, %v11622_v12  ;;  %v4318_v24 = vmul.f32 %v4254_v34, %v11646_v53  ;;  %v3814_v37 = vmul.f32 0.70710677, %v3686_v50  ;;  %6271 = vmatprep.mubr.bf16.mxu1 %v5626_v0  ;;  %v12477_v20 = vld [vmem:[#allocation31_spill] sm:$0xff] }
 0x3f4   : > { %7394 = vmatpush3.bf16.msra.mxu0 %v7797_v18  ;;  %v11720_v22 = vadd.f32 1.0, %v5491_v61  ;;  %v4958_v5 = vmul.f32 %v4894_v16, %v11646_v53  ;;  %v4069_v13 = vmul.f32 0.00022905065, %v11713_v30  ;;  %v4581_v52 = vmul.f32 -1.1791603e-07, %v11713_v30  ;;  %v12478_v23 = vld [vmem:[#allocation27_spill] sm:$0xff] }
 0x3f5   : > { %v12479_v19 = vpack.c.bf16 %v12477_v20, %v12478_v23  ;;  %v7780_v18 = vld [vmem:[%s12348_s6 + $0x188] sm:$0xff]   ;;  %v5270_v38 = vadd.f32 1.0, %v5206_v47  ;;  %v5149_v34 = vadd.f32 0.49746925, %v5085_v7  ;;  %v11731_v6 = vmul.f32 0.5, %v3686_v50 }
 0x3f6   : > { %v11733_v61 = vclamps-f32 %v3814_v37, 4.0  ;;  %v7909_v15 = vpop.eup %7908  ;;  %v11739_v21 = vmul.f32 %v11574_v32, %v4502_v43  ;;  %v5022_v46 = vadd.f32 0.11098505, %v4958_v5  ;;  %v4133_v3 = vadd.f32 0.003408291, %v4069_v13  ;;  %v7786_v5 = vld [vmem:[%s12348_s6 + $0x1d8] sm:$0xff]  }
 0x3f7   : > { %6272 = vmatmul.mubr.bf16.vlgmr.msra.gmra.mrb[36].mxu1 %v12479_v19  ;;  %v4645_v0 = vadd.f32 2.3547966e-05, %v4581_v52  ;;  %v4445_v47 = vmul.f32 %v4381_v17, %v11622_v12  ;;  %v5213_v50 = vmul.f32 %v5149_v34, %v11622_v12  ;;  %v4382_v16 = vadd.f32 0.18520832, %v4318_v24  ;;  %v7784_v24 = vld [vmem:[%s12348_s6 + $0x190] sm:$0xff]   ;;  %v12480_v23 = vld [vmem:[#allocation26_spill] sm:$0xff] }
 0x3f8   : > { %7420 = vmatpush3.bf16.msra.mxu1 %v7776_v51  ;;  %v11745_v51 = vmul.f32 %v11733_v61, %v11733_v61  ;;  %v5086_v7 = vmul.f32 %v5022_v46, %v11646_v53  ;;  %v4197_v37 = vmul.f32 %v4133_v3, %v11713_v30  ;;  %v11752_v43 = vadd.f32 %v11137_v57, %v11199_v9 }
 0x3f9   : > { %7421 = vmatprep.subr.bf16.mxu1 %v7778_v26  ;;  %v4709_v32 = vmul.f32 %v4645_v0, %v11713_v30  ;;  %v5461_v26 = vmul.f32 %v7909_v15, %v11649_v41  ;;  %7912 = vrcp.f32 %v5270_v38  ;;  %v7911_v13 = vpop.eup %7910  ;;  %v12481_v41 = vld [vmem:[#allocation32_spill] sm:$0xff]  ;;  %v5277_v38 = vadd.f32 1.0, %v5213_v50 }
 0x3fa   : > { %v4070_v12 = vmul.f32 0.00022905065, %v11745_v51  ;;  %v4582_v17 = vmul.f32 -1.1791603e-07, %v11745_v51  ;;  %v5150_v52 = vadd.f32 0.49746925, %v5086_v7  ;;  %v5631_v19 = vpack.c.bf16 %v12481_v41, %v12480_v23 }
 0x3fb   : > { %v4261_v9 = vadd.f32 0.050955694, %v4197_v37  ;;  %v4773_v20 = vadd.f32 0.0010179626, %v4709_v32  ;;  %v4446_v34 = vmul.f32 %v4382_v16, %v11646_v53  ;;  %v3821_v4 = vmul.f32 0.70710677, %v11752_v43 }
 0x3fc   : > { %7422 = vmatpush3.bf16.msra.mxu1 %v7780_v18  ;;  %v4134_v18 = vadd.f32 0.003408291, %v4070_v12  ;;  %v4646_v15 = vadd.f32 2.3547966e-05, %v4582_v17  ;;  %v5214_v46 = vmul.f32 %v5150_v52, %v11646_v53  ;;  %6215 = vmatmul.mubr.bf16.gmra.mrb[36].mxu0 %v5631_v19  ;;  %v5492_v7 = vmul.f32 %v7911_v13, %v11669_v48  ;;  %v7788_v53 = vld [vmem:[%s12348_s6 + $0x198] sm:$0xff]   ;;  %v7790_v16 = vld [vmem:[%s12348_s6 + $0x1e0] sm:$0xff]  }
 0x3fd   : > { %7423 = vmatprep.subr.bf16.mxu1 %v7782_v55  ;;  %v4325_v3 = vmul.f32 %v4261_v9, %v11713_v30  ;;  %v4837_v0 = vmul.f32 %v4773_v20, %v11713_v30  ;;  %v11775_v50 = vadd.f32 %v11192_v40, %v11235_v11  ;;  %v4509_v32 = vadd.f32 1.1283791, %v4445_v47 }
 0x3fe   : > { %v4198_v37 = vmul.f32 %v4134_v18, %v11745_v51  ;;  %v4710_v55 = vmul.f32 %v4646_v15, %v11745_v51  ;;  %v5278_v12 = vadd.f32 1.0, %v5214_v46  ;;  %v11783_v17 = vclamps-f32 %v3821_v4, 4.0 }
 0x3ff   : > { %v4901_v48 = vadd.f32 0.01407047, %v4837_v0  ;;  %v5525_v13 = vadd.f32 1.0, %v5461_v26  ;;  %7914 = vrcp.f32 %v5277_v38  ;;  %v4389_v9 = vadd.f32 0.18520832, %v4325_v3  ;;  %v7794_v38 = vld [vmem:[%s12348_s6 + $0x1e8] sm:$0xff]  }
 0x400   : > { %7424 = vmatpush3.bf16.msra.mxu1 %v7784_v24  ;;  %v4262_v52 = vadd.f32 0.050955694, %v4198_v37  ;;  %v4774_v11 = vadd.f32 0.0010179626, %v4710_v55  ;;  %v11787_v24 = vmul.f32 %v11720_v22, %v11479_v54  ;;  %v11792_v23 = vmul.f32 %v11783_v17, %v11783_v17 }
 0x401   : > { %7425 = vmatprep.subr.bf16.mxu1 %v7786_v5  ;;  %v4965_v20 = vmul.f32 %v4901_v48, %v11713_v30  ;;  %v5556_v47 = vadd.f32 1.0, %v5492_v7  ;;  %v4510_v41 = vadd.f32 1.1283791, %v4446_v34  ;;  %v3822_v26 = vmul.f32 0.70710677, %v11775_v50  ;;  %v7792_v5 = vld [vmem:[%s12348_s6 + $0x1a0] sm:$0xff]  }
 0x402   : > { %v4838_v4 = vmul.f32 %v4774_v11, %v11745_v51  ;;  %v5341_v54 = vmul.f32 %v11599_v60, %v4509_v32  ;;  %7916 = vrcp.f32 %v5278_v12  ;;  %v4077_v19 = vmul.f32 0.00022905065, %v11792_v23  ;;  %v7796_v32 = vld [vmem:[%s12348_s6 + $0x1a8] sm:$0xff]  }
 0x403   : > { %v5029_v22 = vadd.f32 0.11098505, %v4965_v20  ;;  %v7913_v34 = vpop.eup %7912  ;;  %v11805_v18 = vmul.f32 %v5525_v13, %v11519_v44  ;;  %v4326_v15 = vmul.f32 %v4262_v52, %v11745_v51  ;;  %v11808_v3 = vclamps-f32 %v3822_v26, 4.0  ;;  %v12482_v20 = vld [vmem:[#allocation37_spill] sm:$0xff] }
 0x404   : > { %7426 = vmatpush3.bf16.msra.mxu1 %v7788_v53  ;;  %v4902_v46 = vadd.f32 0.01407047, %v4838_v4  ;;  %v4453_v60 = vmul.f32 %v4389_v9, %v11713_v30  ;;  %v4141_v7 = vadd.f32 0.003408291, %v4077_v19  ;;  %v4589_v37 = vmul.f32 -1.1791603e-07, %v11792_v23 }
 0x405   : > { %7427 = vmatprep.subr.bf16.mxu1 %v7790_v16  ;;  %v5093_v0 = vmul.f32 %v5029_v22, %v11713_v30  ;;  %v11814_v55 = vmul.f32 %v5556_v47, %v11564_v8  ;;  %v5342_v53 = vmul.f32 %v11635_v35, %v4510_v41  ;;  %v11820_v16 = vmul.f32 %v11808_v3, %v11808_v3  ;;  %v7798_v35 = vld [vmem:[%s12348_s6 + $0x1f0] sm:$0xff]   ;;  %v12483_v47 = vld [vmem:[#allocation40_spill] sm:$0xff] }
 0x406   : > { %v4966_v44 = vmul.f32 %v4902_v46, %v11745_v51  ;;  %v5462_v12 = vmul.f32 %v7913_v34, %v11739_v21  ;;  %v4205_v13 = vmul.f32 %v4141_v7, %v11792_v23  ;;  %v4653_v8 = vadd.f32 2.3547966e-05, %v4589_v37  ;;  %v7799_v22 = vld [vmem:[%s12348_s6 + $0x1b0] sm:$0xff]  }
 0x407   : > { %v5157_v48 = vadd.f32 0.49746925, %v5093_v0  ;;  %v4390_v52 = vadd.f32 0.18520832, %v4326_v15  ;;  %v4078_v9 = vmul.f32 0.00022905065, %v11820_v16  ;;  %v5640_v41 = vpack.c.bf16 %v12483_v47, %v12482_v20 }
 0x408   : > { %7428 = vmatpush3.bf16.msra.mxu1 %v7792_v5  ;;  %v5030_v11 = vadd.f32 0.11098505, %v4966_v44  ;;  %v4517_v4 = vadd.f32 1.1283791, %v4453_v60  ;;  %v4717_v21 = vmul.f32 %v4653_v8, %v11792_v23  ;;  %v11837_v5 = vadd.f32 %v11137_v57, %v11247_v39  ;;  %v7800_v39 = vld [vmem:[%s12348_s6 + $0x1f8] sm:$0xff]  }
 0x409   : > { %7429 = vmatprep.subr.bf16.mxu1 %v7794_v38  ;;  %v5221_v26 = vmul.f32 %v5157_v48, %v11713_v30  ;;  %v7915_v19 = vpop.eup %7914  ;;  %v4269_v34 = vadd.f32 0.050955694, %v4205_v13  ;;  %v4142_v15 = vadd.f32 0.003408291, %v4078_v9  ;;  %v4590_v46 = vmul.f32 -1.1791603e-07, %v11820_v16  ;;  %6222 = vmatprep.mubr.bf16.mxu0 %v5640_v41 }
 0x40a   : > { %v5094_v38 = vmul.f32 %v5030_v11, %v11745_v51  ;;  %v5526_v30 = vadd.f32 1.0, %v5462_v12  ;;  %v4781_v0 = vadd.f32 0.0010179626, %v4717_v21  ;;  %v11846_v57 = vadd.f32 %v11192_v40, %v11279_v25 }
 0x40b   : > { %v5285_v60 = vadd.f32 1.0, %v5221_v26  ;;  %v4454_v7 = vmul.f32 %v4390_v52, %v11745_v51  ;;  %v4206_v44 = vmul.f32 %v4142_v15, %v11820_v16  ;;  %v4654_v48 = vadd.f32 2.3547966e-05, %v4590_v46  ;;  %v7801_v52 = vld [vmem:[%s12348_s6 + $0x1b8] sm:$0xff]   ;;  %v12485_v15 = vld [vmem:[#allocation41_spill] sm:$0xff] }
 0x40c   : > { %7430 = vmatpush3.bf16.msra.mxu1 %v7796_v32  ;;  %v5158_v37 = vadd.f32 0.49746925, %v5094_v38  ;;  %v7917_v13 = vpop.eup %7916  ;;  %v5469_v32 = vmul.f32 %v7915_v19, %v5341_v54  ;;  %v4845_v12 = vmul.f32 %v4781_v0, %v11792_v23  ;;  %v3829_v8 = vmul.f32 0.70710677, %v11837_v5 }
 0x40d   : > { %7431 = vmatprep.subr.bf16.mxu1 %v7798_v35  ;;  %7918 = vrcp.f32 %v5285_v60  ;;  %v5349_v25 = vmul.f32 %v11696_v36, %v4517_v4  ;;  %v4333_v35 = vmul.f32 %v4269_v34, %v11792_v23  ;;  %v4718_v11 = vmul.f32 %v4654_v48, %v11820_v16  ;;  %v12484_v34 = vld [vmem:[#allocation17_spill] sm:$0xff]  ;;  %v12487_v48 = vld [vmem:[#allocation38_spill] sm:$0xff] }
 0x40e   : > { %v5222_v40 = vmul.f32 %v5158_v37, %v11745_v51  ;;  %v11863_v54 = vmul.f32 %v5526_v30, %v11596_v59  ;;  %v4909_v9 = vadd.f32 0.01407047, %v4845_v12  ;;  %v4270_v20 = vadd.f32 0.050955694, %v4206_v44  ;;  %v12486_v44 = vld [vmem:[#allocation35_spill] sm:$0xff] }
 0x40f   : > { %v11865_v47 = vclamps-f32 %v3829_v8, 4.0  ;;  %v5470_v36 = vmul.f32 %v7917_v13, %v5342_v53  ;;  %v4518_v41 = vadd.f32 1.1283791, %v4454_v7  ;;  %v4782_v4 = vadd.f32 0.0010179626, %v4718_v11 }
 0x410   : > { %7432 = vmatpush3.bf16.msra.mxu1 %v7799_v22  ;;  %v5286_v51 = vadd.f32 1.0, %v5222_v40  ;;  %v5533_v26 = vadd.f32 1.0, %v5469_v32  ;;  %v4973_v21 = vmul.f32 %v4909_v9, %v11792_v23  ;;  %v3830_v19 = vmul.f32 0.70710677, %v11846_v57  ;;  %v12488_v40 = vld [vmem:[#allocation36_spill] sm:$0xff] }
 0x411   : > { %7433 = vmatprep.subr.bf16.mxu1 %v7800_v39  ;;  %v11870_v22 = vmul.f32 %v11865_v47, %v11865_v47  ;;  %v4397_v59 = vadd.f32 0.18520832, %v4333_v35  ;;  %v4846_v38 = vmul.f32 %v4782_v4, %v11820_v16  ;;  %v5634_v46 = vpack.c.bf16 %v12485_v15, %v12484_v34  ;;  %v12489_v35 = vld [vmem:[#allocation39_spill] sm:$0xff] }
 0x412   : > { %7920 = vrcp.f32 %v5286_v51  ;;  %v5037_v53 = vadd.f32 0.11098505, %v4973_v21  ;;  %v4334_v30 = vmul.f32 %v4270_v20, %v11820_v16  ;;  %v5534_v39 = vadd.f32 1.0, %v5470_v36  ;;  %v12490_v36 = vld [vmem:[#allocation9_spill] sm:$0xff] }
 0x413   : > { %v4085_v60 = vmul.f32 0.00022905065, %v11870_v22  ;;  %v4597_v0 = vmul.f32 -1.1791603e-07, %v11870_v22  ;;  %v4910_v7 = vadd.f32 0.01407047, %v4846_v38  ;;  %6279 = vmatprep.mubr.bf16.mxu1 %v5634_v46  ;;  %v5639_v13 = vpack.c.bf16 %v12487_v48, %v12486_v44 }
 0x414   : > { %7434 = vmatpush3.bf16.msra.mxu1 %v7801_v52  ;;  %v11879_v37 = vclamps-f32 %v3830_v19, 4.0  ;;  %v5101_v32 = vmul.f32 %v5037_v53, %v11792_v23  ;;  %v5633_v11 = vpack.c.bf16 %v12489_v35, %v12488_v40  ;;  %v4461_v52 = vmul.f32 %v4397_v59, %v11792_v23  ;;  %v12491_v53 = vld [vmem:[#allocation16_spill] sm:$0xff] }
 0x415   : > { %v4149_v12 = vadd.f32 0.003408291, %v4085_v60  ;;  %v4661_v8 = vadd.f32 2.3547966e-05, %v4597_v0  ;;  %v4974_v9 = vmul.f32 %v4910_v7, %v11820_v16  ;;  %6223 = vmatmul.mubr.bf16.gmra.mrb[40].mxu0 %v5639_v13  ;;  %v4584_v51 = vmul.f32 -1.1791603e-07, %v12490_v36 }
 0x416   : > { %v11890_v20 = vmul.f32 %v11879_v37, %v11879_v37  ;;  %v5165_v21 = vadd.f32 0.49746925, %v5101_v32  ;;  %v4398_v19 = vadd.f32 0.18520832, %v4334_v30  ;;  %6280 = vmatmul.mubr.bf16.gmra.mrb[40].mxu1 %v5633_v11  ;;  %v4592_v60 = vmul.f32 -1.1791603e-07, %v12491_v53 }
 0x417   : > { %v7919_v4 = vpop.eup %7918  ;;  %v4213_v38 = vmul.f32 %v4149_v12, %v11870_v22  ;;  %v4725_v34 = vmul.f32 %v4661_v8, %v11870_v22  ;;  %v5038_v46 = vadd.f32 0.11098505, %v4974_v9  ;;  %v5350_v13 = vmul.f32 %v11733_v61, %v4518_v41 }
 0x418   : > { %v5477_v15 = vmul.f32 %v7919_v4, %v5349_v25  ;;  %v4086_v59 = vmul.f32 0.00022905065, %v11890_v20  ;;  %v5229_v0 = vmul.f32 %v5165_v21, %v11792_v23  ;;  %v4598_v48 = vmul.f32 -1.1791603e-07, %v11890_v20 }
 0x419   : > { %v4277_v7 = vadd.f32 0.050955694, %v4213_v38  ;;  %v4789_v44 = vadd.f32 0.0010179626, %v4725_v34  ;;  %v5102_v30 = vmul.f32 %v5038_v46, %v11820_v16  ;;  %v4648_v12 = vadd.f32 2.3547966e-05, %v4584_v51 }
 0x41a   : > { %v4150_v32 = vadd.f32 0.003408291, %v4086_v59  ;;  %v11902_v8 = vmul.f32 %v5533_v26, %v11642_v62  ;;  %v4462_v25 = vmul.f32 %v4398_v19, %v11820_v16  ;;  %v4662_v35 = vadd.f32 2.3547966e-05, %v4598_v48 }
 0x41b   : > { %v4853_v40 = vmul.f32 %v4789_v44, %v11870_v22  ;;  %v4525_v23 = vadd.f32 1.1283791, %v4461_v52  ;;  %v5166_v9 = vadd.f32 0.49746925, %v5102_v30  ;;  %v4341_v4 = vmul.f32 %v4277_v7, %v11870_v22 }
 0x41c   : > { %v7921_v11 = vpop.eup %7920  ;;  %v4656_v21 = vadd.f32 2.3547966e-05, %v4592_v60  ;;  %v11908_v61 = vmul.f32 %v5534_v39, %v11684_v63  ;;  %v5541_v41 = vadd.f32 1.0, %v5477_v15  ;;  %v5293_v38 = vadd.f32 1.0, %v5229_v0 }
 0x41d   : > { %v4917_v51 = vadd.f32 0.01407047, %v4853_v40  ;;  %v5478_v34 = vmul.f32 %v7921_v11, %v5350_v13  ;;  %v4214_v62 = vmul.f32 %v4150_v32, %v11890_v20  ;;  %v4726_v26 = vmul.f32 %v4662_v35, %v11890_v20  ;;  %v12492_v40 = vld [vmem:[#allocation44_spill] sm:$0xff] }
 0x41e   : > { %v4712_v19 = vmul.f32 %v4648_v12, %v12490_v36  ;;  %v11913_v46 = vadd.f32 1.1283791, %v4462_v25  ;;  %v5230_v52 = vmul.f32 %v5166_v9, %v11820_v16  ;;  %v4720_v60 = vmul.f32 %v4656_v21, %v12491_v53  ;;  %v12493_v9 = vld [vmem:[#allocation10_spill] sm:$0xff] }
 0x41f   : > { %v4981_v59 = vmul.f32 %v4917_v51, %v11870_v22  ;;  %v11919_v63 = vmul.f32 %v11783_v17, %v4525_v23  ;;  %v4405_v39 = vadd.f32 0.18520832, %v4341_v4  ;;  %v4790_v15 = vadd.f32 0.0010179626, %v4726_v26 }
 0x420   : > { %v4776_v0 = vadd.f32 0.0010179626, %v4712_v19  ;;  %v11922_v7 = vmul.f32 %v5541_v41, %v11703_v1  ;;  %7922 = vrcp.f32 %v5293_v38  ;;  %v4784_v48 = vadd.f32 0.0010179626, %v4720_v60  ;;  %v12494_v38 = vld [vmem:[#allocation14_spill] sm:$0xff] }
 0x421   : > { %v5045_v44 = vadd.f32 0.11098505, %v4981_v59  ;;  %v5542_v13 = vadd.f32 1.0, %v5478_v34  ;;  %v4278_v30 = vadd.f32 0.050955694, %v4214_v62  ;;  %v4854_v16 = vmul.f32 %v4790_v15, %v11890_v20  ;;  %v12495_v34 = vld [vmem:[#allocation42_spill] sm:$0xff] }
 0x422   : > { %v4840_v32 = vmul.f32 %v4776_v0, %v12490_v36  ;;  %v5294_v12 = vadd.f32 1.0, %v5230_v52  ;;  %v4848_v17 = vmul.f32 %v4784_v48, %v12491_v53  ;;  %v5642_v35 = vpack.c.bf16 %v11030_v56, %v12492_v40  ;;  %v12496_v15 = vld [vmem:[#allocation29_spill] sm:$0xff]  ;;  %v12497_v0 = vld [vmem:[#allocation48_spill] sm:$0xff] }
 0x423   : > { %v5109_v25 = vmul.f32 %v5045_v44, %v11870_v22  ;;  %v4469_v1 = vmul.f32 %v4405_v39, %v11870_v22  ;;  %v4918_v11 = vadd.f32 0.01407047, %v4854_v16  ;;  %v4583_v4 = vmul.f32 -1.1791603e-07, %v12493_v9 }
 0x424   : > { %v4904_v23 = vadd.f32 0.01407047, %v4840_v32  ;;  %v4912_v41 = vadd.f32 0.01407047, %v4848_v17  ;;  %6287 = vmatprep.mubr.bf16.mxu1 %v5642_v35  ;;  %v4591_v51 = vmul.f32 -1.1791603e-07, %v12494_v38  ;;  %v5641_v62 = vpack.c.bf16 %v10984_v27, %v12495_v34 }
 0x425   : > { %v5173_v21 = vadd.f32 0.49746925, %v5109_v25  ;;  %v4342_v26 = vmul.f32 %v4278_v30, %v11890_v20  ;;  %v4982_v19 = vmul.f32 %v4918_v11, %v11890_v20  ;;  %v4647_v52 = vadd.f32 2.3547966e-05, %v4583_v4  ;;  %v12499_v34 = vld [vmem:[#allocation49_spill] sm:$0xff] }
 0x426   : > { %v4968_v56 = vmul.f32 %v4904_v23, %v12490_v36  ;;  %v4976_v60 = vmul.f32 %v4912_v41, %v12491_v53  ;;  %v4655_v39 = vadd.f32 2.3547966e-05, %v4591_v51  ;;  %6288 = vmatmul.mubr.bf16.gmra.mrb[44].mxu1 %v5641_v62  ;;  %v5628_v44 = vpack.c.bf16 %v12497_v0, %v12496_v15  ;;  %v12498_v23 = vld [vmem:[#allocation51_spill] sm:$0xff]  ;;  %v12500_v62 = vld [vmem:[#allocation53_spill] sm:$0xff] }
 0x427   : > { %v5237_v59 = vmul.f32 %v5173_v21, %v11870_v22  ;;  %v11943_v48 = vmul.f32 %v5542_v13, %v11731_v6  ;;  %v4533_v27 = vadd.f32 1.1283791, %v4469_v1  ;;  %v5046_v16 = vadd.f32 0.11098505, %v4982_v19 }
 0x428   : > { %v5032_v30 = vadd.f32 0.11098505, %v4968_v56  ;;  %v5040_v25 = vadd.f32 0.11098505, %v4976_v60  ;;  %v4711_v17 = vmul.f32 %v4647_v52, %v12493_v9  ;;  %v4719_v40 = vmul.f32 %v4655_v39, %v12494_v38  ;;  %v12501_v39 = vld [vmem:[#allocation52_spill] sm:$0xff] }
 0x429   : > { %v5301_v32 = vadd.f32 1.0, %v5237_v59  ;;  %v4406_v22 = vadd.f32 0.18520832, %v4342_v26  ;;  %v5110_v35 = vmul.f32 %v5046_v16, %v11890_v20  ;;  %v5650_v4 = vpack.c.bf16 %v11289_v14, %v12498_v23 }
 0x42a   : > { %v5096_v11 = vmul.f32 %v5032_v30, %v12490_v36  ;;  %v7923_v21 = vpop.eup %7922  ;;  %v5104_v6 = vmul.f32 %v5040_v25, %v12491_v53  ;;  %v4775_v13 = vadd.f32 0.0010179626, %v4711_v17  ;;  %v4783_v1 = vadd.f32 0.0010179626, %v4719_v40  ;;  %v12502_v40 = vld [vmem:[#allocation50_spill] sm:$0xff] }
 0x42b   : > { %7924 = vrcp.f32 %v5301_v32  ;;  %v5174_v41 = vadd.f32 0.49746925, %v5110_v35  ;;  %6295 = vmatprep.mubr.bf16.mxu1 %v5650_v4  ;;  %v5649_v26 = vpack.c.bf16 %v12500_v62, %v12499_v34  ;;  %v5365_v19 = vmul.f32 %v11865_v47, %v4533_v27  ;;  %v12503_v35 = vld [vmem:[#allocation54_spill] sm:$0xff]  ;;  %v12505_v34 = vld [vmem:[#allocation20_spill] sm:$0xff] }
 0x42c   : > { %7926 = vrcp.f32 %v5294_v12  ;;  %v5160_v51 = vadd.f32 0.49746925, %v5096_v11  ;;  %v5168_v56 = vadd.f32 0.49746925, %v5104_v6  ;;  %v4839_v52 = vmul.f32 %v4775_v13, %v12493_v9 }
 0x42d   : > { %v4847_v14 = vmul.f32 %v4783_v1, %v12494_v38  ;;  %v5238_v59 = vmul.f32 %v5174_v41, %v11890_v20  ;;  %v5636_v12 = vpack.c.bf16 %v11318_v10, %v12501_v39  ;;  %v5630_v16 = vpack.c.bf16 %v11526_v28, %v11451_v49  ;;  %v12504_v41 = vld [vmem:[#allocation46_spill] sm:$0xff] }
 0x42e   : > { %v5224_v60 = vmul.f32 %v5160_v51, %v12490_v36  ;;  %v4470_v30 = vmul.f32 %v4406_v22, %v11890_v20  ;;  %v5232_v32 = vmul.f32 %v5168_v56, %v12491_v53  ;;  %v4903_v47 = vadd.f32 0.01407047, %v4839_v52  ;;  %6296 = vmatmul.mubr.bf16.gmra.mrb[48].mxu1 %v5649_v26  ;;  %v12506_v56 = vld [vmem:[#allocation18_spill] sm:$0xff] }
 0x42f   : > { %v4911_v27 = vadd.f32 0.01407047, %v4847_v14  ;;  %v5302_v25 = vadd.f32 1.0, %v5238_v59  ;;  %6401 = vmatprep.mubr.bf16.mxu1 %v5630_v16  ;;  %v5635_v11 = vpack.c.bf16 %v12503_v35, %v12502_v40  ;;  %v5644_v36 = vpack.c.bf16 %v11504_v42, %v11386_v33  ;;  %v12047_v33 = vld [vmem:[%s12349_s7] ss:$0 sm:$0xff] }
 0x430   : > { %v5288_v17 = vadd.f32 1.0, %v5224_v60  ;;  %v5485_v23 = vmul.f32 %v7923_v21, %v11919_v63  ;;  %v5296_v4 = vadd.f32 1.0, %v5232_v32  ;;  %v4967_v49 = vmul.f32 %v4903_v47, %v12493_v9 }
 0x431   : > { %v4975_v28 = vmul.f32 %v4911_v27, %v12494_v38  ;;  %7928 = vrcp.f32 %v5302_v25  ;;  %v5638_v20 = vpack.c.bf16 %v11863_v54, %v11701_v29  ;;  %v5643_v22 = vpack.c.bf16 %v11463_v45, %v11341_v31  ;;  %v12509_v27 = vld [vmem:[#allocation55_spill] sm:$0xff] }
 0x432   : > { %v5637_v6 = vpack.c.bf16 %v11805_v18, %v11614_v2  ;;  %7930 = vrcp.f32 %v5288_v17  ;;  %v5031_v13 = vadd.f32 0.11098505, %v4967_v49  ;;  %v5652_v63 = vpack.c.bf16 %v11814_v55, %v11666_v58  ;;  %v12511_v17 = vld [vmem:[#allocation23_spill] sm:$0xff] }
 0x433   : > { %v5039_v1 = vadd.f32 0.11098505, %v4975_v28  ;;  %7932 = vrcp.f32 %v5296_v4  ;;  %v5646_v21 = vpack.c.bf16 %v11943_v48, %v11908_v61  ;;  %v5651_v51 = vpack.c.bf16 %v11787_v24, %v12504_v41  ;;  %v12507_v61 = vld [vmem:[#allocation19_spill] sm:$0xff] }
 0x434   : > { %v5645_v29 = vpack.c.bf16 %v11922_v7, %v11902_v8  ;;  %v4464_v2 = vmul.f32 %v12505_v34, %v12491_v53  ;;  %v5095_v18 = vmul.f32 %v5031_v13, %v12493_v9  ;;  %v4327_v52 = vmul.f32 %v12506_v56, %v12493_v9  ;;  %v12508_v53 = vld [vmem:[#allocation45_spill] sm:$0xff]  ;;  %v12520_v8 = vld [vmem:[#allocation47_spill] sm:$0xff] }
 0x435   : > { %v7925_v54 = vpop.eup %7924  ;;  %v5103_v62 = vmul.f32 %v5039_v1, %v12494_v38  ;;  %v4335_v48 = vmul.f32 %v12507_v61, %v12494_v38  ;;  %v5549_v14 = vadd.f32 1.0, %v5485_v23  ;;  %v5358_v60 = vmul.f32 %v11808_v3, %v11913_v46  ;;  %v12521_v7 = vld [vmem:[#allocation43_spill] sm:$0xff] }
 0x436   : > { %v7927_v26 = vpop.eup %7926  ;;  %v5493_v59 = vmul.f32 %v7925_v54, %v5365_v19  ;;  %v4534_v16 = vadd.f32 1.1283791, %v4470_v30  ;;  %v5159_v32 = vadd.f32 0.49746925, %v5095_v18  ;;  %v12510_v25 = vpack.c.bf16 %v12508_v53, %v12509_v27 }
 0x437   : > { %v5167_v47 = vadd.f32 0.49746925, %v5103_v62  ;;  %v4520_v4 = vadd.f32 1.1283791, %v12511_v17  ;;  %v3757_v49 = vmul.f32 0.5, %v11752_v43  ;;  %v3765_v28 = vmul.f32 0.5, %v11837_v5 }
 0x438   : > { %6402 = vmatmul.mubr.bf16.vlgmr.msra.gmra.mrb[52].mxu1 %v12510_v25  ;;  %v5557_v13 = vadd.f32 1.0, %v5493_v59  ;;  %v4528_v23 = vadd.f32 1.1283791, %v4464_v2  ;;  %v5486_v19 = vmul.f32 %v7927_v26, %v5358_v60  ;;  %v5223_v1 = vmul.f32 %v5159_v32, %v12493_v9  ;;  %v12512_v43 = vld [vmem:[#allocation7_spill] sm:$0xff]  ;;  %v12514_v25 = vld [vmem:[#allocation6_spill] sm:$0xff] }
 0x439   : > { %6409 = vmatprep.mubr.bf16.mxu1 %v5638_v20  ;;  %v5231_v3 = vmul.f32 %v5167_v47, %v12494_v38  ;;  %v4391_v46 = vadd.f32 0.18520832, %v4327_v52  ;;  %v4399_v30 = vadd.f32 0.18520832, %v4335_v48  ;;  %v5613_v54 = vmul.f32 %v5549_v14, %v3757_v49  ;;  %v12513_v20 = vld [vmem:[#allocation15_spill] sm:$0xff]  ;;  %v12515_v49 = vld [vmem:[#allocation12_spill] sm:$0xff] }
 0x43a   : > { %v5621_v34 = vmul.f32 %v5557_v13, %v3765_v28  ;;  %v5366_v18 = vmul.f32 %v11879_v37, %v4534_v16  ;;  %v5287_v62 = vadd.f32 1.0, %v5223_v1  ;;  %v5352_v53 = vmul.f32 %v12512_v43, %v4520_v4 }
 0x43b   : > { %v5295_v56 = vadd.f32 1.0, %v5231_v3  ;;  %v7929_v61 = vpop.eup %7928  ;;  %v5360_v2 = vmul.f32 %v12513_v20, %v4528_v23  ;;  %v5550_v26 = vadd.f32 1.0, %v5486_v19  ;;  %v4455_v52 = vmul.f32 %v4391_v46, %v12493_v9 }
 0x43c   : > { %v5653_v5 = vpack.c.bf16 %v5621_v34, %v5613_v54  ;;  %v7931_v59 = vpop.eup %7930  ;;  %v5494_v60 = vmul.f32 %v7929_v61, %v5366_v18  ;;  %7934 = vrcp.f32 %v5287_v62  ;;  %v4463_v48 = vmul.f32 %v4399_v30, %v12494_v38  ;;  %v12516_v30 = vld [vmem:[#allocation8_spill] sm:$0xff]  ;;  %v12517_v34 = vld [vmem:[#allocation13_spill] sm:$0xff] }
 0x43d   : > { %v7933_v32 = vpop.eup %7932  ;;  %v5480_v14 = vmul.f32 %v7931_v59, %v5352_v53  ;;  %7936 = vrcp.f32 %v5295_v56  ;;  %v3758_v37 = vmul.f32 0.5, %v11775_v50  ;;  %v3766_v16 = vmul.f32 0.5, %v11846_v57  ;;  %v12518_v61 = vld [vmem:[#allocation5_spill] sm:$0xff]  ;;  %v12519_v53 = vld [vmem:[#allocation11_spill] sm:$0xff] }
 0x43e   : > { %v5558_v47 = vadd.f32 1.0, %v5494_v60  ;;  %v5488_v27 = vmul.f32 %v7933_v32, %v5360_v2  ;;  %v3752_v17 = vmul.f32 0.5, %v12514_v25  ;;  %v3760_v28 = vmul.f32 0.5, %v12515_v49  ;;  %v7802_v49 = vld [vmem:[%s12350_s8] sm:$0xff]  }
 0x43f   : > { %v5544_v4 = vadd.f32 1.0, %v5480_v14  ;;  %v5614_v13 = vmul.f32 %v5550_v26, %v3758_v37  ;;  %v4519_v19 = vadd.f32 1.1283791, %v4455_v52  ;;  %v4527_v38 = vadd.f32 1.1283791, %v4463_v48  ;;  %7471 = vmatprep.subr.bf16.mxu0 %v7802_v49 }
 0x440   : > { %6410 = vmatmul.mubr.bf16.gmra.mrb[56].mxu1 %v5637_v6  ;;  %v5622_v23 = vmul.f32 %v5558_v47, %v3766_v16  ;;  %v5552_v9 = vadd.f32 1.0, %v5488_v27  ;;  %v3751_v43 = vmul.f32 0.5, %v12518_v61  ;;  %v3759_v59 = vmul.f32 0.5, %v12519_v53  ;;  %v7808_v53 = vld [vmem:[%s12350_s8 + $0x30] sm:$0xff]  }
 0x441   : > { %6417 = vmatprep.mubr.bf16.mxu1 %v5646_v21  ;;  %v5608_v1 = vmul.f32 %v5544_v4, %v3752_v17  ;;  %v5351_v57 = vmul.f32 %v12516_v30, %v4519_v19  ;;  %v5359_v6 = vmul.f32 %v12517_v34, %v4527_v38  ;;  %v7803_v38 = vld [vmem:[%s12350_s8 + $0x8] sm:$0xff]  }
 0x442   : > { %v5616_v3 = vmul.f32 %v5552_v9, %v3760_v28  ;;  %v5654_v46 = vpack.c.bf16 %v5622_v23, %v5614_v13 }
 0x444   : > { %v5648_v50 = vpack.c.bf16 %v5616_v3, %v5608_v1  ;;  %v7804_v3 = vld [vmem:[%s12350_s8 + $0x10] sm:$0xff]  }
 0x446   : > { %v7935_v54 = vpop.eup %7934  ;;  %6230 = vmatprep.mubr.bf16.mxu0 %v5648_v50  ;;  %v7806_v50 = vld [vmem:[%s12350_s8 + $0x20] sm:$0xff]  }
 0x447   : > { %v7937_v21 = vpop.eup %7936  ;;  %v5479_v18 = vmul.f32 %v7935_v54, %v5351_v57 }
 0x448   : > { %6418 = vmatmul.mubr.bf16.gmra.mrb[60].mxu1 %v5645_v29  ;;  %v5487_v62 = vmul.f32 %v7937_v21, %v5359_v6  ;;  %v12522_v29 = vpack.c.bf16 %v12520_v8, %v12521_v7  ;;  %v7807_v21 = vld [vmem:[%s12350_s8 + $0x28] sm:$0xff]  }
 0x449   : > { %6425 = vmatprep.mubr.bf16.mxu1 %v5654_v46  ;;  %v5543_v56 = vadd.f32 1.0, %v5479_v18  ;;  %v7805_v46 = vld [vmem:[%s12350_s8 + $0x18] sm:$0xff]  }
 0x44a   : > { %v5551_v20 = vadd.f32 1.0, %v5487_v62 }
 0x44b   : > { %v5607_v2 = vmul.f32 %v5543_v56, %v3751_v43 }
 0x44c   : > { %v5615_v26 = vmul.f32 %v5551_v20, %v3759_v59 }
 0x44e   : > { %v5647_v60 = vpack.c.bf16 %v5615_v26, %v5607_v2 }
 0x450   : > { %6426 = vmatmul.mubr.bf16.gmra.mrb[64].mxu1 %v5653_v5  ;;  %6231 = vmatmul.mubr.bf16.gmra.mrb[44].mxu0 %v5647_v60  ;;  %v7809_v60 = vld [vmem:[%s12350_s8 + $0x38] sm:$0xff]  }
 0x451   : > { %6336 = vmatprep.mubr.bf16.mxu0 %v5628_v44 }
 0x458   : > { %6337 = vmatmul.mubr.bf16.vlgmr.msra.gmra.mrb[48].mxu0 %v12522_v29 }
 0x459   : > { %6344 = vmatprep.mubr.bf16.mxu0 %v5636_v12  ;;  %7472 = vmatpush3.bf16.msra.mxu0 %v7802_v49 }
 0x45a   : > { %7473 = vmatprep.subr.bf16.mxu0 %v7803_v38 }
 0x45d   : > { %7474 = vmatpush3.bf16.msra.mxu0 %v7803_v38 }
 0x45e   : > { %7475 = vmatprep.subr.bf16.mxu0 %v7804_v3 }
 0x460   : > { %6345 = vmatmul.mubr.bf16.gmra.mrb[52].mxu0 %v5635_v11 }
 0x461   : > { %6352 = vmatprep.mubr.bf16.mxu0 %v5644_v36  ;;  %7476 = vmatpush3.bf16.msra.mxu0 %v7804_v3 }
 0x462   : > { %7477 = vmatprep.subr.bf16.mxu0 %v7805_v46 }
 0x465   : > { %7478 = vmatpush3.bf16.msra.mxu0 %v7805_v46 }
 0x466   : > { %7479 = vmatprep.subr.bf16.mxu0 %v7806_v50 }
 0x468   : > { %6353 = vmatmul.mubr.bf16.gmra.mrb[56].mxu0 %v5643_v22 }
 0x469   : > { %6360 = vmatprep.mubr.bf16.mxu0 %v5652_v63  ;;  %7480 = vmatpush3.bf16.msra.mxu0 %v7806_v50 }
 0x46a   : > { %7481 = vmatprep.subr.bf16.mxu0 %v7807_v21 }
 0x46d   : > { %7482 = vmatpush3.bf16.msra.mxu0 %v7807_v21 }
 0x46e   : > { %7483 = vmatprep.subr.bf16.mxu0 %v7808_v53 }
 0x470   : > { %6361 = vmatmul.mubr.bf16.gmra.mrb[60].mxu0 %v5651_v51 }
 0x471   : > { %7484 = vmatpush3.bf16.msra.mxu0 %v7808_v53 }
 0x472   : > { %7485 = vmatprep.subr.bf16.mxu0 %v7809_v60 }
 0x475   : > { %7486 = vmatpush3.bf16.msra.mxu0 %v7809_v60 }
 0x4aa   : > { %v7315_v10 = vpop.f32.mrb[32].mxu0 }
 0x4ab   : > { %v7316_v15 = vpop.f32.mrb[33].mxu0 }
 0x4ac   : > { %v7317_v0 = vadd.f32 %v7316_v15, %v7315_v10  ;;  %v7318_v44 = vpop.f32.mrb[34].mxu0 }
 0x4ad   : > { %v7319_v39 = vpop.f32.mrb[35].mxu0 }
 0x4ae   : > { %v7320_v12 = vadd.f32 %v7319_v39, %v7318_v44  ;;  %v6209_v42 = vadd.f32 %v7317_v0, %v12047_v33 }
 0x4b0   : > { %v6212_v24 = vadd.f32 %v7320_v12, %v12047_v33 }
 0x4ca   : > { %v7355_v31 = vpop.f32.mrb[36].mxu1 }
 0x4cb   : > { %v7356_v45 = vpop.f32.mrb[37].mxu1 }
 0x4cc   : > { %v7357_v58 = vadd.f32 %v7356_v45, %v7355_v31  ;;  %v7358_v55 = vpop.f32.mrb[38].mxu1 }
 0x4cd   : > { %v7359_v40 = vpop.f32.mrb[39].mxu1 }
 0x4ce   : > { %v12051_v35 = vadd.f32 %v7357_v58, %v6209_v42  ;;  %v7360_v11 = vadd.f32 %v7359_v40, %v7358_v55 }
 0x4cf   : > { %v7321_v22 = vpop.f32.mrb[36].mxu0 }
 0x4d0   : > { %v12053_v36 = vadd.f32 %v7360_v11, %v6212_v24  ;;  %v7322_v63 = vpop.f32.mrb[37].mxu0 }
 0x4d1   : > { %v7323_v41 = vadd.f32 %v7322_v63, %v7321_v22  ;;  %v7324_v51 = vpop.f32.mrb[38].mxu0 }
 0x4d2   : > { %v7325_v5 = vpop.f32.mrb[39].mxu0 }
 0x4d3   : > { %v7326_v32 = vadd.f32 %v7325_v5, %v7324_v51  ;;  %v6217_v27 = vadd.f32 %v7323_v41, %v12047_v33 }
 0x4d5   : > { %v6220_v23 = vadd.f32 %v7326_v32, %v12047_v33 }
 0x4e8   : > { %v7327_v52 = vpop.f32.mrb[40].mxu0 }
 0x4e9   : > { %v7361_v48 = vpop.f32.mrb[40].mxu1  ;;  %v7328_v14 = vpop.f32.mrb[41].mxu0 }
 0x4ea   : > { %v7329_v37 = vadd.f32 %v7328_v14, %v7327_v52  ;;  %v7362_v16 = vpop.f32.mrb[41].mxu1  ;;  %v7330_v47 = vpop.f32.mrb[42].mxu0 }
 0x4eb   : > { %v7363_v25 = vadd.f32 %v7362_v16, %v7361_v48  ;;  %v7364_v17 = vpop.f32.mrb[42].mxu1  ;;  %v7331_v4 = vpop.f32.mrb[43].mxu0 }
 0x4ec   : > { %v7332_v28 = vadd.f32 %v7331_v4, %v7330_v47  ;;  %v7365_v13 = vpop.f32.mrb[43].mxu1  ;;  %v6225_v54 = vadd.f32 %v7329_v37, %v12047_v33 }
 0x4ed   : > { %v12060_v9 = vadd.f32 %v7363_v25, %v6217_v27  ;;  %v7366_v19 = vadd.f32 %v7365_v13, %v7364_v17 }
 0x4ee   : > { %v6228_v62 = vadd.f32 %v7332_v28, %v12047_v33 }
 0x4ef   : > { %v12065_v1 = vadd.f32 %v7366_v19, %v6220_v23 }
 0x4f9   : > { %v7367_v30 = vpop.f32.mrb[44].mxu1 }
 0x4fa   : > { %v7368_v57 = vpop.f32.mrb[45].mxu1 }
 0x4fb   : > { %v7369_v34 = vadd.f32 %v7368_v57, %v7367_v30  ;;  %v7370_v6 = vpop.f32.mrb[46].mxu1 }
 0x4fc   : > { %v7371_v18 = vpop.f32.mrb[47].mxu1 }
 0x4fd   : > { %v12081_v56 = vadd.f32 %v7369_v34, %v6225_v54  ;;  %v7372_v61 = vadd.f32 %v7371_v18, %v7370_v6 }
 0x4ff   : > { %v12083_v43 = vadd.f32 %v7372_v61, %v6228_v62 }
 0x501   : > { %v7373_v59 = vpop.f32.mrb[48].mxu1 }
 0x502   : > { %v7374_v20 = vpop.f32.mrb[49].mxu1 }
 0x503   : > { %v7375_v2 = vadd.f32 %v7374_v20, %v7373_v59  ;;  %v7376_v26 = vpop.f32.mrb[50].mxu1 }
 0x504   : > { %v7377_v8 = vpop.f32.mrb[51].mxu1 }
 0x505   : > { %v7378_v7 = vadd.f32 %v7377_v8, %v7376_v26 }
 0x50b   : > { %v7435_v29 = vpop.f32.mrb[52].mxu1 }
 0x50c   : > { %v7436_v10 = vpop.f32.mrb[53].mxu1 }
 0x50d   : > { %v7437_v15 = vadd.f32 %v7436_v10, %v7435_v29  ;;  %v7438_v0 = vpop.f32.mrb[54].mxu1 }
 0x50e   : > { %v7439_v44 = vpop.f32.mrb[55].mxu1 }
 0x50f   : > { %v7440_v39 = vadd.f32 %v7439_v44, %v7438_v0 }
 0x513   : > { %v7441_v12 = vpop.f32.mrb[56].mxu1 }
 0x514   : > { %v7442_v31 = vpop.f32.mrb[57].mxu1 }
 0x515   : > { %v7443_v45 = vadd.f32 %v7442_v31, %v7441_v12  ;;  %v7444_v42 = vpop.f32.mrb[58].mxu1 }
 0x516   : > { %v7445_v58 = vpop.f32.mrb[59].mxu1 }
 0x517   : > { %v7446_v55 = vadd.f32 %v7445_v58, %v7444_v42 }
 0x51b   : > { %v7447_v40 = vpop.f32.mrb[60].mxu1 }
 0x51c   : > { %v7448_v24 = vpop.f32.mrb[61].mxu1 }
 0x51d   : > { %v7449_v11 = vadd.f32 %v7448_v24, %v7447_v40  ;;  %v7450_v22 = vpop.f32.mrb[62].mxu1 }
 0x51e   : > { %v7451_v63 = vpop.f32.mrb[63].mxu1 }
 0x51f   : > { %v12091_v41 = vadd.f32 %v7451_v63, %v7450_v22 }
 0x523   : > { %v7453_v51 = vpop.f32.mrb[64].mxu1  ;;  %v7333_v32 = vpop.f32.mrb[44].mxu0 }
 0x524   : > { %v7454_v5 = vpop.f32.mrb[65].mxu1  ;;  %v7334_v14 = vpop.f32.mrb[45].mxu0 }
 0x525   : > { %v12093_v52 = vadd.f32 %v7454_v5, %v7453_v51  ;;  %v7456_v48 = vpop.f32.mrb[66].mxu1  ;;  %v7335_v16 = vadd.f32 %v7334_v14, %v7333_v32  ;;  %v7336_v47 = vpop.f32.mrb[46].mxu0 }
 0x526   : > { %v7457_v37 = vpop.f32.mrb[67].mxu1  ;;  %v7337_v25 = vpop.f32.mrb[47].mxu0 }
 0x527   : > { %v12095_v27 = vadd.f32 %v7457_v37, %v7456_v48  ;;  %v6233_v17 = vadd.f32 %v7335_v16, %v12047_v33  ;;  %v7338_v4 = vadd.f32 %v7337_v25, %v7336_v47 }
 0x529   : > { %v6236_v49 = vadd.f32 %v7338_v4, %v12047_v33  ;;  %v6298_v28 = vadd.f32 %v7375_v2, %v6233_v17 }
 0x52b   : > { %v7395_v13 = vpop.f32.mrb[48].mxu0  ;;  %v12099_v23 = vadd.f32 %v7378_v7, %v6236_v49 }
 0x52c   : > { %v7396_v19 = vpop.f32.mrb[49].mxu0 }
 0x52d   : > { %v7397_v38 = vadd.f32 %v7396_v19, %v7395_v13  ;;  %v7398_v3 = vpop.f32.mrb[50].mxu0 }
 0x52e   : > { %v7399_v46 = vpop.f32.mrb[51].mxu0 }
 0x52f   : > { %v6339_v50 = vadd.f32 %v7397_v38, %v12051_v35  ;;  %v7400_v30 = vadd.f32 %v7399_v46, %v7398_v3 }
 0x531   : > { %v6342_v57 = vadd.f32 %v7400_v30, %v12053_v36  ;;  %v12103_v54 = vadd.f32 %v7437_v15, %v6339_v50 }
 0x533   : > { %v7401_v34 = vpop.f32.mrb[52].mxu0  ;;  %v6442_v6 = vmul.f32 0.70710677, %v12103_v54  ;;  %v12106_v21 = vadd.f32 %v7440_v39, %v6342_v57 }
 0x534   : > { %v7402_v33 = vpop.f32.mrb[53].mxu0 }
 0x535   : > { %v7403_v18 = vadd.f32 %v7402_v33, %v7401_v34  ;;  %v7404_v62 = vpop.f32.mrb[54].mxu0  ;;  %v12109_v59 = vclamps-f32 %v6442_v6, 4.0  ;;  %v6443_v36 = vmul.f32 0.70710677, %v12106_v21 }
 0x536   : > { %v7405_v61 = vpop.f32.mrb[55].mxu0 }
 0x537   : > { %v6347_v53 = vadd.f32 %v7403_v18, %v12060_v9  ;;  %v7406_v20 = vadd.f32 %v7405_v61, %v7404_v62  ;;  %v12117_v26 = vmul.f32 %v12109_v59, %v12109_v59  ;;  %v12122_v9 = vclamps-f32 %v6443_v36, 4.0 }
 0x539   : > { %v6350_v35 = vadd.f32 %v7406_v20, %v12065_v1  ;;  %v12113_v2 = vadd.f32 %v7443_v45, %v6347_v53  ;;  %v6474_v39 = vmul.f32 0.00022905065, %v12117_v26  ;;  %v12137_v58 = vmul.f32 %v12122_v9, %v12122_v9 }
 0x53b   : > { %v7407_v60 = vpop.f32.mrb[56].mxu0  ;;  %v12119_v8 = vadd.f32 %v7446_v55, %v6350_v35  ;;  %v6444_v29 = vmul.f32 0.70710677, %v12113_v2  ;;  %v6482_v63 = vadd.f32 0.003408291, %v6474_v39 }
 0x53c   : > { %v7408_v7 = vpop.f32.mrb[57].mxu0  ;;  %v6475_v48 = vmul.f32 0.00022905065, %v12137_v58  ;;  %v6539_v46 = vmul.f32 -1.1791603e-07, %v12137_v58 }
 0x53d   : > { %v7409_v10 = vadd.f32 %v7408_v7, %v7407_v60  ;;  %v7410_v15 = vpop.f32.mrb[58].mxu0  ;;  %v12124_v0 = vclamps-f32 %v6444_v29, 4.0  ;;  %v6445_v44 = vmul.f32 0.70710677, %v12119_v8  ;;  %v6490_v17 = vmul.f32 %v6482_v63, %v12117_v26 }
 0x53e   : > { %v7411_v1 = vpop.f32.mrb[59].mxu0  ;;  %v6483_v38 = vadd.f32 0.003408291, %v6475_v48  ;;  %v6547_v36 = vadd.f32 2.3547966e-05, %v6539_v46 }
 0x53f   : > { %v6355_v12 = vadd.f32 %v7409_v10, %v12081_v56  ;;  %v7412_v31 = vadd.f32 %v7411_v1, %v7410_v15  ;;  %v12131_v45 = vmul.f32 %v12124_v0, %v12124_v0  ;;  %v12133_v42 = vclamps-f32 %v6445_v44, 4.0 }
 0x540   : > { %v6498_v6 = vadd.f32 0.050955694, %v6490_v17  ;;  %v6491_v53 = vmul.f32 %v6483_v38, %v12137_v58 }
 0x541   : > { %v6358_v55 = vadd.f32 %v7412_v31, %v12083_v43  ;;  %v12140_v40 = vadd.f32 %v7449_v11, %v6355_v12  ;;  %v6476_v24 = vmul.f32 0.00022905065, %v12131_v45  ;;  %v6540_v22 = vmul.f32 -1.1791603e-07, %v12131_v45 }
 0x542   : > { %v12146_v56 = vmul.f32 %v12133_v42, %v12133_v42  ;;  %v6506_v15 = vmul.f32 %v6498_v6, %v12117_v26  ;;  %v6499_v12 = vadd.f32 0.050955694, %v6491_v53 }
 0x543   : > { %v7413_v51 = vpop.f32.mrb[60].mxu0  ;;  %v6548_v5 = vadd.f32 2.3547966e-05, %v6540_v22  ;;  %v12149_v32 = vadd.f32 %v12091_v41, %v6358_v55  ;;  %v6484_v14 = vadd.f32 0.003408291, %v6476_v24 }
 0x544   : > { %v6541_v43 = vmul.f32 -1.1791603e-07, %v12146_v56  ;;  %v7414_v11 = vpop.f32.mrb[61].mxu0  ;;  %v6477_v16 = vmul.f32 0.00022905065, %v12146_v56 }
 0x545   : > { %v6556_v37 = vmul.f32 %v6548_v5, %v12131_v45  ;;  %v7415_v47 = vadd.f32 %v7414_v11, %v7413_v51  ;;  %v7416_v25 = vpop.f32.mrb[62].mxu0  ;;  %v6538_v41 = vmul.f32 -1.1791603e-07, %v12117_v26  ;;  %v6492_v50 = vmul.f32 %v6484_v14, %v12131_v45 }
 0x546   : > { %v6549_v4 = vadd.f32 2.3547966e-05, %v6541_v43  ;;  %v7417_v49 = vpop.f32.mrb[63].mxu0  ;;  %v6485_v57 = vadd.f32 0.003408291, %v6477_v16  ;;  %v12183_v5 = vmul.f32 0.5, %v12113_v2  ;;  %v6507_v14 = vmul.f32 %v6499_v12, %v12137_v58 }
 0x547   : > { %v6564_v13 = vadd.f32 0.0010179626, %v6556_v37  ;;  %v6363_v19 = vadd.f32 %v7415_v47, %v6298_v28  ;;  %v7418_v34 = vadd.f32 %v7417_v49, %v7416_v25  ;;  %v6446_v62 = vmul.f32 0.70710677, %v12140_v40 }
 0x548   : > { %v6557_v3 = vmul.f32 %v6549_v4, %v12146_v56  ;;  %v6546_v61 = vadd.f32 2.3547966e-05, %v6538_v41  ;;  %v6500_v60 = vadd.f32 0.050955694, %v6492_v50  ;;  %v6493_v29 = vmul.f32 %v6485_v57, %v12146_v56 }
 0x549   : > { %v6572_v30 = vmul.f32 %v6564_v13, %v12131_v45  ;;  %v6366_v28 = vadd.f32 %v7418_v34, %v12099_v23  ;;  %v12166_v35 = vadd.f32 %v12093_v52, %v6363_v19  ;;  %v12174_v44 = vclamps-f32 %v6446_v62, 4.0 }
 0x54a   : > { %v6565_v33 = vadd.f32 0.0010179626, %v6557_v3  ;;  %v6447_v39 = vmul.f32 0.70710677, %v12149_v32  ;;  %v6554_v31 = vmul.f32 %v6546_v61, %v12117_v26  ;;  %v6508_v55 = vmul.f32 %v6500_v60, %v12131_v45 }
 0x54b   : > { %v6580_v18 = vadd.f32 0.01407047, %v6572_v30  ;;  %v12171_v10 = vadd.f32 %v12095_v27, %v6366_v28  ;;  %v6501_v22 = vadd.f32 0.050955694, %v6493_v29  ;;  %v6555_v27 = vmul.f32 %v6547_v36, %v12137_v58 }
 0x54c   : > { %v6573_v20 = vmul.f32 %v6565_v33, %v12146_v56  ;;  %v6514_v63 = vadd.f32 0.18520832, %v6506_v15  ;;  %v12187_v43 = vmul.f32 %v12174_v44, %v12174_v44  ;;  %v12189_v11 = vclamps-f32 %v6447_v39, 4.0 }
 0x54d   : > { %v6588_v7 = vmul.f32 %v6580_v18, %v12131_v45  ;;  %v6448_v16 = vmul.f32 0.70710677, %v12166_v35  ;;  %v6562_v47 = vadd.f32 0.0010179626, %v6554_v31  ;;  %v6516_v25 = vadd.f32 0.18520832, %v6508_v55 }
 0x54e   : > { %v6581_v23 = vadd.f32 0.01407047, %v6573_v20  ;;  %v6509_v2 = vmul.f32 %v6501_v22, %v12146_v56  ;;  %v6563_v4 = vadd.f32 0.0010179626, %v6555_v27  ;;  %v6522_v49 = vmul.f32 %v6514_v63, %v12117_v26 }
 0x54f   : > { %v6596_v1 = vadd.f32 0.11098505, %v6588_v7  ;;  %v6449_v19 = vmul.f32 0.70710677, %v12171_v10  ;;  %v6570_v41 = vmul.f32 %v6562_v47, %v12117_v26  ;;  %v6478_v3 = vmul.f32 0.00022905065, %v12187_v43 }
 0x550   : > { %v6589_v52 = vmul.f32 %v6581_v23, %v12146_v56  ;;  %v12202_v46 = vmul.f32 %v12189_v11, %v12189_v11  ;;  %v6571_v50 = vmul.f32 %v6563_v4, %v12137_v58  ;;  %v6515_v30 = vadd.f32 0.18520832, %v6507_v14 }
 0x551   : > { %v6604_v24 = vmul.f32 %v6596_v1, %v12131_v45  ;;  %v12206_v34 = vclamps-f32 %v6448_v16, 4.0  ;;  %v6578_v6 = vadd.f32 0.01407047, %v6570_v41  ;;  %v6524_v33 = vmul.f32 %v6516_v25, %v12131_v45 }
 0x552   : > { %v6597_v51 = vadd.f32 0.11098505, %v6589_v52  ;;  %v6517_v18 = vadd.f32 0.18520832, %v6509_v2  ;;  %v6579_v62 = vadd.f32 0.01407047, %v6571_v50 }
 0x553   : > { %v6612_v48 = vadd.f32 0.49746925, %v6604_v24  ;;  %v12209_v61 = vclamps-f32 %v6449_v19, 4.0  ;;  %v6586_v53 = vmul.f32 %v6578_v6, %v12117_v26  ;;  %v6542_v20 = vmul.f32 -1.1791603e-07, %v12187_v43 }
 0x554   : > { %v6605_v37 = vmul.f32 %v6597_v51, %v12146_v56  ;;  %v6486_v36 = vadd.f32 0.003408291, %v6478_v3  ;;  %v6479_v60 = vmul.f32 0.00022905065, %v12202_v46  ;;  %v6587_v7 = vmul.f32 %v6579_v62, %v12137_v58 }
 0x555   : > { %v6620_v17 = vmul.f32 %v6612_v48, %v12131_v45  ;;  %v6543_v29 = vmul.f32 -1.1791603e-07, %v12202_v46  ;;  %v12218_v45 = vmul.f32 %v12206_v34, %v12206_v34  ;;  %v6594_v15 = vadd.f32 0.11098505, %v6586_v53 }
 0x556   : > { %v6613_v13 = vadd.f32 0.49746925, %v6605_v37  ;;  %v6550_v23 = vadd.f32 2.3547966e-05, %v6542_v20  ;;  %v6532_v1 = vadd.f32 1.1283791, %v6524_v33  ;;  %v6525_v39 = vmul.f32 %v6517_v18, %v12146_v56 }
 0x557   : > { %v6628_v38 = vadd.f32 1.0, %v6620_v17  ;;  %v6595_v12 = vadd.f32 0.11098505, %v6587_v7  ;;  %v6551_v52 = vadd.f32 2.3547966e-05, %v6543_v29  ;;  %v12225_v55 = vmul.f32 %v12209_v61, %v12209_v61 }
 0x558   : > { %v6621_v57 = vmul.f32 %v6613_v13, %v12146_v56  ;;  %v12221_v31 = vadd.f32 1.1283791, %v6522_v49  ;;  %v6602_v24 = vmul.f32 %v6594_v15, %v12117_v26  ;;  %v6558_v22 = vmul.f32 %v6550_v23, %v12187_v43 }
 0x559   : > { %7938 = vrcp.f32 %v6628_v38  ;;  %v6494_v27 = vmul.f32 %v6486_v36, %v12187_v43  ;;  %v6487_v63 = vadd.f32 0.003408291, %v6479_v60  ;;  %v6603_v51 = vmul.f32 %v6595_v12, %v12137_v58 }
 0x55a   : > { %v6629_v28 = vadd.f32 1.0, %v6621_v57  ;;  %v6559_v48 = vmul.f32 %v6551_v52, %v12202_v46  ;;  %v6523_v56 = vmul.f32 %v6515_v30, %v12137_v58  ;;  %v6610_v14 = vadd.f32 0.49746925, %v6602_v24 }
 0x55b   : > { %v6566_v37 = vadd.f32 0.0010179626, %v6558_v22  ;;  %v6544_v16 = vmul.f32 -1.1791603e-07, %v12218_v45  ;;  %v6636_v47 = vmul.f32 %v12124_v0, %v6532_v1  ;;  %v6533_v25 = vadd.f32 1.1283791, %v6525_v39 }
 0x55c   : > { %7940 = vrcp.f32 %v6629_v28  ;;  %v6611_v17 = vadd.f32 0.49746925, %v6603_v51  ;;  %v6567_v2 = vadd.f32 0.0010179626, %v6559_v48  ;;  %v6480_v4 = vmul.f32 0.00022905065, %v12218_v45 }
 0x55d   : > { %v6618_v49 = vmul.f32 %v6610_v14, %v12117_v26  ;;  %v6574_v13 = vmul.f32 %v6566_v37, %v12187_v43  ;;  %v6545_v19 = vmul.f32 -1.1791603e-07, %v12225_v55  ;;  %v6502_v38 = vadd.f32 0.050955694, %v6494_v27 }
 0x55e   : > { %v6495_v3 = vmul.f32 %v6487_v63, %v12202_v46  ;;  %v6619_v50 = vmul.f32 %v6611_v17, %v12137_v58  ;;  %v6575_v30 = vmul.f32 %v6567_v2, %v12202_v46  ;;  %v6552_v33 = vadd.f32 2.3547966e-05, %v6544_v16 }
 0x55f   : > { %v6626_v57 = vadd.f32 1.0, %v6618_v49  ;;  %v6582_v6 = vadd.f32 0.01407047, %v6574_v13  ;;  %v6637_v18 = vmul.f32 %v12133_v42, %v6533_v25  ;;  %v6481_v26 = vmul.f32 0.00022905065, %v12225_v55 }
 0x560   : > { %v6627_v62 = vadd.f32 1.0, %v6619_v50  ;;  %v6583_v28 = vadd.f32 0.01407047, %v6575_v30  ;;  %v6488_v20 = vadd.f32 0.003408291, %v6480_v4  ;;  %v6560_v1 = vmul.f32 %v6552_v33, %v12218_v45 }
 0x561   : > { %7942 = vrcp.f32 %v6626_v57  ;;  %v6590_v36 = vmul.f32 %v6582_v6, %v12187_v43  ;;  %v6553_v60 = vadd.f32 2.3547966e-05, %v6545_v19  ;;  %v6503_v15 = vadd.f32 0.050955694, %v6495_v3 }
 0x562   : > { %7944 = vrcp.f32 %v6627_v62  ;;  %v6591_v29 = vmul.f32 %v6583_v28, %v12202_v46  ;;  %v6437_v39 = vmul.f32 0.5, %v12119_v8  ;;  %v6489_v52 = vadd.f32 0.003408291, %v6481_v26 }
 0x563   : > { %v7939_v41 = vpop.eup %7938  ;;  %v6598_v23 = vadd.f32 0.11098505, %v6590_v36  ;;  %v6561_v42 = vmul.f32 %v6553_v60, %v12225_v55  ;;  %v6531_v22 = vadd.f32 1.1283791, %v6523_v56  ;;  %v6568_v63 = vadd.f32 0.0010179626, %v6560_v1 }
 0x564   : > { %v6652_v0 = vmul.f32 %v7939_v41, %v6636_v47  ;;  %v6599_v24 = vadd.f32 0.11098505, %v6591_v29  ;;  %v6510_v37 = vmul.f32 %v6502_v38, %v12187_v43  ;;  %v6511_v47 = vmul.f32 %v6503_v15, %v12202_v46 }
 0x565   : > { %v6606_v27 = vmul.f32 %v6598_v23, %v12187_v43  ;;  %v6569_v51 = vadd.f32 0.0010179626, %v6561_v42  ;;  %v6576_v8 = vmul.f32 %v6568_v63, %v12218_v45  ;;  %v6496_v56 = vmul.f32 %v6488_v20, %v12218_v45 }
 0x566   : > { %v7941_v53 = vpop.eup %7940  ;;  %v6660_v7 = vadd.f32 1.0, %v6652_v0  ;;  %v6607_v16 = vmul.f32 %v6599_v24, %v12202_v46  ;;  %v6497_v4 = vmul.f32 %v6489_v52, %v12225_v55  ;;  %v6634_v38 = vmul.f32 %v12109_v59, %v12221_v31 }
 0x567   : > { %v6653_v58 = vmul.f32 %v7941_v53, %v6637_v18  ;;  %v6614_v25 = vadd.f32 0.49746925, %v6606_v27  ;;  %v6577_v17 = vmul.f32 %v6569_v51, %v12225_v55  ;;  %v6584_v19 = vadd.f32 0.01407047, %v6576_v8 }
 0x568   : > { %v6668_v48 = vmul.f32 %v6660_v7, %v12183_v5  ;;  %v6615_v49 = vadd.f32 0.49746925, %v6607_v16  ;;  %v6434_v5 = vmul.f32 0.5, %v12103_v54  ;;  %v6635_v3 = vmul.f32 %v12122_v9, %v6531_v22 }
 0x569   : > { %v6661_v12 = vadd.f32 1.0, %v6653_v58  ;;  %v6622_v13 = vmul.f32 %v6614_v25, %v12187_v43  ;;  %v6585_v41 = vadd.f32 0.01407047, %v6577_v17  ;;  %v6518_v50 = vadd.f32 0.18520832, %v6510_v37 }
 0x56a   : > { %v6623_v30 = vmul.f32 %v6615_v49, %v12202_v46  ;;  %v6519_v57 = vadd.f32 0.18520832, %v6511_v47  ;;  %v6592_v33 = vmul.f32 %v6584_v19, %v12218_v45  ;;  %v6504_v26 = vadd.f32 0.050955694, %v6496_v56 }
 0x56b   : > { %v6669_v14 = vmul.f32 %v6661_v12, %v6437_v39  ;;  %v7943_v0 = vpop.eup %7942  ;;  %v6630_v6 = vadd.f32 1.0, %v6622_v13  ;;  %v6593_v18 = vmul.f32 %v6585_v41, %v12225_v55  ;;  %v6505_v62 = vadd.f32 0.050955694, %v6497_v4 }
 0x56c   : > { %v7945_v54 = vpop.eup %7944  ;;  %v6650_v28 = vmul.f32 %v7943_v0, %v6634_v38  ;;  %v6631_v53 = vadd.f32 1.0, %v6623_v30  ;;  %v6600_v59 = vadd.f32 0.11098505, %v6592_v33  ;;  %v6435_v9 = vmul.f32 0.5, %v12106_v21 }
 0x56d   : > { %v6675_v2 = vpack.c.bf16 %v6669_v14, %v6668_v48  ;;  %v6651_v20 = vmul.f32 %v7945_v54, %v6635_v3  ;;  %7946 = vrcp.f32 %v6630_v6  ;;  %v6601_v31 = vadd.f32 0.11098505, %v6593_v18 }
 0x56e   : > { %v6526_v36 = vmul.f32 %v6518_v50, %v12187_v43  ;;  %v6658_v60 = vadd.f32 1.0, %v6650_v28  ;;  %7948 = vrcp.f32 %v6631_v53  ;;  %v6527_v7 = vmul.f32 %v6519_v57, %v12202_v46 }
 0x56f   : > { %v6659_v58 = vadd.f32 1.0, %v6651_v20  ;;  %v6608_v29 = vmul.f32 %v6600_v59, %v12218_v45  ;;  %v6609_v15 = vmul.f32 %v6601_v31, %v12225_v55  ;;  %v6512_v23 = vmul.f32 %v6504_v26, %v12218_v45 }
 0x570   : > { %v6513_v1 = vmul.f32 %v6505_v62, %v12225_v55  ;;  %v6666_v42 = vmul.f32 %v6658_v60, %v6434_v5  ;;  %v6534_v21 = vadd.f32 1.1283791, %v6526_v36  ;;  %v6535_v24 = vadd.f32 1.1283791, %v6527_v7 }
 0x571   : > { %v6667_v39 = vmul.f32 %v6659_v58, %v6435_v9  ;;  %v6616_v12 = vadd.f32 0.49746925, %v6608_v29  ;;  %v6617_v52 = vadd.f32 0.49746925, %v6609_v15  ;;  %v6520_v27 = vadd.f32 0.18520832, %v6512_v23 }
 0x572   : > { %v6521_v63 = vadd.f32 0.18520832, %v6513_v1  ;;  %v6638_v14 = vmul.f32 %v12174_v44, %v6534_v21  ;;  %v6639_v16 = vmul.f32 %v12189_v11, %v6535_v24  ;;  %v6438_v49 = vmul.f32 0.5, %v12140_v40 }
 0x573   : > { %v6674_v43 = vpack.c.bf16 %v6667_v39, %v6666_v42  ;;  %v6624_v22 = vmul.f32 %v6616_v12, %v12218_v45  ;;  %v6625_v46 = vmul.f32 %v6617_v52, %v12225_v55  ;;  %v6528_v25 = vmul.f32 %v6520_v27, %v12218_v45 }
 0x574   : > { %v6529_v17 = vmul.f32 %v6521_v63, %v12225_v55  ;;  %v6439_v5 = vmul.f32 0.5, %v12149_v32  ;;  %v6440_v32 = vmul.f32 0.5, %v12166_v35  ;;  %v6441_v0 = vmul.f32 0.5, %v12171_v10 }
 0x575   : > { %7487 = vmatprep.mubr.bf16.mxu0 %v6674_v43  ;;  %v6632_v51 = vadd.f32 1.0, %v6624_v22  ;;  %v6633_v48 = vadd.f32 1.0, %v6625_v46  ;;  %v6536_v44 = vadd.f32 1.1283791, %v6528_v25 }
 0x576   : > { %7488 = vmatmul.mubr.bf16.vlgmr.msra.gmra.mrb[64].mxu0 %v6675_v2  ;;  %v6537_v2 = vadd.f32 1.1283791, %v6529_v17 }
 0x577   : > { %v7947_v37 = vpop.eup %7946  ;;  %7950 = vrcp.f32 %v6632_v51  ;;  %v6640_v38 = vmul.f32 %v12206_v34, %v6536_v44  ;;  %v7284_v34 = vld [vmem:[%s12351_s9] ss:$0 sm:$0xff] }
 0x578   : > { %v7949_v47 = vpop.eup %7948  ;;  %v6654_v8 = vmul.f32 %v7947_v37, %v6638_v14  ;;  %7952 = vrcp.f32 %v6633_v48  ;;  %v6641_v3 = vmul.f32 %v12209_v61, %v6537_v2 }
 0x579   : > { %v6655_v56 = vmul.f32 %v7949_v47, %v6639_v16 }
 0x57a   : > { %v6662_v4 = vadd.f32 1.0, %v6654_v8 }
 0x57b   : > { %v6663_v13 = vadd.f32 1.0, %v6655_v56 }
 0x57c   : > { %v6670_v19 = vmul.f32 %v6662_v4, %v6438_v49 }
 0x57d   : > { %v6671_v41 = vmul.f32 %v6663_v13, %v6439_v5 }
 0x57f   : > { %v6676_v11 = vpack.c.bf16 %v6671_v41, %v6670_v19 }
 0x581   : > { %v7951_v45 = vpop.eup %7950  ;;  %7491 = vmatprep.mubr.bf16.mxu0 %v6676_v11 }
 0x582   : > { %v7953_v55 = vpop.eup %7952  ;;  %v6656_v50 = vmul.f32 %v7951_v45, %v6640_v38 }
 0x583   : > { %v6657_v30 = vmul.f32 %v7953_v55, %v6641_v3 }
 0x584   : > { %v6664_v40 = vadd.f32 1.0, %v6656_v50 }
 0x585   : > { %v6665_v57 = vadd.f32 1.0, %v6657_v30 }
 0x586   : > { %v6672_v6 = vmul.f32 %v6664_v40, %v6440_v32 }
 0x587   : > { %v6673_v33 = vmul.f32 %v6665_v57, %v6441_v0 }
 0x589   : > { %v6677_v18 = vpack.c.bf16 %v6673_v33, %v6672_v6 }
 0x58b   : > { %7492 = vmatmul.mubr.bf16.gmra.mrb[68].mxu0 %v6677_v18 }
 0x649   : > { %v7489_v61 = vpop.f32.mrb[64].mxu0 }
 0x64a   : > { %v6792_v54 = vadd.f32 %v7489_v61, %v7284_v34  ;;  %v6783_v26 = vpop.f32.mrb[65].mxu0 }
 0x64b   : > { %v6784_v62 = vadd.f32 %v7284_v34, %v6783_v26  ;;  %v7490_v35 = vpop.f32.mrb[66].mxu0 }
 0x64c   : > { %6816 = vst [vmem:[%s369_s27 + $0x10] sm:$0xff] %v6792_v54  ;;  %v6795_v10 = vadd.f32 %v7490_v35, %v7284_v34  ;;  %v6786_v28 = vpop.f32.mrb[67].mxu0 }
 0x64d   : > { %6814 = vst [vmem:[%s369_s27] sm:$0xff] %v6784_v62  ;;  %v6787_v53 = vadd.f32 %v7284_v34, %v6786_v28 }
 0x64e   : > { %6817 = vst [vmem:[%s369_s27 + $0x18] sm:$0xff] %v6795_v10 }
 0x64f   : > { %6815 = vst [vmem:[%s369_s27 + $0x8] sm:$0xff] %v6787_v53 }
 0x65e   : > { %v7493_v20 = vpop.f32.mrb[68].mxu0 }
 0x65f   : > { %v6808_v59 = vadd.f32 %v7493_v20, %v7284_v34  ;;  %v6799_v31 = vpop.f32.mrb[69].mxu0 }
 0x660   : > { %v6800_v9 = vadd.f32 %v7284_v34, %v6799_v31  ;;  %v7494_v36 = vpop.f32.mrb[70].mxu0 }
 0x661   : > { %6820 = vst [vmem:[%s369_s27 + $0x30] sm:$0xff] %v6808_v59  ;;  %v6811_v60 = vadd.f32 %v7494_v36, %v7284_v34  ;;  %v6802_v7 = vpop.f32.mrb[71].mxu0 }
 0x662   : > { %6818 = vst [vmem:[%s369_s27 + $0x20] sm:$0xff] %v6800_v9  ;;  %v6803_v58 = vadd.f32 %v7284_v34, %v6802_v7 }
 0x663   : > { %6821 = vst [vmem:[%s369_s27 + $0x38] sm:$0xff] %v6811_v60 }
 0x664   : > { %6819 = vst [vmem:[%s369_s27 + $0x28] sm:$0xff] %v6803_v58 }
 0x665   : > { %8033 = shalt.err (!%p8030_p4)
}
 0x666   : > { %s8034_s12 = scalar_lea.hbm %s12295_s29, 1024  ;;  %s8038_s18 = scalar_lea.hbm %s12352_s10, 4096 }
 0x667   : > { %p8035_p7 = scmp.ne.s32.totalorder %s12295_s29, %s8034_s12  ;;  %p8039_p10 = scmp.lt.u32.totalorder %s12295_s29, %s12352_s10 }
 0x668   : > { %p8040_p11 = scmp.lt.u32.totalorder %s8038_s18, %s8034_s12  ;;  %p8042_p13 = scmp.lt.u32.totalorder %s8034_s12, %s12295_s29 }
 0x669   : > { %p8036_p8 = pnand %p8035_p7, %p8182_p5 }
 0x66a   : > { %p8041_p12 = por %p8040_p11, %p8039_p10 }
 0x66b   : > { %p8037_p9 = pneg %p8036_p8 }
 0x66c   : > { %p8043_p0 = por %p8042_p13, %p8041_p12 }
 0x66e   : > { %p8044_p1 = pnand %p8043_p0, %p8037_p9 }
 0x670   : > { %8047 = shalt.err (!%p8044_p1)
}
 0x671   : > { %s8087_s21 = smov 128   ;;  %s8088_s11 = smov 8  }
 0x672   : > { %7627 = dma.vmem_to_hbm [thread:$0]  (%p8182_p5), %s12297_s30, 1024, %s12295_s29, %s12301_s17, %s8087_s21, %s8087_s21, %s8088_s11  }
 0x673 PF: > { %p7633_p2 = scmp.ge.s32.totalorder %s8082_s16, 2  ;;  %s6851_s26 = sand.u32 1, %s8070_s13  }
 0x674   : > { %s6852_s12 = scalar_lea.sflag [#allocation3], %s6851_s26 }
 0x675   : > { %p7630_p3 = pnand %p7633_p2, %p8186_p6 }
 0x677   : > { %8065 = dma.done.wait (!%p7630_p3), %s6852_s12, 1024  }
 0x678   : > { %8067 = vsyncadd (!%p7630_p3), %s6852_s12, 4294966272  ;;  %p20_p4 = scmp.ge.s32.totalorder %s8169_s19, 6   ;;  %s12523_s13 = smov %s8074_s14 }
 0x679   : > { %s12524_s14 = smov %s8078_s15  ;;  %s12525_s15 = smov %s8180_s22 }
 0x67a   : > { %s12526_s16 = smov %s8169_s19  ;;  %22 = sbr.rel (!%p20_p4) target bundleno = 3 (0x3), region = 98 }
 0x681   :  { %6857 = vsyncpa [#allocation3], 1 }
 0x682   :  { %6859 = vsyncpa [#allocation3 + $0x1], 1 }

</bundles_post_ra>
